<compile_context>
chip_gen: v6e
topology: v6e:2x2x1
jax: 0.10.0
libtpu: 0.0.40
codegen_flags: <defaults>
</compile_context>

<pallas_src>
import math

import jax
import jax.numpy as jnp
import numpy as np
from jax.experimental import pallas as pl
from jax.experimental.pallas import tpu as pltpu


# ---------------------------------------------------------------------------
# Host-side constant construction (numpy)
# ---------------------------------------------------------------------------
def bilinear_matrix(n_in, n_out):
    """1-D interpolation matrix matching nn.UpsamplingBilinear2d (align_corners=True)."""
    if n_in == 1:
        return np.ones((n_out, 1), np.float32)
    scale = (n_in - 1) / (n_out - 1)
    src = np.arange(n_out, dtype=np.float64) * scale
    lo = np.clip(np.floor(src).astype(np.int64), 0, n_in - 2)
    frac = (src - lo).astype(np.float32)
    m = np.zeros((n_out, n_in), dtype=np.float32)
    m[np.arange(n_out), lo] = 1.0 - frac
    m[np.arange(n_out), lo + 1] += frac
    return m


def kron_upsample_t(s):
    """Transposed 2-D bilinear 2x upsample operator: (S*S, 4*S*S).

    For channels-major flattened activations x2d (C, S*S):
        x2d @ kron_upsample_t(S)  ==  bilinear 2x upsample (align_corners=True).
    """
    u = bilinear_matrix(s, 2 * s)                       # (2S, S)
    return np.kron(u, u).T.astype(np.float32)           # (S*S, 4*S*S)


# ---------------------------------------------------------------------------
# In-kernel building blocks (value-level, traced inside the fused kernel)
# ---------------------------------------------------------------------------
def _conv3x3_bn_relu(x3d, wmat, bias_col):
    """3x3 conv (stride 1, pad 1, no conv bias) with BN scale folded into wmat, + ReLU.

    x3d      : (Cin, H, W)    f32 activation (channels-major)
    wmat     : (Cout, 9*Cin)  folded weights: wmat[o, (ky*3+kx)*Cin + c] = w[ky,kx,c,o]*bn_scale[o]
    bias_col : (Cout, 1)      folded BN bias: beta - mean*scale
    returns  : (Cout, H*W)    f32, lane-dense
    """
    cin, h, w = x3d.shape
    # Zero-pad spatially by 1 via concatenation — stays entirely in VMEM/vregs.
    zc = jnp.zeros((cin, h, 1), jnp.float32)
    xw = jnp.concatenate([zc, x3d, zc], axis=2)          # (Cin, H, W+2)
    zr = jnp.zeros((cin, 1, w + 2), jnp.float32)
    xp = jnp.concatenate([zr, xw, zr], axis=1)           # (Cin, H+2, W+2)
    # im2col: one (Cout, 9*Cin) @ (9*Cin, H*W) MXU matmul instead of 9 tiny ones.
    taps = []
    for ky in range(3):
        for kx in range(3):
            taps.append(xp[:, ky:ky + h, kx:kx + w].reshape(cin, h * w))
    patches = jnp.concatenate(taps, axis=0)              # (9*Cin, H*W)
    y = jnp.dot(wmat, patches, preferred_element_type=jnp.float32) + bias_col
    return jnp.maximum(y, 0.0)                           # ReLU (BatchNorm2d branch)


def _make_decoder_kernel(structure, kron_sizes, out_channels):
    """Build the fused decoder kernel for a static branch structure.

    structure  : list of (input_spatial, num_layers, has_upsample) per branch
    kron_sizes : sorted list of source spatial sizes needing a 2x upsample matrix
    """
    n_br = len(structure)
    n_layers_total = sum(nl for _, nl, _ in structure)

    def kernel(*refs):
        feat_refs = refs[:n_br]
        wb_refs = refs[n_br:n_br + 2 * n_layers_total]
        kt_refs = refs[n_br + 2 * n_layers_total:
                       n_br + 2 * n_layers_total + len(kron_sizes)]
        out_ref = refs[-1]
        kt_by_size = dict(zip(kron_sizes, kt_refs))

        acc = None
        li = 0
        for bidx, (s0, n_layers, do_up) in enumerate(structure):
            x3d = feat_refs[bidx][0].astype(jnp.float32)     # (Cin, S, S)
            s = s0
            y2d = None
            for lidx in range(n_layers):
                wmat = wb_refs[2 * li][...]                  # (Cout, 9*Cin)
                bias = wb_refs[2 * li + 1][...]              # (Cout, 1)
                li += 1
                y2d = _conv3x3_bn_relu(x3d, wmat, bias)      # (Cout, S*S)
                if do_up:
                    # bilinear 2x upsample as one lane-dense matmul.
                    y2d = jnp.dot(y2d, kt_by_size[s][...],
                                  preferred_element_type=jnp.float32)  # (Cout, (2S)^2)
                    s = 2 * s
                if lidx + 1 < n_layers:
                    x3d = y2d.reshape(out_channels, s, s)
            acc = y2d if acc is None else acc + y2d
        # out_feat = sum(inner_feat_list) / len(inner_feat_list)
        out_ref[0] = (acc * (1.0 / n_br)).astype(out_ref.dtype)

    return kernel


# ---------------------------------------------------------------------------
# Wrapper: single fused pallas_call over the whole decoder
# ---------------------------------------------------------------------------
def asymmetric_decoder_forward(feat_list_nchw, branches, out_channels):
    n_br = len(feat_list_nchw)
    n = feat_list_nchw[0].shape[0]
    dtype = feat_list_nchw[0].dtype

    # Static per-branch structure.
    structure = []
    kron_sizes = set()
    for f, layers in zip(feat_list_nchw, branches):
        s0 = int(f.shape[2])
        n_layers = len(layers)
        do_up = bool(layers[0]["upsample"])
        structure.append((s0, n_layers, do_up))
        if do_up:
            for l in range(n_layers):
                kron_sizes.add(s0 * (2 ** l))
    kron_sizes = sorted(kron_sizes)
    kron_t = {s: jnp.asarray(kron_upsample_t(s)) for s in kron_sizes}

    out_sizes = [s0 * ((2 ** nl) if up else 1) for (s0, nl, up) in structure]
    out_size = out_sizes[0]
    assert all(s == out_size for s in out_sizes)

    # Inputs: 4 feature maps (per-batch blocks) + per-layer folded weights/biases +
    # the 2x-upsample matrices (full-array resident blocks).
    inputs, in_specs = [], []
    for f in feat_list_nchw:
        inputs.append(f)
        in_specs.append(pl.BlockSpec((1,) + f.shape[1:], lambda i: (i, 0, 0, 0)))
    for layers in branches:
        for layer in layers:
            inputs.append(layer["wmat"])
            in_specs.append(pl.BlockSpec(layer["wmat"].shape, lambda i: (0, 0)))
            inputs.append(layer["bias_col"])
            in_specs.append(pl.BlockSpec(layer["bias_col"].shape, lambda i: (0, 0)))
    for s in kron_sizes:
        inputs.append(kron_t[s])
        in_specs.append(pl.BlockSpec(kron_t[s].shape, lambda i: (0, 0)))

    kernel = _make_decoder_kernel(structure, kron_sizes, out_channels)

    out2d = pl.pallas_call(
        kernel,
        out_shape=jax.ShapeDtypeStruct((n, out_channels, out_size * out_size), dtype),
        grid=(n,),
        in_specs=in_specs,
        out_specs=pl.BlockSpec((1, out_channels, out_size * out_size),
                               lambda i: (i, 0, 0)),
        compiler_params=pltpu.CompilerParams(dimension_semantics=("parallel",)),
    )(*inputs)
    # Free row-major reshape back to NCHW.
    return out2d.reshape(n, out_channels, out_size, out_size)


# ---------------------------------------------------------------------------
# Parameter construction (inference-mode BN folded; scale folded into weights)
# ---------------------------------------------------------------------------
def build_params(key, in_channels, out_channels,
                 in_feat_output_strides=(4, 8, 16, 32), out_feat_output_stride=4):
    eps = 1e-5
    branches = []
    for in_feat_os in in_feat_output_strides:
        num_up = int(math.log2(int(in_feat_os))) - int(math.log2(int(out_feat_output_stride)))
        num_layers = num_up if num_up != 0 else 1
        layers = []
        for idx in range(num_layers):
            cin = in_channels if idx == 0 else out_channels
            key, kw, kg, kb, km, kv = jax.random.split(key, 6)
            w = 0.2 * jax.random.normal(kw, (3, 3, cin, out_channels), jnp.float32)  # HWIO
            gamma = 1.0 + 0.1 * jax.random.normal(kg, (out_channels,), jnp.float32)
            beta = 0.1 * jax.random.normal(kb, (out_channels,), jnp.float32)
            rmean = 0.1 * jax.random.normal(km, (out_channels,), jnp.float32)
            rvar = 1.0 + 0.1 * jax.random.uniform(kv, (out_channels,), jnp.float32)
            scale = gamma / jnp.sqrt(rvar + eps)          # fold inference BN
            bias = beta - rmean * scale
            # Fold BN scale into the conv weights (conv is linear -> exact).
            wf = w * scale[None, None, None, :]
            wmat = jnp.transpose(wf, (3, 0, 1, 2)).reshape(out_channels, 9 * cin)
            layers.append(dict(w=w, scale=scale, bias=bias,
                               wmat=wmat, bias_col=bias.reshape(out_channels, 1),
                               upsample=(num_up != 0), cin=cin))
        branches.append(layers)
    return branches, key


# ---------------------------------------------------------------------------
# Pure-JAX reference (lax conv + affine + kron upsample) for verification
# ---------------------------------------------------------------------------
def reference_forward(feat_list_nchw, branches):
    inner = []
    for x, layers in zip(feat_list_nchw, branches):
        for layer in layers:
            y = jax.lax.conv_general_dilated(
                x, layer["w"], window_strides=(1, 1), padding=((1, 1), (1, 1)),
                dimension_numbers=("NCHW", "HWIO", "NCHW"))
            y = y * layer["scale"].reshape(1, -1, 1, 1) + layer["bias"].reshape(1, -1, 1, 1)
            x = jnp.maximum(y, 0.0)
            if layer["upsample"]:
                nb, c, s, _ = x.shape
                kt = jnp.asarray(kron_upsample_t(s))
                x = jnp.einsum("ncs,st->nct", x.reshape(nb, c, s * s),
                               kt).reshape(nb, c, 2 * s, 2 * s)
        inner.append(x)
    return sum(inner) / len(inner)


if __name__ == "__main__":
    in_channels, out_channels = 4, 8
    batch = 2
    base = 16                      # spatial size at output stride 4
    strides = (4, 8, 16, 32)

    key = jax.random.PRNGKey(0)
    branches, key = build_params(key, in_channels, out_channels, strides, 4)

    # PyTorch-style NCHW inputs, one per feature stride.
    feats = []
    for os_ in strides:
        key, k = jax.random.split(key)
        s = base * 4 // os_
        feats.append(jax.random.normal(k, (batch, in_channels, s, s), jnp.float32))

    out = asymmetric_decoder_forward(feats, branches, out_channels)
    jax.block_until_ready(out)

    ref = reference_forward(feats, branches)
    np.testing.assert_allclose(np.asarray(out), np.asarray(ref), rtol=1e-3, atol=1e-3)
    assert out.shape == (batch, out_channels, base, base)

    print("KERNEL_OK")
</pallas_src>

<mosaic_0001>
module attributes {stable_mosaic.version = 11 : i64} {
  func.func @kernel(%arg0: i32, %arg1: memref<1x4x16x16xf32, #tpu.memory_space<vmem>>, %arg2: memref<1x4x8x8xf32, #tpu.memory_space<vmem>>, %arg3: memref<1x4x4x4xf32, #tpu.memory_space<vmem>>, %arg4: memref<1x4x2x2xf32, #tpu.memory_space<vmem>>, %arg5: memref<8x36xf32, #tpu.memory_space<vmem>>, %arg6: memref<8x1xf32, #tpu.memory_space<vmem>>, %arg7: memref<8x36xf32, #tpu.memory_space<vmem>>, %arg8: memref<8x1xf32, #tpu.memory_space<vmem>>, %arg9: memref<8x36xf32, #tpu.memory_space<vmem>>, %arg10: memref<8x1xf32, #tpu.memory_space<vmem>>, %arg11: memref<8x72xf32, #tpu.memory_space<vmem>>, %arg12: memref<8x1xf32, #tpu.memory_space<vmem>>, %arg13: memref<8x36xf32, #tpu.memory_space<vmem>>, %arg14: memref<8x1xf32, #tpu.memory_space<vmem>>, %arg15: memref<8x72xf32, #tpu.memory_space<vmem>>, %arg16: memref<8x1xf32, #tpu.memory_space<vmem>>, %arg17: memref<8x72xf32, #tpu.memory_space<vmem>>, %arg18: memref<8x1xf32, #tpu.memory_space<vmem>>, %arg19: memref<4x16xf32, #tpu.memory_space<vmem>>, %arg20: memref<16x64xf32, #tpu.memory_space<vmem>>, %arg21: memref<64x256xf32, #tpu.memory_space<vmem>>, %arg22: memref<1x8x256xf32, #tpu.memory_space<vmem>>) attributes {dimension_semantics = [#tpu.dimension_semantics<parallel>], iteration_bounds = array<i64: 2>, scalar_prefetch = 0 : i64, scratch_operands = 0 : i64, tpu.core_type = #tpu.core_type<tc>, window_params = [{transform_indices = @transform_0, window_bounds = array<i64: 1, 4, 16, 16>}, {transform_indices = @transform_1, window_bounds = array<i64: 1, 4, 8, 8>}, {transform_indices = @transform_2, window_bounds = array<i64: 1, 4, 4, 4>}, {transform_indices = @transform_3, window_bounds = array<i64: 1, 4, 2, 2>}, {pipeline_mode = #tpu.pipeline_mode<synchronous>, transform_indices = @transform_4, window_bounds = array<i64: 8, 36>}, {pipeline_mode = #tpu.pipeline_mode<synchronous>, transform_indices = @transform_5, window_bounds = array<i64: 8, 1>}, {pipeline_mode = #tpu.pipeline_mode<synchronous>, transform_indices = @transform_6, window_bounds = array<i64: 8, 36>}, {pipeline_mode = #tpu.pipeline_mode<synchronous>, transform_indices = @transform_7, window_bounds = array<i64: 8, 1>}, {pipeline_mode = #tpu.pipeline_mode<synchronous>, transform_indices = @transform_8, window_bounds = array<i64: 8, 36>}, {pipeline_mode = #tpu.pipeline_mode<synchronous>, transform_indices = @transform_9, window_bounds = array<i64: 8, 1>}, {pipeline_mode = #tpu.pipeline_mode<synchronous>, transform_indices = @transform_10, window_bounds = array<i64: 8, 72>}, {pipeline_mode = #tpu.pipeline_mode<synchronous>, transform_indices = @transform_11, window_bounds = array<i64: 8, 1>}, {pipeline_mode = #tpu.pipeline_mode<synchronous>, transform_indices = @transform_12, window_bounds = array<i64: 8, 36>}, {pipeline_mode = #tpu.pipeline_mode<synchronous>, transform_indices = @transform_13, window_bounds = array<i64: 8, 1>}, {pipeline_mode = #tpu.pipeline_mode<synchronous>, transform_indices = @transform_14, window_bounds = array<i64: 8, 72>}, {pipeline_mode = #tpu.pipeline_mode<synchronous>, transform_indices = @transform_15, window_bounds = array<i64: 8, 1>}, {pipeline_mode = #tpu.pipeline_mode<synchronous>, transform_indices = @transform_16, window_bounds = array<i64: 8, 72>}, {pipeline_mode = #tpu.pipeline_mode<synchronous>, transform_indices = @transform_17, window_bounds = array<i64: 8, 1>}, {pipeline_mode = #tpu.pipeline_mode<synchronous>, transform_indices = @transform_18, window_bounds = array<i64: 4, 16>}, {pipeline_mode = #tpu.pipeline_mode<synchronous>, transform_indices = @transform_19, window_bounds = array<i64: 16, 64>}, {pipeline_mode = #tpu.pipeline_mode<synchronous>, transform_indices = @transform_20, window_bounds = array<i64: 64, 256>}, {transform_indices = @transform_21, window_bounds = array<i64: 1, 8, 256>}]} {
    %c0 = arith.constant 0 : index
    %c0_0 = arith.constant 0 : index
    %c0_1 = arith.constant 0 : index
    %c0_2 = arith.constant 0 : index
    %0 = vector.load %arg1[%c0, %c0_0, %c0_1, %c0_2] : memref<1x4x16x16xf32, #tpu.memory_space<vmem>>, vector<1x4x16x16xf32>
    %1 = vector.shape_cast %0 : vector<1x4x16x16xf32> to vector<4x16x16xf32>
    %c0_3 = arith.constant 0 : index
    %c0_4 = arith.constant 0 : index
    %2 = vector.load %arg5[%c0_3, %c0_4] : memref<8x36xf32, #tpu.memory_space<vmem>>, vector<8x36xf32>
    %c0_5 = arith.constant 0 : index
    %c0_6 = arith.constant 0 : index
    %3 = vector.load %arg6[%c0_5, %c0_6] : memref<8x1xf32, #tpu.memory_space<vmem>>, vector<8x1xf32>
    %cst = arith.constant 0.000000e+00 : f32
    %4 = vector.broadcast %cst : f32 to vector<4x16x1xf32>
    %5 = tpu.concatenate %4, %1, %4 in 2 : vector<4x16x1xf32>, vector<4x16x16xf32>, vector<4x16x1xf32> -> vector<4x16x18xf32>
    %cst_7 = arith.constant 0.000000e+00 : f32
    %6 = vector.broadcast %cst_7 : f32 to vector<4x1x18xf32>
    %7 = tpu.concatenate %6, %5, %6 in 1 : vector<4x1x18xf32>, vector<4x16x18xf32>, vector<4x1x18xf32> -> vector<4x18x18xf32>
    %8 = vector.extract_strided_slice %7 {offsets = [0, 0, 0], sizes = [4, 16, 16], strides = [1, 1, 1]} : vector<4x18x18xf32> to vector<4x16x16xf32>
    %9 = vector.shape_cast %8 : vector<4x16x16xf32> to vector<4x256xf32>
    %10 = vector.extract_strided_slice %7 {offsets = [0, 0, 1], sizes = [4, 16, 16], strides = [1, 1, 1]} : vector<4x18x18xf32> to vector<4x16x16xf32>
    %11 = vector.shape_cast %10 : vector<4x16x16xf32> to vector<4x256xf32>
    %12 = vector.extract_strided_slice %7 {offsets = [0, 0, 2], sizes = [4, 16, 16], strides = [1, 1, 1]} : vector<4x18x18xf32> to vector<4x16x16xf32>
    %13 = vector.shape_cast %12 : vector<4x16x16xf32> to vector<4x256xf32>
    %14 = vector.extract_strided_slice %7 {offsets = [0, 1, 0], sizes = [4, 16, 16], strides = [1, 1, 1]} : vector<4x18x18xf32> to vector<4x16x16xf32>
    %15 = vector.shape_cast %14 : vector<4x16x16xf32> to vector<4x256xf32>
    %16 = vector.extract_strided_slice %7 {offsets = [0, 1, 1], sizes = [4, 16, 16], strides = [1, 1, 1]} : vector<4x18x18xf32> to vector<4x16x16xf32>
    %17 = vector.shape_cast %16 : vector<4x16x16xf32> to vector<4x256xf32>
    %18 = vector.extract_strided_slice %7 {offsets = [0, 1, 2], sizes = [4, 16, 16], strides = [1, 1, 1]} : vector<4x18x18xf32> to vector<4x16x16xf32>
    %19 = vector.shape_cast %18 : vector<4x16x16xf32> to vector<4x256xf32>
    %20 = vector.extract_strided_slice %7 {offsets = [0, 2, 0], sizes = [4, 16, 16], strides = [1, 1, 1]} : vector<4x18x18xf32> to vector<4x16x16xf32>
    %21 = vector.shape_cast %20 : vector<4x16x16xf32> to vector<4x256xf32>
    %22 = vector.extract_strided_slice %7 {offsets = [0, 2, 1], sizes = [4, 16, 16], strides = [1, 1, 1]} : vector<4x18x18xf32> to vector<4x16x16xf32>
    %23 = vector.shape_cast %22 : vector<4x16x16xf32> to vector<4x256xf32>
    %24 = vector.extract_strided_slice %7 {offsets = [0, 2, 2], sizes = [4, 16, 16], strides = [1, 1, 1]} : vector<4x18x18xf32> to vector<4x16x16xf32>
    %25 = vector.shape_cast %24 : vector<4x16x16xf32> to vector<4x256xf32>
    %26 = tpu.concatenate %9, %11, %13, %15, %17, %19, %21, %23, %25 in 0 : vector<4x256xf32>, vector<4x256xf32>, vector<4x256xf32>, vector<4x256xf32>, vector<4x256xf32>, vector<4x256xf32>, vector<4x256xf32>, vector<4x256xf32>, vector<4x256xf32> -> vector<36x256xf32>
    %cst_8 = arith.constant dense<0.000000e+00> : vector<8x256xf32>
    %27 = tpu.matmul %2, %26, %cst_8 {dimension_numbers = #tpu.dot_dimension_numbers<[1], [0], [0], [1], [0, 0, 1, 1], [], []>} : vector<8x36xf32>, vector<36x256xf32>, vector<8x256xf32> -> vector<8x256xf32>
    %28 = vector.broadcast %3 : vector<8x1xf32> to vector<8x256xf32>
    %29 = arith.addf %27, %28 : vector<8x256xf32>
    %cst_9 = arith.constant 0.000000e+00 : f32
    %30 = vector.broadcast %cst_9 : f32 to vector<8x256xf32>
    %31 = arith.maximumf %29, %30 : vector<8x256xf32>
    %c0_10 = arith.constant 0 : index
    %c0_11 = arith.constant 0 : index
    %c0_12 = arith.constant 0 : index
    %c0_13 = arith.constant 0 : index
    %32 = vector.load %arg2[%c0_10, %c0_11, %c0_12, %c0_13] : memref<1x4x8x8xf32, #tpu.memory_space<vmem>>, vector<1x4x8x8xf32>
    %33 = vector.shape_cast %32 : vector<1x4x8x8xf32> to vector<4x8x8xf32>
    %c0_14 = arith.constant 0 : index
    %c0_15 = arith.constant 0 : index
    %34 = vector.load %arg7[%c0_14, %c0_15] : memref<8x36xf32, #tpu.memory_space<vmem>>, vector<8x36xf32>
    %c0_16 = arith.constant 0 : index
    %c0_17 = arith.constant 0 : index
    %35 = vector.load %arg8[%c0_16, %c0_17] : memref<8x1xf32, #tpu.memory_space<vmem>>, vector<8x1xf32>
    %cst_18 = arith.constant 0.000000e+00 : f32
    %36 = vector.broadcast %cst_18 : f32 to vector<4x8x1xf32>
    %37 = tpu.concatenate %36, %33, %36 in 2 : vector<4x8x1xf32>, vector<4x8x8xf32>, vector<4x8x1xf32> -> vector<4x8x10xf32>
    %cst_19 = arith.constant 0.000000e+00 : f32
    %38 = vector.broadcast %cst_19 : f32 to vector<4x1x10xf32>
    %39 = tpu.concatenate %38, %37, %38 in 1 : vector<4x1x10xf32>, vector<4x8x10xf32>, vector<4x1x10xf32> -> vector<4x10x10xf32>
    %40 = vector.extract_strided_slice %39 {offsets = [0, 0, 0], sizes = [4, 8, 8], strides = [1, 1, 1]} : vector<4x10x10xf32> to vector<4x8x8xf32>
    %41 = vector.shape_cast %40 : vector<4x8x8xf32> to vector<4x64xf32>
    %42 = vector.extract_strided_slice %39 {offsets = [0, 0, 1], sizes = [4, 8, 8], strides = [1, 1, 1]} : vector<4x10x10xf32> to vector<4x8x8xf32>
    %43 = vector.shape_cast %42 : vector<4x8x8xf32> to vector<4x64xf32>
    %44 = vector.extract_strided_slice %39 {offsets = [0, 0, 2], sizes = [4, 8, 8], strides = [1, 1, 1]} : vector<4x10x10xf32> to vector<4x8x8xf32>
    %45 = vector.shape_cast %44 : vector<4x8x8xf32> to vector<4x64xf32>
    %46 = vector.extract_strided_slice %39 {offsets = [0, 1, 0], sizes = [4, 8, 8], strides = [1, 1, 1]} : vector<4x10x10xf32> to vector<4x8x8xf32>
    %47 = vector.shape_cast %46 : vector<4x8x8xf32> to vector<4x64xf32>
    %48 = vector.extract_strided_slice %39 {offsets = [0, 1, 1], sizes = [4, 8, 8], strides = [1, 1, 1]} : vector<4x10x10xf32> to vector<4x8x8xf32>
    %49 = vector.shape_cast %48 : vector<4x8x8xf32> to vector<4x64xf32>
    %50 = vector.extract_strided_slice %39 {offsets = [0, 1, 2], sizes = [4, 8, 8], strides = [1, 1, 1]} : vector<4x10x10xf32> to vector<4x8x8xf32>
    %51 = vector.shape_cast %50 : vector<4x8x8xf32> to vector<4x64xf32>
    %52 = vector.extract_strided_slice %39 {offsets = [0, 2, 0], sizes = [4, 8, 8], strides = [1, 1, 1]} : vector<4x10x10xf32> to vector<4x8x8xf32>
    %53 = vector.shape_cast %52 : vector<4x8x8xf32> to vector<4x64xf32>
    %54 = vector.extract_strided_slice %39 {offsets = [0, 2, 1], sizes = [4, 8, 8], strides = [1, 1, 1]} : vector<4x10x10xf32> to vector<4x8x8xf32>
    %55 = vector.shape_cast %54 : vector<4x8x8xf32> to vector<4x64xf32>
    %56 = vector.extract_strided_slice %39 {offsets = [0, 2, 2], sizes = [4, 8, 8], strides = [1, 1, 1]} : vector<4x10x10xf32> to vector<4x8x8xf32>
    %57 = vector.shape_cast %56 : vector<4x8x8xf32> to vector<4x64xf32>
    %58 = tpu.concatenate %41, %43, %45, %47, %49, %51, %53, %55, %57 in 0 : vector<4x64xf32>, vector<4x64xf32>, vector<4x64xf32>, vector<4x64xf32>, vector<4x64xf32>, vector<4x64xf32>, vector<4x64xf32>, vector<4x64xf32>, vector<4x64xf32> -> vector<36x64xf32>
    %cst_20 = arith.constant dense<0.000000e+00> : vector<8x64xf32>
    %59 = tpu.matmul %34, %58, %cst_20 {dimension_numbers = #tpu.dot_dimension_numbers<[1], [0], [0], [1], [0, 0, 1, 1], [], []>} : vector<8x36xf32>, vector<36x64xf32>, vector<8x64xf32> -> vector<8x64xf32>
    %60 = vector.broadcast %35 : vector<8x1xf32> to vector<8x64xf32>
    %61 = arith.addf %59, %60 : vector<8x64xf32>
    %cst_21 = arith.constant 0.000000e+00 : f32
    %62 = vector.broadcast %cst_21 : f32 to vector<8x64xf32>
    %63 = arith.maximumf %61, %62 : vector<8x64xf32>
    %c0_22 = arith.constant 0 : index
    %c0_23 = arith.constant 0 : index
    %64 = vector.load %arg21[%c0_22, %c0_23] : memref<64x256xf32, #tpu.memory_space<vmem>>, vector<64x256xf32>
    %cst_24 = arith.constant dense<0.000000e+00> : vector<8x256xf32>
    %65 = tpu.matmul %63, %64, %cst_24 {dimension_numbers = #tpu.dot_dimension_numbers<[1], [0], [0], [1], [0, 0, 1, 1], [], []>} : vector<8x64xf32>, vector<64x256xf32>, vector<8x256xf32> -> vector<8x256xf32>
    %66 = arith.addf %31, %65 : vector<8x256xf32>
    %c0_25 = arith.constant 0 : index
    %c0_26 = arith.constant 0 : index
    %c0_27 = arith.constant 0 : index
    %c0_28 = arith.constant 0 : index
    %67 = vector.load %arg3[%c0_25, %c0_26, %c0_27, %c0_28] : memref<1x4x4x4xf32, #tpu.memory_space<vmem>>, vector<1x4x4x4xf32>
    %68 = vector.shape_cast %67 : vector<1x4x4x4xf32> to vector<4x4x4xf32>
    %c0_29 = arith.constant 0 : index
    %c0_30 = arith.constant 0 : index
    %69 = vector.load %arg9[%c0_29, %c0_30] : memref<8x36xf32, #tpu.memory_space<vmem>>, vector<8x36xf32>
    %c0_31 = arith.constant 0 : index
    %c0_32 = arith.constant 0 : index
    %70 = vector.load %arg10[%c0_31, %c0_32] : memref<8x1xf32, #tpu.memory_space<vmem>>, vector<8x1xf32>
    %cst_33 = arith.constant 0.000000e+00 : f32
    %71 = vector.broadcast %cst_33 : f32 to vector<4x4x1xf32>
    %72 = tpu.concatenate %71, %68, %71 in 2 : vector<4x4x1xf32>, vector<4x4x4xf32>, vector<4x4x1xf32> -> vector<4x4x6xf32>
    %cst_34 = arith.constant 0.000000e+00 : f32
    %73 = vector.broadcast %cst_34 : f32 to vector<4x1x6xf32>
    %74 = tpu.concatenate %73, %72, %73 in 1 : vector<4x1x6xf32>, vector<4x4x6xf32>, vector<4x1x6xf32> -> vector<4x6x6xf32>
    %75 = vector.extract_strided_slice %74 {offsets = [0, 0, 0], sizes = [4, 4, 4], strides = [1, 1, 1]} : vector<4x6x6xf32> to vector<4x4x4xf32>
    %76 = vector.shape_cast %75 : vector<4x4x4xf32> to vector<4x16xf32>
    %77 = vector.extract_strided_slice %74 {offsets = [0, 0, 1], sizes = [4, 4, 4], strides = [1, 1, 1]} : vector<4x6x6xf32> to vector<4x4x4xf32>
    %78 = vector.shape_cast %77 : vector<4x4x4xf32> to vector<4x16xf32>
    %79 = vector.extract_strided_slice %74 {offsets = [0, 0, 2], sizes = [4, 4, 4], strides = [1, 1, 1]} : vector<4x6x6xf32> to vector<4x4x4xf32>
    %80 = vector.shape_cast %79 : vector<4x4x4xf32> to vector<4x16xf32>
    %81 = vector.extract_strided_slice %74 {offsets = [0, 1, 0], sizes = [4, 4, 4], strides = [1, 1, 1]} : vector<4x6x6xf32> to vector<4x4x4xf32>
    %82 = vector.shape_cast %81 : vector<4x4x4xf32> to vector<4x16xf32>
    %83 = vector.extract_strided_slice %74 {offsets = [0, 1, 1], sizes = [4, 4, 4], strides = [1, 1, 1]} : vector<4x6x6xf32> to vector<4x4x4xf32>
    %84 = vector.shape_cast %83 : vector<4x4x4xf32> to vector<4x16xf32>
    %85 = vector.extract_strided_slice %74 {offsets = [0, 1, 2], sizes = [4, 4, 4], strides = [1, 1, 1]} : vector<4x6x6xf32> to vector<4x4x4xf32>
    %86 = vector.shape_cast %85 : vector<4x4x4xf32> to vector<4x16xf32>
    %87 = vector.extract_strided_slice %74 {offsets = [0, 2, 0], sizes = [4, 4, 4], strides = [1, 1, 1]} : vector<4x6x6xf32> to vector<4x4x4xf32>
    %88 = vector.shape_cast %87 : vector<4x4x4xf32> to vector<4x16xf32>
    %89 = vector.extract_strided_slice %74 {offsets = [0, 2, 1], sizes = [4, 4, 4], strides = [1, 1, 1]} : vector<4x6x6xf32> to vector<4x4x4xf32>
    %90 = vector.shape_cast %89 : vector<4x4x4xf32> to vector<4x16xf32>
    %91 = vector.extract_strided_slice %74 {offsets = [0, 2, 2], sizes = [4, 4, 4], strides = [1, 1, 1]} : vector<4x6x6xf32> to vector<4x4x4xf32>
    %92 = vector.shape_cast %91 : vector<4x4x4xf32> to vector<4x16xf32>
    %93 = tpu.concatenate %76, %78, %80, %82, %84, %86, %88, %90, %92 in 0 : vector<4x16xf32>, vector<4x16xf32>, vector<4x16xf32>, vector<4x16xf32>, vector<4x16xf32>, vector<4x16xf32>, vector<4x16xf32>, vector<4x16xf32>, vector<4x16xf32> -> vector<36x16xf32>
    %cst_35 = arith.constant dense<0.000000e+00> : vector<8x16xf32>
    %94 = tpu.matmul %69, %93, %cst_35 {dimension_numbers = #tpu.dot_dimension_numbers<[1], [0], [0], [1], [0, 0, 1, 1], [], []>} : vector<8x36xf32>, vector<36x16xf32>, vector<8x16xf32> -> vector<8x16xf32>
    %95 = vector.broadcast %70 : vector<8x1xf32> to vector<8x16xf32>
    %96 = arith.addf %94, %95 : vector<8x16xf32>
    %cst_36 = arith.constant 0.000000e+00 : f32
    %97 = vector.broadcast %cst_36 : f32 to vector<8x16xf32>
    %98 = arith.maximumf %96, %97 : vector<8x16xf32>
    %c0_37 = arith.constant 0 : index
    %c0_38 = arith.constant 0 : index
    %99 = vector.load %arg20[%c0_37, %c0_38] : memref<16x64xf32, #tpu.memory_space<vmem>>, vector<16x64xf32>
    %cst_39 = arith.constant dense<0.000000e+00> : vector<8x64xf32>
    %100 = tpu.matmul %98, %99, %cst_39 {dimension_numbers = #tpu.dot_dimension_numbers<[1], [0], [0], [1], [0, 0, 1, 1], [], []>} : vector<8x16xf32>, vector<16x64xf32>, vector<8x64xf32> -> vector<8x64xf32>
    %101 = vector.shape_cast %100 : vector<8x64xf32> to vector<8x8x8xf32>
    %c0_40 = arith.constant 0 : index
    %c0_41 = arith.constant 0 : index
    %102 = vector.load %arg11[%c0_40, %c0_41] : memref<8x72xf32, #tpu.memory_space<vmem>>, vector<8x72xf32>
    %c0_42 = arith.constant 0 : index
    %c0_43 = arith.constant 0 : index
    %103 = vector.load %arg12[%c0_42, %c0_43] : memref<8x1xf32, #tpu.memory_space<vmem>>, vector<8x1xf32>
    %cst_44 = arith.constant 0.000000e+00 : f32
    %104 = vector.broadcast %cst_44 : f32 to vector<8x8x1xf32>
    %105 = tpu.concatenate %104, %101, %104 in 2 : vector<8x8x1xf32>, vector<8x8x8xf32>, vector<8x8x1xf32> -> vector<8x8x10xf32>
    %cst_45 = arith.constant 0.000000e+00 : f32
    %106 = vector.broadcast %cst_45 : f32 to vector<8x1x10xf32>
    %107 = tpu.concatenate %106, %105, %106 in 1 : vector<8x1x10xf32>, vector<8x8x10xf32>, vector<8x1x10xf32> -> vector<8x10x10xf32>
    %108 = vector.extract_strided_slice %107 {offsets = [0, 0, 0], sizes = [8, 8, 8], strides = [1, 1, 1]} : vector<8x10x10xf32> to vector<8x8x8xf32>
    %109 = vector.shape_cast %108 : vector<8x8x8xf32> to vector<8x64xf32>
    %110 = vector.extract_strided_slice %107 {offsets = [0, 0, 1], sizes = [8, 8, 8], strides = [1, 1, 1]} : vector<8x10x10xf32> to vector<8x8x8xf32>
    %111 = vector.shape_cast %110 : vector<8x8x8xf32> to vector<8x64xf32>
    %112 = vector.extract_strided_slice %107 {offsets = [0, 0, 2], sizes = [8, 8, 8], strides = [1, 1, 1]} : vector<8x10x10xf32> to vector<8x8x8xf32>
    %113 = vector.shape_cast %112 : vector<8x8x8xf32> to vector<8x64xf32>
    %114 = vector.extract_strided_slice %107 {offsets = [0, 1, 0], sizes = [8, 8, 8], strides = [1, 1, 1]} : vector<8x10x10xf32> to vector<8x8x8xf32>
    %115 = vector.shape_cast %114 : vector<8x8x8xf32> to vector<8x64xf32>
    %116 = vector.extract_strided_slice %107 {offsets = [0, 1, 1], sizes = [8, 8, 8], strides = [1, 1, 1]} : vector<8x10x10xf32> to vector<8x8x8xf32>
    %117 = vector.shape_cast %116 : vector<8x8x8xf32> to vector<8x64xf32>
    %118 = vector.extract_strided_slice %107 {offsets = [0, 1, 2], sizes = [8, 8, 8], strides = [1, 1, 1]} : vector<8x10x10xf32> to vector<8x8x8xf32>
    %119 = vector.shape_cast %118 : vector<8x8x8xf32> to vector<8x64xf32>
    %120 = vector.extract_strided_slice %107 {offsets = [0, 2, 0], sizes = [8, 8, 8], strides = [1, 1, 1]} : vector<8x10x10xf32> to vector<8x8x8xf32>
    %121 = vector.shape_cast %120 : vector<8x8x8xf32> to vector<8x64xf32>
    %122 = vector.extract_strided_slice %107 {offsets = [0, 2, 1], sizes = [8, 8, 8], strides = [1, 1, 1]} : vector<8x10x10xf32> to vector<8x8x8xf32>
    %123 = vector.shape_cast %122 : vector<8x8x8xf32> to vector<8x64xf32>
    %124 = vector.extract_strided_slice %107 {offsets = [0, 2, 2], sizes = [8, 8, 8], strides = [1, 1, 1]} : vector<8x10x10xf32> to vector<8x8x8xf32>
    %125 = vector.shape_cast %124 : vector<8x8x8xf32> to vector<8x64xf32>
    %126 = tpu.concatenate %109, %111, %113, %115, %117, %119, %121, %123, %125 in 0 : vector<8x64xf32>, vector<8x64xf32>, vector<8x64xf32>, vector<8x64xf32>, vector<8x64xf32>, vector<8x64xf32>, vector<8x64xf32>, vector<8x64xf32>, vector<8x64xf32> -> vector<72x64xf32>
    %cst_46 = arith.constant dense<0.000000e+00> : vector<8x64xf32>
    %127 = tpu.matmul %102, %126, %cst_46 {dimension_numbers = #tpu.dot_dimension_numbers<[1], [0], [0], [1], [0, 0, 1, 1], [], []>} : vector<8x72xf32>, vector<72x64xf32>, vector<8x64xf32> -> vector<8x64xf32>
    %128 = vector.broadcast %103 : vector<8x1xf32> to vector<8x64xf32>
    %129 = arith.addf %127, %128 : vector<8x64xf32>
    %cst_47 = arith.constant 0.000000e+00 : f32
    %130 = vector.broadcast %cst_47 : f32 to vector<8x64xf32>
    %131 = arith.maximumf %129, %130 : vector<8x64xf32>
    %c0_48 = arith.constant 0 : index
    %c0_49 = arith.constant 0 : index
    %132 = vector.load %arg21[%c0_48, %c0_49] : memref<64x256xf32, #tpu.memory_space<vmem>>, vector<64x256xf32>
    %cst_50 = arith.constant dense<0.000000e+00> : vector<8x256xf32>
    %133 = tpu.matmul %131, %132, %cst_50 {dimension_numbers = #tpu.dot_dimension_numbers<[1], [0], [0], [1], [0, 0, 1, 1], [], []>} : vector<8x64xf32>, vector<64x256xf32>, vector<8x256xf32> -> vector<8x256xf32>
    %134 = arith.addf %66, %133 : vector<8x256xf32>
    %c0_51 = arith.constant 0 : index
    %c0_52 = arith.constant 0 : index
    %c0_53 = arith.constant 0 : index
    %c0_54 = arith.constant 0 : index
    %135 = vector.load %arg4[%c0_51, %c0_52, %c0_53, %c0_54] : memref<1x4x2x2xf32, #tpu.memory_space<vmem>>, vector<1x4x2x2xf32>
    %136 = vector.shape_cast %135 : vector<1x4x2x2xf32> to vector<4x2x2xf32>
    %c0_55 = arith.constant 0 : index
    %c0_56 = arith.constant 0 : index
    %137 = vector.load %arg13[%c0_55, %c0_56] : memref<8x36xf32, #tpu.memory_space<vmem>>, vector<8x36xf32>
    %c0_57 = arith.constant 0 : index
    %c0_58 = arith.constant 0 : index
    %138 = vector.load %arg14[%c0_57, %c0_58] : memref<8x1xf32, #tpu.memory_space<vmem>>, vector<8x1xf32>
    %cst_59 = arith.constant 0.000000e+00 : f32
    %139 = vector.broadcast %cst_59 : f32 to vector<4x2x1xf32>
    %140 = tpu.concatenate %139, %136, %139 in 2 : vector<4x2x1xf32>, vector<4x2x2xf32>, vector<4x2x1xf32> -> vector<4x2x4xf32>
    %cst_60 = arith.constant 0.000000e+00 : f32
    %141 = vector.broadcast %cst_60 : f32 to vector<4x1x4xf32>
    %142 = tpu.concatenate %141, %140, %141 in 1 : vector<4x1x4xf32>, vector<4x2x4xf32>, vector<4x1x4xf32> -> vector<4x4x4xf32>
    %143 = vector.extract_strided_slice %142 {offsets = [0, 0, 0], sizes = [4, 2, 2], strides = [1, 1, 1]} : vector<4x4x4xf32> to vector<4x2x2xf32>
    %144 = vector.shape_cast %143 : vector<4x2x2xf32> to vector<4x4xf32>
    %145 = vector.extract_strided_slice %142 {offsets = [0, 0, 1], sizes = [4, 2, 2], strides = [1, 1, 1]} : vector<4x4x4xf32> to vector<4x2x2xf32>
    %146 = vector.shape_cast %145 : vector<4x2x2xf32> to vector<4x4xf32>
    %147 = vector.extract_strided_slice %142 {offsets = [0, 0, 2], sizes = [4, 2, 2], strides = [1, 1, 1]} : vector<4x4x4xf32> to vector<4x2x2xf32>
    %148 = vector.shape_cast %147 : vector<4x2x2xf32> to vector<4x4xf32>
    %149 = vector.extract_strided_slice %142 {offsets = [0, 1, 0], sizes = [4, 2, 2], strides = [1, 1, 1]} : vector<4x4x4xf32> to vector<4x2x2xf32>
    %150 = vector.shape_cast %149 : vector<4x2x2xf32> to vector<4x4xf32>
    %151 = vector.extract_strided_slice %142 {offsets = [0, 1, 1], sizes = [4, 2, 2], strides = [1, 1, 1]} : vector<4x4x4xf32> to vector<4x2x2xf32>
    %152 = vector.shape_cast %151 : vector<4x2x2xf32> to vector<4x4xf32>
    %153 = vector.extract_strided_slice %142 {offsets = [0, 1, 2], sizes = [4, 2, 2], strides = [1, 1, 1]} : vector<4x4x4xf32> to vector<4x2x2xf32>
    %154 = vector.shape_cast %153 : vector<4x2x2xf32> to vector<4x4xf32>
    %155 = vector.extract_strided_slice %142 {offsets = [0, 2, 0], sizes = [4, 2, 2], strides = [1, 1, 1]} : vector<4x4x4xf32> to vector<4x2x2xf32>
    %156 = vector.shape_cast %155 : vector<4x2x2xf32> to vector<4x4xf32>
    %157 = vector.extract_strided_slice %142 {offsets = [0, 2, 1], sizes = [4, 2, 2], strides = [1, 1, 1]} : vector<4x4x4xf32> to vector<4x2x2xf32>
    %158 = vector.shape_cast %157 : vector<4x2x2xf32> to vector<4x4xf32>
    %159 = vector.extract_strided_slice %142 {offsets = [0, 2, 2], sizes = [4, 2, 2], strides = [1, 1, 1]} : vector<4x4x4xf32> to vector<4x2x2xf32>
    %160 = vector.shape_cast %159 : vector<4x2x2xf32> to vector<4x4xf32>
    %161 = tpu.concatenate %144, %146, %148, %150, %152, %154, %156, %158, %160 in 0 : vector<4x4xf32>, vector<4x4xf32>, vector<4x4xf32>, vector<4x4xf32>, vector<4x4xf32>, vector<4x4xf32>, vector<4x4xf32>, vector<4x4xf32>, vector<4x4xf32> -> vector<36x4xf32>
    %cst_61 = arith.constant dense<0.000000e+00> : vector<8x4xf32>
    %162 = tpu.matmul %137, %161, %cst_61 {dimension_numbers = #tpu.dot_dimension_numbers<[1], [0], [0], [1], [0, 0, 1, 1], [], []>} : vector<8x36xf32>, vector<36x4xf32>, vector<8x4xf32> -> vector<8x4xf32>
    %163 = vector.broadcast %138 : vector<8x1xf32> to vector<8x4xf32>
    %164 = arith.addf %162, %163 : vector<8x4xf32>
    %cst_62 = arith.constant 0.000000e+00 : f32
    %165 = vector.broadcast %cst_62 : f32 to vector<8x4xf32>
    %166 = arith.maximumf %164, %165 : vector<8x4xf32>
    %c0_63 = arith.constant 0 : index
    %c0_64 = arith.constant 0 : index
    %167 = vector.load %arg19[%c0_63, %c0_64] : memref<4x16xf32, #tpu.memory_space<vmem>>, vector<4x16xf32>
    %cst_65 = arith.constant dense<0.000000e+00> : vector<8x16xf32>
    %168 = tpu.matmul %166, %167, %cst_65 {dimension_numbers = #tpu.dot_dimension_numbers<[1], [0], [0], [1], [0, 0, 1, 1], [], []>} : vector<8x4xf32>, vector<4x16xf32>, vector<8x16xf32> -> vector<8x16xf32>
    %169 = vector.shape_cast %168 : vector<8x16xf32> to vector<8x4x4xf32>
    %c0_66 = arith.constant 0 : index
    %c0_67 = arith.constant 0 : index
    %170 = vector.load %arg15[%c0_66, %c0_67] : memref<8x72xf32, #tpu.memory_space<vmem>>, vector<8x72xf32>
    %c0_68 = arith.constant 0 : index
    %c0_69 = arith.constant 0 : index
    %171 = vector.load %arg16[%c0_68, %c0_69] : memref<8x1xf32, #tpu.memory_space<vmem>>, vector<8x1xf32>
    %cst_70 = arith.constant 0.000000e+00 : f32
    %172 = vector.broadcast %cst_70 : f32 to vector<8x4x1xf32>
    %173 = tpu.concatenate %172, %169, %172 in 2 : vector<8x4x1xf32>, vector<8x4x4xf32>, vector<8x4x1xf32> -> vector<8x4x6xf32>
    %cst_71 = arith.constant 0.000000e+00 : f32
    %174 = vector.broadcast %cst_71 : f32 to vector<8x1x6xf32>
    %175 = tpu.concatenate %174, %173, %174 in 1 : vector<8x1x6xf32>, vector<8x4x6xf32>, vector<8x1x6xf32> -> vector<8x6x6xf32>
    %176 = vector.extract_strided_slice %175 {offsets = [0, 0, 0], sizes = [8, 4, 4], strides = [1, 1, 1]} : vector<8x6x6xf32> to vector<8x4x4xf32>
    %177 = vector.shape_cast %176 : vector<8x4x4xf32> to vector<8x16xf32>
    %178 = vector.extract_strided_slice %175 {offsets = [0, 0, 1], sizes = [8, 4, 4], strides = [1, 1, 1]} : vector<8x6x6xf32> to vector<8x4x4xf32>
    %179 = vector.shape_cast %178 : vector<8x4x4xf32> to vector<8x16xf32>
    %180 = vector.extract_strided_slice %175 {offsets = [0, 0, 2], sizes = [8, 4, 4], strides = [1, 1, 1]} : vector<8x6x6xf32> to vector<8x4x4xf32>
    %181 = vector.shape_cast %180 : vector<8x4x4xf32> to vector<8x16xf32>
    %182 = vector.extract_strided_slice %175 {offsets = [0, 1, 0], sizes = [8, 4, 4], strides = [1, 1, 1]} : vector<8x6x6xf32> to vector<8x4x4xf32>
    %183 = vector.shape_cast %182 : vector<8x4x4xf32> to vector<8x16xf32>
    %184 = vector.extract_strided_slice %175 {offsets = [0, 1, 1], sizes = [8, 4, 4], strides = [1, 1, 1]} : vector<8x6x6xf32> to vector<8x4x4xf32>
    %185 = vector.shape_cast %184 : vector<8x4x4xf32> to vector<8x16xf32>
    %186 = vector.extract_strided_slice %175 {offsets = [0, 1, 2], sizes = [8, 4, 4], strides = [1, 1, 1]} : vector<8x6x6xf32> to vector<8x4x4xf32>
    %187 = vector.shape_cast %186 : vector<8x4x4xf32> to vector<8x16xf32>
    %188 = vector.extract_strided_slice %175 {offsets = [0, 2, 0], sizes = [8, 4, 4], strides = [1, 1, 1]} : vector<8x6x6xf32> to vector<8x4x4xf32>
    %189 = vector.shape_cast %188 : vector<8x4x4xf32> to vector<8x16xf32>
    %190 = vector.extract_strided_slice %175 {offsets = [0, 2, 1], sizes = [8, 4, 4], strides = [1, 1, 1]} : vector<8x6x6xf32> to vector<8x4x4xf32>
    %191 = vector.shape_cast %190 : vector<8x4x4xf32> to vector<8x16xf32>
    %192 = vector.extract_strided_slice %175 {offsets = [0, 2, 2], sizes = [8, 4, 4], strides = [1, 1, 1]} : vector<8x6x6xf32> to vector<8x4x4xf32>
    %193 = vector.shape_cast %192 : vector<8x4x4xf32> to vector<8x16xf32>
    %194 = tpu.concatenate %177, %179, %181, %183, %185, %187, %189, %191, %193 in 0 : vector<8x16xf32>, vector<8x16xf32>, vector<8x16xf32>, vector<8x16xf32>, vector<8x16xf32>, vector<8x16xf32>, vector<8x16xf32>, vector<8x16xf32>, vector<8x16xf32> -> vector<72x16xf32>
    %cst_72 = arith.constant dense<0.000000e+00> : vector<8x16xf32>
    %195 = tpu.matmul %170, %194, %cst_72 {dimension_numbers = #tpu.dot_dimension_numbers<[1], [0], [0], [1], [0, 0, 1, 1], [], []>} : vector<8x72xf32>, vector<72x16xf32>, vector<8x16xf32> -> vector<8x16xf32>
    %196 = vector.broadcast %171 : vector<8x1xf32> to vector<8x16xf32>
    %197 = arith.addf %195, %196 : vector<8x16xf32>
    %cst_73 = arith.constant 0.000000e+00 : f32
    %198 = vector.broadcast %cst_73 : f32 to vector<8x16xf32>
    %199 = arith.maximumf %197, %198 : vector<8x16xf32>
    %c0_74 = arith.constant 0 : index
    %c0_75 = arith.constant 0 : index
    %200 = vector.load %arg20[%c0_74, %c0_75] : memref<16x64xf32, #tpu.memory_space<vmem>>, vector<16x64xf32>
    %cst_76 = arith.constant dense<0.000000e+00> : vector<8x64xf32>
    %201 = tpu.matmul %199, %200, %cst_76 {dimension_numbers = #tpu.dot_dimension_numbers<[1], [0], [0], [1], [0, 0, 1, 1], [], []>} : vector<8x16xf32>, vector<16x64xf32>, vector<8x64xf32> -> vector<8x64xf32>
    %202 = vector.shape_cast %201 : vector<8x64xf32> to vector<8x8x8xf32>
    %c0_77 = arith.constant 0 : index
    %c0_78 = arith.constant 0 : index
    %203 = vector.load %arg17[%c0_77, %c0_78] : memref<8x72xf32, #tpu.memory_space<vmem>>, vector<8x72xf32>
    %c0_79 = arith.constant 0 : index
    %c0_80 = arith.constant 0 : index
    %204 = vector.load %arg18[%c0_79, %c0_80] : memref<8x1xf32, #tpu.memory_space<vmem>>, vector<8x1xf32>
    %cst_81 = arith.constant 0.000000e+00 : f32
    %205 = vector.broadcast %cst_81 : f32 to vector<8x8x1xf32>
    %206 = tpu.concatenate %205, %202, %205 in 2 : vector<8x8x1xf32>, vector<8x8x8xf32>, vector<8x8x1xf32> -> vector<8x8x10xf32>
    %cst_82 = arith.constant 0.000000e+00 : f32
    %207 = vector.broadcast %cst_82 : f32 to vector<8x1x10xf32>
    %208 = tpu.concatenate %207, %206, %207 in 1 : vector<8x1x10xf32>, vector<8x8x10xf32>, vector<8x1x10xf32> -> vector<8x10x10xf32>
    %209 = vector.extract_strided_slice %208 {offsets = [0, 0, 0], sizes = [8, 8, 8], strides = [1, 1, 1]} : vector<8x10x10xf32> to vector<8x8x8xf32>
    %210 = vector.shape_cast %209 : vector<8x8x8xf32> to vector<8x64xf32>
    %211 = vector.extract_strided_slice %208 {offsets = [0, 0, 1], sizes = [8, 8, 8], strides = [1, 1, 1]} : vector<8x10x10xf32> to vector<8x8x8xf32>
    %212 = vector.shape_cast %211 : vector<8x8x8xf32> to vector<8x64xf32>
    %213 = vector.extract_strided_slice %208 {offsets = [0, 0, 2], sizes = [8, 8, 8], strides = [1, 1, 1]} : vector<8x10x10xf32> to vector<8x8x8xf32>
    %214 = vector.shape_cast %213 : vector<8x8x8xf32> to vector<8x64xf32>
    %215 = vector.extract_strided_slice %208 {offsets = [0, 1, 0], sizes = [8, 8, 8], strides = [1, 1, 1]} : vector<8x10x10xf32> to vector<8x8x8xf32>
    %216 = vector.shape_cast %215 : vector<8x8x8xf32> to vector<8x64xf32>
    %217 = vector.extract_strided_slice %208 {offsets = [0, 1, 1], sizes = [8, 8, 8], strides = [1, 1, 1]} : vector<8x10x10xf32> to vector<8x8x8xf32>
    %218 = vector.shape_cast %217 : vector<8x8x8xf32> to vector<8x64xf32>
    %219 = vector.extract_strided_slice %208 {offsets = [0, 1, 2], sizes = [8, 8, 8], strides = [1, 1, 1]} : vector<8x10x10xf32> to vector<8x8x8xf32>
    %220 = vector.shape_cast %219 : vector<8x8x8xf32> to vector<8x64xf32>
    %221 = vector.extract_strided_slice %208 {offsets = [0, 2, 0], sizes = [8, 8, 8], strides = [1, 1, 1]} : vector<8x10x10xf32> to vector<8x8x8xf32>
    %222 = vector.shape_cast %221 : vector<8x8x8xf32> to vector<8x64xf32>
    %223 = vector.extract_strided_slice %208 {offsets = [0, 2, 1], sizes = [8, 8, 8], strides = [1, 1, 1]} : vector<8x10x10xf32> to vector<8x8x8xf32>
    %224 = vector.shape_cast %223 : vector<8x8x8xf32> to vector<8x64xf32>
    %225 = vector.extract_strided_slice %208 {offsets = [0, 2, 2], sizes = [8, 8, 8], strides = [1, 1, 1]} : vector<8x10x10xf32> to vector<8x8x8xf32>
    %226 = vector.shape_cast %225 : vector<8x8x8xf32> to vector<8x64xf32>
    %227 = tpu.concatenate %210, %212, %214, %216, %218, %220, %222, %224, %226 in 0 : vector<8x64xf32>, vector<8x64xf32>, vector<8x64xf32>, vector<8x64xf32>, vector<8x64xf32>, vector<8x64xf32>, vector<8x64xf32>, vector<8x64xf32>, vector<8x64xf32> -> vector<72x64xf32>
    %cst_83 = arith.constant dense<0.000000e+00> : vector<8x64xf32>
    %228 = tpu.matmul %203, %227, %cst_83 {dimension_numbers = #tpu.dot_dimension_numbers<[1], [0], [0], [1], [0, 0, 1, 1], [], []>} : vector<8x72xf32>, vector<72x64xf32>, vector<8x64xf32> -> vector<8x64xf32>
    %229 = vector.broadcast %204 : vector<8x1xf32> to vector<8x64xf32>
    %230 = arith.addf %228, %229 : vector<8x64xf32>
    %cst_84 = arith.constant 0.000000e+00 : f32
    %231 = vector.broadcast %cst_84 : f32 to vector<8x64xf32>
    %232 = arith.maximumf %230, %231 : vector<8x64xf32>
    %c0_85 = arith.constant 0 : index
    %c0_86 = arith.constant 0 : index
    %233 = vector.load %arg21[%c0_85, %c0_86] : memref<64x256xf32, #tpu.memory_space<vmem>>, vector<64x256xf32>
    %cst_87 = arith.constant dense<0.000000e+00> : vector<8x256xf32>
    %234 = tpu.matmul %232, %233, %cst_87 {dimension_numbers = #tpu.dot_dimension_numbers<[1], [0], [0], [1], [0, 0, 1, 1], [], []>} : vector<8x64xf32>, vector<64x256xf32>, vector<8x256xf32> -> vector<8x256xf32>
    %235 = arith.addf %134, %234 : vector<8x256xf32>
    %cst_88 = arith.constant 2.500000e-01 : f32
    %236 = vector.broadcast %cst_88 : f32 to vector<8x256xf32>
    %237 = arith.mulf %235, %236 : vector<8x256xf32>
    %c0_89 = arith.constant 0 : index
    %c0_90 = arith.constant 0 : index
    %c0_91 = arith.constant 0 : index
    %238 = vector.load %arg22[%c0_89, %c0_90, %c0_91] : memref<1x8x256xf32, #tpu.memory_space<vmem>>, vector<1x8x256xf32>
    %239 = vector.shape_cast %238 : vector<1x8x256xf32> to vector<8x256xf32>
    %240 = vector.shape_cast %237 : vector<8x256xf32> to vector<1x8x256xf32>
    tpu.vector_store %arg22[%c0_89, %c0_90, %c0_91], %240 {strides = array<i32>} : memref<1x8x256xf32, #tpu.memory_space<vmem>>, vector<1x8x256xf32>,
    return
  }
  func.func @transform_0(%arg0: i32) -> (i32, i32, i32, i32) {
    %c0_i32 = arith.constant 0 : i32
    %c0_i32_0 = arith.constant 0 : i32
    %c0_i32_1 = arith.constant 0 : i32
    %c0_i32_2 = arith.constant 0 : i32
    return %arg0, %c0_i32, %c0_i32_0, %c0_i32_1 : i32, i32, i32, i32
  }
  func.func @transform_1(%arg0: i32) -> (i32, i32, i32, i32) {
    %c0_i32 = arith.constant 0 : i32
    %c0_i32_0 = arith.constant 0 : i32
    %c0_i32_1 = arith.constant 0 : i32
    %c0_i32_2 = arith.constant 0 : i32
    return %arg0, %c0_i32, %c0_i32_0, %c0_i32_1 : i32, i32, i32, i32
  }
  func.func @transform_2(%arg0: i32) -> (i32, i32, i32, i32) {
    %c0_i32 = arith.constant 0 : i32
    %c0_i32_0 = arith.constant 0 : i32
    %c0_i32_1 = arith.constant 0 : i32
    %c0_i32_2 = arith.constant 0 : i32
    return %arg0, %c0_i32, %c0_i32_0, %c0_i32_1 : i32, i32, i32, i32
  }
  func.func @transform_3(%arg0: i32) -> (i32, i32, i32, i32) {
    %c0_i32 = arith.constant 0 : i32
    %c0_i32_0 = arith.constant 0 : i32
    %c0_i32_1 = arith.constant 0 : i32
    %c0_i32_2 = arith.constant 0 : i32
    return %arg0, %c0_i32, %c0_i32_0, %c0_i32_1 : i32, i32, i32, i32
  }
  func.func @transform_4(%arg0: i32) -> (i32, i32) {
    %c0_i32 = arith.constant 0 : i32
    %c0_i32_0 = arith.constant 0 : i32
    %c0_i32_1 = arith.constant 0 : i32
    return %c0_i32, %c0_i32_0 : i32, i32
  }
  func.func @transform_5(%arg0: i32) -> (i32, i32) {
    %c0_i32 = arith.constant 0 : i32
    %c0_i32_0 = arith.constant 0 : i32
    %c0_i32_1 = arith.constant 0 : i32
    return %c0_i32, %c0_i32_0 : i32, i32
  }
  func.func @transform_6(%arg0: i32) -> (i32, i32) {
    %c0_i32 = arith.constant 0 : i32
    %c0_i32_0 = arith.constant 0 : i32
    %c0_i32_1 = arith.constant 0 : i32
    return %c0_i32, %c0_i32_0 : i32, i32
  }
  func.func @transform_7(%arg0: i32) -> (i32, i32) {
    %c0_i32 = arith.constant 0 : i32
    %c0_i32_0 = arith.constant 0 : i32
    %c0_i32_1 = arith.constant 0 : i32
    return %c0_i32, %c0_i32_0 : i32, i32
  }
  func.func @transform_8(%arg0: i32) -> (i32, i32) {
    %c0_i32 = arith.constant 0 : i32
    %c0_i32_0 = arith.constant 0 : i32
    %c0_i32_1 = arith.constant 0 : i32
    return %c0_i32, %c0_i32_0 : i32, i32
  }
  func.func @transform_9(%arg0: i32) -> (i32, i32) {
    %c0_i32 = arith.constant 0 : i32
    %c0_i32_0 = arith.constant 0 : i32
    %c0_i32_1 = arith.constant 0 : i32
    return %c0_i32, %c0_i32_0 : i32, i32
  }
  func.func @transform_10(%arg0: i32) -> (i32, i32) {
    %c0_i32 = arith.constant 0 : i32
    %c0_i32_0 = arith.constant 0 : i32
    %c0_i32_1 = arith.constant 0 : i32
    return %c0_i32, %c0_i32_0 : i32, i32
  }
  func.func @transform_11(%arg0: i32) -> (i32, i32) {
    %c0_i32 = arith.constant 0 : i32
    %c0_i32_0 = arith.constant 0 : i32
    %c0_i32_1 = arith.constant 0 : i32
    return %c0_i32, %c0_i32_0 : i32, i32
  }
  func.func @transform_12(%arg0: i32) -> (i32, i32) {
    %c0_i32 = arith.constant 0 : i32
    %c0_i32_0 = arith.constant 0 : i32
    %c0_i32_1 = arith.constant 0 : i32
    return %c0_i32, %c0_i32_0 : i32, i32
  }
  func.func @transform_13(%arg0: i32) -> (i32, i32) {
    %c0_i32 = arith.constant 0 : i32
    %c0_i32_0 = arith.constant 0 : i32
    %c0_i32_1 = arith.constant 0 : i32
    return %c0_i32, %c0_i32_0 : i32, i32
  }
  func.func @transform_14(%arg0: i32) -> (i32, i32) {
    %c0_i32 = arith.constant 0 : i32
    %c0_i32_0 = arith.constant 0 : i32
    %c0_i32_1 = arith.constant 0 : i32
    return %c0_i32, %c0_i32_0 : i32, i32
  }
  func.func @transform_15(%arg0: i32) -> (i32, i32) {
    %c0_i32 = arith.constant 0 : i32
    %c0_i32_0 = arith.constant 0 : i32
    %c0_i32_1 = arith.constant 0 : i32
    return %c0_i32, %c0_i32_0 : i32, i32
  }
  func.func @transform_16(%arg0: i32) -> (i32, i32) {
    %c0_i32 = arith.constant 0 : i32
    %c0_i32_0 = arith.constant 0 : i32
    %c0_i32_1 = arith.constant 0 : i32
    return %c0_i32, %c0_i32_0 : i32, i32
  }
  func.func @transform_17(%arg0: i32) -> (i32, i32) {
    %c0_i32 = arith.constant 0 : i32
    %c0_i32_0 = arith.constant 0 : i32
    %c0_i32_1 = arith.constant 0 : i32
    return %c0_i32, %c0_i32_0 : i32, i32
  }
  func.func @transform_18(%arg0: i32) -> (i32, i32) {
    %c0_i32 = arith.constant 0 : i32
    %c0_i32_0 = arith.constant 0 : i32
    %c0_i32_1 = arith.constant 0 : i32
    return %c0_i32, %c0_i32_0 : i32, i32
  }
  func.func @transform_19(%arg0: i32) -> (i32, i32) {
    %c0_i32 = arith.constant 0 : i32
    %c0_i32_0 = arith.constant 0 : i32
    %c0_i32_1 = arith.constant 0 : i32
    return %c0_i32, %c0_i32_0 : i32, i32
  }
  func.func @transform_20(%arg0: i32) -> (i32, i32) {
    %c0_i32 = arith.constant 0 : i32
    %c0_i32_0 = arith.constant 0 : i32
    %c0_i32_1 = arith.constant 0 : i32
    return %c0_i32, %c0_i32_0 : i32, i32
  }
  func.func @transform_21(%arg0: i32) -> (i32, i32, i32) {
    %c0_i32 = arith.constant 0 : i32
    %c0_i32_0 = arith.constant 0 : i32
    %c0_i32_1 = arith.constant 0 : i32
    return %arg0, %c0_i32, %c0_i32_0 : i32, i32, i32
  }
}

</mosaic_0001>

<bundles_post_ra>
// kernel: tpu_custom_call.1
= control target key start
LH: loop header
LB: loop body
LE: loop exit
PB: predicated region body
PF: predicated region fallthrough
CT: control target
= control target key end

     0   :  { %s18076_s0 = inlined_call_operand.hbm [shape: f32[2,4,16,16], index: 0, kind: input, shape index: {}]   ;;  %s18077_s1 = inlined_call_operand.vmem [shape: f32[2,4,8,8], index: 1, kind: input, shape index: {}]   ;;  %s18078_s2 = inlined_call_operand.hbm [shape: f32[2,4,4,4], index: 2, kind: input, shape index: {}]   ;;  %s18079_s3 = inlined_call_operand.vmem [shape: f32[2,4,2,2], index: 3, kind: input, shape index: {}]   ;;  %s18080_s4 = inlined_call_operand.hbm [shape: f32[8,36], index: 4, kind: input, shape index: {}]   ;;  %s18081_s5 = inlined_call_operand.vmem [shape: f32[8,1], index: 5, kind: input, shape index: {}]   ;;  %s18082_s6 = inlined_call_operand.vmem [shape: f32[8,36], index: 6, kind: input, shape index: {}]   ;;  %s18083_s7 = inlined_call_operand.vmem [shape: f32[8,1], index: 7, kind: input, shape index: {}]   ;;  %s18084_s8 = inlined_call_operand.hbm [shape: f32[8,36], index: 8, kind: input, shape index: {}]   ;;  %s18085_s9 = inlined_call_operand.vmem [shape: f32[8,1], index: 9, kind: input, shape index: {}]   ;;  %s18086_s10 = inlined_call_operand.vmem [shape: f32[8,72], index: 10, kind: input, shape index: {}]   ;;  %s18087_s11 = inlined_call_operand.vmem [shape: f32[8,1], index: 11, kind: input, shape index: {}]   ;;  %s18088_s12 = inlined_call_operand.hbm [shape: f32[8,36], index: 12, kind: input, shape index: {}]   ;;  %s18089_s13 = inlined_call_operand.vmem [shape: f32[8,1], index: 13, kind: input, shape index: {}]   ;;  %s18090_s14 = inlined_call_operand.vmem [shape: f32[8,72], index: 14, kind: input, shape index: {}]   ;;  %s18091_s15 = inlined_call_operand.vmem [shape: f32[8,1], index: 15, kind: input, shape index: {}]   ;;  %s18092_s16 = inlined_call_operand.hbm [shape: f32[8,72], index: 16, kind: input, shape index: {}]   ;;  %s18093_s17 = inlined_call_operand.vmem [shape: f32[8,1], index: 17, kind: input, shape index: {}]   ;;  %s18094_s18 = inlined_call_operand.vmem [shape: f32[4,16], index: 18, kind: input, shape index: {}]   ;;  %s18095_s19 = inlined_call_operand.vmem [shape: f32[16,64], index: 19, kind: input, shape index: {}]   ;;  %s18096_s20 = inlined_call_operand.hbm [shape: f32[64,256], index: 20, kind: input, shape index: {}]   ;;  %s18097_s21 = inlined_call_operand.hbm [shape: f32[2,8,256], index: 21, kind: output, shape index: {}]  }
   0x1   :  { %18183 = sst [smem:[#allocation71_spill]] %s18076_s0 }
   0x2   :  { %18184 = sst [smem:[#allocation72_spill]] %s18077_s1 }
   0x3   :  { %18185 = sst [smem:[#allocation73_spill]] %s18078_s2 }
   0x4   :  { %18186 = sst [smem:[#allocation74_spill]] %s18079_s3 }
   0x5   :  { %18187 = sst [smem:[#allocation75_spill]] %s18080_s4 }
   0x6   :  { %18188 = sst [smem:[#allocation76_spill]] %s18081_s5 }
   0x7   :  { %18189 = sst [smem:[#allocation77_spill]] %s18084_s8 }
   0x8   :  { %18190 = sst [smem:[#allocation78_spill]] %s18088_s12 }
   0x9   :  { %18191 = sst [smem:[#allocation79_spill]] %s18090_s14 }
   0xa   :  { %18192 = sst [smem:[#allocation80_spill]] %s18091_s15 }
   0xb   :  { %18193 = sst [smem:[#allocation81_spill]] %s18092_s16 }
   0xc   :  { %18194 = sst [smem:[#allocation82_spill]] %s18093_s17 }
   0xd   :  { %18195 = sst [smem:[#allocation83_spill]] %s18096_s20 }
   0xe   :  { %18196 = sst [smem:[#allocation84_spill]] %s18097_s21 }
   0xf   :  { %26 = vsyncpa [#allocation3], 0 }
  0x10   :  { %28 = vsyncpa [#allocation3 + $0x1], 0 }
  0x11   :  { %29 = vsyncpa [#allocation6], 0 }
  0x12   :  { %31 = vsyncpa [#allocation6 + $0x1], 0 }
  0x13   :  { %32 = vsyncpa [#allocation9], 0 }
  0x14   :  { %33 = vsyncpa [#allocation12], 0 }
  0x15   :  { %34 = vsyncpa [#allocation4], 0 }
  0x16   :  { %36 = vsyncpa [#allocation4 + $0x1], 0  ;;  %s12322_s2 = smov 0   ;;  %s12324_s25 = smov 0  }
  0x17   :  { %s12326_s26 = smov 0   ;;  %s12328_s27 = smov 0  }
  0x18 LB: > { %18197 = sst [smem:[#allocation21_spill]] %s12156_s2  ;;  %s12170_s3 = smov [#allocation7]   ;;  %s12168_s27 = sphi %s12328_s27, %s18545_s27   ;;  %s12164_s26 = sphi %s12326_s26, %s18547_s26   ;;  %s12160_s25 = sphi %s12324_s25, %s18549_s25   ;;  %s12156_s2 = sphi %s12322_s2, %s18548_s2  }
  0x19   : > { %18198 = sst [smem:[#allocation22_spill]] %s12164_s26  ;;  %s547_s28 = sshll.u32 %s12170_s3, 4  ;;  %s548_s28 = int_to_ptr.vmem [resolvable:$true] %s547_s28 }
  0x1a   : > { %s12343_s29 = sadd.s32 4294967295, %s12168_s27   ;;  %p11514_p0 = scmp.ge.s32.totalorder %s12168_s27, 1 }
  0x1b   : > { %p18101_p1 = scmp.eq.s32.totalorder %s12343_s29, 0  ;;  %p534_p2 = scmp.lt.s32.totalorder %s12168_s27, 3 }
  0x1c   : > { %s12171_s4 = smov [#allocation8]   ;;  %s12172_s5 = smov [#allocation11]  }
  0x1d   : > { %p12348_p3 = pnand %p11514_p0, %p534_p2  ;;  %s567_s30 = sshll.u32 %s12171_s4, 4  ;;  %s568_s30 = int_to_ptr.vmem [resolvable:$true] %s567_s30 }
  0x1e   : > { %s607_s22 = sshll.u32 %s12172_s5, 4  ;;  %s12173_s1 = smov [#allocation10]   ;;  %s12361_s22 = int_to_ptr.vmem [resolvable:$true] %s607_s22 }
  0x1f   : > { %s18199_s0 = scalar_select %p12348_p3, 1, 0 }
  0x20   : > { %p11772_p5 = pneg %p12348_p3  ;;  %s12363_s24 = sshll.u32 %s12173_s1, 4  ;;  %s588_s24 = int_to_ptr.vmem [resolvable:$true] %s12363_s24 }
  0x21   : > { %s11913_s4 = scalar_lea.vmem %s548_s28, 128  ;;  %p11921_p11 = scmp.lt.s32.totalorder %s548_s28, %s548_s28 }
  0x22   : > { %p12357_p6 = pnand %p11772_p5, %p18101_p1  ;;  %p11914_p8 = scmp.ne.s32.totalorder %s548_s28, %s11913_s4 }
  0x23   : > { %p11922_p12 = scmp.lt.s32.totalorder %s11913_s4, %s11913_s4 }
  0x24   : > { %p12367_p7 = pneg %p12357_p6 }
  0x25   : > { %p11923_p13 = por %p11922_p12, %p11921_p11 }
  0x26   : > { %p11916_p9 = pnand %p11914_p8, %p12367_p7 }
  0x28   : > { %p11917_p10 = pneg %p11916_p9 }
  0x2a   : > { %p11924_p0 = pnand %p11923_p13, %p11917_p10 }
  0x2c   : > { %11927 = shalt.err (!%p11924_p0)
}
  0x2d   : > { %s18202_s21 = sld [smem:[#allocation75_spill]]  ;;  %s11939_s17 = scalar_lea.vmem %s568_s30, 128 }
  0x2e   : > { %p11940_p2 = scmp.ne.s32.totalorder %s568_s30, %s11939_s17  ;;  %p11947_p1 = scmp.lt.s32.totalorder %s568_s30, %s568_s30 }
  0x2f   : > { %p11948_p8 = scmp.lt.s32.totalorder %s11939_s17, %s11939_s17 }
  0x30   : > { %p11942_p5 = pnand %p11940_p2, %p12367_p7 }
  0x31   : > { %p11949_p9 = por %p11948_p8, %p11947_p1 }
  0x32   : > { %p11943_p4 = pneg %p11942_p5 }
  0x33   : > { %11775 = dma.hbm_to_vmem [thread:$0]  (!%p12357_p6), %s18202_s21, 128, %s548_s28, [#allocation6]  }
  0x34   : > { %p11950_p3 = pnand %p11949_p9, %p11943_p4 }
  0x36   : > { %11953 = shalt.err (!%p11950_p3)
}
  0x37   : > { %s18203_s8 = sld [smem:[#allocation77_spill]]  ;;  %s11965_s21 = scalar_lea.vmem %s12361_s22, 128 }
  0x38   : > { %p11966_p10 = scmp.ne.s32.totalorder %s12361_s22, %s11965_s21  ;;  %p11973_p13 = scmp.lt.s32.totalorder %s12361_s22, %s12361_s22 }
  0x39   : > { %p11974_p1 = scmp.lt.s32.totalorder %s11965_s21, %s11965_s21 }
  0x3a   : > { %p11968_p11 = pnand %p11966_p10, %p12367_p7 }
  0x3b   : > { %p11975_p4 = por %p11974_p1, %p11973_p13 }
  0x3c   : > { %p11969_p12 = pneg %p11968_p11 }
  0x3d   : > { %11778 = dma.hbm_to_vmem [thread:$0]  (!%p12357_p6), %s18203_s8, 128, %s568_s30, [#allocation9]  }
  0x3e   : > { %p11976_p3 = pnand %p11975_p4, %p11969_p12 }
  0x40   : > { %11979 = shalt.err (!%p11976_p3)
}
  0x41   : > { %s18204_s16 = sld [smem:[#allocation81_spill]]  ;;  %s12174_s28 = smov [#allocation13]  }
  0x42   : > { %s626_s30 = sshll.u32 %s12174_s28, 4  ;;  %s11991_s5 = scalar_lea.vmem %s588_s24, 128  ;;  %s627_s30 = int_to_ptr.vmem [resolvable:$true] %s626_s30 }
  0x43   : > { %p11992_p0 = scmp.ne.s32.totalorder %s588_s24, %s11991_s5  ;;  %p11999_p8 = scmp.lt.s32.totalorder %s588_s24, %s588_s24 }
  0x44   : > { %p12000_p9 = scmp.lt.s32.totalorder %s11991_s5, %s11991_s5 }
  0x45   : > { %p11994_p2 = pnand %p11992_p0, %p12367_p7 }
  0x46   : > { %p12001_p10 = por %p12000_p9, %p11999_p8 }
  0x47   : > { %11784 = dma.hbm_to_vmem [thread:$0]  (!%p12357_p6), %s18204_s16, 128, %s12361_s22, [#allocation12]  }
  0x48   : > { %p11995_p5 = pneg %p11994_p2 }
  0x4a   : > { %p12002_p11 = pnand %p12001_p10, %p11995_p5 }
  0x4c   : > { %12005 = shalt.err (!%p12002_p11)
}
  0x4d   : > { %s18205_s12 = sld [smem:[#allocation78_spill]]  ;;  %s12017_s22 = scalar_lea.vmem %s627_s30, 2048 }
  0x4e   : > { %p12018_p12 = scmp.ne.s32.totalorder %s627_s30, %s12017_s22  ;;  %p12025_p4 = scmp.lt.s32.totalorder %s627_s30, %s627_s30 }
  0x4f   : > { %p12026_p3 = scmp.lt.s32.totalorder %s12017_s22, %s12017_s22 }
  0x50   : > { %p12020_p13 = pnand %p12018_p12, %p12367_p7 }
  0x51   : > { %p12027_p0 = por %p12026_p3, %p12025_p4 }
  0x52   : > { %p12021_p1 = pneg %p12020_p13 }
  0x53   : > { %11781 = dma.hbm_to_vmem [thread:$0]  (!%p12357_p6), %s18205_s12, 128, %s588_s24, [#allocation9]  }
  0x54   : > { %p12028_p2 = pnand %p12027_p0, %p12021_p1 }
  0x56   : > { %12031 = shalt.err (!%p12028_p2)
}
  0x57   : > { %s12175_s21 = smov 256   ;;  %s12176_s24 = smov 16  }
  0x58   : > { %s18206_s20 = sld [smem:[#allocation83_spill]]  ;;  %s11513_s17 = sadd.s32 4294967294, %s12168_s27  }
  0x59   : > { %s12414_s28 = sadd.s32 1, %s12168_s27   ;;  %s49_s5 = sadd.s32 1, %s12164_s26 }
  0x5a   : > { %18207 = sst [smem:[#allocation23_spill]] %s12414_s28  ;;  %s46_s1 = ssub.s32 %s12168_s27, %s12414_s28 }
  0x5b   : > { %p56_p7 = scmp.ne.s32.totalorder %s12164_s26, %s12160_s25  ;;  %p47_p5 = scmp.eq.s32.totalorder %s46_s1, 0 }
  0x5c   : > { %p57_p8 = scmp.eq.s32.totalorder %s12168_s27, 0  ;;  %p62_p9 = scmp.ne.s32.totalorder %s12160_s25, %s12156_s2 }
  0x5d   : > { %p521_p10 = scmp.eq.s32.totalorder %s12343_s29, 1  ;;  %p18209_p12 = scmp.eq.s32.totalorder %s12343_s29, 0 }
  0x5e   : > { %11787 = dma.hbm_to_vmem [thread:$0]  (!%p12357_p6), %s18206_s20, 2048, %s627_s30, [#allocation12], %s12175_s21, %s12175_s21, %s12176_s24  }
  0x5f   : > { %s12426_s4 = scalar_select %p47_p5, %s12164_s26, %s49_s5  }
  0x60   : > { %p58_p11 = por %p57_p8, %p56_p7  ;;  %p12430_p13 = por %p18209_p12, %p62_p9 }
  0x61   : > { %18208 = sst [smem:[#allocation24_spill]] %s12426_s4  ;;  %p12434_p6 = por %p521_p10, %p56_p7 }
  0x62   : > { %p527_p1 = scmp.eq.s32.totalorder %s11513_s17, 1  ;;  %p11804_p4 = scmp.lt.s32.totalorder %s12168_s27, 2 }
  0x63   : > { %s18211_s30 = scalar_select %p12434_p6, 1, 0 }
  0x64   : > { %s12440_s22 = sand.u32 1, %s12164_s26   ;;  %p12442_p3 = por %p527_p1, %p62_p9 }
  0x65   : > { %18212 = sst [smem:[#allocation25_spill]] %s18211_s30  ;;  %s11521_s24 = sshll.u32 %s12440_s22, 6 }
  0x66   : > { %s18213_s21 = scalar_select %p12442_p3, 1, 0 }
  0x67   : > { %s11564_s3 = sshll.u32 %s12168_s27, 10  ;;  %s18215_s1 = sld [smem:[#allocation71_spill]] }
  0x68   : > { %18214 = sst [smem:[#allocation26_spill]] %s18213_s21  ;;  %s644_s17 = scalar_lea.vmem [#allocation2], %s11521_s24 }
  0x69   : > { %s651_s12 = sshll.u32 %s644_s17, 4  ;;  %p12453_p0 = pnand %p11804_p4, %p58_p11  ;;  %s12457_s12 = int_to_ptr.vmem [resolvable:$true] %s651_s12 }
  0x6b   : > { %p12034_p7 = pneg %p12453_p0 }
  0x6d   : > { %s12451_s8 = scalar_lea.hbm %s18215_s1, %s11564_s3  ;;  %s12037_s14 = scalar_lea.hbm %s18215_s1, 2048 }
  0x6e   : > { %s12032_s4 = scalar_lea.hbm %s12451_s8, 1024  ;;  %p12038_p9 = scmp.lt.s32.totalorder %s12451_s8, %s18215_s1 }
  0x6f   : > { %p12033_p2 = scmp.ne.s32.totalorder %s12451_s8, %s12032_s4  ;;  %p12039_p10 = scmp.lt.s32.totalorder %s12037_s14, %s12032_s4 }
  0x71   : > { %p12035_p5 = pnand %p12034_p7, %p12033_p2  ;;  %p12040_p11 = por %p12039_p10, %p12038_p9 }
  0x73   : > { %p12036_p8 = pneg %p12035_p5 }
  0x75   : > { %p12041_p12 = pnand %p12040_p11, %p12036_p8 }
  0x77   : > { %12044 = shalt.err (!%p12041_p12)
}
  0x78   : > { %s12045_s20 = scalar_lea.vmem %s12457_s12, 1024  ;;  %s12177_s3 = smov [#allocation2]  }
  0x79   : > { %p12046_p1 = scmp.ne.s32.totalorder %s12457_s12, %s12045_s20  ;;  %s12050_s24 = sshll.u32 %s12177_s3, 4  ;;  %s12051_s24 = int_to_ptr.vmem [resolvable:$false] %s12050_s24 }
  0x7a   : > { %s12052_s26 = scalar_lea.vmem %s12051_s24, 2048  ;;  %p12053_p5 = scmp.lt.s32.totalorder %s12457_s12, %s12051_s24 }
  0x7b   : > { %p12048_p4 = pnand %p12046_p1, %p12034_p7  ;;  %p12054_p3 = scmp.lt.s32.totalorder %s12052_s26, %s12045_s20 }
  0x7d   : > { %p12049_p2 = pneg %p12048_p4  ;;  %p12055_p6 = por %p12054_p3, %p12053_p5 }
  0x7f   : > { %p12056_p9 = pnand %p12055_p6, %p12049_p2 }
  0x81   : > { %12059 = shalt.err (!%p12056_p9)
}
  0x82   : > { %s12178_s4 = smov 128   ;;  %s12179_s14 = smov 8  }
  0x83   : > { %s18217_s5 = scalar_lea.sflag [#allocation3], %s12440_s22  ;;  %s669_s17 = sand.u32 1, %s12168_s27  }
  0x84   : > { %11791 = dma.hbm_to_vmem [thread:$0]  (!%p12453_p0), %s12451_s8, 1024, %s12457_s12, %s18217_s5, %s12178_s4, %s12178_s4, %s12179_s14  }
  0x85   : > { %s11524_s3 = sshll.u32 %s12440_s22, 4  ;;  %s11565_s24 = sshll.u32 %s12168_s27, 8 }
  0x86   : > { %s673_s20 = scalar_lea.vmem [#allocation5], %s11524_s3  ;;  %s18218_s21 = sld [smem:[#allocation73_spill]] }
  0x87   : > { %s680_s26 = sshll.u32 %s673_s20, 4  ;;  %s12496_s30 = scalar_lea.sflag [#allocation6], %s669_s17  ;;  %s12494_s26 = int_to_ptr.vmem [resolvable:$true] %s680_s26 }
  0x8c   : > { %s12492_s2 = scalar_lea.hbm %s18218_s21, %s11565_s24  ;;  %s12065_s22 = scalar_lea.hbm %s18218_s21, 512 }
  0x8d   : > { %s12060_s15 = scalar_lea.hbm %s12492_s2, 256  ;;  %p12066_p10 = scmp.lt.s32.totalorder %s12492_s2, %s18218_s21 }
  0x8e   : > { %p12061_p6 = scmp.ne.s32.totalorder %s12492_s2, %s12060_s15  ;;  %p12067_p11 = scmp.lt.s32.totalorder %s12065_s22, %s12060_s15 }
  0x90   : > { %p12063_p3 = pnand %p12061_p6, %p12034_p7  ;;  %p12068_p12 = por %p12067_p11, %p12066_p10 }
  0x92   : > { %p12064_p8 = pneg %p12063_p3 }
  0x94   : > { %p12069_p1 = pnand %p12068_p12, %p12064_p8 }
  0x96   : > { %12072 = shalt.err (!%p12069_p1)
}
  0x97   : > { %s12073_s4 = scalar_lea.vmem %s12494_s26, 256  ;;  %s12180_s14 = smov [#allocation5]  }
  0x98   : > { %p12074_p4 = scmp.ne.s32.totalorder %s12494_s26, %s12073_s4  ;;  %s12078_s5 = sshll.u32 %s12180_s14, 4  ;;  %s12079_s5 = int_to_ptr.vmem [resolvable:$false] %s12078_s5 }
  0x99   : > { %s12080_s17 = scalar_lea.vmem %s12079_s5, 512  ;;  %p12081_p9 = scmp.lt.s32.totalorder %s12494_s26, %s12079_s5 }
  0x9a   : > { %p12076_p2 = pnand %p12074_p4, %p12034_p7  ;;  %p12082_p6 = scmp.lt.s32.totalorder %s12080_s17, %s12073_s4 }
  0x9c   : > { %p12077_p5 = pneg %p12076_p2  ;;  %p12083_p3 = por %p12082_p6, %p12081_p9 }
  0x9e   : > { %p12084_p10 = pnand %p12083_p3, %p12077_p5 }
  0xa0   : > { %12087 = shalt.err (!%p12084_p10)
}
  0xa1   : > { %s12181_s15 = smov 64   ;;  %s12182_s3 = smov 4  }
  0xa2   : > { %11794 = dma.hbm_to_vmem [thread:$0]  (!%p12453_p0), %s12492_s2, 256, %s12494_s26, %s12496_s30, %s12181_s15, %s12181_s15, %s12182_s3  }
  0xa3   : > { %p18219_p7 = scmp.ne.s32.totalorder %s18199_s0, 0 }
  0xa5   : > { %700 = sbr.rel (%p18219_p7) target bundleno = 4829 (0x12dd), region = 104 }
  0xaa   : > { %s12524_s24 = sand.u32 1, %s12160_s25  }
  0xab   : > { %s11528_s20 = sshll.u32 %s12524_s24, 6  ;;  %s703_s8 = scalar_lea.sflag [#allocation3], %s12524_s24 }
  0xac   : > { %s12528_s12 = scalar_lea.vmem [#allocation2], %s11528_s20 }
  0xad   : > { %12131 = dma.done.wait (%p12430_p13), %s703_s8, 1024  }
  0xae   : > { %12133 = vsyncadd (%p12430_p13), %s703_s8, 4294966272  ;;  %s711_s16 = sand.u32 1, %s12343_s29   ;;  %s18161_s2 = sshll.u32 %s12524_s24, 4 }
  0xaf   : > { %s712_s0 = scalar_lea.sflag [#allocation6], %s711_s16  ;;  %s715_s30 = scalar_lea.vmem [#allocation5], %s18161_s2 }
  0xb0   : > { %12135 = dma.done.wait (%p12430_p13), %s712_s0, 256  }
  0xb1   : > { %12137 = vsyncadd (%p12430_p13), %s712_s0, 4294967040  ;;  %p18220_p0 = scmp.eq.s32.totalorder %s12343_s29, 0 }
  0xb3   : > { %12139 = dma.done.wait (%p18220_p0), [#allocation6], 128   ;;  %p18221_p8 = pmov %p18220_p0 }
  0xb4   : > { %p18222_p11 = pmov %p18220_p0 }
  0xb5   : > { %12141 = vsyncadd (%p18221_p8), [#allocation6], 4294967168 }
  0xb6   : > { %12143 = dma.done.wait (%p18222_p11), [#allocation9], 256   ;;  %p18223_p12 = pmov %p18220_p0 }
  0xb7   : > { %p18224_p1 = pmov %p18220_p0 }
  0xb8   : > { %12145 = vsyncadd (%p18223_p12), [#allocation9], 4294967040 }
  0xb9   : > { %12147 = dma.done.wait (%p18224_p1), [#allocation12], 2176   ;;  %p18225_p4 = pmov %p18220_p0 }
  0xba   : > { %p809_p13 = scmp.lt.s32.totalorder %s12343_s29, 1  ;;  %s18226_s1 = sld [smem:[#allocation72_spill]]  ;;  %v4397_v4 = vld [vmem:[%s715_s30 + $0x4] sm:$0xf]  ;;  %v4396_v5 = vld [vmem:[%s715_s30] sm:$0xf]  ;;  %v925_v38 = vlaneseq }
  0xbb   : > { %12149 = vsyncadd (%p18225_p4), [#allocation12], 4294965120  ;;  %s12183_s14 = smov 1   ;;  %v4399_v6 = vld [vmem:[%s715_s30 + $0xc] sm:$0xf]  ;;  %v18116_v8 = vmov 0.0  }
  0xbc   : > { %s12556_s23 = scalar_select %p809_p13, %s12343_s29, 1  ;;  %v4398_v7 = vld [vmem:[%s715_s30 + $0x8] sm:$0xf]  ;;  %11625 = vmatprep.subr.mxu1 %v18116_v8  ;;  %3103 = vmatprep.mubr.f32.mxu0 %v18116_v8  ;;  %vm861_vm0 = vcmask 7168   ;;  %vm3138_vm1 = vcmask 72704   ;;  %vm887_vm2 = vcmask 1040384  }
  0xbd   : > { %s12185_s5 = smov 127   ;;  %vm18128_vm3 = vcmask 39936   ;;  %v12186_v36 = vmov 1983009808   ;;  %s12187_s17 = smov 126   ;;  %vm18127_vm4 = vcmask 1044480  }
  0xbe   : > { %s11566_s26 = sshll.u32 %s12556_s23, 5  ;;  %v923_v37 = vunpack.c.l.s4 %v12186_v36  ;;  %v12652_v59 = vshrl.u32 %v925_v38, 7  ;;  %vm2296_vm5 = vcmask 1045504   ;;  %vm18182_vm6 = vcmask 1046528   ;;  %s12189_s15 = smov 8  }
  0xbf   : > { %s18174_s3 = smov 16   ;;  %s18172_s20 = smov 32   ;;  %vm12197_vm7 = vmmov 0   ;;  %vm3259_vm8 = vcmask 64512   ;;  %vm1112_vm9 = vcmask 130048   ;;  %vm18166_vm10 = vcmask 195584  }
  0xc0   : > { %s813_s4 = scalar_lea.vmem %s18226_s1, %s11566_s26  ;;  %v924_v58 = vunpack.c.0.s8 %v923_v37  ;;  %s12192_s8 = smov 48   ;;  %11635 = vmatprep.mubr.msk.f32.mxu1 %vm12197_vm7, %v18116_v8  ;;  %vm1114_vm11 = vcmask 261120   ;;  %vm18130_vm12 = vcmask 326656   ;;  %vm1116_vm13 = vcmask 392192  }
  0xc1   : > { %v3114_v0 = vld [vmem:[%s813_s4 + $0x10] sm:$0xff]  ;;  %v3112_v1 = vld [vmem:[%s813_s4] sm:$0xff]  ;;  %v3115_v2 = vld [vmem:[%s813_s4 + $0x18] sm:$0xff]  ;;  %s18176_s16 = smov 24   ;;  %s12194_s0 = smov 40   ;;  %vm18129_vm14 = vcmask 457728  }
  0xc2   : > { %3126 = vrot.lane.b32.xlu1 %v3114_v0, %s12183_s14  ;;  %3122 = vrot.lane.b32.xlu0 %v3112_v1, %s12183_s14  ;;  %v3113_v3 = vld [vmem:[%s813_s4 + $0x8] sm:$0xff]  ;;  %v12659_v60 = vsub.s32 %v924_v58, %v12652_v59  ;;  %s12195_s30 = smov 56   ;;  %s18170_s26 = smov 4   ;;  %vm3015_vm15 = vcmask 1043456  }
  0xc3   : > { %s18168_s22 = smov 12   ;;  %s12199_s1 = smov 64  }
  0xc4   : > { %18227 = vst [vmem:[#allocation27_spill] sm:$0xff] %v12659_v60  ;;  %s12200_s4 = smov 80   ;;  %s12202_s28 = smov 112  }
  0xc5   : > { %s18179_s2 = smov 88  }
  0xc6   : > { %3128 = vrot.lane.b32.xlu1 %v3115_v2, %s12183_s14  ;;  %3124 = vrot.lane.b32.xlu0 %v3113_v3, %s12183_s14 }
  0xca   : > { %4408 = vrot.lane.b32.xlu1 %v4397_v4, %s12183_s14  ;;  %4406 = vrot.lane.b32.xlu0 %v4396_v5, %s12183_s14 }
  0xce   : > { %4412 = vrot.lane.b32.xlu1 %v4399_v6, %s12183_s14  ;;  %4410 = vrot.lane.b32.xlu0 %v4398_v7, %s12183_s14 }
 0x134   : > { %v3127_v9 = vpop.permute.xlu1 %3126  ;;  %v3123_v10 = vpop.permute.xlu0 %3122 }
 0x135   : > { %v3136_v11 = vsel %vm861_vm0, 0.0, %v3127_v9  ;;  %v3134_v12 = vsel %vm861_vm0, 0.0, %v3123_v10 }
 0x136   : > { %v12575_v13 = vsel %vm3138_vm1, %v3136_v11, 0.0  ;;  %v12578_v14 = vsel %vm3138_vm1, %v3134_v12, 0.0 }
 0x137   : > { %v3147_v15 = vrot.slane %v12578_v14, 7  ;;  %v3149_v18 = vrot.slane %v12575_v13, 7 }
 0x138   : > { %v3129_v16 = vpop.permute.xlu1 %3128  ;;  %v3125_v17 = vpop.permute.xlu0 %3124 }
 0x139   : > { %v12585_v19 = vsel %vm887_vm2, 0.0, %v3147_v15  ;;  %v3137_v20 = vsel %vm861_vm0, 0.0, %v3129_v16  ;;  %v3135_v21 = vsel %vm861_vm0, 0.0, %v3125_v17  ;;  %v12600_v26 = vsel %vm887_vm2, 0.0, %v3149_v18 }
 0x13a   : > { %3274 = vrot.lane.b32.xlu0 %v12585_v19, %s12185_s5  ;;  %v12592_v22 = vsel %vm3138_vm1, %v3137_v20, 0.0  ;;  %v12595_v23 = vsel %vm3138_vm1, %v3135_v21, 0.0  ;;  %v3163_v61 = vcombine.low %v12585_v19, %v12600_v26  ;;  %v3159_v7 = vsel %vm887_vm2, %v3147_v15, 0.0 }
 0x13b   : > { %v3148_v27 = vrot.slane %v12595_v23, 7  ;;  %v3150_v30 = vrot.slane %v12592_v22, 7  ;;  %v3858_v11 = vrot.slane %v3159_v7, 2  ;;  %v3857_v12 = vrot.slane %v12585_v19, 2 }
 0x13c   : > { %v4409_v24 = vpop.permute.xlu1 %4408  ;;  %v4407_v25 = vpop.permute.xlu0 %4406  ;;  %v12670_v63 = vrot.slane %v3163_v61, %v12659_v60  ;;  %v3161_v14 = vsel %vm887_vm2, %v3149_v18, 0.0  ;;  %v3164_v15 = vcombine.high %v12585_v19, %v12600_v26 }
 0x13d   : > { %v4419_v28 = vsel %vm861_vm0, 0.0, %v4409_v24  ;;  %v4418_v29 = vsel %vm861_vm0, 0.0, %v4407_v25  ;;  %v12613_v33 = vsel %vm887_vm2, 0.0, %v3148_v27  ;;  %v12622_v43 = vsel %vm887_vm2, 0.0, %v3150_v30 }
 0x13e   : > { %3278 = vrot.lane.b32.xlu0 %v12600_v26, %s12185_s5  ;;  %v4424_v31 = vsel %vm18128_vm3, %v4419_v28, 0.0  ;;  %v4423_v32 = vsel %vm18128_vm3, %v4418_v29, 0.0  ;;  %3276 = vrot.lane.b32.xlu1 %v12613_v33, %s12185_s5  ;;  %v3179_v62 = vcombine.low %v12613_v33, %v12622_v43  ;;  %v3180_v16 = vcombine.high %v12613_v33, %v12622_v43 }
 0x13f   : > { %v4432_v39 = vrot.slane %v4424_v31, 7  ;;  %v4431_v40 = vrot.slane %v4423_v32, 7  ;;  %v3160_v17 = vsel %vm887_vm2, %v3148_v27, 0.0  ;;  %v12720_v13 = vrot.slane %v3164_v15, %v12659_v60 }
 0x140   : > { %v4413_v34 = vpop.permute.xlu1 %4412  ;;  %v4411_v35 = vpop.permute.xlu0 %4410  ;;  %v12673_v0 = vrot.slane %v3179_v62, %v12659_v60  ;;  %v12723_v18 = vrot.slane %v3180_v16, %v12659_v60  ;;  %v3864_v24 = vrot.slane %v3161_v14, 2  ;;  %v12732_v23 = vsel %vm2296_vm5, %v3857_v12, %v3858_v11 }
 0x141   : > { %v4421_v41 = vsel %vm861_vm0, 0.0, %v4413_v34  ;;  %v4420_v42 = vsel %vm861_vm0, 0.0, %v4411_v35  ;;  %v4440_v46 = vsel %vm887_vm2, 0.0, %v4432_v39  ;;  %v4439_v47 = vsel %vm887_vm2, 0.0, %v4431_v40 }
 0x142   : > { %3389 = vrot.lane.b32.xlu0 %v12585_v19, %s12187_s17  ;;  %v4426_v44 = vsel %vm18128_vm3, %v4421_v41, 0.0  ;;  %v4425_v45 = vsel %vm18128_vm3, %v4420_v42, 0.0  ;;  %3280 = vrot.lane.b32.xlu1 %v12622_v43, %s12185_s5  ;;  %v12633_v50 = vsel %vm18127_vm4, %v4440_v46, 0.0  ;;  %v12640_v53 = vsel %vm18127_vm4, %v4439_v47, 0.0 }
 0x143   : > { %v4434_v48 = vrot.slane %v4426_v44, 7  ;;  %v4433_v49 = vrot.slane %v4425_v45, 7  ;;  %v12678_v1 = vrot.slane %v12640_v53, 1  ;;  %v12681_v2 = vrot.slane %v12633_v50, 1 }
 0x144   : > { %v3195_v5 = vcombine.low %v12670_v63, %v12673_v0  ;;  %v3196_v6 = vcombine.high %v12670_v63, %v12673_v0  ;;  %v3863_v25 = vrot.slane %v12600_v26, 2  ;;  %v3211_v28 = vcombine.low %v12720_v13, %v12723_v18 }
 0x145   : > { %v4442_v51 = vsel %vm887_vm2, 0.0, %v4434_v48  ;;  %v4441_v52 = vsel %vm887_vm2, 0.0, %v4433_v49  ;;  %v3212_v29 = vcombine.high %v12720_v13, %v12723_v18  ;;  %v3861_v32 = vrot.slane %v3160_v17, 2 }
 0x146   : > { %3393 = vrot.lane.b32.xlu0 %v12600_v26, %s12187_s17  ;;  %v12643_v54 = vsel %vm18127_vm4, %v4441_v52, 0.0  ;;  %v12646_v55 = vsel %vm18127_vm4, %v4442_v51, 0.0  ;;  %3391 = vrot.lane.b32.xlu1 %v12613_v33, %s12187_s17  ;;  %v3860_v34 = vrot.slane %v12613_v33, 2  ;;  %v3162_v36 = vsel %vm887_vm2, %v3150_v30, 0.0 }
 0x147   : > { %v4448_v56 = vcombine.low %v12640_v53, %v12643_v54  ;;  %v4456_v57 = vcombine.low %v12633_v50, %v12646_v55  ;;  %v12684_v3 = vrot.slane %v12643_v54, 1  ;;  %v12687_v4 = vrot.slane %v12646_v55, 1 }
 0x148   : > { %v12756_v37 = vsel %vm2296_vm5, %v3863_v25, %v3864_v24  ;;  %v3867_v40 = vrot.slane %v3162_v36, 2  ;;  %v12765_v22 = vsel %vm2296_vm5, %v3860_v34, %v3861_v32  ;;  %v3866_v30 = vrot.slane %v12622_v43, 2 }
 0x149   : > { %v4633_v9 = vcombine.low %v12678_v1, %v12684_v3  ;;  %v4641_v10 = vcombine.low %v12681_v2, %v12687_v4  ;;  %v12736_v27 = vrot.slane %v4448_v56, %v12659_v60  ;;  %v12748_v35 = vrot.slane %v4456_v57, %v12659_v60 }
 0x14a   : > { %4503 = vrot.lane.b32.xlu0 %v12640_v53, %s12185_s5  ;;  %3395 = vrot.lane.b32.xlu1 %v12622_v43, %s12187_s17  ;;  %v3868_v41 = vsel %vm2296_vm5, %v3866_v30, %v3867_v40  ;;  %v3509_v42 = vrot.slane %v3159_v7, 1  ;;  %v3508_v44 = vrot.slane %v12585_v19, 1  ;;  %v3515_v45 = vrot.slane %v3161_v14, 1 }
 0x14b   : > { %v12726_v20 = vrot.slane %v4633_v9, %v12659_v60  ;;  %v12729_v21 = vrot.slane %v4641_v10, %v12659_v60  ;;  %v3514_v47 = vrot.slane %v12600_v26, 1  ;;  %v3512_v48 = vrot.slane %v3160_v17, 1 }
 0x14c   : > { %v12780_v46 = vsel %vm18182_vm6, %v3508_v44, %v3509_v42  ;;  %v3511_v49 = vrot.slane %v12613_v33, 1  ;;  %v3518_v51 = vrot.slane %v3162_v36, 1  ;;  %v3517_v56 = vrot.slane %v12622_v43, 1 }
 0x14d   : > { %v4650_v31 = vcombine.high %v12726_v20, %v12729_v21  ;;  %v12788_v19 = vsel %vm18182_vm6, %v3514_v47, %v3515_v45  ;;  %v12803_v33 = vrot.slane %v12640_v53, 2  ;;  %v12809_v43 = vrot.slane %v12643_v54, 2 }
 0x14e   : > { %4507 = vrot.lane.b32.xlu0 %v12643_v54, %s12185_s5  ;;  %4505 = vrot.lane.b32.xlu1 %v12633_v50, %s12185_s5  ;;  %v3513_v52 = vsel %vm18182_vm6, %v3511_v49, %v3512_v48  ;;  %v3519_v26 = vsel %vm18182_vm6, %v3517_v56, %v3518_v51  ;;  %v12812_v57 = vrot.slane %v12633_v50, 2  ;;  %v3889_v58 = vcombine.low %v12765_v22, %v3868_v41 }
 0x14f   : > { %v3873_v62 = vcombine.low %v12732_v23, %v12756_v37  ;;  %v3890_v7 = vcombine.high %v12765_v22, %v3868_v41  ;;  %v3874_v10 = vcombine.high %v12732_v23, %v12756_v37  ;;  %v3540_v11 = vcombine.low %v3513_v52, %v3519_v26 }
 0x150   : > { %v3524_v12 = vcombine.low %v12780_v46, %v12788_v19  ;;  %v3541_v16 = vcombine.high %v3513_v52, %v3519_v26  ;;  %v3525_v24 = vcombine.high %v12780_v46, %v12788_v19  ;;  %v4649_v13 = vcombine.low %v12726_v20, %v12729_v21 }
 0x151   : > { %v3904_v15 = vrot.slane %v3890_v7, %v12659_v60  ;;  %v3888_v17 = vrot.slane %v3874_v10, %v12659_v60  ;;  %vm3029_vm4 = vcmask 293888   ;;  %vm18165_vm3 = vcmask 31744  }
 0x152   : > { %4564 = vrot.lane.b32.xlu0 %v12640_v53, %s12187_s17  ;;  %4509 = vrot.lane.b32.xlu1 %v12646_v55, %s12185_s5  ;;  %v12819_v53 = vrot.slane %v12646_v55, 2  ;;  %v3555_v36 = vrot.slane %v3541_v16, %v12659_v60 }
 0x153   : > { %v3921_v25 = vcombine.low %v3888_v17, %v3904_v15  ;;  %v3922_v40 = vcombine.high %v3888_v17, %v3904_v15 }
 0x154   : > { %v4820_v56 = vcombine.low %v12812_v57, %v12819_v53 }
 0x156   : > { %4568 = vrot.lane.b32.xlu0 %v12643_v54, %s12187_s17  ;;  %4566 = vrot.lane.b32.xlu1 %v12633_v50, %s12187_s17  ;;  %v12188_v50 = vmov 1934713408  }
 0x157   : > { %v955_v54 = vunpack.c.l.s4 %v12188_v50 }
 0x15a   : > { %3976 = vrot.lane.b32.xlu0 %v12732_v23, %s12185_s5  ;;  %4570 = vrot.lane.b32.xlu1 %v12646_v55, %s12187_s17  ;;  %v956_v55 = vunpack.c.0.s8 %v955_v54 }
 0x15c   : > { %v12839_v61 = vsub.s32 %v956_v55, %v12652_v59  ;;  %v3897_v59 = vrot.slane %v3889_v58, %v12659_v60 }
 0x15e   : > { %3980 = vrot.lane.b32.xlu0 %v12756_v37, %s12185_s5  ;;  %3978 = vrot.lane.b32.xlu1 %v12765_v22, %s12185_s5  ;;  %18228 = vst [vmem:[#allocation28_spill] sm:$0xff] %v12839_v61  ;;  %v12852_v9 = vrot.slane %v3195_v5, %v12839_v61  ;;  %v3210_v32 = vrot.slane %v3196_v6, %v12839_v61 }
 0x15f   : > { %v3936_v6 = vrot.slane %v3922_v40, %v12839_v61 }
 0x160   : > { %v3227_v5 = vcombine.high %v12852_v9, %v18116_v8 }
 0x161   : > { %v3940_v58 = vcombine.high %v3936_v6, %v18116_v8 }
 0x162   : > { %4091 = vrot.lane.b32.xlu0 %v12732_v23, %s12187_s17  ;;  %3982 = vrot.lane.b32.xlu1 %v3868_v41, %s12185_s5  ;;  %v3532_v23 = vrot.slane %v3524_v12, %v12659_v60 }
 0x166   : > { %4095 = vrot.lane.b32.xlu0 %v12756_v37, %s12187_s17  ;;  %4093 = vrot.lane.b32.xlu1 %v12765_v22, %s12187_s17  ;;  %v3539_v37 = vrot.slane %v3525_v24, %v12659_v60 }
 0x168   : > { %v3572_v63 = vcombine.low %v3539_v37, %v3555_v36  ;;  %v3573_v54 = vcombine.high %v3539_v37, %v3555_v36 }
 0x16a   : > { %3742 = vrot.lane.b32.xlu0 %v12780_v46, %s12187_s17  ;;  %4097 = vrot.lane.b32.xlu1 %v3868_v41, %s12187_s17  ;;  %v3580_v42 = vrot.slane %v3572_v63, %v12839_v61 }
 0x16c   : > { %v3590_v50 = vcombine.high %v3580_v42, %v18116_v8 }
 0x16e   : > { %3746 = vrot.lane.b32.xlu0 %v12788_v19, %s12187_s17  ;;  %3744 = vrot.lane.b32.xlu1 %v3513_v52, %s12187_s17 }
 0x172   : > { %3627 = vrot.lane.b32.xlu0 %v12780_v46, %s12185_s5  ;;  %3748 = vrot.lane.b32.xlu1 %v3519_v26, %s12187_s17 }
 0x176   : > { %3631 = vrot.lane.b32.xlu0 %v12788_v19, %s12185_s5  ;;  %3629 = vrot.lane.b32.xlu1 %v3513_v52, %s12185_s5  ;;  %v4812_v52 = vcombine.low %v12803_v33, %v12809_v43 }
 0x17a   : > { %4861 = vrot.lane.b32.xlu0 %v12803_v33, %s12185_s5  ;;  %3633 = vrot.lane.b32.xlu1 %v3519_v26, %s12185_s5 }
 0x17e   : > { %4865 = vrot.lane.b32.xlu0 %v12809_v43, %s12185_s5  ;;  %4863 = vrot.lane.b32.xlu1 %v12812_v57, %s12185_s5 }
 0x182   : > { %4922 = vrot.lane.b32.xlu0 %v12803_v33, %s12187_s17  ;;  %4867 = vrot.lane.b32.xlu1 %v12819_v53, %s12185_s5  ;;  %v3219_v33 = vrot.slane %v3211_v28, %v12839_v61 }
 0x184   : > { %v3229_v24 = vcombine.high %v3219_v33, %v18116_v8 }
 0x186   : > { %4926 = vrot.lane.b32.xlu0 %v12809_v43, %s12187_s17  ;;  %4924 = vrot.lane.b32.xlu1 %v12812_v57, %s12187_s17  ;;  %v3587_v43 = vrot.slane %v3573_v54, %v12839_v61  ;;  %v4819_v57 = vrot.slane %v4812_v52, %v12659_v60 }
 0x188   : > { %v3591_v10 = vcombine.high %v3587_v43, %v18116_v8 }
 0x18a   : > { %4743 = vrot.lane.b32.xlu0 %v12678_v1, %s12187_s17  ;;  %4928 = vrot.lane.b32.xlu1 %v12819_v53, %s12187_s17  ;;  %v4827_v53 = vrot.slane %v4820_v56, %v12659_v60 }
 0x18e   : > { %4747 = vrot.lane.b32.xlu0 %v12684_v3, %s12187_s17  ;;  %4745 = vrot.lane.b32.xlu1 %v12681_v2, %s12187_s17 }
 0x192   : > { %4682 = vrot.lane.b32.xlu0 %v12678_v1, %s12185_s5  ;;  %4749 = vrot.lane.b32.xlu1 %v12687_v4, %s12187_s17  ;;  %v3881_v1 = vrot.slane %v3873_v62, %v12659_v60 }
 0x194   : > { %v3906_v14 = vcombine.high %v3881_v1, %v3897_v59  ;;  %v3905_v22 = vcombine.low %v3881_v1, %v3897_v59  ;;  %v3228_v1 = vcombine.high %v3210_v32, %v18116_v8 }
 0x196   : > { %4686 = vrot.lane.b32.xlu0 %v12684_v3, %s12185_s5  ;;  %4684 = vrot.lane.b32.xlu1 %v12681_v2, %s12185_s5  ;;  %v3548_v3 = vrot.slane %v3540_v11, %v12659_v60  ;;  %v3920_v2 = vrot.slane %v3906_v14, %v12839_v61  ;;  %v12890_v41 = vrot.slane %v3905_v22, %v12839_v61 }
 0x197   : > { %v4828_v11 = vcombine.low %v4819_v57, %v4827_v53  ;;  %v3226_v14 = vrot.slane %v3212_v29, %v12839_v61 }
 0x198   : > { %v3557_v34 = vcombine.high %v3532_v23, %v3548_v3  ;;  %v3556_v0 = vcombine.low %v3532_v23, %v3548_v3  ;;  %v3937_v45 = vcombine.high %v12890_v41, %v18116_v8  ;;  %v3938_v48 = vcombine.high %v3920_v2, %v18116_v8 }
 0x199   : > { %v12943_v15 = vrot.slane %v4828_v11, %v12839_v61  ;;  %v4829_v23 = vcombine.high %v4819_v57, %v4827_v53  ;;  %v3230_v40 = vcombine.high %v3226_v14, %v18116_v8 }
 0x19a   : > { %3232 = vrot.lane.b32.xlu0 %v3227_v5, %s12189_s15  ;;  %4688 = vrot.lane.b32.xlu1 %v12687_v4, %s12185_s5  ;;  %v3929_v4 = vrot.slane %v3921_v25, %v12839_v61  ;;  %v3571_v30 = vrot.slane %v3557_v34, %v12839_v61  ;;  %v12895_v44 = vrot.slane %v3556_v0, %v12839_v61 }
 0x19b   : > { %18229 = vst [vmem:[#allocation29_spill] sm:$0xff] %v12943_v15  ;;  %v4844_v34 = vcombine.high %v12943_v15, %v18116_v8 }
 0x19c   : > { %v3588_v46 = vcombine.high %v12895_v44, %v18116_v8  ;;  %v3589_v49 = vcombine.high %v3571_v30, %v18116_v8  ;;  %v3939_v51 = vcombine.high %v3929_v4, %v18116_v8 }
 0x19e   : > { %3946 = vrot.lane.b32.xlu0 %v3920_v2, %s18174_s3  ;;  %3236 = vrot.lane.b32.xlu1 %v3210_v32, %s18174_s3 }
 0x1a2   : > { %3954 = vrot.lane.b32.xlu0 %v3929_v4, %s18172_s20  ;;  %3597 = vrot.lane.b32.xlu1 %v3571_v30, %s18174_s3  ;;  %v12966_v30 = vrot.slane %v4829_v23, %v12839_v61 }
 0x1a6   : > { %3962 = vrot.lane.b32.xlu0 %v3936_v6, %s12192_s8  ;;  %3605 = vrot.lane.b32.xlu1 %v3580_v42, %s18172_s20 }
 0x1aa   : > { %3942 = vrot.lane.b32.xlu0 %v3937_v45, %s12189_s15  ;;  %3593 = vrot.lane.b32.xlu1 %v3588_v46, %s12189_s15  ;;  %v12974_v45 = vrot.slane %v4649_v13, %v12839_v61 }
 0x1ac   : > { %v12904_v47 = vpop.permute.xlu0 %3274  ;;  %18230 = vst [vmem:[#allocation30_spill] sm:$0xff] %v12974_v45  ;;  %v4665_v56 = vcombine.high %v12974_v45, %v18116_v8 }
 0x1ae   : > { %3950 = vrot.lane.b32.xlu0 %v3938_v48, %s18176_s16  ;;  %3601 = vrot.lane.b32.xlu1 %v3589_v49, %s18176_s16 }
 0x1b0   : > { %v3279_v19 = vpop.permute.xlu0 %3278  ;;  %v3277_v26 = vpop.permute.xlu1 %3276 }
 0x1b1   : > { %v3287_v18 = vcombine.high %v12904_v47, %v3279_v19  ;;  %v3286_v36 = vcombine.low %v12904_v47, %v3279_v19 }
 0x1b2   : > { %3958 = vrot.lane.b32.xlu0 %v3939_v51, %s12194_s0  ;;  %3609 = vrot.lane.b32.xlu1 %v3590_v50, %s12194_s0 }
 0x1b3   : > { %v3301_v63 = vrot.slane %v3287_v18, %v12659_v60  ;;  %v3294_v46 = vrot.slane %v3286_v36, %v12659_v60 }
 0x1b4   : > { %v12918_v55 = vpop.permute.xlu0 %3389  ;;  %v3281_v62 = vpop.permute.xlu1 %3280 }
 0x1b5   : > { %v3303_v3 = vcombine.high %v3277_v26, %v3281_v62  ;;  %v3302_v29 = vcombine.low %v3277_v26, %v3281_v62 }
 0x1b6   : > { %3966 = vrot.lane.b32.xlu0 %v3940_v58, %s12195_s30  ;;  %3244 = vrot.lane.b32.xlu1 %v3219_v33, %s18172_s20 }
 0x1b7   : > { %v3317_v4 = vrot.slane %v3303_v3, %v12659_v60  ;;  %v3310_v0 = vrot.slane %v3302_v29, %v12659_v60 }
 0x1b8   : > { %v3394_v7 = vpop.permute.xlu0 %3393  ;;  %v3392_v59 = vpop.permute.xlu1 %3391 }
 0x1b9   : > { %v3401_v12 = vcombine.low %v12918_v55, %v3394_v7  ;;  %v3402_v47 = vcombine.high %v12918_v55, %v3394_v7  ;;  %v3334_v19 = vcombine.low %v3301_v63, %v3317_v4  ;;  %v3319_v26 = vcombine.high %v3294_v46, %v3310_v0 }
 0x1ba   : > { %3613 = vrot.lane.b32.xlu0 %v3587_v43, %s12192_s8  ;;  %3617 = vrot.lane.b32.xlu1 %v3591_v10, %s12195_s30  ;;  %v3335_v62 = vcombine.high %v3301_v63, %v3317_v4  ;;  %v3318_v10 = vcombine.low %v3294_v46, %v3310_v0 }
 0x1bb   : > { %v3409_v25 = vrot.slane %v3401_v12, %v12659_v60  ;;  %v3416_v50 = vrot.slane %v3402_v47, %v12659_v60  ;;  %v3342_v58 = vrot.slane %v3334_v19, %v12839_v61  ;;  %v3333_v43 = vrot.slane %v3319_v26, %v12839_v61 }
 0x1bc   : > { %v12933_v28 = vpop.permute.xlu0 %4503  ;;  %v3396_v5 = vpop.permute.xlu1 %3395  ;;  %v3349_v7 = vrot.slane %v3335_v62, %v12839_v61 }
 0x1bd   : > { %v3417_v16 = vcombine.low %v3392_v59, %v3396_v5  ;;  %v3418_v6 = vcombine.high %v3392_v59, %v3396_v5 }
 0x1be   : > { %3240 = vrot.lane.b32.xlu0 %v3228_v1, %s18176_s16  ;;  %3252 = vrot.lane.b32.xlu1 %v3226_v14, %s12192_s8 }
 0x1bf   : > { %v3425_v2 = vrot.slane %v3417_v16, %v12659_v60  ;;  %v3432_v51 = vrot.slane %v3418_v6, %v12659_v60 }
 0x1c0   : > { %v12946_v17 = vpop.permute.xlu0 %4507  ;;  %v12954_v32 = vpop.permute.xlu1 %4505 }
 0x1c1   : > { %v3434_v22 = vcombine.high %v3409_v25, %v3425_v2  ;;  %v3433_v54 = vcombine.low %v3409_v25, %v3425_v2  ;;  %v3449_v57 = vcombine.low %v3416_v50, %v3432_v51  ;;  %v3450_v12 = vcombine.high %v3416_v50, %v3432_v51 }
 0x1c2   : > { %3248 = vrot.lane.b32.xlu0 %v3229_v24, %s12194_s0  ;;  %4847 = vrot.lane.b32.xlu1 %v4844_v34, %s18170_s26  ;;  %v13013_v24 = vrot.slane %v3318_v10, %v12839_v61  ;;  %v3352_v50 = vcombine.high %v3342_v58, %v18116_v8 }
 0x1c3   : > { %v3448_v49 = vrot.slane %v3434_v22, %v12839_v61  ;;  %v13003_v59 = vrot.slane %v3433_v54, %v12839_v61  ;;  %v3457_v1 = vrot.slane %v3449_v57, %v12839_v61  ;;  %v3464_v3 = vrot.slane %v3450_v12, %v12839_v61 }
 0x1c4   : > { %v12962_v37 = vpop.permute.xlu0 %4564  ;;  %v12970_v42 = vpop.permute.xlu1 %4509  ;;  %v3350_v18 = vcombine.high %v13013_v24, %v18116_v8 }
 0x1c5   : > { %v3465_v14 = vcombine.high %v13003_v59, %v18116_v8  ;;  %v3466_v23 = vcombine.high %v3448_v49, %v18116_v8  ;;  %v3467_v25 = vcombine.high %v3457_v1, %v18116_v8  ;;  %v3468_v47 = vcombine.high %v3464_v3, %v18116_v8 }
 0x1c6   : > { %3256 = vrot.lane.b32.xlu0 %v3230_v40, %s12195_s30  ;;  %4851 = vrot.lane.b32.xlu1 %v12966_v30, %s12189_s15  ;;  %v3351_v40 = vcombine.high %v3333_v43, %v18116_v8 }
 0x1c8   : > { %v12980_v48 = vpop.permute.xlu0 %4568  ;;  %v12984_v52 = vpop.permute.xlu1 %4566 }
 0x1c9   : > { %v4576_v21 = vcombine.low %v12962_v37, %v12980_v48  ;;  %v4845_v48 = vcombine.high %v12966_v30, %v18116_v8 }
 0x1ca   : > { %3474 = vrot.lane.b32.xlu0 %v3448_v49, %s18174_s3  ;;  %4668 = vrot.lane.b32.xlu1 %v4665_v56, %s18170_s26 }
 0x1cc   : > { %v12991_v55 = vpop.permute.xlu0 %3976  ;;  %v12994_v33 = vpop.permute.xlu1 %4570 }
 0x1ce   : > { %3367 = vrot.lane.b32.xlu0 %v3342_v58, %s18172_s20  ;;  %3359 = vrot.lane.b32.xlu1 %v3333_v43, %s18174_s3 }
 0x1d0   : > { %v12999_v53 = vpop.permute.xlu0 %3980  ;;  %v3979_v11 = vpop.permute.xlu1 %3978 }
 0x1d1   : > { %v3988_v0 = vcombine.low %v12991_v55, %v12999_v53 }
 0x1d2   : > { %3375 = vrot.lane.b32.xlu0 %v3349_v7, %s12192_s8  ;;  %3482 = vrot.lane.b32.xlu1 %v3457_v1, %s18172_s20  ;;  %v3353_v1 = vcombine.high %v3349_v7, %v18116_v8 }
 0x1d3   : > { %v13043_v54 = vrot.slane %v3988_v0, %v12659_v60 }
 0x1d4   : > { %v4092_v5 = vpop.permute.xlu0 %4091  ;;  %v3983_v16 = vpop.permute.xlu1 %3982 }
 0x1d5   : > { %v4004_v34 = vcombine.low %v3979_v11, %v3983_v16  ;;  %v4005_v10 = vcombine.high %v3979_v11, %v3983_v16 }
 0x1d6   : > { %3470 = vrot.lane.b32.xlu0 %v3465_v14, %s12189_s15  ;;  %3490 = vrot.lane.b32.xlu1 %v3464_v3, %s12192_s8 }
 0x1d7   : > { %v13032_v19 = vrot.slane %v4004_v34, %v12659_v60  ;;  %v4019_v11 = vrot.slane %v4005_v10, %v12659_v60 }
 0x1d8   : > { %v4096_v2 = vpop.permute.xlu0 %4095  ;;  %v4094_v13 = vpop.permute.xlu1 %4093 }
 0x1d9   : > { %v4103_v36 = vcombine.low %v4092_v5, %v4096_v2  ;;  %v4104_v6 = vcombine.high %v4092_v5, %v4096_v2  ;;  %v4021_v14 = vcombine.high %v13043_v54, %v13032_v19 }
 0x1da   : > { %3478 = vrot.lane.b32.xlu0 %v3466_v23, %s18176_s16  ;;  %3355 = vrot.lane.b32.xlu1 %v3350_v18, %s12189_s15  ;;  %v3989_v23 = vcombine.high %v12991_v55, %v12999_v53 }
 0x1db   : > { %v13035_v51 = vrot.slane %v4103_v36, %v12659_v60  ;;  %v13046_v62 = vrot.slane %v4104_v6, %v12659_v60  ;;  %v13072_v34 = vrot.slane %v4021_v14, %v12839_v61 }
 0x1dc   : > { %v3743_v29 = vpop.permute.xlu0 %3742  ;;  %v4098_v4 = vpop.permute.xlu1 %4097  ;;  %v4003_v53 = vrot.slane %v3989_v23, %v12659_v60 }
 0x1dd   : > { %v4119_v22 = vcombine.low %v4094_v13, %v4098_v4  ;;  %v4120_v63 = vcombine.high %v4094_v13, %v4098_v4 }
 0x1de   : > { %3486 = vrot.lane.b32.xlu0 %v3467_v25, %s12194_s0  ;;  %3363 = vrot.lane.b32.xlu1 %v3351_v40, %s18176_s16 }
 0x1df   : > { %v13029_v49 = vrot.slane %v4119_v22, %v12659_v60  ;;  %v13038_v56 = vrot.slane %v4120_v63, %v12659_v60  ;;  %v4036_v63 = vcombine.low %v4003_v53, %v4019_v11 }
 0x1e0   : > { %v3747_v46 = vpop.permute.xlu0 %3746  ;;  %v3745_v26 = vpop.permute.xlu1 %3744 }
 0x1e1   : > { %v4136_v57 = vcombine.high %v13035_v51, %v13029_v49  ;;  %v3754_v12 = vcombine.low %v3743_v29, %v3747_v46  ;;  %v4151_v3 = vcombine.low %v13046_v62, %v13038_v56  ;;  %v3755_v36 = vcombine.high %v3743_v29, %v3747_v46 }
 0x1e2   : > { %3494 = vrot.lane.b32.xlu0 %v3468_v47, %s12195_s30  ;;  %3371 = vrot.lane.b32.xlu1 %v3352_v50, %s12194_s0  ;;  %v4152_v23 = vcombine.high %v13046_v62, %v13038_v56 }
 0x1e3   : > { %v13053_v58 = vrot.slane %v4136_v57, %v12839_v61  ;;  %v13069_v13 = vrot.slane %v3754_v12, %v12659_v60  ;;  %v13075_v55 = vrot.slane %v4151_v3, %v12839_v61  ;;  %v3769_v29 = vrot.slane %v3755_v36, %v12659_v60 }
 0x1e4   : > { %v3628_v43 = vpop.permute.xlu0 %3627  ;;  %v3749_v5 = vpop.permute.xlu1 %3748  ;;  %v4037_v36 = vcombine.high %v4003_v53, %v4019_v11  ;;  %v13122_v11 = vrot.slane %v4152_v23, %v12839_v61 }
 0x1e5   : > { %v3770_v2 = vcombine.low %v3745_v26, %v3749_v5  ;;  %v3771_v18 = vcombine.high %v3745_v26, %v3749_v5  ;;  %v13098_v5 = vrot.slane %v4036_v63, %v12839_v61 }
 0x1e6   : > { %3379 = vrot.lane.b32.xlu1 %v3353_v1, %s12195_s30  ;;  %4176 = vrot.lane.b32.xlu0 %v13053_v58, %s18174_s3  ;;  %v4170_v38 = vcombine.high %v13122_v11, %v18116_v8 }
 0x1e7   : > { %v13066_v16 = vrot.slane %v3770_v2, %v12659_v60  ;;  %v3785_v0 = vrot.slane %v3771_v18, %v12659_v60 }
 0x1e8   : > { %v3632_v7 = vpop.permute.xlu0 %3631  ;;  %v3630_v25 = vpop.permute.xlu1 %3629 }
 0x1e9   : > { %v3787_v40 = vcombine.high %v13069_v13, %v13066_v16  ;;  %v3639_v22 = vcombine.low %v3628_v43, %v3632_v7  ;;  %v3802_v1 = vcombine.low %v3769_v29, %v3785_v0  ;;  %v3640_v14 = vcombine.high %v3628_v43, %v3632_v7 }
 0x1ea   : > { %4061 = vrot.lane.b32.xlu1 %v13072_v34, %s18174_s3  ;;  %4184 = vrot.lane.b32.xlu0 %v13075_v55, %s18172_s20  ;;  %v3803_v53 = vcombine.high %v3769_v29, %v3785_v0 }
 0x1eb   : > { %v13086_v47 = vrot.slane %v3787_v40, %v12839_v61  ;;  %v13092_v50 = vrot.slane %v3639_v22, %v12659_v60  ;;  %v13111_v22 = vrot.slane %v3802_v1, %v12839_v61  ;;  %v3654_v43 = vrot.slane %v3640_v14, %v12659_v60 }
 0x1ec   : > { %v4862_v4 = vpop.permute.xlu0 %4861  ;;  %v3634_v6 = vpop.permute.xlu1 %3633 }
 0x1ed   : > { %v3655_v26 = vcombine.low %v3630_v25, %v3634_v6  ;;  %v3656_v57 = vcombine.high %v3630_v25, %v3634_v6 }
 0x1ee   : > { %3827 = vrot.lane.b32.xlu1 %v13086_v47, %s18174_s3 }
 0x1ef   : > { %v13095_v10 = vrot.slane %v3655_v26, %v12659_v60  ;;  %v3670_v18 = vrot.slane %v3656_v57, %v12659_v60  ;;  %v13125_v57 = vrot.slane %v4037_v36, %v12839_v61 }
 0x1f0   : > { %v4866_v46 = vpop.permute.xlu0 %4865  ;;  %v4864_v12 = vpop.permute.xlu1 %4863 }
 0x1f1   : > { %v3672_v3 = vcombine.high %v13092_v50, %v13095_v10  ;;  %v4873_v7 = vcombine.low %v4862_v4, %v4866_v46  ;;  %v3687_v62 = vcombine.low %v3654_v43, %v3670_v18  ;;  %v3688_v29 = vcombine.high %v3654_v43, %v3670_v18 }
 0x1f2   : > { %4069 = vrot.lane.b32.xlu1 %v13098_v5, %s18172_s20  ;;  %v3786_v43 = vcombine.low %v13069_v13, %v13066_v16 }
 0x1f3   : > { %v13108_v25 = vrot.slane %v3672_v3, %v12839_v61  ;;  %v13128_v4 = vrot.slane %v4873_v7, %v12659_v60  ;;  %v13137_v0 = vrot.slane %v3687_v62, %v12839_v61  ;;  %v13140_v3 = vrot.slane %v3803_v53, %v12839_v61 }
 0x1f4   : > { %v4923_v2 = vpop.permute.xlu0 %4922  ;;  %v4868_v40 = vpop.permute.xlu1 %4867  ;;  %v13172_v13 = vrot.slane %v3786_v43, %v12839_v61 }
 0x1f5   : > { %v4881_v63 = vcombine.low %v4864_v12, %v4868_v40  ;;  %3712 = vrot.lane.b32.xlu0 %v13108_v25, %s18174_s3 }
 0x1f6   : > { %3835 = vrot.lane.b32.xlu1 %v13111_v22, %s18172_s20 }
 0x1f7   : > { %v13119_v6 = vrot.slane %v4881_v63, %v12659_v60  ;;  %v13158_v63 = vrot.slane %v3688_v29, %v12839_v61  ;;  %v4020_v29 = vcombine.low %v13043_v54, %v13032_v19  ;;  %v4135_v19 = vcombine.low %v13035_v51, %v13029_v49 }
 0x1f8   : > { %v4927_v56 = vpop.permute.xlu0 %4926  ;;  %v4925_v26 = vpop.permute.xlu1 %4924 }
 0x1f9   : > { %4192 = vrot.lane.b32.xlu0 %v13122_v11, %s12192_s8  ;;  %v4890_v1 = vcombine.high %v13128_v4, %v13119_v6  ;;  %v4934_v12 = vcombine.low %v4923_v2, %v4927_v56  ;;  %v13215_v51 = vrot.slane %v4135_v19, %v12839_v61  ;;  %v4054_v19 = vcombine.high %v13098_v5, %v18116_v8 }
 0x1fa   : > { %4077 = vrot.lane.b32.xlu1 %v13125_v57, %s12192_s8  ;;  %v3821_v11 = vcombine.high %v13140_v3, %v18116_v8 }
 0x1fb   : > { %v13147_v40 = vrot.slane %v4934_v12, %v12659_v60  ;;  %v13153_v18 = vrot.slane %v4890_v1, %v12839_v61 }
 0x1fc   : > { %v4744_v46 = vpop.permute.xlu0 %4743  ;;  %v4929_v14 = vpop.permute.xlu1 %4928 }
 0x1fd   : > { %v4942_v23 = vcombine.low %v4925_v26, %v4929_v14  ;;  %3720 = vrot.lane.b32.xlu0 %v13137_v0, %s18172_s20 }
 0x1fe   : > { %3843 = vrot.lane.b32.xlu1 %v13140_v3, %s12192_s8 }
 0x1ff   : > { %v13150_v2 = vrot.slane %v4942_v23, %v12659_v60 }
 0x200   : > { %v4748_v36 = vpop.permute.xlu0 %4747  ;;  %v4746_v7 = vpop.permute.xlu1 %4745 }
 0x201   : > { %v4951_v56 = vcombine.high %v13147_v40, %v13150_v2  ;;  %4912 = vrot.lane.b32.xlu0 %v13153_v18, %s12189_s15  ;;  %v4755_v53 = vcombine.low %v4744_v46, %v4748_v36  ;;  %v3818_v36 = vcombine.high %v13172_v13, %v18116_v8 }
 0x202   : > { %3728 = vrot.lane.b32.xlu1 %v13158_v63, %s12192_s8 }
 0x203   : > { %v13169_v26 = vrot.slane %v4951_v56, %v12839_v61  ;;  %v13181_v14 = vrot.slane %v4755_v53, %v12659_v60  ;;  %v13201_v56 = vrot.slane %v4020_v29, %v12839_v61  ;;  %v4053_v53 = vcombine.high %v13072_v34, %v18116_v8 }
 0x204   : > { %v13166_v62 = vpop.permute.xlu0 %4682  ;;  %v4750_v16 = vpop.permute.xlu1 %4749  ;;  %v3819_v29 = vcombine.high %v13086_v47, %v18116_v8 }
 0x205   : > { %v4763_v1 = vcombine.low %v4746_v7, %v4750_v16  ;;  %v4052_v49 = vcombine.high %v13201_v56, %v18116_v8 }
 0x206   : > { %4973 = vrot.lane.b32.xlu1 %v13169_v26, %s12189_s15 }
 0x207   : > { %v13184_v46 = vrot.slane %v4763_v1, %v12659_v60 }
 0x208   : > { %v13176_v12 = vpop.permute.xlu0 %4686  ;;  %v13186_v23 = vpop.permute.xlu1 %4684 }
 0x209   : > { %v4772_v43 = vcombine.high %v13181_v14, %v13184_v46 }
 0x20a   : > { %3823 = vrot.lane.b32.xlu1 %v3818_v36, %s12189_s15 }
 0x20b   : > { %v13198_v54 = vrot.slane %v4772_v43, %v12839_v61  ;;  %v3671_v43 = vcombine.low %v13092_v50, %v13095_v10  ;;  %v3820_v10 = vcombine.high %v13111_v22, %v18116_v8  ;;  %v4169_v22 = vcombine.high %v13075_v55, %v18116_v8 }
 0x20c   : > { %v13193_v7 = vpop.permute.xlu0 %3232  ;;  %v13205_v16 = vpop.permute.xlu1 %4688  ;;  %v4950_v55 = vcombine.low %v13147_v40, %v13150_v2  ;;  %v4523_v40 = vcombine.low %v12954_v32, %v12970_v42  ;;  %v3706_v42 = vcombine.high %v13158_v63, %v18116_v8 }
 0x20d   : > { %4794 = vrot.lane.b32.xlu0 %v13198_v54, %s12189_s15  ;;  %v4702_v32 = vcombine.low %v13186_v23, %v13205_v16 }
 0x20e   : > { %4065 = vrot.lane.b32.xlu1 %v4053_v53, %s18176_s16  ;;  %v4167_v53 = vcombine.high %v13215_v51, %v18116_v8  ;;  %v13294_v2 = vrot.slane %v4950_v55, %v12839_v61 }
 0x20f   : > { %v4709_v16 = vrot.slane %v4702_v32, %v12659_v60 }
 0x210   : > { %v13210_v1 = vpop.permute.xlu0 %3946  ;;  %v13219_v36 = vpop.permute.xlu1 %3236  ;;  %18232 = vst [vmem:[#allocation32_spill] sm:$0xff] %v13294_v2 }
 0x211   : > { %4057 = vrot.lane.b32.xlu0 %v4052_v49, %s12189_s15  ;;  %v4168_v49 = vcombine.high %v13053_v58, %v18116_v8  ;;  %v4055_v58 = vcombine.high %v13125_v57, %v18116_v8 }
 0x212   : > { %3831 = vrot.lane.b32.xlu1 %v3819_v29, %s18176_s16  ;;  %v13240_v29 = vrot.slane %v3671_v43, %v12839_v61 }
 0x214   : > { %v13223_v34 = vpop.permute.xlu0 %3954  ;;  %v13229_v39 = vpop.permute.xlu1 %3597 }
 0x215   : > { %4172 = vrot.lane.b32.xlu0 %v4167_v53, %s12189_s15  ;;  %v3703_v53 = vcombine.high %v13240_v29, %v18116_v8 }
 0x216   : > { %4073 = vrot.lane.b32.xlu1 %v4054_v19, %s12194_s0 }
 0x218   : > { %v13235_v47 = vpop.permute.xlu0 %3962  ;;  %v13242_v50 = vpop.permute.xlu1 %3605 }
 0x219   : > { %4180 = vrot.lane.b32.xlu0 %v4168_v49, %s18176_s16  ;;  %v4889_v49 = vcombine.low %v13128_v4, %v13119_v6  ;;  %v3705_v4 = vcombine.high %v13137_v0, %v18116_v8 }
 0x21a   : > { %3839 = vrot.lane.b32.xlu1 %v3820_v10, %s12194_s0 }
 0x21c   : > { %v13248_v5 = vpop.permute.xlu0 %3942  ;;  %v13252_v19 = vpop.permute.xlu1 %3593 }
 0x21d   : > { %3708 = vrot.lane.b32.xlu0 %v3703_v53, %s12189_s15  ;;  %v3704_v53 = vcombine.high %v13108_v25, %v18116_v8  ;;  %v4771_v25 = vcombine.low %v13181_v14, %v13184_v46  ;;  %v4530_v46 = vrot.slane %v4523_v40, %v12659_v60 }
 0x21e   : > { %4081 = vrot.lane.b32.xlu1 %v4055_v58, %s12195_s30  ;;  %v13275_v58 = vrot.slane %v4889_v49, %v12839_v61  ;;  %v4515_v49 = vcombine.low %v12933_v28, %v12946_v17  ;;  %v4966_v28 = vcombine.high %v13294_v2, %v18116_v8  ;;  %v4694_v17 = vcombine.low %v13166_v62, %v13176_v12 }
 0x21f   : > { %v13307_v0 = vrot.slane %v4771_v25, %v12839_v61  ;;  %v4788_v62 = vcombine.high %v13198_v54, %v18116_v8  ;;  %v4664_v54 = vrot.slane %v4650_v31, %v12839_v61 }
 0x220   : > { %v13258_v43 = vpop.permute.xlu0 %3950  ;;  %v13264_v10 = vpop.permute.xlu1 %3601  ;;  %18231 = vst [vmem:[#allocation31_spill] sm:$0xff] %v13275_v58  ;;  %v4905_v3 = vcombine.high %v13275_v58, %v18116_v8  ;;  %v4522_v23 = vrot.slane %v4515_v49, %v12659_v60  ;;  %v4701_v12 = vrot.slane %v4694_v17, %v12659_v60  ;;  %v4967_v17 = vcombine.high %v13169_v26, %v18116_v8 }
 0x221   : > { %4188 = vrot.lane.b32.xlu0 %v4169_v22, %s12194_s0  ;;  %18233 = vst [vmem:[#allocation33_spill] sm:$0xff] %v13307_v0  ;;  %v4787_v55 = vcombine.high %v13307_v0, %v18116_v8 }
 0x222   : > { %4196 = vrot.lane.b32.xlu1 %v4170_v38, %s12195_s30  ;;  %v4710_v40 = vcombine.low %v4701_v12, %v4709_v16  ;;  %v4532_v26 = vcombine.high %v4522_v23, %v4530_v46 }
 0x224   : > { %v13270_v57 = vpop.permute.xlu0 %3958  ;;  %v13279_v6 = vpop.permute.xlu1 %3609 }
 0x225   : > { %3716 = vrot.lane.b32.xlu0 %v3704_v53, %s18176_s16 }
 0x226   : > { %3847 = vrot.lane.b32.xlu1 %v3821_v11, %s12195_s30  ;;  %v4531_v11 = vcombine.low %v4522_v23, %v4530_v46  ;;  %v4546_v46 = vrot.slane %v4532_v26, %v12839_v61  ;;  %v18242_v23 = vcombine.low %v12736_v27, %v12748_v35 }
 0x228   : > { %v13285_v38 = vpop.permute.xlu0 %3966  ;;  %v13296_v22 = vpop.permute.xlu1 %3244  ;;  %v13342_v49 = vrot.slane %v4531_v11, %v12839_v61 }
 0x229   : > { %3724 = vrot.lane.b32.xlu0 %v3705_v4, %s12194_s0 }
 0x22a   : > { %4908 = vrot.lane.b32.xlu1 %v4905_v3, %s18170_s26  ;;  %v4906_v3 = vcombine.high %v13153_v18, %v18116_v8  ;;  %18236 = vst [vmem:[#allocation36_spill] sm:$0xff] %v13342_v49  ;;  %v13357_v18 = vrot.slane %v4710_v40, %v12839_v61  ;;  %v4547_v20 = vcombine.high %v13342_v49, %v18116_v8 }
 0x22b   : > { %v4583_v40 = vrot.slane %v4576_v21, %v12659_v60 }
 0x22c   : > { %v13304_v14 = vpop.permute.xlu0 %3613  ;;  %v13314_v53 = vpop.permute.xlu1 %3617  ;;  %18239 = vst [vmem:[#allocation39_spill] sm:$0xff] %v13357_v18 }
 0x22d   : > { %3732 = vrot.lane.b32.xlu0 %v3706_v42, %s12195_s30 }
 0x22e   : > { %4969 = vrot.lane.b32.xlu1 %v4966_v28, %s18170_s26  ;;  %v4584_v28 = vcombine.low %v12984_v52, %v12994_v33  ;;  %v4726_v33 = vcombine.high %v13357_v18, %v18116_v8 }
 0x230   : > { %v13325_v63 = vpop.permute.xlu0 %3240  ;;  %v13330_v25 = vpop.permute.xlu1 %3252  ;;  %v4591_v52 = vrot.slane %v4584_v28, %v12659_v60  ;;  %v4711_v28 = vcombine.high %v4701_v12, %v4709_v16 }
 0x231   : > { %18234 = vst [vmem:[#allocation34_spill] sm:$0xff] %v13330_v25  ;;  %4790 = vrot.lane.b32.xlu0 %v4787_v55, %s18170_s26 }
 0x232   : > { %4798 = vrot.lane.b32.xlu1 %v4788_v62, %s18168_s22  ;;  %v4666_v62 = vcombine.high %v4664_v54, %v18116_v8  ;;  %v4725_v16 = vrot.slane %v4711_v28, %v12839_v61 }
 0x234   : > { %v13337_v4 = vpop.permute.xlu0 %3248  ;;  %v13344_v32 = vpop.permute.xlu1 %4847 }
 0x235   : > { %18235 = vst [vmem:[#allocation35_spill] sm:$0xff] %v13337_v4  ;;  %18237 = vst [vmem:[#allocation37_spill] sm:$0xff] %v13344_v32  ;;  %4916 = vrot.lane.b32.xlu0 %v4906_v3, %s18168_s22  ;;  %v4592_v3 = vcombine.low %v4583_v40, %v4591_v52 }
 0x236   : > { %4672 = vrot.lane.b32.xlu1 %v4664_v54, %s12189_s15  ;;  %v13391_v54 = vrot.slane %v18242_v23, %v12839_v61 }
 0x237   : > { %v13398_v30 = vrot.slane %v4592_v3, %v12839_v61  ;;  %v18245_v3 = vcombine.high %v12736_v27, %v12748_v35  ;;  %v820_v27 = vld [vmem:[%s12528_s12 + $0x8] sm:$0xff] }
 0x238   : > { %v13352_v42 = vpop.permute.xlu0 %3256  ;;  %v13361_v55 = vpop.permute.xlu1 %4851  ;;  %18243 = vst [vmem:[#allocation42_spill] sm:$0xff] %v13391_v54 }
 0x239   : > { %18238 = vst [vmem:[#allocation38_spill] sm:$0xff] %v13352_v42  ;;  %18240 = vst [vmem:[#allocation40_spill] sm:$0xff] %v13361_v55  ;;  %4977 = vrot.lane.b32.xlu0 %v4967_v17, %s18168_s22  ;;  %v4593_v17 = vcombine.high %v4583_v40, %v4591_v52  ;;  %v4479_v28 = vrot.slane %v18245_v3, %v12839_v61 }
 0x23a   : > { %4550 = vrot.lane.b32.xlu1 %v4547_v20, %s18170_s26  ;;  %18244 = vst [vmem:[#allocation43_spill] sm:$0xff] %v13398_v30 }
 0x23b   : > { %v4607_v12 = vrot.slane %v4593_v17, %v12839_v61  ;;  %v4727_v17 = vcombine.high %v4725_v16, %v18116_v8 }
 0x23c   : > { %v13369_v31 = vpop.permute.xlu0 %3474  ;;  %v13374_v11 = vpop.permute.xlu1 %4668 }
 0x23d   : > { %18241 = vst [vmem:[#allocation41_spill] sm:$0xff] %v13374_v11  ;;  %4729 = vrot.lane.b32.xlu0 %v4726_v33, %s18170_s26  ;;  %v4480_v33 = vcombine.high %v13391_v54, %v18116_v8  ;;  %v823_v54 = vld [vmem:[%s12528_s12 + $0x20] sm:$0xff] }
 0x23e   : > { %4676 = vrot.lane.b32.xlu1 %v4666_v62, %s18168_s22  ;;  %v4608_v62 = vcombine.high %v13398_v30, %v18116_v8 }
 0x240   : > { %v13380_v37 = vpop.permute.xlu0 %3367  ;;  %v13384_v20 = vpop.permute.xlu1 %3359 }
 0x241   : > { %4855 = vrot.lane.b32.xlu0 %v4845_v48, %s18168_s22  ;;  %v4609_v48 = vcombine.high %v4607_v12, %v18116_v8 }
 0x242   : > { %4554 = vrot.lane.b32.xlu1 %v4546_v46, %s12189_s15 }
 0x244   : > { %v13395_v21 = vpop.permute.xlu0 %3375  ;;  %v13402_v52 = vpop.permute.xlu1 %3482 }
 0x245   : > { %4733 = vrot.lane.b32.xlu0 %v4725_v16, %s12189_s15 }
 0x246   : > { %4483 = vrot.lane.b32.xlu1 %v4480_v33, %s18170_s26  ;;  %v4481_v33 = vcombine.high %v4479_v28, %v18116_v8 }
 0x248   : > { %v13408_v26 = vpop.permute.xlu0 %3470  ;;  %v13412_v40 = vpop.permute.xlu1 %3490 }
 0x249   : > { %4611 = vrot.lane.b32.xlu0 %v4608_v62, %s18170_s26  ;;  %v4548_v62 = vcombine.high %v4546_v46, %v18116_v8  ;;  %v826_v46 = vld [vmem:[%s12528_s12 + $0x38] sm:$0xff]  ;;  %v821_v8 = vld [vmem:[%s12528_s12 + $0x10] sm:$0xff]  ;;  %s12204_s26 = smov 120  }
 0x24a   : > { %4619 = vrot.lane.b32.xlu1 %v4609_v48, %s18168_s22  ;;  %v822_v48 = vld [vmem:[%s12528_s12 + $0x18] sm:$0xff] }
 0x24c   : > { %v13422_v23 = vpop.permute.xlu1 %3355  ;;  %v13425_v60 = vpop.permute.xlu0 %3478 }
 0x24d   : > { %4737 = vrot.lane.b32.xlu0 %v4727_v17, %s18168_s22  ;;  %v824_v17 = vld [vmem:[%s12528_s12 + $0x28] sm:$0xff] }
 0x24e   : > { %4491 = vrot.lane.b32.xlu1 %v4481_v33, %s18168_s22 }
 0x250   : > { %v13430_v35 = vpop.permute.xlu1 %3363  ;;  %v13434_v16 = vpop.permute.xlu0 %3486 }
 0x251   : > { %4615 = vrot.lane.b32.xlu0 %v4607_v12, %s12189_s15  ;;  %v819_v12 = vld [vmem:[%s12528_s12] sm:$0xff] }
 0x252   : > { %839 = vrot.lane.b32.xlu1 %v820_v27, %s12183_s14 }
 0x254   : > { %v13438_v3 = vpop.permute.xlu1 %3371  ;;  %v13445_v61 = vpop.permute.xlu0 %3494 }
 0x255   : > { %4558 = vrot.lane.b32.xlu0 %v4548_v62, %s18168_s22  ;;  %18246 = vst [vmem:[#allocation44_spill] sm:$0xff] %v13445_v61  ;;  %s12205_s22 = smov 104  }
 0x256   : > { %843 = vrot.lane.b32.xlu1 %v822_v48, %s12183_s14 }
 0x258   : > { %v13443_v33 = vpop.permute.xlu1 %3379  ;;  %v4177_v62 = vpop.permute.xlu0 %4176 }
 0x259   : > { %4487 = vrot.lane.b32.xlu0 %v4479_v28, %s12189_s15  ;;  %v825_v28 = vld [vmem:[%s12528_s12 + $0x30] sm:$0xff]  ;;  %s12201_s12 = smov 96  }
 0x25a   : > { %847 = vrot.lane.b32.xlu1 %v824_v17, %s12183_s14 }
 0x25c   : > { %v4062_v27 = vpop.permute.xlu1 %4061  ;;  %v4185_v30 = vpop.permute.xlu0 %4184 }
 0x25d   : > { %837 = vrot.lane.b32.xlu0 %v819_v12, %s12183_s14 }
 0x25e   : > { %851 = vrot.lane.b32.xlu1 %v826_v46, %s12183_s14 }
 0x260   : > { %v3828_v48 = vpop.permute.xlu1 %3827 }
 0x261   : > { %841 = vrot.lane.b32.xlu0 %v821_v8, %s12183_s14 }
 0x264   : > { %v4070_v49 = vpop.permute.xlu1 %4069 }
 0x265   : > { %845 = vrot.lane.b32.xlu0 %v823_v54, %s12183_s14 }
 0x267   : > { %v13460_v17 = vpop.permute.xlu0 %3712 }
 0x268   : > { %v13458_v45 = vpop.permute.xlu1 %3835 }
 0x269   : > { %849 = vrot.lane.b32.xlu0 %v825_v28, %s12183_s14 }
 0x26b   : > { %v4193_v11 = vpop.permute.xlu0 %4192 }
 0x26c   : > { %v4078_v12 = vpop.permute.xlu1 %4077 }
 0x26f   : > { %v13467_v0 = vpop.permute.xlu0 %3720 }
 0x270   : > { %v13463_v18 = vpop.permute.xlu1 %3843 }
 0x273   : > { %v13471_v55 = vpop.permute.xlu0 %4912 }
 0x274   : > { %v13465_v46 = vpop.permute.xlu1 %3728  ;;  %18248 = vst [vmem:[#allocation46_spill] sm:$0xff] %v13471_v55 }
 0x278   : > { %v13469_v8 = vpop.permute.xlu1 %4973 }
 0x279   : > { %18247 = vst [vmem:[#allocation45_spill] sm:$0xff] %v13469_v8 }
 0x27c   : > { %v3824_v54 = vpop.permute.xlu1 %3823 }
 0x27f   : > { %v13473_v15 = vpop.permute.xlu0 %4794 }
 0x280   : > { %18249 = vst [vmem:[#allocation47_spill] sm:$0xff] %v13473_v15  ;;  %v4066_v32 = vpop.permute.xlu1 %4065  ;;  %v3969_v15 = vsel %vm3259_vm8, %v12890_v41, %v13248_v5  ;;  %v3850_v41 = vsel %vm3259_vm8, %v13172_v13, %v3824_v54 }
 0x283   : > { %v4058_v58 = vpop.permute.xlu0 %4057 }
 0x284   : > { %v4084_v28 = vsel %vm3259_vm8, %v13201_v56, %v4058_v58  ;;  %v3832_v2 = vpop.permute.xlu1 %3831 }
 0x285   : > { %v4085_v42 = vsel %vm1112_vm9, %v4084_v28, %v4062_v27  ;;  %v3970_v28 = vsel %vm1112_vm9, %v3969_v15, %v13210_v1  ;;  %v3620_v15 = vsel %vm3259_vm8, %v12895_v44, %v13252_v19 }
 0x286   : > { %v4086_v61 = vsel %vm18166_vm10, %v4085_v42, %v4066_v32  ;;  %v3971_v32 = vsel %vm18166_vm10, %v3970_v28, %v13258_v43  ;;  %v3382_v43 = vsel %vm3259_vm8, %v13013_v24, %v13422_v23 }
 0x287   : > { %v4173_v25 = vpop.permute.xlu0 %4172  ;;  %v4087_v55 = vsel %vm1114_vm11, %v4086_v61, %v4070_v49  ;;  %v3972_v1 = vsel %vm1114_vm11, %v3971_v32, %v13223_v34 }
 0x288   : > { %v4074_v8 = vpop.permute.xlu1 %4073  ;;  %v4199_v56 = vsel %vm3259_vm8, %v13215_v51, %v4173_v25  ;;  %v3973_v13 = vsel %vm18130_vm12, %v3972_v1, %v13270_v57  ;;  %v3621_v57 = vsel %vm1112_vm9, %v3620_v15, %v13229_v39 }
 0x289   : > { %v4088_v27 = vsel %vm18130_vm12, %v4087_v55, %v4074_v8  ;;  %v4200_v61 = vsel %vm1112_vm9, %v4199_v56, %v4177_v62  ;;  %v3851_v55 = vsel %vm1112_vm9, %v3850_v41, %v3828_v48  ;;  %v18250_v56 = vmov 0.0  }
 0x28a   : > { %v4089_v25 = vsel %vm1116_vm13, %v4088_v27, %v4078_v12  ;;  %v3852_v44 = vsel %vm18166_vm10, %v3851_v55, %v3832_v2  ;;  %v3974_v2 = vsel %vm1116_vm13, %v3973_v13, %v13235_v47 }
 0x28b   : > { %v4181_v4 = vpop.permute.xlu0 %4180  ;;  %v3975_v39 = vsel %vm18129_vm14, %v3974_v2, %v13285_v38 }
 0x28c   : > { %v3840_v58 = vpop.permute.xlu1 %3839  ;;  %v4201_v5 = vsel %vm18166_vm10, %v4200_v61, %v4181_v4  ;;  %v3497_v4 = vsel %vm3259_vm8, %v13003_v59, %v13408_v26  ;;  %v3383_v59 = vsel %vm1112_vm9, %v3382_v43, %v13384_v20 }
 0x28d   : > { %v4202_v62 = vsel %vm1114_vm11, %v4201_v5, %v4185_v30  ;;  %v3622_v30 = vsel %vm18166_vm10, %v3621_v57, %v13264_v10  ;;  %v3498_v20 = vsel %vm1112_vm9, %v3497_v4, %v13369_v31  ;;  %v18254_v4 = vld [vmem:[#allocation38_spill] sm:$0xff]  ;;  %v18256_v57 = vld [vmem:[#allocation45_spill] sm:$0xff] }
 0x28f   : > { %v3709_v49 = vpop.permute.xlu0 %3708 }
 0x290   : > { %v4082_v51 = vpop.permute.xlu1 %4081  ;;  %v3735_v34 = vsel %vm3259_vm8, %v13240_v29, %v3709_v49  ;;  %v3384_v29 = vsel %vm18166_vm10, %v3383_v59, %v13430_v35  ;;  %v3499_v35 = vsel %vm18166_vm10, %v3498_v20, %v13425_v60 }
 0x291   : > { %v4090_v42 = vsel %vm18129_vm14, %v4089_v25, %v4082_v51  ;;  %v3736_v10 = vsel %vm1112_vm9, %v3735_v34, %v13460_v17  ;;  %v3623_v17 = vsel %vm1114_vm11, %v3622_v30, %v13242_v50  ;;  %v3385_v27 = vsel %vm1114_vm11, %v3384_v29, %v13380_v37  ;;  %v18251_v51 = vld [vmem:[#allocation35_spill] sm:$0xff]  ;;  %v18252_v25 = vld [vmem:[#allocation44_spill] sm:$0xff] }
 0x292   : > { %v4216_v19 = vrot.slane %v4090_v42, 4  ;;  %v3386_v28 = vsel %vm18130_vm12, %v3385_v27, %v13438_v3  ;;  %v18257_v30 = vld [vmem:[#allocation31_spill] sm:$0xff] }
 0x293   : > { %v4189_v12 = vpop.permute.xlu0 %4188 }
 0x294   : > { %v4203_v24 = vsel %vm18130_vm12, %v4202_v62, %v4189_v12  ;;  %v4197_v23 = vpop.permute.xlu1 %4196  ;;  %v4221_v31 = vsel %vm3015_vm15, %v3975_v39, %v4216_v19  ;;  %v3116_v12 = vld [vmem:[%s18082_s6] sm:$0xff]  ;;  %v18255_v19 = vld [vmem:[#allocation32_spill] sm:$0xff]  ;;  %v18258_v39 = vld [vmem:[#allocation46_spill] sm:$0xff] }
 0x295   : > { %v4204_v26 = vsel %vm1116_vm13, %v4203_v24, %v4193_v11  ;;  %v3853_v11 = vsel %vm1114_vm11, %v3852_v44, %v13458_v45  ;;  %v3260_v45 = vsel %vm3259_vm8, %v12852_v9, %v13193_v7  ;;  %v3500_v7 = vsel %vm1114_vm11, %v3499_v35, %v13402_v52  ;;  %v18259_v35 = vld [vmem:[#allocation37_spill] sm:$0xff] }
 0x296   : > { %v4205_v48 = vsel %vm18129_vm14, %v4204_v26, %v4197_v23  ;;  %v3854_v8 = vsel %vm18130_vm12, %v3853_v11, %v3840_v58  ;;  %v3261_v60 = vsel %vm1112_vm9, %v3260_v45, %v13219_v36  ;;  %v3624_v58 = vsel %vm18130_vm12, %v3623_v17, %v13279_v6 }
 0x297   : > { %11626 = vmatpush3.msk.msra.mxu1 %vm3015_vm15, %v4205_v48  ;;  %v3717_v47 = vpop.permute.xlu0 %3716  ;;  %v3625_v9 = vsel %vm1116_vm13, %v3624_v58, %v13304_v14  ;;  %v3855_v50 = vsel %vm1116_vm13, %v3854_v8, %v13463_v18  ;;  %v3263_v6 = vsel %vm18166_vm10, %v3261_v60, %v13325_v63  ;;  %v3501_v3 = vsel %vm18130_vm12, %v3500_v7, %v13434_v16  ;;  %v18260_v8 = vld [vmem:[#allocation29_spill] sm:$0xff] }
 0x298   : > { %v3737_v54 = vsel %vm18166_vm10, %v3736_v10, %v3717_v47  ;;  %v3848_v38 = vpop.permute.xlu1 %3847  ;;  %11627 = vmatprep.subr.mxu1 %v18250_v56  ;;  %v3387_v52 = vsel %vm1116_vm13, %v3386_v28, %v13395_v21  ;;  %v3626_v18 = vsel %vm18129_vm14, %v3625_v9, %v13314_v53  ;;  %v3264_v63 = vsel %vm1114_vm11, %v3263_v6, %v13296_v22  ;;  %v18262_v28 = vld [vmem:[#allocation33_spill] sm:$0xff] }
 0x299   : > { %11628 = vmatpush3.msra.mxu1 %v4221_v31  ;;  %v3738_v36 = vsel %vm1114_vm11, %v3737_v54, %v13467_v0  ;;  %v3856_v32 = vsel %vm18129_vm14, %v3855_v50, %v3848_v38  ;;  %v3388_v0 = vsel %vm18129_vm14, %v3387_v52, %v13443_v33  ;;  %v3502_v16 = vsel %vm1116_vm13, %v3501_v3, %v13412_v40  ;;  %v18253_v40 = vld [vmem:[#allocation34_spill] sm:$0xff]  ;;  %v18261_v38 = vld [vmem:[#allocation40_spill] sm:$0xff]  ;;  %v18265_v52 = vld [vmem:[#allocation41_spill] sm:$0xff] }
 0x29a   : > { %11629 = vmatprep.subr.mxu1 %v18250_v56  ;;  %v4213_v49 = vrot.slane %v3856_v32, 4  ;;  %v3266_v21 = vsel %vm18130_vm12, %v3264_v63, %v18251_v51  ;;  %v3503_v53 = vsel %vm18129_vm14, %v3502_v16, %v18252_v25  ;;  %v4210_v15 = vrot.slane %v3626_v18, 4  ;;  %v18266_v18 = vld [vmem:[#allocation30_spill] sm:$0xff] }
 0x29b   : > { %v3725_v37 = vpop.permute.xlu0 %3724  ;;  %v4207_v1 = vrot.slane %v3388_v0, 4  ;;  %v3267_v43 = vsel %vm1116_vm13, %v3266_v21, %v18253_v40  ;;  %v4858_v54 = vsel %vm18165_vm3, %v18260_v8, %v18259_v35  ;;  %v4679_v0 = vsel %vm18165_vm3, %v18266_v18, %v18265_v52 }
 0x29c   : > { %v3739_v14 = vsel %vm18130_vm12, %v3738_v36, %v3725_v37  ;;  %v4909_v61 = vpop.permute.xlu1 %4908  ;;  %v4219_v13 = vsel %vm3015_vm15, %v3503_v53, %v4210_v15  ;;  %v3269_v55 = vsel %vm18129_vm14, %v3267_v43, %v18254_v4  ;;  %v4859_v31 = vsel %vm3259_vm8, %v4858_v54, %v18261_v38  ;;  %v18263_v36 = vld [vmem:[#allocation47_spill] sm:$0xff] }
 0x29d   : > { %v3740_v41 = vsel %vm1116_vm13, %v3739_v14, %v13465_v46  ;;  %v4218_v44 = vsel %vm3015_vm15, %v3269_v55, %v4207_v1  ;;  %v4919_v2 = vsel %vm18165_vm3, %v18257_v30, %v4909_v61  ;;  %v18264_v14 = vld [vmem:[#allocation39_spill] sm:$0xff]  ;;  %vm870_vm12 = vcmask 138240  }
 0x29e   : > { %v4920_v20 = vsel %vm3259_vm8, %v4919_v2, %v18258_v39  ;;  %v18267_v53 = vld [vmem:[#allocation43_spill] sm:$0xff]  ;;  %vm1124_vm10 = vcmask 916480  }
 0x29f   : > { %v3733_v5 = vpop.permute.xlu0 %3732 }
 0x2a0   : > { %v3741_v42 = vsel %vm18129_vm14, %v3740_v41, %v3733_v5  ;;  %v4970_v33 = vpop.permute.xlu1 %4969  ;;  %vm18164_vm14 = vcmask 97280  }
 0x2a1   : > { %v4220_v22 = vsel %vm3015_vm15, %v3741_v42, %v4213_v49  ;;  %v4980_v24 = vsel %vm18165_vm3, %v18255_v19, %v4970_v33 }
 0x2a2   : > { %11630 = vmatpush3.msra.mxu1 %v4220_v22  ;;  %v4981_v59 = vsel %vm3259_vm8, %v4980_v24, %v18256_v57  ;;  %v18269_v24 = vld [vmem:[#allocation42_spill] sm:$0xff] }
 0x2a3   : > { %11631 = vmatprep.subr.mxu1 %v18250_v56  ;;  %v4791_v46 = vpop.permute.xlu0 %4790 }
 0x2a4   : > { %v4799_v62 = vpop.permute.xlu1 %4798  ;;  %11632 = vmatpush3.msra.mxu1 %v4219_v13  ;;  %v4801_v9 = vsel %vm18165_vm3, %v18262_v28, %v4791_v46  ;;  %v18268_v13 = vld [vmem:[#allocation36_spill] sm:$0xff] }
 0x2a5   : > { %11633 = vmatprep.subr.mxu1 %v18250_v56  ;;  %v4802_v37 = vsel %vm3259_vm8, %v4801_v9, %v18263_v36 }
 0x2a6   : > { %11634 = vmatpush3.msra.mxu1 %v4218_v44  ;;  %v4803_v3 = vsel %vm18164_vm14, %v4802_v37, %v4799_v62 }
 0x2a7   : > { %v4917_v34 = vpop.permute.xlu0 %4916  ;;  %11638 = vmatprep.subr.mxu1 %v18250_v56  ;;  %11636 = vmatmul.mubr.msk.f32.vlgmr.msra.gmra.mxu1 %vm3029_vm4, %v3116_v12  ;;  %v4990_v63 = vrot.slane %v4803_v3, 4 }
 0x2a8   : > { %v4673_v23 = vpop.permute.xlu1 %4672  ;;  %11648 = vmatprep.mubr.msk.f32.mxu1 %vm12197_vm7, %v18250_v56  ;;  %v4921_v10 = vsel %vm18164_vm14, %v4920_v20, %v4917_v34 }
 0x2a9   : > { %v4993_v45 = vrot.slane %v4921_v10, 4  ;;  %v4680_v41 = vsel %vm3259_vm8, %v4679_v0, %v4673_v23 }
 0x2ab   : > { %v4978_v26 = vpop.permute.xlu0 %4977 }
 0x2ac   : > { %v4982_v29 = vsel %vm18164_vm14, %v4981_v59, %v4978_v26  ;;  %v4551_v48 = vpop.permute.xlu1 %4550 }
 0x2ad   : > { %11639 = vmatpush3.msk.msra.mxu1 %vm3015_vm15, %v4982_v29  ;;  %v4561_v4 = vsel %vm18165_vm3, %v18268_v13, %v4551_v48 }
 0x2ae   : > { %11640 = vmatprep.subr.mxu1 %v18250_v56 }
 0x2af   : > { %v4730_v11 = vpop.permute.xlu0 %4729 }
 0x2b0   : > { %v4677_v47 = vpop.permute.xlu1 %4676  ;;  %v4740_v61 = vsel %vm18165_vm3, %v18264_v14, %v4730_v11 }
 0x2b1   : > { %v4681_v21 = vsel %vm18164_vm14, %v4680_v41, %v4677_v47 }
 0x2b2   : > { %v4987_v15 = vrot.slane %v4681_v21, 4 }
 0x2b3   : > { %v4856_v17 = vpop.permute.xlu0 %4855 }
 0x2b4   : > { %v4860_v27 = vsel %vm18164_vm14, %v4859_v31, %v4856_v17  ;;  %v4555_v60 = vpop.permute.xlu1 %4554 }
 0x2b5   : > { %v4998_v58 = vsel %vm3015_vm15, %v4860_v27, %v4993_v45  ;;  %v4562_v62 = vsel %vm3259_vm8, %v4561_v4, %v4555_v60 }
 0x2b6   : > { %11641 = vmatpush3.msra.mxu1 %v4998_v58 }
 0x2b7   : > { %v4734_v7 = vpop.permute.xlu0 %4733  ;;  %11642 = vmatprep.subr.mxu1 %v18250_v56 }
 0x2b8   : > { %v4484_v50 = vpop.permute.xlu1 %4483  ;;  %v4741_v16 = vsel %vm3259_vm8, %v4740_v61, %v4734_v7 }
 0x2b9   : > { %v4495_v23 = vsel %vm18165_vm3, %v18269_v24, %v4484_v50 }
 0x2bb   : > { %v4612_v6 = vpop.permute.xlu0 %4611 }
 0x2bc   : > { %v4620_v32 = vpop.permute.xlu1 %4619  ;;  %v4622_v42 = vsel %vm18165_vm3, %v18267_v53, %v4612_v6  ;;  %vm1122_vm3 = vcmask 785408  }
 0x2bf   : > { %v4738_v49 = vpop.permute.xlu0 %4737 }
 0x2c0   : > { %v4742_v5 = vsel %vm18164_vm14, %v4741_v16, %v4738_v49  ;;  %v4492_v51 = vpop.permute.xlu1 %4491 }
 0x2c1   : > { %v4997_v25 = vsel %vm3015_vm15, %v4742_v5, %v4990_v63 }
 0x2c2   : > { %11643 = vmatpush3.msra.mxu1 %v4997_v25 }
 0x2c3   : > { %v4616_v33 = vpop.permute.xlu0 %4615  ;;  %11644 = vmatprep.subr.mxu1 %v18250_v56 }
 0x2c4   : > { %v4623_v1 = vsel %vm3259_vm8, %v4622_v42, %v4616_v33  ;;  %v840_v22 = vpop.permute.xlu1 %839 }
 0x2c5   : > { %v4624_v40 = vsel %vm18164_vm14, %v4623_v1, %v4620_v32  ;;  %v863_v46 = vsel %vm861_vm0, 0.0, %v840_v22 }
 0x2c6   : > { %v4996_v43 = vsel %vm3015_vm15, %v4624_v40, %v4987_v15  ;;  %v872_v34 = vsel %vm870_vm12, %v863_v46, 0.0 }
 0x2c7   : > { %11645 = vmatpush3.msra.mxu1 %v4996_v43  ;;  %v4559_v55 = vpop.permute.xlu0 %4558  ;;  %v889_v30 = vrot.slane %v872_v34, 7 }
 0x2c8   : > { %11646 = vmatprep.subr.mxu1 %v18250_v56  ;;  %v844_v12 = vpop.permute.xlu1 %843  ;;  %v4563_v44 = vsel %vm18164_vm14, %v4562_v62, %v4559_v55 }
 0x2c9   : > { %v865_v19 = vsel %vm861_vm0, 0.0, %v844_v12  ;;  %v4984_v59 = vrot.slane %v4563_v44, 4  ;;  %v13660_v47 = vsel %vm887_vm2, %v889_v30, 0.0 }
 0x2ca   : > { %v874_v2 = vsel %vm870_vm12, %v865_v19, 0.0  ;;  %v2300_v27 = vrot.slane %v13660_v47, 2  ;;  %v1605_v41 = vrot.slane %v13660_v47, 1 }
 0x2cb   : > { %v4488_v57 = vpop.permute.xlu0 %4487  ;;  %v892_v10 = vrot.slane %v874_v2, 7 }
 0x2cc   : > { %v4496_v26 = vsel %vm3259_vm8, %v4495_v23, %v4488_v57  ;;  %v848_v29 = vpop.permute.xlu1 %847 }
 0x2cd   : > { %v4498_v48 = vsel %vm18164_vm14, %v4496_v26, %v4492_v51  ;;  %v867_v20 = vsel %vm861_vm0, 0.0, %v848_v29  ;;  %v13670_v60 = vsel %vm887_vm2, %v892_v10, 0.0  ;;  %vm1120_vm14 = vcmask 654336  }
 0x2ce   : > { %v4995_v39 = vsel %vm3015_vm15, %v4498_v48, %v4984_v59  ;;  %v876_v38 = vsel %vm870_vm12, %v867_v20, 0.0  ;;  %v2305_v32 = vrot.slane %v13670_v60, 2  ;;  %v1610_v5 = vrot.slane %v13670_v60, 1 }
 0x2cf   : > { %11647 = vmatpush3.msra.mxu1 %v4995_v39  ;;  %v838_v11 = vpop.permute.xlu0 %837  ;;  %v895_v7 = vrot.slane %v876_v38, 7 }
 0x2d0   : > { %v862_v35 = vsel %vm861_vm0, 0.0, %v838_v11  ;;  %v852_v8 = vpop.permute.xlu1 %851  ;;  %11658 = vmatprep.subr.mxu1 %v18250_v56 }
 0x2d1   : > { %v871_v54 = vsel %vm870_vm12, %v862_v35, 0.0  ;;  %v869_v31 = vsel %vm861_vm0, 0.0, %v852_v8  ;;  %v918_v18 = vsel %vm887_vm2, %v895_v7, 0.0 }
 0x2d2   : > { %v888_v45 = vrot.slane %v871_v54, 7  ;;  %v878_v17 = vsel %vm870_vm12, %v869_v31, 0.0  ;;  %v1615_v25 = vrot.slane %v918_v18, 1  ;;  %v2310_v53 = vrot.slane %v918_v18, 2 }
 0x2d3   : > { %v842_v58 = vpop.permute.xlu0 %841  ;;  %v898_v50 = vrot.slane %v878_v17, 7 }
 0x2d4   : > { %v13673_v28 = vsel %vm887_vm2, %v888_v45, %v889_v30  ;;  %v864_v9 = vsel %vm861_vm0, 0.0, %v842_v58  ;;  %v13679_v3 = vsel %vm887_vm2, 0.0, %v888_v45 }
 0x2d5   : > { %v873_v36 = vsel %vm870_vm12, %v864_v9, 0.0  ;;  %v2298_v37 = vrot.slane %v13673_v28, 2  ;;  %18270 = vst [vmem:[#allocation35_spill] sm:$0xff] %v13679_v3  ;;  %v919_v63 = vsel %vm887_vm2, %v898_v50, 0.0  ;;  %v2297_v21 = vrot.slane %v13679_v3, 2 }
 0x2d6   : > { %v891_v6 = vrot.slane %v873_v36, 7  ;;  %v1620_v42 = vrot.slane %v919_v63, 1  ;;  %v1603_v55 = vrot.slane %v13673_v28, 1  ;;  %v2315_v62 = vrot.slane %v919_v63, 2  ;;  %v18274_v36 = vld [vmem:[#allocation27_spill] sm:$0xff] }
 0x2d7   : > { %v846_v14 = vpop.permute.xlu0 %845  ;;  %v13683_v61 = vsel %vm2296_vm5, %v2298_v37, %v2300_v27  ;;  %v13718_v44 = vsel %vm2296_vm5, %v2297_v21, %v2298_v37  ;;  %v1602_v57 = vrot.slane %v13679_v3, 1 }
 0x2d8   : > { %v13686_v52 = vsel %vm887_vm2, %v891_v6, %v892_v10  ;;  %v866_v0 = vsel %vm861_vm0, 0.0, %v846_v14  ;;  %2533 = vrot.lane.b32.xlu0 %v13683_v61, %s12185_s5  ;;  %v13702_v1 = vsel %vm887_vm2, 0.0, %v891_v6  ;;  %v13747_v20 = vsel %vm18182_vm6, %v1603_v55, %v1605_v41 }
 0x2d9   : > { %v875_v16 = vsel %vm870_vm12, %v866_v0, 0.0  ;;  %v2303_v49 = vrot.slane %v13686_v52, 2  ;;  %18271 = vst [vmem:[#allocation44_spill] sm:$0xff] %v13702_v1  ;;  %v2302_v23 = vrot.slane %v13702_v1, 2  ;;  %v1608_v47 = vrot.slane %v13686_v52, 1 }
 0x2da   : > { %v894_v51 = vrot.slane %v875_v16, 7  ;;  %v13762_v31 = vsel %vm18182_vm6, %v1602_v57, %v1603_v55 }
 0x2db   : > { %v850_v33 = vpop.permute.xlu0 %849  ;;  %v13699_v15 = vsel %vm2296_vm5, %v2303_v49, %v2305_v32  ;;  %v13757_v54 = vsel %vm2296_vm5, %v2302_v23, %v2303_v49  ;;  %v13784_v6 = vsel %vm18182_vm6, %v1608_v47, %v1610_v5 }
 0x2dc   : > { %v13705_v22 = vsel %vm887_vm2, %v894_v51, %v895_v7  ;;  %v13708_v40 = vsel %vm887_vm2, 0.0, %v894_v51  ;;  %v868_v43 = vsel %vm861_vm0, 0.0, %v850_v33  ;;  %2537 = vrot.lane.b32.xlu1 %v13699_v15, %s12185_s5 }
 0x2dd   : > { %18272 = vst [vmem:[#allocation34_spill] sm:$0xff] %v13708_v40  ;;  %v877_v46 = vsel %vm870_vm12, %v868_v43, 0.0  ;;  %v2308_v13 = vrot.slane %v13705_v22, 2  ;;  %v2307_v4 = vrot.slane %v13708_v40, 2  ;;  %v1613_v34 = vrot.slane %v13705_v22, 1 }
 0x2de   : > { %v897_v12 = vrot.slane %v877_v46, 7  ;;  %v1612_v35 = vrot.slane %v13708_v40, 1  ;;  %vm1118_vm12 = vcmask 523264  }
 0x2df   : > { %v13722_v19 = vsel %vm2296_vm5, %v2308_v13, %v2310_v53  ;;  %v13725_v24 = vsel %vm2296_vm5, %v2307_v4, %v2308_v13  ;;  %v13751_v10 = vsel %vm18182_vm6, %v1613_v34, %v1615_v25 }
 0x2e0   : > { %v13730_v59 = vsel %vm887_vm2, %v897_v12, %v898_v50  ;;  %v13733_v26 = vsel %vm887_vm2, 0.0, %v897_v12  ;;  %2541 = vrot.lane.b32.xlu0 %v13722_v19, %s12185_s5  ;;  %v2393_v30 = vcombine.low %v13683_v61, %v13722_v19  ;;  %v2394_v2 = vcombine.high %v13683_v61, %v13722_v19 }
 0x2e1   : > { %18273 = vst [vmem:[#allocation38_spill] sm:$0xff] %v13733_v26  ;;  %v2313_v29 = vrot.slane %v13730_v59, 2  ;;  %v2325_v48 = vcombine.low %v13718_v44, %v13725_v24  ;;  %v2326_v39 = vcombine.high %v13718_v44, %v13725_v24  ;;  %v2312_v11 = vrot.slane %v13733_v26, 2 }
 0x2e2   : > { %v1698_v38 = vcombine.low %v13747_v20, %v13751_v10  ;;  %v1618_v60 = vrot.slane %v13730_v59, 1  ;;  %v1699_v7 = vcombine.high %v13747_v20, %v13751_v10  ;;  %v1607_v50 = vrot.slane %v13702_v1, 1 }
 0x2e3   : > { %v2316_v8 = vsel %vm2296_vm5, %v2313_v29, %v2315_v62  ;;  %v13770_v27 = vsel %vm2296_vm5, %v2312_v11, %v2313_v29  ;;  %v13790_v14 = vsel %vm18182_vm6, %v1612_v35, %v1613_v34  ;;  %v13793_v18 = vrot.slane %v2393_v30, %v18274_v36 }
 0x2e4   : > { %2531 = vrot.lane.b32.xlu0 %v13718_v44, %s12185_s5  ;;  %2545 = vrot.lane.b32.xlu1 %v2316_v8, %s12185_s5  ;;  %v2409_v45 = vcombine.low %v13699_v15, %v2316_v8  ;;  %v2410_v17 = vcombine.high %v13699_v15, %v2316_v8  ;;  %v2341_v58 = vcombine.low %v13757_v54, %v13770_v27  ;;  %v1617_v51 = vrot.slane %v13733_v26, 1 }
 0x2e5   : > { %v2342_v9 = vcombine.high %v13757_v54, %v13770_v27  ;;  %v13787_v32 = vsel %vm18182_vm6, %v1618_v60, %v1620_v42  ;;  %v13796_v0 = vrot.slane %v2325_v48, %v18274_v36  ;;  %v1630_v41 = vcombine.low %v13762_v31, %v13790_v14 }
 0x2e6   : > { %v13781_v37 = vrot.slane %v2409_v45, %v18274_v36  ;;  %v13799_v63 = vrot.slane %v2341_v58, %v18274_v36  ;;  %v1714_v16 = vcombine.low %v13784_v6, %v13787_v32  ;;  %v1715_v49 = vcombine.high %v13784_v6, %v13787_v32 }
 0x2e7   : > { %v1631_v5 = vcombine.high %v13762_v31, %v13790_v14  ;;  %v13824_v33 = vrot.slane %v1698_v38, %v18274_v36  ;;  %v1609_v43 = vsel %vm18182_vm6, %v1607_v50, %v1608_v47  ;;  %v1619_v46 = vsel %vm18182_vm6, %v1617_v51, %v1618_v60 }
 0x2e8   : > { %2539 = vrot.lane.b32.xlu0 %v13725_v24, %s12185_s5  ;;  %2535 = vrot.lane.b32.xlu1 %v13757_v54, %s12185_s5  ;;  %v13815_v21 = vrot.slane %v1714_v16, %v18274_v36  ;;  %v2425_v25 = vcombine.low %v13793_v18, %v13781_v37  ;;  %v13829_v13 = vrot.slane %v2410_v17, %v18274_v36  ;;  %v18277_v16 = vld [vmem:[#allocation28_spill] sm:$0xff] }
 0x2e9   : > { %v13832_v4 = vrot.slane %v2342_v9, %v18274_v36  ;;  %v1646_v55 = vcombine.low %v1609_v43, %v1619_v46  ;;  %v1647_v62 = vcombine.high %v1609_v43, %v1619_v46  ;;  %v13843_v23 = vrot.slane %v2394_v2, %v18274_v36 }
 0x2ea   : > { %v13846_v57 = vrot.slane %v2326_v39, %v18274_v36  ;;  %v13849_v30 = vrot.slane %v1630_v41, %v18274_v36  ;;  %v13855_v29 = vrot.slane %v1715_v49, %v18274_v36  ;;  %v13872_v35 = vrot.slane %v1699_v7, %v18274_v36 }
 0x2eb   : > { %v13875_v38 = vrot.slane %v1647_v62, %v18274_v36  ;;  %v13882_v60 = vrot.slane %v1631_v5, %v18274_v36 }
 0x2ec   : > { %2763 = vrot.lane.b32.xlu0 %v13683_v61, %s12187_s17  ;;  %2543 = vrot.lane.b32.xlu1 %v13770_v27, %s12185_s5  ;;  %v13852_v61 = vrot.slane %v1646_v55, %v18274_v36 }
 0x2ed   : > { %18275 = vst [vmem:[#allocation32_spill] sm:$0xff] %v13875_v38  ;;  %18276 = vst [vmem:[#allocation45_spill] sm:$0xff] %v13882_v60 }
 0x2f0   : > { %2771 = vrot.lane.b32.xlu0 %v13722_v19, %s12187_s17  ;;  %2767 = vrot.lane.b32.xlu1 %v13699_v15, %s12187_s17 }
 0x2f4   : > { %2068 = vrot.lane.b32.xlu0 %v13747_v20, %s12187_s17  ;;  %2775 = vrot.lane.b32.xlu1 %v2316_v8, %s12187_s17 }
 0x2f8   : > { %2076 = vrot.lane.b32.xlu0 %v13751_v10, %s12187_s17  ;;  %2072 = vrot.lane.b32.xlu1 %v13784_v6, %s12187_s17 }
 0x2fc   : > { %2761 = vrot.lane.b32.xlu0 %v13718_v44, %s12187_s17  ;;  %2080 = vrot.lane.b32.xlu1 %v13787_v32, %s12187_s17 }
 0x300   : > { %2769 = vrot.lane.b32.xlu0 %v13725_v24, %s12187_s17  ;;  %2765 = vrot.lane.b32.xlu1 %v13757_v54, %s12187_s17 }
 0x304   : > { %2066 = vrot.lane.b32.xlu0 %v13762_v31, %s12187_s17  ;;  %2773 = vrot.lane.b32.xlu1 %v13770_v27, %s12187_s17 }
 0x308   : > { %2074 = vrot.lane.b32.xlu0 %v13790_v14, %s12187_s17  ;;  %2070 = vrot.lane.b32.xlu1 %v1609_v43, %s12187_s17 }
 0x30c   : > { %1838 = vrot.lane.b32.xlu0 %v13747_v20, %s12185_s5  ;;  %2078 = vrot.lane.b32.xlu1 %v1619_v46, %s12187_s17 }
 0x310   : > { %1846 = vrot.lane.b32.xlu0 %v13751_v10, %s12185_s5  ;;  %1842 = vrot.lane.b32.xlu1 %v13784_v6, %s12185_s5 }
 0x314   : > { %1836 = vrot.lane.b32.xlu0 %v13762_v31, %s12185_s5  ;;  %1850 = vrot.lane.b32.xlu1 %v13787_v32, %s12185_s5 }
 0x318   : > { %1844 = vrot.lane.b32.xlu0 %v13790_v14, %s12185_s5  ;;  %1840 = vrot.lane.b32.xlu1 %v1609_v43, %s12185_s5 }
 0x31c   : > { %1139 = vrot.lane.b32.xlu0 %v13673_v28, %s12185_s5  ;;  %1848 = vrot.lane.b32.xlu1 %v1619_v46, %s12185_s5 }
 0x320   : > { %1147 = vrot.lane.b32.xlu0 %v13705_v22, %s12185_s5  ;;  %1143 = vrot.lane.b32.xlu1 %v13686_v52, %s12185_s5 }
 0x324   : > { %1369 = vrot.lane.b32.xlu0 %v13673_v28, %s12187_s17  ;;  %1151 = vrot.lane.b32.xlu1 %v13730_v59, %s12185_s5 }
 0x328   : > { %1377 = vrot.lane.b32.xlu0 %v13705_v22, %s12187_s17  ;;  %1373 = vrot.lane.b32.xlu1 %v13686_v52, %s12187_s17 }
 0x32c   : > { %1137 = vrot.lane.b32.xlu0 %v13679_v3, %s12185_s5  ;;  %1381 = vrot.lane.b32.xlu1 %v13730_v59, %s12187_s17 }
 0x330   : > { %1145 = vrot.lane.b32.xlu0 %v13708_v40, %s12185_s5  ;;  %1141 = vrot.lane.b32.xlu1 %v13702_v1, %s12185_s5 }
 0x334   : > { %1367 = vrot.lane.b32.xlu0 %v13679_v3, %s12187_s17  ;;  %1149 = vrot.lane.b32.xlu1 %v13733_v26, %s12185_s5  ;;  %v18286_v3 = vcombine.low %v13796_v0, %v13799_v63 }
 0x338   : > { %1375 = vrot.lane.b32.xlu0 %v13708_v40, %s12187_s17  ;;  %1371 = vrot.lane.b32.xlu1 %v13702_v1, %s12187_s17  ;;  %v14126_v40 = vrot.slane %v18286_v3, %v18277_v16 }
 0x33a   : > { %18287 = vst [vmem:[#allocation39_spill] sm:$0xff] %v14126_v40 }
 0x33c   : > { %1379 = vrot.lane.b32.xlu1 %v13733_v26, %s12187_s17 }
 0x34a   : > { %v13961_v44 = vpop.permute.xlu0 %2533 }
 0x34e   : > { %v13963_v24 = vpop.permute.xlu1 %2537 }
 0x352   : > { %v13965_v20 = vpop.permute.xlu0 %2541 }
 0x353   : > { %v2623_v10 = vcombine.low %v13961_v44, %v13965_v20 }
 0x355   : > { %v2631_v27 = vrot.slane %v2623_v10, %v18274_v36 }
 0x356   : > { %v13969_v8 = vpop.permute.xlu1 %2545  ;;  %v13971_v54 = vpop.permute.xlu0 %2531 }
 0x357   : > { %v2639_v31 = vcombine.low %v13963_v24, %v13969_v8 }
 0x359   : > { %v2647_v7 = vrot.slane %v2639_v31, %v18274_v36 }
 0x35a   : > { %v13977_v50 = vpop.permute.xlu1 %2535  ;;  %v13979_v6 = vpop.permute.xlu0 %2539 }
 0x35b   : > { %v2655_v32 = vcombine.low %v2631_v27, %v2647_v7  ;;  %v2555_v14 = vcombine.low %v13971_v54, %v13979_v6  ;;  %v2656_v51 = vcombine.high %v2631_v27, %v2647_v7 }
 0x35d   : > { %v13984_v49 = vrot.slane %v2655_v32, %v18277_v16  ;;  %v2563_v55 = vrot.slane %v2555_v14, %v18274_v36  ;;  %v2670_v9 = vrot.slane %v2656_v51, %v18277_v16 }
 0x35e   : > { %v13986_v41 = vpop.permute.xlu1 %2543  ;;  %v13988_v5 = vpop.permute.xlu0 %2763 }
 0x35f   : > { %18278 = vst [vmem:[#allocation31_spill] sm:$0xff] %v13984_v49  ;;  %v2571_v43 = vcombine.low %v13977_v50, %v13986_v41  ;;  %v2687_v46 = vcombine.high %v13984_v49, %v18250_v56 }
 0x361   : > { %v2579_v62 = vrot.slane %v2571_v43, %v18274_v36  ;;  %2720 = vrot.lane.b32.xlu0 %v2687_v46, %s18174_s3 }
 0x362   : > { %v13997_v10 = vpop.permute.xlu1 %2767  ;;  %v13999_v31 = vpop.permute.xlu0 %2771 }
 0x363   : > { %v2587_v32 = vcombine.low %v2563_v55, %v2579_v62  ;;  %v2853_v27 = vcombine.low %v13988_v5, %v13999_v31 }
 0x365   : > { %2724 = vrot.lane.b32.xlu0 %v2670_v9, %s18172_s20  ;;  %v14006_v7 = vrot.slane %v2587_v32, %v18277_v16  ;;  %v2861_v51 = vrot.slane %v2853_v27, %v18274_v36 }
 0x366   : > { %v14008_v14 = vpop.permute.xlu1 %2775  ;;  %v14010_v43 = vpop.permute.xlu0 %2068 }
 0x367   : > { %18279 = vst [vmem:[#allocation46_spill] sm:$0xff] %v14006_v7  ;;  %v2869_v46 = vcombine.low %v13997_v10, %v14008_v14  ;;  %v2619_v58 = vcombine.high %v14006_v7, %v18250_v56  ;;  %v2588_v7 = vcombine.high %v2563_v55, %v2579_v62 }
 0x369   : > { %v2877_v19 = vrot.slane %v2869_v46, %v18274_v36  ;;  %2692 = vrot.lane.b32.xlu1 %v2619_v58, %s18174_s3  ;;  %v14040_v46 = vrot.slane %v2425_v25, %v18277_v16 }
 0x36a   : > { %v14019_v15 = vpop.permute.xlu1 %2072  ;;  %v14021_v32 = vpop.permute.xlu0 %2076 }
 0x36b   : > { %v2885_v17 = vcombine.low %v2861_v51, %v2877_v19  ;;  %v2158_v45 = vcombine.low %v14010_v43, %v14021_v32  ;;  %18281 = vst [vmem:[#allocation29_spill] sm:$0xff] %v14040_v46  ;;  %v2457_v42 = vcombine.high %v14040_v46, %v18250_v56  ;;  %v2886_v49 = vcombine.high %v2861_v51, %v2877_v19 }
 0x36d   : > { %v14026_v47 = vrot.slane %v2885_v17, %v18277_v16  ;;  %v2166_v11 = vrot.slane %v2158_v45, %v18274_v36  ;;  %v2900_v51 = vrot.slane %v2886_v49, %v18277_v16 }
 0x36e   : > { %v14028_v39 = vpop.permute.xlu1 %2080  ;;  %v14030_v2 = vpop.permute.xlu0 %2761 }
 0x36f   : > { %18280 = vst [vmem:[#allocation37_spill] sm:$0xff] %v14026_v47  ;;  %v2174_v27 = vcombine.low %v14019_v15, %v14028_v39  ;;  %v2917_v58 = vcombine.high %v14026_v47, %v18250_v56 }
 0x371   : > { %v2182_v17 = vrot.slane %v2174_v27, %v18274_v36  ;;  %2950 = vrot.lane.b32.xlu1 %v2917_v58, %s18174_s3  ;;  %v2688_v58 = vcombine.high %v2670_v9, %v18250_v56 }
 0x372   : > { %v14045_v48 = vpop.permute.xlu1 %2765  ;;  %v14047_v34 = vpop.permute.xlu0 %2769 }
 0x373   : > { %v2190_v12 = vcombine.low %v2166_v11, %v2182_v17  ;;  %v2785_v53 = vcombine.low %v14030_v2, %v14047_v34  ;;  %v2191_v55 = vcombine.high %v2166_v11, %v2182_v17 }
 0x375   : > { %2490 = vrot.lane.b32.xlu1 %v2457_v42, %s18174_s3  ;;  %v14055_v25 = vrot.slane %v2190_v12, %v18277_v16  ;;  %v14065_v38 = vrot.slane %v2785_v53, %v18274_v36  ;;  %v2640_v12 = vcombine.high %v13963_v24, %v13969_v8  ;;  %v2602_v53 = vrot.slane %v2588_v7, %v18277_v16 }
 0x376   : > { %v14057_v45 = vpop.permute.xlu1 %2773  ;;  %v2067_v27 = vpop.permute.xlu0 %2066  ;;  %v2205_v7 = vrot.slane %v2191_v55, %v18277_v16 }
 0x377   : > { %18282 = vst [vmem:[#allocation40_spill] sm:$0xff] %v14055_v25  ;;  %v2801_v47 = vcombine.low %v14045_v48, %v14057_v45  ;;  %v2222_v46 = vcombine.high %v14055_v25, %v18250_v56  ;;  %v14086_v11 = vrot.slane %v2640_v12, %v18274_v36 }
 0x379   : > { %v14068_v42 = vrot.slane %v2801_v47, %v18274_v36  ;;  %2728 = vrot.lane.b32.xlu1 %v2688_v58, %s12192_s8  ;;  %2255 = vrot.lane.b32.xlu0 %v2222_v46, %s18174_s3  ;;  %v2624_v47 = vcombine.high %v13961_v44, %v13965_v20 }
 0x37a   : > { %v2071_v19 = vpop.permute.xlu1 %2070  ;;  %v2075_v9 = vpop.permute.xlu0 %2074 }
 0x37b   : > { %v2817_v62 = vcombine.low %v14065_v38, %v14068_v42  ;;  %v2090_v25 = vcombine.low %v2067_v27, %v2075_v9  ;;  %v2091_v58 = vcombine.high %v2067_v27, %v2075_v9  ;;  %v14092_v20 = vrot.slane %v2624_v47, %v18274_v36 }
 0x37d   : > { %2954 = vrot.lane.b32.xlu1 %v2900_v51, %s18172_s20  ;;  %2696 = vrot.lane.b32.xlu0 %v2602_v53, %s18172_s20  ;;  %v14083_v24 = vrot.slane %v2817_v62, %v18277_v16  ;;  %v14095_v27 = vrot.slane %v2090_v25, %v18274_v36  ;;  %v14098_v9 = vrot.slane %v2091_v58, %v18274_v36 }
 0x37e   : > { %v2079_v8 = vpop.permute.xlu1 %2078  ;;  %v1839_v46 = vpop.permute.xlu0 %1838  ;;  %v2671_v47 = vcombine.low %v14092_v20, %v14086_v11 }
 0x37f   : > { %18283 = vst [vmem:[#allocation33_spill] sm:$0xff] %v14083_v24  ;;  %v2106_v49 = vcombine.low %v2071_v19, %v2079_v8  ;;  %v2107_v17 = vcombine.high %v2071_v19, %v2079_v8  ;;  %v2849_v44 = vcombine.high %v14083_v24, %v18250_v56  ;;  %v18284_v8 = vcombine.high %v13793_v18, %v13781_v37 }
 0x380   : > { %v2679_v26 = vrot.slane %v2671_v47, %v18277_v16  ;;  %v2389_v47 = vcombine.high %v14126_v40, %v18250_v56 }
 0x381   : > { %v14101_v12 = vrot.slane %v2106_v49, %v18274_v36  ;;  %v14104_v62 = vrot.slane %v2107_v17, %v18274_v36  ;;  %2259 = vrot.lane.b32.xlu1 %v2205_v7, %s18172_s20  ;;  %2922 = vrot.lane.b32.xlu0 %v2849_v44, %s18174_s3  ;;  %v2440_v49 = vrot.slane %v18284_v8, %v18277_v16 }
 0x382   : > { %v1843_v19 = vpop.permute.xlu1 %1842  ;;  %v1847_v55 = vpop.permute.xlu0 %1846  ;;  %v2818_v8 = vcombine.high %v14065_v38, %v14068_v42  ;;  %v2223_v38 = vcombine.high %v2205_v7, %v18250_v56  ;;  %v18289_v42 = vcombine.low %v13824_v33, %v13815_v21 }
 0x383   : > { %v2122_v25 = vcombine.low %v14095_v27, %v14101_v12  ;;  %v1928_v17 = vcombine.low %v1839_v46, %v1847_v55  ;;  %v1929_v24 = vcombine.high %v1839_v46, %v1847_v55 }
 0x385   : > { %2494 = vrot.lane.b32.xlu1 %v2440_v49, %s18172_s20  ;;  %v14120_v44 = vrot.slane %v2122_v25, %v18277_v16  ;;  %v14132_v18 = vrot.slane %v1928_v17, %v18274_v36  ;;  %v14135_v46 = vrot.slane %v1929_v24, %v18274_v36  ;;  %v2620_v17 = vcombine.high %v2602_v53, %v18250_v56 }
 0x386   : > { %v1851_v60 = vpop.permute.xlu1 %1850  ;;  %v14180_v53 = vrot.slane %v18289_v42, %v18277_v16 }
 0x387   : > { %18285 = vst [vmem:[#allocation47_spill] sm:$0xff] %v14120_v44  ;;  %v1944_v58 = vcombine.low %v1843_v19, %v1851_v60  ;;  %v1945_v1 = vcombine.high %v1843_v19, %v1851_v60  ;;  %v2154_v37 = vcombine.high %v14120_v44, %v18250_v56  ;;  %v2918_v19 = vcombine.high %v2900_v51, %v18250_v56 }
 0x388   : > { %18290 = vst [vmem:[#allocation30_spill] sm:$0xff] %v14180_v53 }
 0x389   : > { %v14138_v55 = vrot.slane %v1944_v58, %v18274_v36  ;;  %v14141_v25 = vrot.slane %v1945_v1, %v18274_v36  ;;  %2732 = vrot.lane.b32.xlu1 %v2679_v26, %s12199_s1  ;;  %2227 = vrot.lane.b32.xlu0 %v2154_v37, %s18174_s3  ;;  %v14154_v1 = vpop.permute.xlu0 %1836 }
 0x38a   : > { %v14145_v3 = vpop.permute.xlu1 %1840 }
 0x38b   : > { %v1960_v60 = vcombine.low %v14132_v18, %v14138_v55 }
 0x38d   : > { %2958 = vrot.lane.b32.xlu1 %v2918_v19, %s12192_s8  ;;  %2462 = vrot.lane.b32.xlu0 %v2389_v47, %s18174_s3  ;;  %v14159_v58 = vrot.slane %v1960_v60, %v18277_v16  ;;  %v14170_v19 = vpop.permute.xlu0 %1844  ;;  %v2870_v60 = vcombine.high %v13997_v10, %v14008_v14  ;;  %v2832_v47 = vrot.slane %v2818_v8, %v18277_v16 }
 0x38e   : > { %v14166_v37 = vpop.permute.xlu1 %1848  ;;  %v2458_v10 = vcombine.high %v2440_v49, %v18250_v56  ;;  %v2572_v14 = vcombine.high %v13977_v50, %v13986_v41  ;;  %v2123_v8 = vcombine.high %v14095_v27, %v14101_v12  ;;  %v2689_v12 = vcombine.high %v2679_v26, %v18250_v56 }
 0x38f   : > { %18288 = vst [vmem:[#allocation41_spill] sm:$0xff] %v14159_v58  ;;  %v1992_v51 = vcombine.high %v14159_v58, %v18250_v56  ;;  %v14192_v7 = vrot.slane %v2870_v60, %v18274_v36  ;;  %v18291_v60 = vcombine.high %v13796_v0, %v13799_v63  ;;  %v18292_v63 = vcombine.high %v13824_v33, %v13815_v21 }
 0x390   : > { %v14208_v50 = vrot.slane %v2572_v14, %v18274_v36  ;;  %v2137_v27 = vrot.slane %v2123_v8, %v18277_v16  ;;  %v1876_v14 = vcombine.low %v14145_v3, %v14166_v37  ;;  %v18293_v33 = vcombine.low %v13849_v30, %v13852_v61 }
 0x391   : > { %2700 = vrot.lane.b32.xlu0 %v2620_v17, %s12192_s8  ;;  %2025 = vrot.lane.b32.xlu1 %v1992_v51, %s18174_s3  ;;  %v2854_v17 = vcombine.high %v13988_v5, %v13999_v31  ;;  %v1762_v5 = vcombine.high %v14180_v53, %v18250_v56  ;;  %v14198_v31 = vpop.permute.xlu0 %1139 }
 0x392   : > { %v14186_v51 = vpop.permute.xlu1 %1143 }
 0x393   : > { %v14203_v42 = vrot.slane %v2854_v17, %v18274_v36  ;;  %v2372_v17 = vrot.slane %v18291_v60, %v18277_v16 }
 0x395   : > { %2926 = vrot.lane.b32.xlu0 %v2832_v47, %s18172_s20  ;;  %2263 = vrot.lane.b32.xlu1 %v2223_v38, %s12192_s8  ;;  %v2556_v38 = vcombine.high %v13971_v54, %v13979_v6  ;;  %v2901_v41 = vcombine.low %v14203_v42, %v14192_v7  ;;  %v14221_v6 = vpop.permute.xlu0 %1147 }
 0x396   : > { %v14214_v49 = vpop.permute.xlu1 %1151 }
 0x397   : > { %v14217_v54 = vrot.slane %v2556_v38, %v18274_v36  ;;  %v2909_v8 = vrot.slane %v2901_v41, %v18277_v16  ;;  %v1860_v38 = vcombine.low %v14154_v1, %v14170_v19 }
 0x399   : > { %1795 = vrot.lane.b32.xlu0 %v1762_v5, %s18174_s3  ;;  %2498 = vrot.lane.b32.xlu1 %v2458_v10, %s12192_s8  ;;  %v2603_v26 = vcombine.low %v14217_v54, %v14208_v50  ;;  %v2175_v10 = vcombine.high %v14019_v15, %v14028_v39  ;;  %v2159_v5 = vcombine.high %v14010_v43, %v14021_v32 }
 0x39a   : > { %v14240_v0 = vpop.permute.xlu1 %1373  ;;  %v14246_v39 = vrot.slane %v18292_v63, %v18277_v16  ;;  %v1961_v43 = vcombine.high %v14132_v18, %v14138_v55  ;;  %v14254_v32 = vrot.slane %v1876_v14, %v18274_v36  ;;  %v14263_v21 = vrot.slane %v1860_v38, %v18274_v36 }
 0x39b   : > { %v14249_v15 = vrot.slane %v2175_v10, %v18274_v36  ;;  %v2611_v41 = vrot.slane %v2603_v26, %v18277_v16  ;;  %v14260_v60 = vrot.slane %v2159_v5, %v18274_v36  ;;  %v14272_v18 = vrot.slane %v18293_v33, %v18277_v16 }
 0x39c   : > { %v1892_v26 = vcombine.low %v14263_v21, %v14254_v32  ;;  %v2850_v10 = vcombine.high %v2832_v47, %v18250_v56  ;;  %v1975_v14 = vrot.slane %v1961_v43, %v18277_v16 }
 0x39d   : > { %2231 = vrot.lane.b32.xlu0 %v2137_v27, %s18172_s20  ;;  %2736 = vrot.lane.b32.xlu1 %v2689_v12, %s12200_s4  ;;  %v14257_v12 = vpop.permute.xlu0 %1369  ;;  %18294 = vst [vmem:[#allocation43_spill] sm:$0xff] %v14272_v18  ;;  %v2206_v55 = vcombine.low %v14260_v60, %v14249_v15  ;;  %v1694_v33 = vcombine.high %v14272_v18, %v18250_v56 }
 0x39e   : > { %v14280_v5 = vpop.permute.xlu1 %1381  ;;  %v14292_v47 = vrot.slane %v1892_v26, %v18277_v16 }
 0x39f   : > { %v1475_v63 = vcombine.low %v14240_v0, %v14280_v5  ;;  %v2214_v24 = vrot.slane %v2206_v55, %v18277_v16  ;;  %v18296_v55 = vcombine.low %v13843_v23, %v13829_v13 }
 0x3a0   : > { %18295 = vst [vmem:[#allocation36_spill] sm:$0xff] %v14292_v47  ;;  %v1924_v26 = vcombine.high %v14292_v47, %v18250_v56 }
 0x3a1   : > { %2466 = vrot.lane.b32.xlu0 %v2372_v17, %s18172_s20  ;;  %2962 = vrot.lane.b32.xlu1 %v2909_v8, %s12199_s1  ;;  %v14284_v38 = vpop.permute.xlu0 %1377  ;;  %v14301_v53 = vrot.slane %v1475_v63, %v18274_v36  ;;  %v2449_v18 = vrot.slane %v18296_v55, %v18277_v16  ;;  %v1245_v63 = vcombine.low %v14186_v51, %v14214_v49 }
 0x3a2   : > { %v1459_v43 = vcombine.low %v14257_v12, %v14284_v38 }
 0x3a4   : > { %v14310_v44 = vrot.slane %v1459_v43, %v18274_v36  ;;  %v2155_v43 = vcombine.high %v2137_v27, %v18250_v56  ;;  %v14336_v27 = vrot.slane %v1245_v63, %v18274_v36  ;;  %v2621_v63 = vcombine.high %v2611_v41, %v18250_v56 }
 0x3a5   : > { %2704 = vrot.lane.b32.xlu0 %v2611_v41, %s12199_s1  ;;  %1799 = vrot.lane.b32.xlu1 %v14246_v39, %s18172_s20 }
 0x3a6   : > { %v1491_v55 = vcombine.low %v14310_v44, %v14301_v53 }
 0x3a9   : > { %2930 = vrot.lane.b32.xlu0 %v2850_v10, %s12192_s8  ;;  %2029 = vrot.lane.b32.xlu1 %v1975_v14, %s18172_s20  ;;  %v2672_v10 = vcombine.high %v14092_v20, %v14086_v11  ;;  %v2802_v20 = vcombine.high %v14045_v48, %v14057_v45  ;;  %v2390_v48 = vcombine.high %v2372_v17, %v18250_v56 }
 0x3ab   : > { %v2686_v11 = vrot.slane %v2672_v10, %v18277_v16  ;;  %v1229_v10 = vcombine.low %v14198_v31, %v14221_v6  ;;  %v14333_v45 = vrot.slane %v2802_v20, %v18274_v36 }
 0x3ad   : > { %1767 = vrot.lane.b32.xlu0 %v1694_v33, %s18174_s3  ;;  %2267 = vrot.lane.b32.xlu1 %v2214_v24, %s12199_s1  ;;  %v4400_v33 = vld [vmem:[#allocation8] sm:$0xff]  ;;  %v1237_v47 = vrot.slane %v1229_v10, %v18274_v36 }
 0x3ae   : > { %11649 = vmatmul.mubr.msk.f32.vlgmr.msra.gmra.mxu1 %vm3029_vm4, %v4400_v33  ;;  %v2919_v33 = vcombine.high %v2909_v8, %v18250_v56 }
 0x3af   : > { %11676 = vmatprep.mubr.msk.f32.mxu1 %vm12197_vm7, %v18250_v56  ;;  %v1261_v20 = vcombine.low %v1237_v47, %v14336_v27 }
 0x3b1   : > { %2502 = vrot.lane.b32.xlu1 %v2449_v18, %s12199_s1  ;;  %1997 = vrot.lane.b32.xlu0 %v1924_v26, %s18174_s3  ;;  %v2786_v26 = vcombine.high %v14030_v2, %v14047_v34  ;;  %v14340_v34 = vrot.slane %v1491_v55, %v18277_v16  ;;  %v14356_v55 = vpop.permute.xlu1 %1141  ;;  %v14362_v10 = vrot.slane %v1261_v20, %v18277_v16 }
 0x3b2   : > { %v18299_v20 = vcombine.high %v13849_v30, %v13852_v61  ;;  %v2902_v61 = vcombine.high %v14203_v42, %v14192_v7  ;;  %v2604_v7 = vcombine.high %v14217_v54, %v14208_v50 }
 0x3b3   : > { %18297 = vst [vmem:[#allocation42_spill] sm:$0xff] %v14340_v34  ;;  %v14343_v2 = vrot.slane %v2786_v26, %v18274_v36  ;;  %v1523_v8 = vcombine.high %v14340_v34, %v18250_v56  ;;  %v1763_v26 = vcombine.high %v14246_v39, %v18250_v56  ;;  %18298 = vst [vmem:[#allocation48_spill] sm:$0xff] %v14362_v10 }
 0x3b4   : > { %v1293_v41 = vcombine.high %v14362_v10, %v18250_v56  ;;  %v18303_v34 = vcombine.low %v13872_v35, %v13855_v29 }
 0x3b5   : > { %2740 = vrot.lane.b32.xlu1 %v2686_v11, %s12201_s12  ;;  %2235 = vrot.lane.b32.xlu0 %v2155_v43, %s12192_s8  ;;  %v2833_v17 = vcombine.low %v14343_v2, %v14333_v45 }
 0x3b6   : > { %v14479_v58 = vrot.slane %v18303_v34, %v18277_v16 }
 0x3b7   : > { %v2841_v43 = vrot.slane %v2833_v17, %v18277_v16  ;;  %v1893_v17 = vcombine.high %v14263_v21, %v14254_v32  ;;  %v2459_v21 = vcombine.high %v2449_v18, %v18250_v56 }
 0x3b9   : > { %2966 = vrot.lane.b32.xlu1 %v2919_v33, %s12200_s4  ;;  %2470 = vrot.lane.b32.xlu0 %v2390_v48, %s12192_s8  ;;  %v14364_v48 = vpop.permute.xlu0 %1137  ;;  %v1993_v33 = vcombine.high %v1975_v14, %v18250_v56  ;;  %v14394_v32 = vrot.slane %v1893_v17, %v18277_v16  ;;  %v2690_v17 = vcombine.high %v2686_v11, %v18250_v56 }
 0x3ba   : > { %v18300_v11 = vcombine.low %v13846_v57, %v13832_v4 }
 0x3bd   : > { %2708 = vrot.lane.b32.xlu0 %v2621_v63, %s12200_s4  ;;  %1556 = vrot.lane.b32.xlu1 %v1523_v8, %s18174_s3  ;;  %v14371_v63 = vpop.permute.xlu1 %1149  ;;  %v14375_v39 = vpop.permute.xlu0 %1145  ;;  %v14383_v8 = vrot.slane %v18299_v20, %v18277_v16 }
 0x3be   : > { %v1161_v18 = vcombine.low %v14364_v48, %v14375_v39 }
 0x3c0   : > { %v14437_v50 = vrot.slane %v1161_v18, %v18274_v36 }
 0x3c1   : > { %2934 = vrot.lane.b32.xlu0 %v2841_v43, %s12199_s1  ;;  %1803 = vrot.lane.b32.xlu1 %v1763_v26, %s12192_s8  ;;  %v2224_v26 = vcombine.high %v2214_v24, %v18250_v56  ;;  %v14389_v14 = vpop.permute.xlu1 %1371  ;;  %v14397_v30 = vpop.permute.xlu0 %1367  ;;  %v1177_v24 = vcombine.low %v14356_v55, %v14371_v63 }
 0x3c5   : > { %1326 = vrot.lane.b32.xlu0 %v1293_v41, %s18174_s3  ;;  %2033 = vrot.lane.b32.xlu1 %v1993_v33, %s12192_s8  ;;  %v2138_v41 = vcombine.low %v14098_v9, %v14104_v62  ;;  %v14410_v20 = vpop.permute.xlu1 %1379  ;;  %v14419_v42 = vpop.permute.xlu0 %1375 }
 0x3c6   : > { %v1407_v10 = vcombine.low %v14389_v14, %v14410_v20  ;;  %v1391_v54 = vcombine.low %v14397_v30, %v14419_v42 }
 0x3c7   : > { %v14407_v33 = vrot.slane %v2138_v41, %v18277_v16  ;;  %v1262_v41 = vcombine.high %v1237_v47, %v14336_v27  ;;  %v14446_v47 = vrot.slane %v2604_v7, %v18277_v16  ;;  %v1492_v27 = vcombine.high %v14310_v44, %v14301_v53 }
 0x3c8   : > { %v2851_v44 = vcombine.high %v2841_v43, %v18250_v56 }
 0x3c9   : > { %1771 = vrot.lane.b32.xlu0 %v14383_v8, %s18172_s20  ;;  %2271 = vrot.lane.b32.xlu1 %v2224_v26, %s12200_s4  ;;  %v14425_v26 = vrot.slane %v18300_v11, %v18277_v16  ;;  %v1276_v18 = vrot.slane %v1262_v41, %v18277_v16  ;;  %v14457_v11 = vrot.slane %v1391_v54, %v18274_v36 }
 0x3ca   : > { %v1506_v53 = vrot.slane %v1492_v27, %v18277_v16  ;;  %v1976_v41 = vcombine.low %v14135_v46, %v14141_v25 }
 0x3cc   : > { %v14496_v34 = vrot.slane %v1976_v41, %v18277_v16 }
 0x3cd   : > { %2001 = vrot.lane.b32.xlu0 %v14394_v32, %s18172_s20  ;;  %2506 = vrot.lane.b32.xlu1 %v2459_v21, %s12200_s4  ;;  %v14429_v21 = vrot.slane %v1177_v24, %v18274_v36  ;;  %v14453_v24 = vrot.slane %v1407_v10, %v18274_v36 }
 0x3cf   : > { %v1423_v7 = vcombine.low %v14457_v11, %v14453_v24 }
 0x3d1   : > { %2239 = vrot.lane.b32.xlu0 %v14407_v33, %s12199_s1  ;;  %2744 = vrot.lane.b32.xlu1 %v2690_v17, %s12202_s28  ;;  %v14434_v17 = vrot.slane %v2902_v61, %v18277_v16  ;;  %v1193_v61 = vcombine.low %v14437_v50, %v14429_v21  ;;  %v14484_v27 = vrot.slane %v1423_v7, %v18277_v16 }
 0x3d2   : > { %v1004_v7 = vcombine.low %v13686_v52, %v13730_v59 }
 0x3d3   : > { %v14467_v10 = vrot.slane %v1193_v61, %v18277_v16  ;;  %18304 = vst [vmem:[#allocation51_spill] sm:$0xff] %v14484_v27  ;;  %v14486_v61 = vpop.permute.xlu0 %2720 }
 0x3d4   : > { %18305 = vst [vmem:[#allocation52_spill] sm:$0xff] %v14486_v61  ;;  %v1925_v61 = vcombine.high %v14394_v32, %v18250_v56 }
 0x3d5   : > { %2474 = vrot.lane.b32.xlu0 %v14425_v26, %s12199_s1  ;;  %2970 = vrot.lane.b32.xlu1 %v14434_v17, %s12201_s12  ;;  %18301 = vst [vmem:[#allocation49_spill] sm:$0xff] %v14467_v10  ;;  %v1225_v43 = vcombine.high %v14467_v10, %v18250_v56  ;;  %v1455_v10 = vcombine.high %v14484_v27, %v18250_v56 }
 0x3d6   : > { %v1695_v27 = vcombine.high %v14383_v8, %v18250_v56  ;;  %v18309_v8 = vcombine.high %v13843_v23, %v13829_v13  ;;  %v2156_v13 = vcombine.high %v14407_v33, %v18250_v56  ;;  %v2391_v33 = vcombine.high %v14425_v26, %v18250_v56 }
 0x3d7   : > { %v1194_v26 = vcombine.high %v14437_v50, %v14429_v21  ;;  %v1424_v21 = vcombine.high %v14457_v11, %v14453_v24 }
 0x3d9   : > { %2712 = vrot.lane.b32.xlu0 %v14446_v47, %s12201_s12  ;;  %1330 = vrot.lane.b32.xlu1 %v1276_v18, %s18172_s20  ;;  %v1438_v11 = vrot.slane %v1424_v21, %v18277_v16  ;;  %v18324_v21 = vld [vmem:[#allocation32_spill] sm:$0xff] }
 0x3db   : > { %v14473_v54 = vpop.permute.xlu1 %2692 }
 0x3dc   : > { %18302 = vst [vmem:[#allocation50_spill] sm:$0xff] %v14473_v54  ;;  %v14517_v54 = vrot.slane %v1004_v7, %v18274_v36  ;;  %v14535_v7 = vrot.slane %v18309_v8, %v18277_v16 }
 0x3dd   : > { %2938 = vrot.lane.b32.xlu0 %v2851_v44, %s12200_s4  ;;  %1560 = vrot.lane.b32.xlu1 %v1506_v53, %s18172_s20  ;;  %v2207_v44 = vcombine.high %v14260_v60, %v14249_v15  ;;  %v14507_v15 = vpop.permute.xlu0 %2724 }
 0x3de   : > { %18306 = vst [vmem:[#allocation53_spill] sm:$0xff] %v14507_v15 }
 0x3df   : > { %v14512_v41 = vrot.slane %v2207_v44, %v18277_v16 }
 0x3e1   : > { %1807 = vrot.lane.b32.xlu1 %v14479_v58, %s12199_s1  ;;  %1298 = vrot.lane.b32.xlu0 %v1225_v43, %s18174_s3  ;;  %v988_v43 = vcombine.low %v13673_v28, %v13705_v22 }
 0x3e3   : > { %v14493_v40 = vpop.permute.xlu1 %2950 }
 0x3e5   : > { %2037 = vrot.lane.b32.xlu1 %v14496_v34, %s12199_s1  ;;  %1528 = vrot.lane.b32.xlu0 %v1455_v10, %s18174_s3  ;;  %v14523_v10 = vrot.slane %v988_v43, %v18274_v36  ;;  %v12203_v43 = vmov 0  }
 0x3e6   : > { %11882 = vset.pattern.permute.xlu0 %v12203_v43  ;;  %11883 = vset.pattern.permute.xlu1 %v12203_v43  ;;  %v2622_v43 = vcombine.high %v14446_v47, %v18250_v56  ;;  %v18314_v47 = vld [vmem:[#allocation38_spill] sm:$0xff] }
 0x3e7   : > { %v14509_v60 = vpop.permute.xlu1 %2490 }
 0x3e8   : > { %18307 = vst [vmem:[#allocation54_spill] sm:$0xff] %v14509_v60  ;;  %v2834_v60 = vcombine.high %v14343_v2, %v14333_v45 }
 0x3e9   : > { %2275 = vrot.lane.b32.xlu1 %v14512_v41, %s12201_s12  ;;  %1775 = vrot.lane.b32.xlu0 %v1695_v27, %s12192_s8  ;;  %v1020_v27 = vcombine.low %v14523_v10, %v14517_v54 }
 0x3ea   : > { %v14547_v2 = vrot.slane %v2834_v60, %v18277_v16 }
 0x3eb   : > { %v14527_v15 = vpop.permute.xlu1 %2728  ;;  %v14529_v44 = vpop.permute.xlu0 %2255  ;;  %v14552_v23 = vrot.slane %v1020_v27, %v18277_v16 }
 0x3ec   : > { %18308 = vst [vmem:[#allocation55_spill] sm:$0xff] %v14529_v44 }
 0x3ed   : > { %2510 = vrot.lane.b32.xlu1 %v14535_v7, %s12201_s12  ;;  %2005 = vrot.lane.b32.xlu0 %v1925_v61, %s12192_s8  ;;  %18310 = vst [vmem:[#allocation56_spill] sm:$0xff] %v14552_v23  ;;  %v1052_v60 = vcombine.high %v14552_v23, %v18250_v56 }
 0x3ef   : > { %v14544_v45 = vpop.permute.xlu1 %2954  ;;  %v14554_v32 = vpop.permute.xlu0 %2696 }
 0x3f0   : > { %18311 = vst [vmem:[#allocation57_spill] sm:$0xff] %v14554_v32  ;;  %v1861_v32 = vcombine.high %v14154_v1, %v14170_v19 }
 0x3f1   : > { %2942 = vrot.lane.b32.xlu1 %v14547_v2, %s12201_s12  ;;  %2243 = vrot.lane.b32.xlu0 %v2156_v13, %s12200_s4  ;;  %v1294_v13 = vcombine.high %v1276_v18, %v18250_v56  ;;  %v18315_v18 = vld [vmem:[#allocation44_spill] sm:$0xff] }
 0x3f2   : > { %v14620_v1 = vrot.slane %v1861_v32, %v18274_v36  ;;  %v18323_v32 = vld [vmem:[#allocation45_spill] sm:$0xff] }
 0x3f3   : > { %v14559_v61 = vpop.permute.xlu1 %2259  ;;  %v14567_v8 = vpop.permute.xlu0 %2922 }
 0x3f4   : > { %18312 = vst [vmem:[#allocation58_spill] sm:$0xff] %v14559_v61  ;;  %v2920_v61 = vcombine.high %v14434_v17, %v18250_v56  ;;  %v1764_v17 = vcombine.high %v14479_v58, %v18250_v56  ;;  %v1994_v58 = vcombine.high %v14496_v34, %v18250_v56 }
 0x3f5   : > { %1085 = vrot.lane.b32.xlu1 %v1052_v60, %s18174_s3  ;;  %2478 = vrot.lane.b32.xlu0 %v2391_v33, %s12200_s4  ;;  %v1524_v33 = vcombine.high %v1506_v53, %v18250_v56  ;;  %v1208_v53 = vrot.slane %v1194_v26, %v18277_v16 }
 0x3f7   : > { %v14569_v27 = vpop.permute.xlu1 %2494 }
 0x3f9   : > { %1334 = vrot.lane.b32.xlu1 %v1294_v13, %s12192_s8  ;;  %2716 = vrot.lane.b32.xlu0 %v2622_v43, %s12202_s28  ;;  %v936_v13 = vcombine.low %v18315_v18, %v18314_v47  ;;  %v1877_v43 = vcombine.high %v14145_v3, %v14166_v37 }
 0x3fb   : > { %v14578_v23 = vpop.permute.xlu1 %2732  ;;  %v14580_v60 = vpop.permute.xlu0 %2227  ;;  %v14607_v3 = vrot.slane %v1877_v43, %v18274_v36  ;;  %v14617_v26 = vrot.slane %v936_v13, %v18274_v36  ;;  %v2225_v13 = vcombine.high %v14512_v41, %v18250_v56 }
 0x3fc   : > { %18313 = vst [vmem:[#allocation59_spill] sm:$0xff] %v14580_v60 }
 0x3fd   : > { %1564 = vrot.lane.b32.xlu1 %v1524_v33, %s12192_s8  ;;  %2974 = vrot.lane.b32.xlu0 %v2920_v61, %s12202_s28  ;;  %v18317_v33 = vld [vmem:[#allocation34_spill] sm:$0xff]  ;;  %v18318_v61 = vld [vmem:[#allocation35_spill] sm:$0xff]  ;;  %v1908_v43 = vcombine.low %v14620_v1, %v14607_v3 }
 0x3fe   : > { %v920_v44 = vcombine.low %v18318_v61, %v18317_v33 }
 0x3ff   : > { %v14593_v50 = vpop.permute.xlu1 %2958  ;;  %v14595_v60 = vpop.permute.xlu0 %2462  ;;  %v1916_v41 = vrot.slane %v1908_v43, %v18277_v16 }
 0x400   : > { %18316 = vst [vmem:[#allocation38_spill] sm:$0xff] %v14595_v60  ;;  %v14625_v19 = vrot.slane %v920_v44, %v18274_v36 }
 0x401   : > { %1811 = vrot.lane.b32.xlu1 %v1764_v17, %s12200_s4  ;;  %1302 = vrot.lane.b32.xlu0 %v1208_v53, %s18172_s20 }
 0x402   : > { %v952_v60 = vcombine.low %v14625_v19, %v14617_v26 }
 0x403   : > { %v14609_v37 = vpop.permute.xlu1 %2025  ;;  %v14611_v24 = vpop.permute.xlu0 %2700 }
 0x404   : > { %18319 = vst [vmem:[#allocation44_spill] sm:$0xff] %v14609_v37  ;;  %18320 = vst [vmem:[#allocation34_spill] sm:$0xff] %v14611_v24  ;;  %v18325_v37 = vcombine.low %v18323_v32, %v18324_v21  ;;  %v2460_v24 = vcombine.high %v14535_v7, %v18250_v56  ;;  %v18331_v7 = vcombine.high %v14098_v9, %v14104_v62 }
 0x405   : > { %2041 = vrot.lane.b32.xlu1 %v1994_v58, %s12200_s4  ;;  %1532 = vrot.lane.b32.xlu0 %v1438_v11, %s18172_s20  ;;  %v1230_v9 = vcombine.high %v14198_v31, %v14221_v6  ;;  %v1021_v62 = vcombine.high %v14523_v10, %v14517_v54  ;;  %v1456_v31 = vcombine.high %v1438_v11, %v18250_v56 }
 0x406   : > { %v1686_v58 = vrot.slane %v18325_v37, %v18277_v16  ;;  %v2852_v6 = vcombine.high %v14547_v2, %v18250_v56  ;;  %v1460_v54 = vcombine.high %v14257_v12, %v14284_v38 }
 0x407   : > { %v14629_v17 = vpop.permute.xlu1 %2263  ;;  %v14631_v34 = vpop.permute.xlu0 %2926 }
 0x408   : > { %18321 = vst [vmem:[#allocation35_spill] sm:$0xff] %v14629_v17  ;;  %18322 = vst [vmem:[#allocation60_spill] sm:$0xff] %v14631_v34  ;;  %v14651_v34 = vrot.slane %v952_v60, %v18277_v16  ;;  %v1246_v60 = vcombine.high %v14186_v51, %v14214_v49  ;;  %v1476_v49 = vcombine.high %v14240_v0, %v14280_v5 }
 0x409   : > { %2279 = vrot.lane.b32.xlu1 %v2225_v13, %s12202_s28  ;;  %1779 = vrot.lane.b32.xlu0 %v1686_v58, %s12199_s1  ;;  %v1696_v2 = vcombine.high %v1686_v58, %v18250_v56  ;;  %v14718_v12 = vrot.slane %v1460_v54, %v18274_v36  ;;  %v1926_v58 = vcombine.high %v1916_v41, %v18250_v56 }
 0x40a   : > { %18328 = vst [vmem:[#allocation61_spill] sm:$0xff] %v14651_v34  ;;  %v14688_v51 = vrot.slane %v1246_v60, %v18274_v36  ;;  %v14709_v5 = vrot.slane %v1476_v49, %v18274_v36 }
 0x40b   : > { %v14643_v44 = vpop.permute.xlu1 %2498  ;;  %v14645_v17 = vpop.permute.xlu0 %1795 }
 0x40c   : > { %18326 = vst [vmem:[#allocation45_spill] sm:$0xff] %v14643_v44  ;;  %18327 = vst [vmem:[#allocation32_spill] sm:$0xff] %v14645_v17  ;;  %v984_v44 = vcombine.high %v14651_v34, %v18250_v56  ;;  %v2153_v17 = vrot.slane %v18331_v7, %v18277_v16  ;;  %v18332_v34 = vcombine.high %v13846_v57, %v13832_v4 }
 0x40d   : > { %2514 = vrot.lane.b32.xlu1 %v2460_v24, %s12202_s28  ;;  %2009 = vrot.lane.b32.xlu0 %v1916_v41, %s12199_s1  ;;  %v1507_v38 = vcombine.low %v14718_v12, %v14709_v5 }
 0x40f   : > { %v14655_v37 = vpop.permute.xlu1 %2736  ;;  %v14657_v13 = vpop.permute.xlu0 %2231 }
 0x410   : > { %18329 = vst [vmem:[#allocation62_spill] sm:$0xff] %v14655_v37  ;;  %18330 = vst [vmem:[#allocation63_spill] sm:$0xff] %v14657_v13  ;;  %v1226_v13 = vcombine.high %v1208_v53, %v18250_v56  ;;  %v14678_v37 = vrot.slane %v18332_v34, %v18277_v16  ;;  %v14700_v53 = vrot.slane %v1230_v9, %v18274_v36 }
 0x411   : > { %1057 = vrot.lane.b32.xlu1 %v984_v44, %s18174_s3  ;;  %2247 = vrot.lane.b32.xlu0 %v2153_v17, %s12201_s12  ;;  %v1035_v34 = vrot.slane %v1021_v62, %v18277_v16  ;;  %v1178_v44 = vcombine.high %v14356_v55, %v14371_v63  ;;  %v1162_v9 = vcombine.high %v14364_v48, %v14375_v39 }
 0x412   : > { %v1277_v0 = vcombine.low %v14700_v53, %v14688_v51  ;;  %v953_v62 = vcombine.high %v14625_v19, %v14617_v26  ;;  %v1408_v63 = vcombine.high %v14389_v14, %v14410_v20  ;;  %v1515_v48 = vrot.slane %v1507_v38, %v18277_v16 }
 0x413   : > { %v14669_v24 = vpop.permute.xlu1 %2962  ;;  %v14671_v43 = vpop.permute.xlu0 %2466  ;;  %v14739_v55 = vrot.slane %v1178_v44, %v18274_v36  ;;  %v14750_v39 = vrot.slane %v1162_v9, %v18274_v36  ;;  %v1392_v26 = vcombine.high %v14397_v30, %v14419_v42  ;;  %v18333_v30 = vcombine.high %v13872_v35, %v13855_v29 }
 0x414   : > { %v1285_v60 = vrot.slane %v1277_v0, %v18277_v16  ;;  %v14759_v20 = vrot.slane %v1408_v63, %v18274_v36  ;;  %v18334_v29 = vcombine.high %v14135_v46, %v14141_v25  ;;  %v2392_v63 = vcombine.high %v14678_v37, %v18250_v56 }
 0x415   : > { %1306 = vrot.lane.b32.xlu1 %v1226_v13, %s12192_s8  ;;  %2482 = vrot.lane.b32.xlu0 %v14678_v37, %s12201_s12  ;;  %v1209_v14 = vcombine.low %v14750_v39, %v14739_v55  ;;  %v1761_v42 = vrot.slane %v18333_v30, %v18277_v16  ;;  %v14771_v54 = vrot.slane %v1392_v26, %v18274_v36 }
 0x416   : > { %v1991_v35 = vrot.slane %v18334_v29, %v18277_v16  ;;  %v1909_v46 = vcombine.high %v14620_v1, %v14607_v3  ;;  %v18335_v26 = vcombine.high %v18323_v32, %v18324_v21  ;;  %v1053_v30 = vcombine.high %v1035_v34, %v18250_v56 }
 0x417   : > { %v14692_v4 = vpop.permute.xlu1 %1799  ;;  %v14694_v57 = vpop.permute.xlu0 %2704  ;;  %v1439_v0 = vcombine.low %v14771_v54, %v14759_v20  ;;  %v1217_v44 = vrot.slane %v1209_v14, %v18277_v16  ;;  %v1295_v1 = vcombine.high %v1285_v60, %v18250_v56  ;;  %v1525_v29 = vcombine.high %v1515_v48, %v18250_v56 }
 0x418   : > { %v1693_v14 = vrot.slane %v18335_v26, %v18277_v16  ;;  %v1923_v3 = vrot.slane %v1909_v46, %v18277_v16 }
 0x419   : > { %1536 = vrot.lane.b32.xlu1 %v1456_v31, %s12192_s8  ;;  %2946 = vrot.lane.b32.xlu0 %v2852_v6, %s12202_s28  ;;  %v2157_v31 = vcombine.high %v2153_v17, %v18250_v56  ;;  %v967_v6 = vrot.slane %v953_v62, %v18277_v16  ;;  %v1447_v62 = vrot.slane %v1439_v0, %v18277_v16 }
 0x41b   : > { %v14711_v10 = vpop.permute.xlu1 %2029  ;;  %v14713_v11 = vpop.permute.xlu0 %2930 }
 0x41d   : > { %1783 = vrot.lane.b32.xlu1 %v1696_v2, %s12200_s4  ;;  %1089 = vrot.lane.b32.xlu0 %v1035_v34, %s18172_s20  ;;  %v985_v34 = vcombine.high %v967_v6, %v18250_v56 }
 0x41f   : > { %v14726_v13 = vpop.permute.xlu1 %2267  ;;  %v14728_v7 = vpop.permute.xlu0 %1767 }
 0x421   : > { %2013 = vrot.lane.b32.xlu1 %v1926_v58, %s12200_s4  ;;  %1338 = vrot.lane.b32.xlu0 %v1285_v60, %s12199_s1  ;;  %v989_v60 = vcombine.high %v13673_v28, %v13705_v22  ;;  %v921_v22 = vcombine.high %v18318_v61, %v18317_v33  ;;  %v1278_v33 = vcombine.high %v14700_v53, %v14688_v51 }
 0x423   : > { %v14743_v49 = vpop.permute.xlu1 %2502  ;;  %v14745_v41 = vpop.permute.xlu0 %1997  ;;  %v14844_v28 = vrot.slane %v989_v60, %v18274_v36  ;;  %v1508_v60 = vcombine.high %v14718_v12, %v14709_v5 }
 0x425   : > { %2251 = vrot.lane.b32.xlu1 %v2157_v31, %s12202_s28  ;;  %1568 = vrot.lane.b32.xlu0 %v1515_v48, %s12199_s1 }
 0x427   : > { %v14761_v19 = vpop.permute.xlu1 %2740  ;;  %v14763_v17 = vpop.permute.xlu0 %2235 }
 0x429   : > { %1061 = vrot.lane.b32.xlu1 %v967_v6, %s18172_s20  ;;  %1815 = vrot.lane.b32.xlu0 %v1761_v42, %s12201_s12  ;;  %v1765_v6 = vcombine.high %v1761_v42, %v18250_v56  ;;  %v1457_v42 = vcombine.high %v1447_v62, %v18250_v56 }
 0x42b   : > { %v14777_v2 = vpop.permute.xlu1 %2966  ;;  %v14779_v38 = vpop.permute.xlu0 %2470 }
 0x42d   : > { %1310 = vrot.lane.b32.xlu1 %v1217_v44, %s12199_s1  ;;  %2045 = vrot.lane.b32.xlu0 %v1991_v35, %s12201_s12 }
 0x42f   : > { %v14788_v58 = vpop.permute.xlu1 %1556  ;;  %v14790_v9 = vpop.permute.xlu0 %2708 }
 0x431   : > { %1540 = vrot.lane.b32.xlu1 %v1447_v62, %s12199_s1  ;;  %2486 = vrot.lane.b32.xlu0 %v2392_v63, %s12202_s28  ;;  %v1005_v63 = vcombine.high %v13686_v52, %v13730_v59  ;;  %v937_v52 = vcombine.high %v18315_v18, %v18314_v47 }
 0x433   : > { %v14799_v25 = vpop.permute.xlu1 %1803  ;;  %v14801_v31 = vpop.permute.xlu0 %2934  ;;  %v14837_v48 = vrot.slane %v1005_v63, %v18274_v36  ;;  %v951_v18 = vrot.slane %v937_v52, %v18274_v36  ;;  %v1440_v52 = vcombine.high %v14771_v54, %v14759_v20  ;;  %v1927_v20 = vcombine.high %v1923_v3, %v18250_v56 }
 0x435   : > { %1787 = vrot.lane.b32.xlu1 %v1693_v14, %s12201_s12  ;;  %1093 = vrot.lane.b32.xlu0 %v1053_v30, %s12192_s8  ;;  %v1227_v30 = vcombine.high %v1217_v44, %v18250_v56  ;;  %v1036_v47 = vcombine.low %v14844_v28, %v14837_v48 }
 0x437   : > { %v14810_v37 = vpop.permute.xlu1 %2033  ;;  %v14812_v0 = vpop.permute.xlu0 %1326  ;;  %v1044_v62 = vrot.slane %v1036_v47, %v18277_v16 }
 0x439   : > { %2017 = vrot.lane.b32.xlu1 %v1923_v3, %s12201_s12  ;;  %1342 = vrot.lane.b32.xlu0 %v1295_v1, %s12200_s4  ;;  %v1995_v1 = vcombine.high %v1991_v35, %v18250_v56  ;;  %v1697_v35 = vcombine.high %v1693_v14, %v18250_v56  ;;  %v1292_v14 = vrot.slane %v1278_v33, %v18277_v16 }
 0x43b   : > { %v14818_v32 = vpop.permute.xlu1 %2271  ;;  %v14820_v21 = vpop.permute.xlu0 %1771 }
 0x43d   : > { %1065 = vrot.lane.b32.xlu1 %v985_v34, %s12192_s8  ;;  %1572 = vrot.lane.b32.xlu0 %v1525_v29, %s12200_s4  ;;  %v935_v34 = vrot.slane %v921_v22, %v18274_v36 }
 0x43f   : > { %v14830_v46 = vpop.permute.xlu1 %2506  ;;  %v14832_v26 = vpop.permute.xlu0 %2001  ;;  %v968_v63 = vcombine.low %v935_v34, %v951_v18 }
 0x441   : > { %1314 = vrot.lane.b32.xlu1 %v1227_v30, %s12200_s4  ;;  %1819 = vrot.lane.b32.xlu0 %v1765_v6, %s12202_s28  ;;  %v1210_v30 = vcombine.high %v14750_v39, %v14739_v55  ;;  %v976_v6 = vrot.slane %v968_v63, %v18277_v16  ;;  %v1522_v55 = vrot.slane %v1508_v60, %v18277_v16 }
 0x443   : > { %v14848_v59 = vpop.permute.xlu1 %2744  ;;  %v14850_v44 = vpop.permute.xlu0 %2239  ;;  %v1224_v12 = vrot.slane %v1210_v30, %v18277_v16  ;;  %v986_v33 = vcombine.high %v976_v6, %v18250_v56  ;;  %v1296_v30 = vcombine.high %v1292_v14, %v18250_v56 }
 0x445   : > { %1544 = vrot.lane.b32.xlu1 %v1457_v42, %s12200_s4  ;;  %2049 = vrot.lane.b32.xlu0 %v1995_v1, %s12202_s28  ;;  %v1454_v1 = vrot.slane %v1440_v52, %v18277_v16  ;;  %v1228_v3 = vcombine.high %v1224_v12, %v18250_v56  ;;  %v969_v52 = vcombine.high %v935_v34, %v951_v18 }
 0x447   : > { %v14862_v61 = vpop.permute.xlu1 %2970  ;;  %v14864_v29 = vpop.permute.xlu0 %2474 }
 0x449   : > { %1791 = vrot.lane.b32.xlu1 %v1697_v35, %s12202_s28  ;;  %1097 = vrot.lane.b32.xlu0 %v1044_v62, %s12199_s1  ;;  %v1054_v35 = vcombine.high %v1044_v62, %v18250_v56 }
 0x44b   : > { %v14874_v51 = vpop.permute.xlu1 %1330  ;;  %v14876_v53 = vpop.permute.xlu0 %2712 }
 0x44d   : > { %1069 = vrot.lane.b32.xlu1 %v976_v6, %s12199_s1  ;;  %1346 = vrot.lane.b32.xlu0 %v1292_v14, %s12201_s12  ;;  %s18178_s1 = smov 72  }
 0x44f   : > { %v14884_v22 = vpop.permute.xlu1 %1560  ;;  %v14886_v5 = vpop.permute.xlu0 %2938 }
 0x451   : > { %1318 = vrot.lane.b32.xlu1 %v1224_v12, %s12201_s12  ;;  %1576 = vrot.lane.b32.xlu0 %v1522_v55, %s12201_s12 }
 0x453   : > { %v14892_v39 = vpop.permute.xlu1 %1807  ;;  %v14894_v42 = vpop.permute.xlu0 %1298 }
 0x455   : > { %1548 = vrot.lane.b32.xlu1 %v1454_v1, %s12201_s12  ;;  %2021 = vrot.lane.b32.xlu0 %v1927_v20, %s12202_s28  ;;  %v983_v20 = vrot.slane %v969_v52, %v18277_v16  ;;  %v18339_v52 = vld [vmem:[#allocation37_spill] sm:$0xff] }
 0x457   : > { %v14900_v54 = vpop.permute.xlu1 %2037  ;;  %v14902_v47 = vpop.permute.xlu0 %1528  ;;  %v987_v14 = vcombine.high %v983_v20, %v18250_v56 }
 0x458   : > { %18336 = vst [vmem:[#allocation64_spill] sm:$0xff] %v14902_v47  ;;  %v18353_v47 = vld [vmem:[#allocation62_spill] sm:$0xff] }
 0x459   : > { %1073 = vrot.lane.b32.xlu1 %v986_v33, %s12200_s4  ;;  %1101 = vrot.lane.b32.xlu0 %v1054_v35, %s12200_s4  ;;  %v1526_v33 = vcombine.high %v1522_v55, %v18250_v56  ;;  %v1037_v35 = vcombine.high %v14844_v28, %v14837_v48  ;;  %v4401_v48 = vld [vmem:[%s18085_s9] sm:$0xff] }
 0x45b   : > { %v14908_v63 = vpop.permute.xlu1 %2275  ;;  %v14910_v60 = vpop.permute.xlu0 %1775  ;;  %v1051_v12 = vrot.slane %v1037_v35, %v18277_v16 }
 0x45d   : > { %1322 = vrot.lane.b32.xlu1 %v1228_v3, %s12202_s28  ;;  %1350 = vrot.lane.b32.xlu0 %v1296_v30, %s12202_s28  ;;  %v1458_v3 = vcombine.high %v1454_v1, %v18250_v56  ;;  %v14942_v30 = vpop.f32.mrf.mxu1  ;;  %v1055_v36 = vcombine.high %v1051_v12, %v18250_v56  ;;  %v18349_v56 = vld [vmem:[#allocation54_spill] sm:$0xff] }
 0x45e   : > { %18338 = vst [vmem:[#allocation66_spill] sm:$0xff] %v14942_v30 }
 0x45f   : > { %v14916_v6 = vpop.permute.xlu1 %2510  ;;  %v14918_v62 = vpop.permute.xlu0 %2005 }
 0x461   : > { %1077 = vrot.lane.b32.xlu1 %v983_v20, %s12201_s12  ;;  %1580 = vrot.lane.b32.xlu0 %v1526_v33, %s12202_s28  ;;  %v2984_v20 = vsel %vm1112_vm9, %v18339_v52, %v14493_v40  ;;  %v11637_v33 = vpop.f32.mrf.mxu1 }
 0x462   : > { %v2985_v35 = vsel %vm1114_vm11, %v2984_v20, %v14544_v45  ;;  %v3117_v45 = vld [vmem:[%s18083_s7] sm:$0xff] }
 0x463   : > { %v14926_v18 = vpop.permute.xlu1 %2942  ;;  %v14928_v34 = vpop.permute.xlu0 %2243  ;;  %v2986_v1 = vsel %vm1116_vm13, %v2985_v35, %v14593_v50 }
 0x465   : > { %1081 = vrot.lane.b32.xlu1 %v987_v14, %s12202_s28  ;;  %1105 = vrot.lane.b32.xlu0 %v1051_v12, %s12201_s12 }
 0x467   : > { %v14937_v28 = vpop.permute.xlu1 %1085  ;;  %v14939_v55 = vpop.permute.xlu0 %2478 }
 0x468   : > { %18337 = vst [vmem:[#allocation65_spill] sm:$0xff] %v14937_v28 }
 0x469   : > { %1552 = vrot.lane.b32.xlu0 %v1458_v3, %s12202_s28  ;;  %5001 = vperm.xlu1 %11883, %v4401_v48   ;;  %v2987_v48 = vsel %vm1118_vm12, %v2986_v1, %v14669_v24 }
 0x46a   : > { %v2988_v40 = vsel %vm1120_vm14, %v2987_v48, %v14777_v2 }
 0x46b   : > { %v14950_v14 = vpop.permute.xlu1 %1334  ;;  %v14952_v16 = vpop.permute.xlu0 %2716  ;;  %v2989_v12 = vsel %vm1122_vm3, %v2988_v40, %v14862_v61 }
 0x46c   : > { %18340 = vst [vmem:[#allocation37_spill] sm:$0xff] %v14950_v14 }
 0x46d   : > { %1109 = vrot.lane.b32.xlu0 %v1055_v36, %s12202_s28 }
 0x46e   : > { %v14971_v36 = vpop.f32.mrf.mxu1 }
 0x46f   : > { %v14967_v3 = vpop.permute.xlu1 %1564  ;;  %v2975_v50 = vpop.permute.xlu0 %2974  ;;  %18341 = vst [vmem:[#allocation67_spill] sm:$0xff] %v14971_v36 }
 0x470   : > { %v2990_v52 = vsel %vm1124_vm10, %v2989_v12, %v2975_v50  ;;  %v11650_v20 = vpop.f32.mrf.mxu1  ;;  %v18346_v12 = vld [vmem:[#allocation31_spill] sm:$0xff] }
 0x471   : > { %4224 = vperm.xlu0 %11882, %v3117_v45   ;;  %11540 = vmatprep.subr.msk.mxu0 %vm3015_vm15, %v2990_v52  ;;  %v18345_v45 = vld [vmem:[#allocation52_spill] sm:$0xff]  ;;  %v18347_v52 = vld [vmem:[#allocation53_spill] sm:$0xff] }
 0x472   : > { %v2754_v50 = vsel %vm1112_vm9, %v18346_v12, %v18345_v45  ;;  %v18351_v12 = vld [vmem:[#allocation33_spill] sm:$0xff] }
 0x473   : > { %v14973_v24 = vpop.permute.xlu1 %1811  ;;  %v14975_v2 = vpop.permute.xlu0 %1302  ;;  %v2755_v36 = vsel %vm1114_vm11, %v2754_v50, %v18347_v52  ;;  %v2977_v50 = vsel %vm1112_vm9, %v18351_v12, %v14567_v8  ;;  %v18352_v52 = vld [vmem:[#allocation45_spill] sm:$0xff] }
 0x474   : > { %18342 = vst [vmem:[#allocation68_spill] sm:$0xff] %v14975_v2  ;;  %v2756_v14 = vsel %vm1116_vm13, %v2755_v36, %v14527_v15 }
 0x475   : > { %v2757_v45 = vsel %vm1118_vm12, %v2756_v14, %v14578_v23 }
 0x477   : > { %v14977_v33 = vpop.permute.xlu1 %2041  ;;  %v14979_v35 = vpop.permute.xlu0 %1532 }
 0x478   : > { %18343 = vst [vmem:[#allocation69_spill] sm:$0xff] %v14979_v35  ;;  %v18350_v35 = vld [vmem:[#allocation29_spill] sm:$0xff] }
 0x479   : > { %v2524_v2 = vsel %vm1112_vm9, %v18350_v35, %v18349_v56  ;;  %v18354_v56 = vld [vmem:[#allocation60_spill] sm:$0xff] }
 0x47a   : > { %v2525_v28 = vsel %vm1114_vm11, %v2524_v2, %v14569_v27  ;;  %v2978_v35 = vsel %vm1114_vm11, %v2977_v50, %v18354_v56  ;;  %v18355_v50 = vld [vmem:[#allocation50_spill] sm:$0xff] }
 0x47b   : > { %v14981_v61 = vpop.permute.xlu1 %2279  ;;  %v14983_v1 = vpop.permute.xlu0 %1779  ;;  %v2979_v8 = vsel %vm1116_vm13, %v2978_v35, %v14713_v11  ;;  %v18357_v35 = vld [vmem:[#allocation57_spill] sm:$0xff] }
 0x47c   : > { %18344 = vst [vmem:[#allocation70_spill] sm:$0xff] %v14983_v1  ;;  %v2758_v1 = vsel %vm1120_vm14, %v2757_v45, %v18353_v47  ;;  %v2980_v36 = vsel %vm1118_vm12, %v2979_v8, %v14801_v31 }
 0x47d   : > { %v2759_v27 = vsel %vm1122_vm3, %v2758_v1, %v14761_v19  ;;  %v2981_v19 = vsel %vm1120_vm14, %v2980_v36, %v14886_v5 }
 0x47e   : > { %v2760_v47 = vsel %vm1124_vm10, %v2759_v27, %v14848_v59  ;;  %v2982_v11 = vsel %vm1122_vm3, %v2981_v19, %v14926_v18  ;;  %v18360_v19 = vld [vmem:[#allocation39_spill] sm:$0xff] }
 0x47f   : > { %v2515_v48 = vpop.permute.xlu1 %2514  ;;  %v14985_v40 = vpop.permute.xlu0 %2009  ;;  %v3012_v2 = vrot.slane %v2760_v47, 4 }
 0x483   : > { %v14992_v30 = vpop.permute.xlu1 %1057  ;;  %v14994_v20 = vpop.permute.xlu0 %2247 }
 0x484   : > { %18348 = vst [vmem:[#allocation52_spill] sm:$0xff] %v14992_v30  ;;  %v2526_v30 = vsel %vm1116_vm13, %v2525_v28, %v18352_v52  ;;  %v18356_v52 = vld [vmem:[#allocation46_spill] sm:$0xff] }
 0x485   : > { %v2527_v15 = vsel %vm1118_vm12, %v2526_v30, %v14743_v49  ;;  %v2747_v56 = vsel %vm1112_vm9, %v18356_v52, %v18355_v50 }
 0x486   : > { %v2528_v28 = vsel %vm1120_vm14, %v2527_v15, %v14830_v46  ;;  %v2748_v15 = vsel %vm1114_vm11, %v2747_v56, %v18357_v35 }
 0x487   : > { %v15018_v23 = vpop.permute.xlu1 %1306  ;;  %v2483_v14 = vpop.permute.xlu0 %2482  ;;  %v2529_v49 = vsel %vm1122_vm3, %v2528_v28, %v14916_v6  ;;  %v18358_v28 = vld [vmem:[#allocation34_spill] sm:$0xff] }
 0x488   : > { %v2530_v30 = vsel %vm1124_vm10, %v2529_v49, %v2515_v48  ;;  %v2749_v47 = vsel %vm1116_vm13, %v2748_v15, %v18358_v28  ;;  %v18359_v49 = vld [vmem:[#allocation38_spill] sm:$0xff] }
 0x489   : > { %v3023_v31 = vsel %vm3015_vm15, %v2530_v30, %v3012_v2  ;;  %v2750_v36 = vsel %vm1118_vm12, %v2749_v47, %v14694_v57  ;;  %v2517_v30 = vsel %vm1112_vm9, %v18360_v19, %v18359_v49 }
 0x48a   : > { %v2751_v2 = vsel %vm1120_vm14, %v2750_v36, %v14790_v9  ;;  %v18361_v36 = vld [vmem:[#allocation55_spill] sm:$0xff] }
 0x48b   : > { %v15035_v1 = vpop.permute.xlu1 %1536  ;;  %v2947_v46 = vpop.permute.xlu0 %2946 }
 0x48c   : > { %v2983_v59 = vsel %vm1124_vm10, %v2982_v11, %v2947_v46  ;;  %v2518_v11 = vsel %vm1114_vm11, %v2517_v30, %v14671_v43  ;;  %v2752_v46 = vsel %vm1122_vm3, %v2751_v2, %v14876_v53 }
 0x48d   : > { %11541 = vmatpush1.msk.msra.mxu0 %vm3015_vm15, %v2983_v59  ;;  %v2519_v50 = vsel %vm1116_vm13, %v2518_v11, %v14779_v38  ;;  %v2753_v57 = vsel %vm1124_vm10, %v2752_v46, %v14952_v16  ;;  %v18364_v11 = vld [vmem:[#allocation35_spill] sm:$0xff] }
 0x48e   : > { %3063 = vmatprep.subr.mxu0 %v3023_v31  ;;  %v2520_v52 = vsel %vm1118_vm12, %v2519_v50, %v14864_v29  ;;  %v3011_v56 = vrot.slane %v2753_v57, 4  ;;  %v18365_v57 = vld [vmem:[#allocation44_spill] sm:$0xff] }
 0x48f   : > { %v15040_v6 = vpop.permute.xlu1 %1783  ;;  %v15042_v45 = vpop.permute.xlu0 %1089  ;;  %v2521_v9 = vsel %vm1120_vm14, %v2520_v52, %v14939_v55  ;;  %v18362_v55 = vld [vmem:[#allocation40_spill] sm:$0xff]  ;;  %v18366_v52 = vld [vmem:[#allocation41_spill] sm:$0xff] }
 0x490   : > { %v2522_v43 = vsel %vm1122_vm3, %v2521_v9, %v2483_v14  ;;  %v2289_v49 = vsel %vm1112_vm9, %v18362_v55, %v18361_v36  ;;  %v18363_v14 = vld [vmem:[#allocation58_spill] sm:$0xff]  ;;  %v2059_v9 = vsel %vm1112_vm9, %v18366_v52, %v18365_v57 }
 0x491   : > { %v2290_v19 = vsel %vm1114_vm11, %v2289_v49, %v18363_v14 }
 0x492   : > { %v2291_v46 = vsel %vm1116_vm13, %v2290_v19, %v18364_v11 }
 0x493   : > { %v15044_v5 = vpop.permute.xlu1 %2013  ;;  %v15046_v48 = vpop.permute.xlu0 %1338  ;;  %v2292_v50 = vsel %vm1118_vm12, %v2291_v46, %v14726_v13  ;;  %v18367_v46 = vld [vmem:[#allocation59_spill] sm:$0xff] }
 0x497   : > { %v15048_v12 = vpop.permute.xlu1 %2251  ;;  %v15050_v18 = vpop.permute.xlu0 %1568 }
 0x49b   : > { %v15057_v27 = vpop.permute.xlu1 %1061  ;;  %v15059_v8 = vpop.permute.xlu0 %1815 }
 0x49f   : > { %v15074_v59 = vpop.permute.xlu1 %1310  ;;  %v2046_v31 = vpop.permute.xlu0 %2045 }
 0x4a3   : > { %v15085_v35 = vpop.permute.xlu1 %1540  ;;  %v2487_v53 = vpop.permute.xlu0 %2486 }
 0x4a4   : > { %v2523_v15 = vsel %vm1124_vm10, %v2522_v43, %v2487_v53  ;;  %v2060_v43 = vsel %vm1114_vm11, %v2059_v9, %v14711_v10 }
 0x4a5   : > { %v3022_v28 = vsel %vm3015_vm15, %v2523_v15, %v3011_v56  ;;  %v2293_v56 = vsel %vm1120_vm14, %v2292_v50, %v14818_v32  ;;  %v2061_v36 = vsel %vm1116_vm13, %v2060_v43, %v14810_v37  ;;  %v18370_v43 = vld [vmem:[#allocation36_spill] sm:$0xff] }
 0x4a6   : > { %3064 = vmatpush1.msra.mxu0 %v3022_v28  ;;  %v2294_v53 = vsel %vm1122_vm3, %v2293_v56, %v14908_v63  ;;  %v2062_v55 = vsel %vm1118_vm12, %v2061_v36, %v14900_v54  ;;  %v18368_v54 = vld [vmem:[#allocation47_spill] sm:$0xff] }
 0x4a7   : > { %v15089_v38 = vpop.permute.xlu1 %1787  ;;  %v15091_v16 = vpop.permute.xlu0 %1093  ;;  %v2295_v13 = vsel %vm1124_vm10, %v2294_v53, %v14981_v61  ;;  %v2063_v32 = vsel %vm1120_vm14, %v2062_v55, %v14977_v33  ;;  %v2282_v50 = vsel %vm1112_vm9, %v18368_v54, %v18367_v46  ;;  %v18369_v33 = vld [vmem:[#allocation63_spill] sm:$0xff]  ;;  %v2052_v53 = vsel %vm1112_vm9, %v18370_v43, %v14745_v41  ;;  %v18371_v46 = vld [vmem:[#allocation32_spill] sm:$0xff] }
 0x4a8   : > { %v3006_v49 = vrot.slane %v2295_v13, 4  ;;  %v2064_v10 = vsel %vm1122_vm3, %v2063_v32, %v2046_v31  ;;  %v2283_v57 = vsel %vm1114_vm11, %v2282_v50, %v18369_v33  ;;  %v2053_v13 = vsel %vm1114_vm11, %v2052_v53, %v14832_v26  ;;  %v18373_v33 = vld [vmem:[#allocation42_spill] sm:$0xff] }
 0x4a9   : > { %v2284_v9 = vsel %vm1116_vm13, %v2283_v57, %v14763_v17  ;;  %v2054_v17 = vsel %vm1116_vm13, %v2053_v13, %v14918_v62  ;;  %v18372_v62 = vld [vmem:[#allocation30_spill] sm:$0xff]  ;;  %v1590_v57 = vsel %vm1112_vm9, %v18373_v33, %v14788_v58  ;;  %v18374_v58 = vld [vmem:[#allocation43_spill] sm:$0xff]  ;;  %v18386_v33 = vld [vmem:[#allocation61_spill] sm:$0xff] }
 0x4aa   : > { %v2285_v56 = vsel %vm1118_vm12, %v2284_v9, %v14850_v44  ;;  %v2055_v41 = vsel %vm1118_vm12, %v2054_v17, %v14985_v40  ;;  %v1829_v54 = vsel %vm1112_vm9, %v18372_v62, %v18371_v46  ;;  %v18383_v62 = vld [vmem:[#allocation68_spill] sm:$0xff] }
 0x4ab   : > { %v2018_v47 = vpop.permute.xlu1 %2017  ;;  %v15093_v29 = vpop.permute.xlu0 %1342  ;;  %v2286_v36 = vsel %vm1120_vm14, %v2285_v56, %v14928_v34  ;;  %v2056_v34 = vsel %vm1120_vm14, %v2055_v41, %v15044_v5  ;;  %v1830_v40 = vsel %vm1114_vm11, %v1829_v54, %v14692_v4  ;;  %v1591_v56 = vsel %vm1114_vm11, %v1590_v57, %v14884_v22  ;;  %v18377_v41 = vld [vmem:[#allocation70_spill] sm:$0xff] }
 0x4ac   : > { %v2287_v55 = vsel %vm1122_vm3, %v2286_v36, %v14994_v20  ;;  %v2057_v26 = vsel %vm1122_vm3, %v2056_v34, %v2018_v47  ;;  %v1831_v5 = vsel %vm1116_vm13, %v1830_v40, %v14799_v25  ;;  %v1592_v25 = vsel %vm1116_vm13, %v1591_v56, %v14967_v3  ;;  %v18375_v3 = vld [vmem:[#allocation48_spill] sm:$0xff]  ;;  %v18384_v40 = vld [vmem:[#allocation69_spill] sm:$0xff] }
 0x4ad   : > { %v2288_v44 = vsel %vm1124_vm10, %v2287_v55, %v15048_v12  ;;  %v1832_v47 = vsel %vm1118_vm12, %v1831_v5, %v14892_v39  ;;  %v1593_v36 = vsel %vm1118_vm12, %v1592_v25, %v15050_v18 }
 0x4ae   : > { %v1833_v9 = vsel %vm1120_vm14, %v1832_v47, %v14973_v24  ;;  %v1822_v24 = vsel %vm1112_vm9, %v18374_v58, %v14728_v7  ;;  %v18385_v47 = vld [vmem:[#allocation52_spill] sm:$0xff] }
 0x4af   : > { %v15100_v30 = vpop.permute.xlu1 %1065  ;;  %v1573_v2 = vpop.permute.xlu0 %1572  ;;  %v1834_v4 = vsel %vm1122_vm3, %v1833_v9, %v15059_v8  ;;  %v1823_v22 = vsel %vm1114_vm11, %v1822_v24, %v14820_v21  ;;  %v1113_v57 = vsel %vm1112_vm9, %v18386_v33, %v18385_v47  ;;  %v4304_v47 = vld [vmem:[#allocation13] sm:$0xff] }
 0x4b0   : > { %v1594_v13 = vsel %vm1120_vm14, %v1593_v36, %v1573_v2  ;;  %v1824_v18 = vsel %vm1116_vm13, %v1823_v22, %v14910_v60  ;;  %v18376_v2 = vld [vmem:[#allocation49_spill] sm:$0xff]  ;;  %v18381_v60 = vld [vmem:[#allocation56_spill] sm:$0xff]  ;;  %v1115_v58 = vsel %vm1114_vm11, %v1113_v57, %v15057_v27 }
 0x4b1   : > { %v1353_v21 = vsel %vm1112_vm9, %v18376_v2, %v14894_v42  ;;  %v4316_v2 = vld [vmem:[#allocation13 + $0x60] sm:$0xff]  ;;  %v5082_v57 = vld [vmem:[%s18095_s19 + $0x8] sm:$0xff] }
 0x4b2   : > { %v1354_v54 = vsel %vm1114_vm11, %v1353_v21, %v18383_v62  ;;  %v4315_v21 = vld [vmem:[#allocation13 + $0x58] sm:$0xff]  ;;  %v4306_v62 = vld [vmem:[#allocation13 + $0x10] sm:$0xff] }
 0x4b3   : > { %v15115_v15 = vpop.permute.xlu1 %1314  ;;  %v1820_v28 = vpop.permute.xlu0 %1819 }
 0x4b4   : > { %v1835_v53 = vsel %vm1124_vm10, %v1834_v4, %v1820_v28  ;;  %v1360_v28 = vsel %vm1112_vm9, %v18375_v3, %v14812_v0  ;;  %v1355_v4 = vsel %vm1116_vm13, %v1354_v54, %v15018_v23  ;;  %v4305_v54 = vld [vmem:[#allocation13 + $0x8] sm:$0xff] }
 0x4b5   : > { %v3000_v8 = vrot.slane %v1835_v53, 4  ;;  %v1361_v7 = vsel %vm1114_vm11, %v1360_v28, %v14874_v51 }
 0x4b7   : > { %v15126_v14 = vpop.permute.xlu1 %1544  ;;  %v2050_v63 = vpop.permute.xlu0 %2049 }
 0x4b8   : > { %v2065_v19 = vsel %vm1124_vm10, %v2064_v10, %v2050_v63  ;;  %v3005_v10 = vrot.slane %v2288_v44, 4 }
 0x4b9   : > { %v3021_v11 = vsel %vm3015_vm15, %v2065_v19, %v3006_v49 }
 0x4ba   : > { %3065 = vmatprep.subr.mxu0 %v3021_v11 }
 0x4bb   : > { %v15130_v37 = vpop.permute.xlu1 %1791  ;;  %v15132_v61 = vpop.permute.xlu0 %1097 }
 0x4bf   : > { %v15139_v31 = vpop.permute.xlu1 %1069  ;;  %v15141_v52 = vpop.permute.xlu0 %1346 }
 0x4c3   : > { %v15156_v32 = vpop.permute.xlu1 %1318  ;;  %v1577_v49 = vpop.permute.xlu0 %1576 }
 0x4c4   : > { %v1595_v55 = vsel %vm1122_vm3, %v1594_v13, %v1577_v49  ;;  %v1825_v49 = vsel %vm1118_vm12, %v1824_v18, %v18377_v41  ;;  %v4319_v18 = vld [vmem:[#allocation13 + $0x78] sm:$0xff]  ;;  %v18387_v41 = vmov 0.0  }
 0x4c5   : > { %v1826_v46 = vsel %vm1120_vm14, %v1825_v49, %v15040_v6  ;;  %v4314_v49 = vld [vmem:[#allocation13 + $0x50] sm:$0xff] }
 0x4c6   : > { %v1827_v9 = vsel %vm1122_vm3, %v1826_v46, %v15089_v38  ;;  %v1356_v38 = vsel %vm1118_vm12, %v1355_v4, %v15074_v59  ;;  %v18388_v46 = vld [vmem:[#allocation66_spill] sm:$0xff] }
 0x4c7   : > { %v1549_v63 = vpop.permute.xlu1 %1548  ;;  %v2022_v20 = vpop.permute.xlu0 %2021  ;;  %v1828_v53 = vsel %vm1124_vm10, %v1827_v9, %v15130_v37  ;;  %v1117_v37 = vsel %vm1116_vm13, %v1115_v58, %v15100_v30  ;;  %v1357_v27 = vsel %vm1120_vm14, %v1356_v38, %v15115_v15 }
 0x4c8   : > { %v2058_v19 = vsel %vm1124_vm10, %v2057_v26, %v2022_v20  ;;  %v18379_v26 = vld [vmem:[#allocation51_spill] sm:$0xff]  ;;  %v18380_v20 = vld [vmem:[#allocation65_spill] sm:$0xff]  ;;  %v2999_v24 = vrot.slane %v1828_v53, 4 }
 0x4c9   : > { %v3020_v11 = vsel %vm3015_vm15, %v2058_v19, %v3005_v10  ;;  %v18378_v10 = vld [vmem:[#allocation64_spill] sm:$0xff]  ;;  %v1126_v19 = vsel %vm1112_vm9, %v18381_v60, %v18380_v20 }
 0x4ca   : > { %3066 = vmatpush1.msra.mxu0 %v3020_v11  ;;  %v1583_v0 = vsel %vm1112_vm9, %v18379_v26, %v18378_v10  ;;  %v18382_v11 = vld [vmem:[#allocation37_spill] sm:$0xff]  ;;  %v1127_v25 = vsel %vm1114_vm11, %v1126_v19, %v15042_v45  ;;  %v4312_v10 = vld [vmem:[#allocation13 + $0x40] sm:$0xff]  ;;  %v4311_v26 = vld [vmem:[#allocation13 + $0x38] sm:$0xff] }
 0x4cb   : > { %v1074_v12 = vpop.permute.xlu1 %1073  ;;  %v15174_v50 = vpop.permute.xlu0 %1101  ;;  %v1362_v51 = vsel %vm1116_vm13, %v1361_v7, %v18382_v11  ;;  %v1584_v5 = vsel %vm1114_vm11, %v1583_v0, %v18384_v40  ;;  %v4317_v7 = vld [vmem:[#allocation13 + $0x68] sm:$0xff]  ;;  %v4310_v0 = vld [vmem:[#allocation13 + $0x30] sm:$0xff]  ;;  %v4308_v19 = vld [vmem:[#allocation13 + $0x20] sm:$0xff] }
 0x4cc   : > { %v1585_v6 = vsel %vm1116_vm13, %v1584_v5, %v15035_v1  ;;  %v1363_v36 = vsel %vm1118_vm12, %v1362_v51, %v15046_v48  ;;  %v1128_v1 = vsel %vm1116_vm13, %v1127_v25, %v15091_v16  ;;  %v1119_v16 = vsel %vm1118_vm12, %v1117_v37, %v15139_v31  ;;  %v4309_v20 = vld [vmem:[#allocation13 + $0x28] sm:$0xff]  ;;  %v4307_v11 = vld [vmem:[#allocation13 + $0x18] sm:$0xff]  ;;  %v18389_v40 = vld [vmem:[#allocation67_spill] sm:$0xff] }
 0x4cd   : > { %v1586_v23 = vsel %vm1118_vm12, %v1585_v6, %v15085_v35  ;;  %v1364_v45 = vsel %vm1120_vm14, %v1363_v36, %v15093_v29  ;;  %v1358_v29 = vsel %vm1122_vm3, %v1357_v27, %v15156_v32  ;;  %v1129_v15 = vsel %vm1118_vm12, %v1128_v1, %v15132_v61 }
 0x4ce   : > { %v1587_v48 = vsel %vm1120_vm14, %v1586_v23, %v15126_v14  ;;  %v1365_v59 = vsel %vm1122_vm3, %v1364_v45, %v15141_v52  ;;  %v1130_v31 = vsel %vm1120_vm14, %v1129_v15, %v15174_v50  ;;  %v4318_v50 = vld [vmem:[#allocation13 + $0x70] sm:$0xff] }
 0x4cf   : > { %v1351_v43 = vpop.permute.xlu0 %1350  ;;  %v1323_v39 = vpop.permute.xlu1 %1322  ;;  %v1588_v35 = vsel %vm1122_vm3, %v1587_v48, %v1549_v63 }
 0x4d0   : > { %v1366_v30 = vsel %vm1124_vm10, %v1365_v59, %v1351_v43  ;;  %v1359_v52 = vsel %vm1124_vm10, %v1358_v29, %v1323_v39  ;;  %v827_v39 = vld [vmem:[#allocation7] sm:$0xff] }
 0x4d1   : > { %v2994_v32 = vrot.slane %v1366_v30, 4  ;;  %v2993_v28 = vrot.slane %v1359_v52, 4  ;;  %v18394_v59 = vld [vmem:[#allocation27_spill] sm:$0xff] }
 0x4d3   : > { %v1581_v17 = vpop.permute.xlu0 %1580  ;;  %v1078_v42 = vpop.permute.xlu1 %1077 }
 0x4d4   : > { %v1596_v44 = vsel %vm1124_vm10, %v1595_v55, %v1581_v17 }
 0x4d5   : > { %v3019_v34 = vsel %vm3015_vm15, %v1596_v44, %v3000_v8  ;;  %v1121_v8 = vsel %vm1120_vm14, %v1119_v16, %v1074_v12  ;;  %vm18411_vm14 = vcmask 457728  }
 0x4d6   : > { %3067 = vmatprep.subr.mxu0 %v3019_v34  ;;  %v1123_v55 = vsel %vm1122_vm3, %v1121_v8, %v1078_v42  ;;  %v4313_v34 = vld [vmem:[#allocation13 + $0x48] sm:$0xff] }
 0x4d7   : > { %v1106_v56 = vpop.permute.xlu0 %1105  ;;  %v1082_v22 = vpop.permute.xlu1 %1081 }
 0x4d8   : > { %v1125_v43 = vsel %vm1124_vm10, %v1123_v55, %v1082_v22  ;;  %v1131_v17 = vsel %vm1122_vm3, %v1130_v31, %v1106_v56  ;;  %v5081_v56 = vld [vmem:[%s18095_s19] sm:$0xff]  ;;  %vm18409_vm3 = vcmask 195584  }
 0x4d9   : > { %v3016_v44 = vsel %vm3015_vm15, %v1125_v43, %v2993_v28 }
 0x4db   : > { %v1553_v13 = vpop.permute.xlu0 %1552 }
 0x4dc   : > { %v1589_v14 = vsel %vm1124_vm10, %v1588_v35, %v1553_v13 }
 0x4dd   : > { %v3018_v63 = vsel %vm3015_vm15, %v1589_v14, %v2999_v24 }
 0x4de   : > { %3068 = vmatpush1.msra.mxu0 %v3018_v63 }
 0x4df   : > { %v1110_v3 = vpop.permute.xlu0 %1109 }
 0x4e0   : > { %v1132_v61 = vsel %vm1124_vm10, %v1131_v17, %v1110_v3  ;;  %vm18410_vm10 = vcmask 326656  }
 0x4e1   : > { %v3017_v12 = vsel %vm3015_vm15, %v1132_v61, %v2994_v32  ;;  %v18395_v61 = vld [vmem:[#allocation28_spill] sm:$0xff] }
 0x4e2   : > { %3069 = vmatprep.subr.mxu0 %v3017_v12 }
 0x4e3   : > { %3070 = vmatpush1.msra.mxu0 %v3016_v44 }
 0x4e4   : > { %11542 = vmatmul.mubr.msk.f32.vlgmr.msra.gmra.mxu0 %vm3029_vm4, %v827_v39  ;;  %4339 = vmatprep.subr.mxu0 %v4319_v18  ;;  %v5002_v51 = vpop.permute.xlu1 %5001 }
 0x4e5   : > { %4340 = vmatpush1.msra.mxu0 %v4318_v50  ;;  %4387 = vmatprep.mubr.f32.mxu0 %v18387_v41  ;;  %v5077_v5 = vadd.f32 %v18389_v40, %v5002_v51 }
 0x4e6   : > { %4341 = vmatprep.subr.mxu0 %v4317_v7 }
 0x4e7   : > { %4342 = vmatpush1.msra.mxu0 %v4316_v2  ;;  %v5080_v9 = vmax.f32 %v5077_v5, 0.0 }
 0x4e8   : > { %4343 = vmatprep.subr.mxu0 %v4315_v21 }
 0x4e9   : > { %4344 = vmatpush1.msra.mxu0 %v4314_v49 }
 0x4ea   : > { %4345 = vmatprep.subr.mxu0 %v4313_v34 }
 0x4eb   : > { %4346 = vmatpush1.msra.mxu0 %v4312_v10 }
 0x4ec   : > { %4347 = vmatprep.subr.mxu0 %v4311_v26  ;;  %v4225_v60 = vpop.permute.xlu0 %4224 }
 0x4ed   : > { %4348 = vmatpush1.msra.mxu0 %v4310_v0  ;;  %v4300_v42 = vadd.f32 %v18388_v46, %v4225_v60 }
 0x4ee   : > { %4349 = vmatprep.subr.mxu0 %v4309_v20 }
 0x4ef   : > { %4350 = vmatpush1.msra.mxu0 %v4308_v19  ;;  %v4303_v33 = vmax.f32 %v4300_v42, 0.0 }
 0x4f0   : > { %4351 = vmatprep.subr.mxu0 %v4307_v11 }
 0x4f1   : > { %4352 = vmatpush1.msra.mxu0 %v4306_v62 }
 0x4f2   : > { %4353 = vmatprep.subr.mxu0 %v4305_v54 }
 0x4f3   : > { %4354 = vmatpush1.msra.mxu0 %v4304_v47 }
 0x4f4   : > { %11545 = vmatmul.mubr.msk.f32.vlgmr.msra.gmra.mxu0 %vm1118_vm12, %v4303_v33  ;;  %11651 = vmatprep.subr.mxu0 %v18387_v41 }
 0x4f5   : > { %11652 = vmatpush3.msra.mxu0 %v5082_v57  ;;  %11655 = vmatprep.mubr.msk.f32.mxu0 %vm12197_vm7, %v18387_v41 }
 0x4f6   : > { %11653 = vmatprep.subr.mxu0 %v18387_v41 }
 0x4f7   : > { %11654 = vmatpush3.msra.mxu0 %v5081_v56 }
 0x4f8   : > { %11656 = vmatmul.mubr.msk.f32.vlgmr.msra.gmra.mxu0 %vm1112_vm9, %v5080_v9  ;;  %7266 = vmatprep.subr.mxu0 %v4319_v18 }
 0x4f9   : > { %7267 = vmatpush1.msra.mxu0 %v4318_v50  ;;  %7314 = vmatprep.mubr.f32.mxu0 %v18387_v41 }
 0x4fa   : > { %7268 = vmatprep.subr.mxu0 %v4317_v7 }
 0x4fb   : > { %7269 = vmatpush1.msra.mxu0 %v4316_v2 }
 0x4fc   : > { %7270 = vmatprep.subr.mxu0 %v4315_v21 }
 0x4fd   : > { %7271 = vmatpush1.msra.mxu0 %v4314_v49 }
 0x4fe   : > { %7272 = vmatprep.subr.mxu0 %v4313_v34 }
 0x4ff   : > { %7273 = vmatpush1.msra.mxu0 %v4312_v10 }
 0x500   : > { %7274 = vmatprep.subr.mxu0 %v4311_v26 }
 0x501   : > { %7275 = vmatpush1.msra.mxu0 %v4310_v0 }
 0x502   : > { %7276 = vmatprep.subr.mxu0 %v4309_v20 }
 0x503   : > { %7277 = vmatpush1.msra.mxu0 %v4308_v19 }
 0x504   : > { %7278 = vmatprep.subr.mxu0 %v4307_v11 }
 0x505   : > { %7279 = vmatpush1.msra.mxu0 %v4306_v62 }
 0x506   : > { %7280 = vmatprep.subr.mxu0 %v4305_v54 }
 0x507   : > { %7281 = vmatpush1.msra.mxu0 %v4304_v47 }
 0x508   : > { %11679 = vmatprep.subr.mxu0 %v18387_v41 }
 0x5a4   : > { %v15300_v4 = vpop.f32.mrf.mxu0 }
 0x5a5   : > { %18390 = vst [vmem:[#allocation31_spill] sm:$0xff] %v15300_v4 }
 0x5a6   : > { %v15302_v6 = vpop.f32.mrf.mxu0 }
 0x5a7   : > { %18391 = vst [vmem:[#allocation53_spill] sm:$0xff] %v15302_v6 }
 0x5b4   : > { %v15304_v25 = vpop.f32.mrf.mxu0 }
 0x5b5   : > { %18392 = vst [vmem:[#allocation54_spill] sm:$0xff] %v15304_v25 }
 0x5b6   : > { %v15306_v53 = vpop.f32.mrf.mxu0 }
 0x5b7   : > { %18393 = vst [vmem:[#allocation29_spill] sm:$0xff] %v15306_v53 }
 0x5b8   : > { %v5152_v36 = vpop.f32.mrf.mxu0 }
 0x5b9   : > { %5160 = vrot.lane.b32.xlu0 %v5152_v36, %s12202_s28  ;;  %5157 = vrot.lane.b32.xlu1 %v5152_v36, %s12204_s26 }
 0x5ba   : > { %v11657_v58 = vpop.f32.mrf.mxu0 }
 0x5bd   : > { %5166 = vrot.lane.b32.xlu0 %v5152_v36, %s12201_s12  ;;  %5163 = vrot.lane.b32.xlu1 %v5152_v36, %s12205_s22 }
 0x5c1   : > { %5172 = vrot.lane.b32.xlu0 %v5152_v36, %s12200_s4  ;;  %5169 = vrot.lane.b32.xlu1 %v5152_v36, %s18179_s2 }
 0x5c5   : > { %5175 = vrot.lane.b32.xlu1 %v5152_v36, %s18178_s1  ;;  %s18405_s1 = sld [smem:[#allocation74_spill]] }
 0x62b   : > { %v5161_v38 = vpop.permute.xlu0 %5160  ;;  %v5158_v23 = vpop.permute.xlu1 %5157 }
 0x62c   : > { %v5178_v24 = vcombine.low %v5152_v36, %v5161_v38  ;;  %v5179_v31 = vcombine.high %v5152_v36, %v5161_v38 }
 0x62e   : > { %v5186_v29 = vrot.slane %v5178_v24, %v18394_v59  ;;  %v5193_v18 = vrot.slane %v5179_v31, %v18394_v59 }
 0x62f   : > { %v5167_v1 = vpop.permute.xlu0 %5166  ;;  %v5164_v45 = vpop.permute.xlu1 %5163 }
 0x630   : > { %v5194_v37 = vcombine.low %v5158_v23, %v5164_v45  ;;  %v5195_v14 = vcombine.high %v5158_v23, %v5164_v45 }
 0x632   : > { %v5202_v35 = vrot.slane %v5194_v37, %v18394_v59  ;;  %v5209_v17 = vrot.slane %v5195_v14, %v18394_v59 }
 0x633   : > { %v5173_v48 = vpop.permute.xlu0 %5172  ;;  %v5170_v27 = vpop.permute.xlu1 %5169 }
 0x634   : > { %v5210_v13 = vcombine.low %v5167_v1, %v5173_v48  ;;  %v5242_v15 = vcombine.low %v5186_v29, %v5202_v35  ;;  %v5211_v8 = vcombine.high %v5167_v1, %v5173_v48  ;;  %v5243_v3 = vcombine.high %v5186_v29, %v5202_v35 }
 0x635   : > { %v5258_v21 = vcombine.low %v5193_v18, %v5209_v17  ;;  %v5259_v20 = vcombine.high %v5193_v18, %v5209_v17 }
 0x636   : > { %v5218_v52 = vrot.slane %v5210_v13, %v18394_v59  ;;  %v5225_v28 = vrot.slane %v5211_v8, %v18394_v59  ;;  %v5250_v12 = vrot.slane %v5242_v15, %v18395_v61  ;;  %v5257_v49 = vrot.slane %v5243_v3, %v18395_v61 }
 0x637   : > { %v5176_v16 = vpop.permute.xlu1 %5175  ;;  %v5266_v60 = vrot.slane %v5258_v21, %v18395_v61  ;;  %v5273_v46 = vrot.slane %v5259_v20, %v18395_v61 }
 0x638   : > { %v5226_v30 = vcombine.low %v5170_v27, %v5176_v16  ;;  %v5227_v22 = vcombine.high %v5170_v27, %v5176_v16 }
 0x63a   : > { %v5234_v63 = vrot.slane %v5226_v30, %v18394_v59  ;;  %v5241_v55 = vrot.slane %v5227_v22, %v18394_v59 }
 0x63c   : > { %v5274_v32 = vcombine.low %v5218_v52, %v5234_v63  ;;  %v5275_v43 = vcombine.high %v5218_v52, %v5234_v63  ;;  %v5290_v44 = vcombine.low %v5225_v28, %v5241_v55  ;;  %v5291_v34 = vcombine.high %v5225_v28, %v5241_v55 }
 0x63e   : > { %v5282_v39 = vrot.slane %v5274_v32, %v18395_v61  ;;  %v5289_v2 = vrot.slane %v5275_v43, %v18395_v61  ;;  %v5298_v0 = vrot.slane %v5290_v44, %v18395_v61  ;;  %v5305_v51 = vrot.slane %v5291_v34, %v18395_v61 }
 0x640   : > { %v5307_v50 = vcombine.high %v5250_v12, %v5282_v39  ;;  %v5306_v7 = vcombine.low %v5250_v12, %v5282_v39  ;;  %v5309_v10 = vcombine.high %v5257_v49, %v5289_v2  ;;  %v5308_v26 = vcombine.low %v5257_v49, %v5289_v2 }
 0x641   : > { %v5311_v19 = vcombine.high %v5266_v60, %v5298_v0  ;;  %v5310_v11 = vcombine.low %v5266_v60, %v5298_v0  ;;  %v5313_v42 = vcombine.high %v5273_v46, %v5305_v51  ;;  %v5312_v62 = vcombine.low %v5273_v46, %v5305_v51 }
 0x642   : > { %5326 = vrot.lane.b32.xlu1 %v5307_v50, %s12183_s14  ;;  %5324 = vrot.lane.b32.xlu0 %v5306_v7, %s12183_s14 }
 0x646   : > { %5330 = vrot.lane.b32.xlu1 %v5309_v10, %s12183_s14  ;;  %5328 = vrot.lane.b32.xlu0 %v5308_v26, %s12183_s14 }
 0x64a   : > { %5334 = vrot.lane.b32.xlu1 %v5311_v19, %s12183_s14  ;;  %5332 = vrot.lane.b32.xlu0 %v5310_v11, %s12183_s14 }
 0x64e   : > { %5338 = vrot.lane.b32.xlu1 %v5313_v42, %s12183_s14  ;;  %5336 = vrot.lane.b32.xlu0 %v5312_v62, %s12183_s14 }
 0x6b4   : > { %v5327_v54 = vpop.permute.xlu1 %5326  ;;  %v5325_v40 = vpop.permute.xlu0 %5324 }
 0x6b5   : > { %v5349_v5 = vsel %vm861_vm0, 0.0, %v5327_v54  ;;  %v5348_v47 = vsel %vm861_vm0, 0.0, %v5325_v40 }
 0x6b6   : > { %v5357_v33 = vsel %vm3138_vm1, %v5349_v5, 0.0  ;;  %v5356_v57 = vsel %vm3138_vm1, %v5348_v47, 0.0 }
 0x6b7   : > { %v5373_v9 = vrot.slane %v5357_v33, 7  ;;  %v5372_v56 = vrot.slane %v5356_v57, 7 }
 0x6b8   : > { %v5331_v36 = vpop.permute.xlu1 %5330  ;;  %v5329_v58 = vpop.permute.xlu0 %5328 }
 0x6b9   : > { %v15344_v38 = vsel %vm887_vm2, 0.0, %v5373_v9  ;;  %v15347_v23 = vsel %vm887_vm2, 0.0, %v5372_v56  ;;  %v15354_v1 = vsel %vm887_vm2, %v5373_v9, 0.0  ;;  %v15357_v45 = vsel %vm887_vm2, %v5372_v56, 0.0 }
 0x6ba   : > { %5780 = vrot.lane.b32.xlu1 %v15344_v38, %s12187_s17  ;;  %5778 = vrot.lane.b32.xlu0 %v15347_v23, %s12187_s17  ;;  %v5351_v37 = vsel %vm861_vm0, 0.0, %v5331_v36  ;;  %v5350_v48 = vsel %vm861_vm0, 0.0, %v5329_v58  ;;  %v6578_v14 = vrot.slane %v15354_v1, 2  ;;  %v6575_v15 = vrot.slane %v15357_v45, 2 }
 0x6bb   : > { %v5359_v27 = vsel %vm3138_vm1, %v5351_v37, 0.0  ;;  %v5358_v24 = vsel %vm3138_vm1, %v5350_v48, 0.0  ;;  %v6577_v12 = vrot.slane %v15344_v38, 2  ;;  %v6574_v39 = vrot.slane %v15347_v23, 2 }
 0x6bc   : > { %v5335_v35 = vpop.permute.xlu1 %5334  ;;  %v5333_v13 = vpop.permute.xlu0 %5332  ;;  %v5375_v16 = vrot.slane %v5359_v27, 7  ;;  %v5374_v29 = vrot.slane %v5358_v24, 7  ;;  %v5985_v47 = vrot.slane %v15354_v1, 1  ;;  %v5982_v9 = vrot.slane %v15357_v45, 1 }
 0x6bd   : > { %v5353_v30 = vsel %vm861_vm0, 0.0, %v5335_v35  ;;  %v5352_v22 = vsel %vm861_vm0, 0.0, %v5333_v13  ;;  %v15414_v11 = vsel %vm2296_vm5, %v6577_v12, %v6578_v14  ;;  %v15417_v51 = vsel %vm2296_vm5, %v6574_v39, %v6575_v15 }
 0x6be   : > { %v5361_v8 = vsel %vm3138_vm1, %v5353_v30, 0.0  ;;  %v5360_v52 = vsel %vm3138_vm1, %v5352_v22, 0.0  ;;  %v15370_v63 = vsel %vm887_vm2, 0.0, %v5375_v16  ;;  %v15373_v31 = vsel %vm887_vm2, %v5375_v16, 0.0 }
 0x6bf   : > { %v15376_v55 = vsel %vm887_vm2, 0.0, %v5374_v29  ;;  %v15379_v32 = vsel %vm887_vm2, %v5374_v29, 0.0  ;;  %v5420_v43 = vcombine.low %v15344_v38, %v15370_v63  ;;  %v5421_v17 = vcombine.high %v15344_v38, %v15370_v63  ;;  %5784 = vrot.lane.b32.xlu1 %v15370_v63, %s12187_s17 }
 0x6c0   : > { %5782 = vrot.lane.b32.xlu0 %v15376_v55, %s12187_s17  ;;  %v5339_v3 = vpop.permute.xlu1 %5338  ;;  %v5337_v28 = vpop.permute.xlu0 %5336  ;;  %v6584_v18 = vrot.slane %v15373_v31, 2  ;;  %v5404_v44 = vcombine.low %v15347_v23, %v15376_v55  ;;  %v5405_v50 = vcombine.high %v15347_v23, %v15376_v55  ;;  %v6581_v7 = vrot.slane %v15379_v32, 2 }
 0x6c1   : > { %v5377_v2 = vrot.slane %v5361_v8, 7  ;;  %v5376_v21 = vrot.slane %v5360_v52, 7  ;;  %v5355_v49 = vsel %vm861_vm0, 0.0, %v5339_v3  ;;  %v5354_v34 = vsel %vm861_vm0, 0.0, %v5337_v28 }
 0x6c2   : > { %v5363_v10 = vsel %vm3138_vm1, %v5355_v49, 0.0  ;;  %v5362_v26 = vsel %vm3138_vm1, %v5354_v34, 0.0  ;;  %v6583_v0 = vrot.slane %v15370_v63, 2  ;;  %v6580_v20 = vrot.slane %v15376_v55, 2 }
 0x6c3   : > { %v15404_v60 = vsel %vm887_vm2, 0.0, %v5377_v2  ;;  %v15407_v19 = vsel %vm887_vm2, 0.0, %v5376_v21  ;;  %v5379_v46 = vrot.slane %v5363_v10, 7  ;;  %v5378_v42 = vrot.slane %v5362_v26, 7 }
 0x6c4   : > { %5788 = vrot.lane.b32.xlu1 %v15404_v60, %s12187_s17  ;;  %5786 = vrot.lane.b32.xlu0 %v15407_v19, %s12187_s17  ;;  %v15420_v62 = vsel %vm2296_vm5, %v6583_v0, %v6584_v18  ;;  %v15423_v54 = vsel %vm2296_vm5, %v6580_v20, %v6581_v7  ;;  %v5984_v48 = vrot.slane %v15344_v38, 1  ;;  %v5991_v27 = vrot.slane %v15373_v31, 1 }
 0x6c5   : > { %v6623_v40 = vcombine.high %v15414_v11, %v15420_v62  ;;  %v6607_v5 = vcombine.high %v15417_v51, %v15423_v54  ;;  %v15431_v33 = vsel %vm887_vm2, 0.0, %v5379_v46  ;;  %v15434_v57 = vsel %vm887_vm2, 0.0, %v5378_v42 }
 0x6c6   : > { %v5403_v56 = vsel %vm887_vm2, %v5379_v46, 0.0  ;;  %v5452_v36 = vcombine.low %v15404_v60, %v15431_v33  ;;  %v5453_v58 = vcombine.high %v15404_v60, %v15431_v33  ;;  %v5402_v1 = vsel %vm887_vm2, %v5378_v42, 0.0 }
 0x6c7   : > { %v5436_v37 = vcombine.low %v15407_v19, %v15434_v57  ;;  %v5437_v45 = vcombine.high %v15407_v19, %v15434_v57  ;;  %v5401_v24 = vsel %vm887_vm2, %v5377_v2, 0.0  ;;  %v5400_v35 = vsel %vm887_vm2, %v5376_v21, 0.0 }
 0x6c8   : > { %5792 = vrot.lane.b32.xlu1 %v15431_v33, %s12187_s17  ;;  %5790 = vrot.lane.b32.xlu0 %v15434_v57, %s12187_s17  ;;  %v5981_v13 = vrot.slane %v15347_v23, 1  ;;  %v5988_v16 = vrot.slane %v15379_v32, 1  ;;  %v6596_v29 = vrot.slane %v5403_v56, 2  ;;  %v6622_v30 = vcombine.low %v15414_v11, %v15420_v62 }
 0x6c9   : > { %v6595_v22 = vrot.slane %v15431_v33, 2  ;;  %v6593_v14 = vrot.slane %v5402_v1, 2  ;;  %v6592_v15 = vrot.slane %v15434_v57, 2  ;;  %v5990_v8 = vrot.slane %v15370_v63, 1 }
 0x6ca   : > { %v5987_v52 = vrot.slane %v15376_v55, 1  ;;  %v6590_v31 = vrot.slane %v5401_v24, 2  ;;  %v6587_v32 = vrot.slane %v5400_v35, 2  ;;  %v6589_v3 = vrot.slane %v15404_v60, 2 }
 0x6cb   : > { %v6586_v28 = vrot.slane %v15407_v19, 2  ;;  %v5997_v12 = vrot.slane %v5401_v24, 1  ;;  %v5994_v39 = vrot.slane %v5400_v35, 1  ;;  %v6606_v18 = vcombine.low %v15417_v51, %v15423_v54 }
 0x6cc   : > { %5585 = vrot.lane.b32.xlu1 %v15344_v38, %s12185_s5  ;;  %5583 = vrot.lane.b32.xlu0 %v15347_v23, %s12185_s5  ;;  %v6003_v7 = vrot.slane %v5403_v56, 1  ;;  %v15472_v2 = vsel %vm2296_vm5, %v6595_v22, %v6596_v29  ;;  %v15475_v21 = vsel %vm18182_vm6, %v5990_v8, %v5991_v27  ;;  %v15478_v49 = vsel %vm18182_vm6, %v5987_v52, %v5988_v16 }
 0x6cd   : > { %v6000_v34 = vrot.slane %v5402_v1, 1  ;;  %v15485_v10 = vrot.slane %v6622_v30, %v18394_v59  ;;  %v15488_v26 = vsel %vm2296_vm5, %v6592_v15, %v6593_v14  ;;  %v6002_v0 = vrot.slane %v15431_v33, 1 }
 0x6ce   : > { %v15492_v20 = vsel %vm2296_vm5, %v6589_v3, %v6590_v31  ;;  %v15495_v46 = vsel %vm2296_vm5, %v6586_v28, %v6587_v32  ;;  %v15498_v42 = vsel %vm18182_vm6, %v5984_v48, %v5985_v47  ;;  %v15501_v56 = vsel %vm18182_vm6, %v5981_v13, %v5982_v9 }
 0x6cf   : > { %v6654_v1 = vcombine.low %v15492_v20, %v15472_v2  ;;  %v6029_v27 = vcombine.low %v15498_v42, %v15475_v21  ;;  %v6013_v24 = vcombine.low %v15501_v56, %v15478_v49  ;;  %v5996_v35 = vrot.slane %v15404_v60, 1 }
 0x6d0   : > { %5589 = vrot.lane.b32.xlu1 %v15370_v63, %s12185_s5  ;;  %5587 = vrot.lane.b32.xlu0 %v15376_v55, %s12185_s5  ;;  %v6655_v16 = vcombine.high %v15492_v20, %v15472_v2  ;;  %v6638_v47 = vcombine.low %v15495_v46, %v15488_v26  ;;  %v6639_v9 = vcombine.high %v15495_v46, %v15488_v26  ;;  %v5993_v48 = vrot.slane %v15407_v19, 1 }
 0x6d1   : > { %v6030_v13 = vcombine.high %v15498_v42, %v15475_v21  ;;  %v15524_v29 = vsel %vm18182_vm6, %v6002_v0, %v6003_v7  ;;  %v5999_v30 = vrot.slane %v15434_v57, 1  ;;  %v5412_v22 = vrot.slane %v5404_v44, %v18394_v59 }
 0x6d2   : > { %v6014_v14 = vcombine.high %v15501_v56, %v15478_v49  ;;  %v5428_v15 = vrot.slane %v5420_v43, %v18394_v59  ;;  %v5444_v8 = vrot.slane %v5436_v37, %v18394_v59  ;;  %v5460_v52 = vrot.slane %v5452_v36, %v18394_v59 }
 0x6d3   : > { %v15540_v31 = vrot.slane %v6029_v27, %v18394_v59  ;;  %v15543_v32 = vrot.slane %v6013_v24, %v18394_v59  ;;  %v15546_v44 = vsel %vm18182_vm6, %v5996_v35, %v5997_v12  ;;  %v15549_v3 = vsel %vm18182_vm6, %v5999_v30, %v6000_v34 }
 0x6d4   : > { %5593 = vrot.lane.b32.xlu1 %v15404_v60, %s12185_s5  ;;  %5591 = vrot.lane.b32.xlu0 %v15407_v19, %s12185_s5  ;;  %v15552_v28 = vsel %vm18182_vm6, %v5993_v48, %v5994_v39  ;;  %v6061_v43 = vcombine.low %v15546_v44, %v15524_v29  ;;  %v5469_v37 = vcombine.high %v5412_v22, %v5428_v15 }
 0x6d5   : > { %v5501_v36 = vcombine.high %v5444_v8, %v5460_v52  ;;  %v6045_v12 = vcombine.low %v15552_v28, %v15549_v3  ;;  %v5468_v7 = vcombine.low %v5412_v22, %v5428_v15  ;;  %v5500_v34 = vcombine.low %v5444_v8, %v5460_v52 }
 0x6d6   : > { %v15563_v0 = vrot.slane %v6654_v1, %v18394_v59  ;;  %v15566_v39 = vrot.slane %v6638_v47, %v18394_v59  ;;  %v15569_v27 = vrot.slane %v5469_v37, %v18395_v61  ;;  %v15575_v35 = vrot.slane %v6030_v13, %v18394_v59 }
 0x6d7   : > { %v15572_v24 = vrot.slane %v5501_v36, %v18395_v61  ;;  %v15578_v48 = vrot.slane %v5468_v7, %v18395_v61  ;;  %v15581_v30 = vrot.slane %v5500_v34, %v18395_v61  ;;  %v6077_v1 = vcombine.low %v15543_v32, %v15540_v31 }
 0x6d8   : > { %5597 = vrot.lane.b32.xlu1 %v15431_v33, %s12185_s5  ;;  %5595 = vrot.lane.b32.xlu0 %v15434_v57, %s12185_s5  ;;  %v15586_v47 = vrot.slane %v6014_v14, %v18394_v59  ;;  %v5419_v13 = vrot.slane %v5405_v50, %v18394_v59  ;;  %v15601_v14 = vrot.slane %v6061_v43, %v18394_v59 }
 0x6d9   : > { %v5535_v22 = vcombine.high %v15569_v27, %v15572_v24  ;;  %v5534_v15 = vcombine.low %v15569_v27, %v15572_v24  ;;  %v15604_v8 = vrot.slane %v6045_v12, %v18394_v59  ;;  %v5533_v52 = vcombine.high %v15578_v48, %v15581_v30 }
 0x6da   : > { %v6637_v23 = vrot.slane %v6623_v40, %v18394_v59  ;;  %v5435_v55 = vrot.slane %v5421_v17, %v18394_v59  ;;  %v5451_v50 = vrot.slane %v5437_v45, %v18394_v59  ;;  %v5467_v43 = vrot.slane %v5453_v58, %v18394_v59 }
 0x6db   : > { %v15628_v40 = vrot.slane %v6606_v18, %v18394_v59  ;;  %v6621_v38 = vrot.slane %v6607_v5, %v18394_v59  ;;  %v6669_v63 = vrot.slane %v6655_v16, %v18394_v59  ;;  %v6653_v19 = vrot.slane %v6639_v9, %v18394_v59 }
 0x6dc   : > { %6974 = vrot.lane.b32.xlu1 %v15414_v11, %s12187_s17  ;;  %6972 = vrot.lane.b32.xlu0 %v15417_v51, %s12187_s17  ;;  %v5484_v60 = vcombine.low %v5419_v13, %v5435_v55  ;;  %v5516_v33 = vcombine.low %v5451_v50, %v5467_v43  ;;  %v6702_v5 = vcombine.low %v15566_v39, %v15563_v0 }
 0x6dd   : > { %v6109_v58 = vcombine.low %v15604_v8, %v15601_v14  ;;  %v6670_v16 = vcombine.low %v15628_v40, %v15485_v10  ;;  %v6686_v9 = vcombine.low %v6621_v38, %v6637_v23  ;;  %v6718_v36 = vcombine.low %v6653_v19, %v6669_v63 }
 0x6de   : > { %v15649_v45 = vrot.slane %v5484_v60, %v18395_v61  ;;  %v15652_v18 = vrot.slane %v5516_v33, %v18395_v61  ;;  %v15663_v12 = vrot.slane %v6702_v5, %v18395_v61  ;;  %v6687_v57 = vcombine.high %v6621_v38, %v6637_v23 }
 0x6df   : > { %v15666_v7 = vrot.slane %v6109_v58, %v18395_v61  ;;  %v15671_v60 = vrot.slane %v6686_v9, %v18395_v61  ;;  %v15674_v33 = vrot.slane %v6718_v36, %v18395_v61  ;;  %v6719_v17 = vcombine.high %v6653_v19, %v6669_v63 }
 0x6e0   : > { %6978 = vrot.lane.b32.xlu1 %v15420_v62, %s12187_s17  ;;  %6976 = vrot.lane.b32.xlu0 %v15423_v54, %s12187_s17  ;;  %v15677_v37 = vrot.slane %v6670_v16, %v18395_v61  ;;  %v15680_v5 = vrot.slane %v6077_v1, %v18395_v61  ;;  %v15689_v36 = vrot.slane %v6687_v57, %v18395_v61 }
 0x6e1   : > { %v6738_v34 = vcombine.low %v15671_v60, %v15674_v33  ;;  %v6739_v9 = vcombine.high %v15671_v60, %v15674_v33  ;;  %v15696_v1 = vrot.slane %v6719_v17, %v18395_v61  ;;  %v5485_v19 = vcombine.high %v5419_v13, %v5435_v55 }
 0x6e2   : > { %v5517_v58 = vcombine.high %v5451_v50, %v5467_v43 }
 0x6e3   : > { %v6740_v57 = vcombine.low %v15689_v36, %v15696_v1  ;;  %v6741_v16 = vcombine.high %v15689_v36, %v15696_v1  ;;  %v15713_v17 = vrot.slane %v5485_v19, %v18395_v61 }
 0x6e4   : > { %6982 = vrot.lane.b32.xlu1 %v15492_v20, %s12187_s17  ;;  %6980 = vrot.lane.b32.xlu0 %v15495_v46, %s12187_s17  ;;  %v15716_v38 = vrot.slane %v5517_v58, %v18395_v61  ;;  %v18399_v58 = vcombine.high %v15586_v47, %v15575_v35 }
 0x6e6   : > { %v6108_v19 = vrot.slane %v18399_v58, %v18395_v61 }
 0x6e8   : > { %6986 = vrot.lane.b32.xlu1 %v15472_v2, %s12187_s17  ;;  %6984 = vrot.lane.b32.xlu0 %v15488_v26, %s12187_s17 }
 0x6ec   : > { %6779 = vrot.lane.b32.xlu1 %v15414_v11, %s12185_s5  ;;  %6777 = vrot.lane.b32.xlu0 %v15417_v51, %s12185_s5  ;;  %v6062_v11 = vcombine.high %v15546_v44, %v15524_v29  ;;  %v6046_v51 = vcombine.high %v15552_v28, %v15549_v3 }
 0x6f0   : > { %6783 = vrot.lane.b32.xlu1 %v15420_v62, %s12185_s5  ;;  %6781 = vrot.lane.b32.xlu0 %v15423_v54, %s12185_s5  ;;  %v6735_v62 = vcombine.high %v15677_v37, %v15663_v12  ;;  %v6110_v54 = vcombine.high %v15604_v8, %v15601_v14 }
 0x6f4   : > { %6787 = vrot.lane.b32.xlu1 %v15492_v20, %s12185_s5  ;;  %6785 = vrot.lane.b32.xlu0 %v15495_v46, %s12185_s5  ;;  %v6142_v20 = vcombine.high %v15680_v5, %v15666_v7  ;;  %v6124_v46 = vrot.slane %v6110_v54, %v18395_v61 }
 0x6f8   : > { %6791 = vrot.lane.b32.xlu1 %v15472_v2, %s12185_s5  ;;  %6789 = vrot.lane.b32.xlu0 %v15488_v26, %s12185_s5  ;;  %v6703_v2 = vcombine.high %v15566_v39, %v15563_v0  ;;  %v6060_v26 = vrot.slane %v6046_v51, %v18394_v59 }
 0x6fc   : > { %6381 = vrot.lane.b32.xlu1 %v15498_v42, %s12187_s17  ;;  %6379 = vrot.lane.b32.xlu0 %v15501_v56, %s12187_s17 }
 0x700   : > { %6385 = vrot.lane.b32.xlu1 %v15475_v21, %s12187_s17  ;;  %6383 = vrot.lane.b32.xlu0 %v15478_v49, %s12187_s17 }
 0x704   : > { %6389 = vrot.lane.b32.xlu1 %v15546_v44, %s12187_s17  ;;  %6387 = vrot.lane.b32.xlu0 %v15552_v28, %s12187_s17 }
 0x708   : > { %6393 = vrot.lane.b32.xlu1 %v15524_v29, %s12187_s17  ;;  %6391 = vrot.lane.b32.xlu0 %v15549_v3, %s12187_s17 }
 0x70c   : > { %6186 = vrot.lane.b32.xlu1 %v15498_v42, %s12185_s5  ;;  %6184 = vrot.lane.b32.xlu0 %v15501_v56, %s12185_s5  ;;  %v6717_v42 = vrot.slane %v6703_v2, %v18395_v61  ;;  %v18396_v56 = vcombine.low %v15649_v45, %v15652_v18 }
 0x710   : > { %6190 = vrot.lane.b32.xlu1 %v15475_v21, %s12185_s5  ;;  %6188 = vrot.lane.b32.xlu0 %v15478_v49, %s12185_s5  ;;  %v6671_v21 = vcombine.high %v15628_v40, %v15485_v10  ;;  %v6076_v49 = vrot.slane %v6062_v11, %v18394_v59  ;;  %v18397_v10 = vcombine.high %v15543_v32, %v15540_v31 }
 0x711   : > { %v18398_v31 = vcombine.low %v15586_v47, %v15575_v35 }
 0x712   : > { %v6125_v0 = vcombine.low %v6060_v26, %v6076_v49  ;;  %v6126_v8 = vcombine.high %v6060_v26, %v6076_v49 }
 0x713   : > { %v6101_v32 = vrot.slane %v18398_v31, %v18395_v61 }
 0x714   : > { %6194 = vrot.lane.b32.xlu1 %v15546_v44, %s12185_s5  ;;  %6192 = vrot.lane.b32.xlu0 %v15552_v28, %s12185_s5  ;;  %v6685_v44 = vrot.slane %v6671_v21, %v18395_v61  ;;  %v6133_v24 = vrot.slane %v6125_v0, %v18395_v61  ;;  %v6140_v40 = vrot.slane %v6126_v8, %v18395_v61 }
 0x716   : > { %v6736_v28 = vcombine.low %v6685_v44, %v6717_v42  ;;  %v6737_v27 = vcombine.high %v6685_v44, %v6717_v42  ;;  %v6145_v14 = vcombine.low %v6101_v32, %v6133_v24  ;;  %v6146_v43 = vcombine.high %v6101_v32, %v6133_v24 }
 0x717   : > { %v6147_v54 = vcombine.low %v6108_v19, %v6140_v40  ;;  %v6148_v60 = vcombine.high %v6108_v19, %v6140_v40 }
 0x718   : > { %6198 = vrot.lane.b32.xlu1 %v15524_v29, %s12185_s5  ;;  %6196 = vrot.lane.b32.xlu0 %v15549_v3, %s12185_s5  ;;  %v6092_v29 = vrot.slane %v18397_v10, %v18395_v61 }
 0x71a   : > { %v6143_v3 = vcombine.low %v6092_v29, %v6124_v46  ;;  %v6144_v39 = vcombine.high %v6092_v29, %v6124_v46 }
 0x71c   : > { %5549 = vrot.lane.b32.xlu0 %v5535_v22, %s18176_s16  ;;  %5541 = vrot.lane.b32.xlu1 %v5533_v52, %s12189_s15 }
 0x720   : > { %6743 = vrot.lane.b32.xlu0 %v6735_v62, %s12189_s15  ;;  %5545 = vrot.lane.b32.xlu1 %v5534_v15, %s18174_s3 }
 0x724   : > { %6150 = vrot.lane.b32.xlu0 %v6142_v20, %s12189_s15  ;;  %5553 = vrot.lane.b32.xlu1 %v18396_v56, %s18172_s20 }
 0x728   : > { %6154 = vrot.lane.b32.xlu0 %v6143_v3, %s18174_s3  ;;  %6747 = vrot.lane.b32.xlu1 %v6736_v28, %s18174_s3 }
 0x72c   : > { %v5781_v22 = vpop.permute.xlu1 %5780  ;;  %v5779_v15 = vpop.permute.xlu0 %5778  ;;  %6158 = vrot.lane.b32.xlu0 %v6144_v39, %s18176_s16  ;;  %6751 = vrot.lane.b32.xlu1 %v6737_v27, %s18176_s16 }
 0x730   : > { %6162 = vrot.lane.b32.xlu0 %v6145_v14, %s18172_s20  ;;  %6755 = vrot.lane.b32.xlu1 %v6738_v34, %s18172_s20 }
 0x731   : > { %v5785_v52 = vpop.permute.xlu1 %5784 }
 0x732   : > { %v5783_v50 = vpop.permute.xlu0 %5782  ;;  %v5818_v11 = vcombine.low %v5781_v22, %v5785_v52  ;;  %v5819_v44 = vcombine.high %v5781_v22, %v5785_v52 }
 0x733   : > { %v5802_v51 = vcombine.low %v5779_v15, %v5783_v50  ;;  %v5803_v3 = vcombine.high %v5779_v15, %v5783_v50 }
 0x734   : > { %6166 = vrot.lane.b32.xlu0 %v6146_v43, %s12194_s0  ;;  %6759 = vrot.lane.b32.xlu1 %v6739_v9, %s12194_s0  ;;  %v5826_v35 = vrot.slane %v5818_v11, %v18394_v59  ;;  %v5833_v15 = vrot.slane %v5819_v44, %v18394_v59 }
 0x735   : > { %v5810_v47 = vrot.slane %v5802_v51, %v18394_v59  ;;  %v5817_v14 = vrot.slane %v5803_v3, %v18394_v59 }
 0x736   : > { %v5789_v34 = vpop.permute.xlu1 %5788  ;;  %v5787_v62 = vpop.permute.xlu0 %5786 }
 0x737   : > { %v5867_v0 = vcombine.high %v5810_v47, %v5826_v35 }
 0x738   : > { %6170 = vrot.lane.b32.xlu0 %v6147_v54, %s12192_s8  ;;  %6763 = vrot.lane.b32.xlu1 %v6740_v57, %s12192_s8  ;;  %v5866_v57 = vcombine.low %v5810_v47, %v5826_v35  ;;  %v5882_v54 = vcombine.low %v5817_v14, %v5833_v15 }
 0x739   : > { %v5881_v19 = vrot.slane %v5867_v0, %v18395_v61 }
 0x73a   : > { %v5793_v2 = vpop.permute.xlu1 %5792  ;;  %v5791_v21 = vpop.permute.xlu0 %5790  ;;  %v15849_v24 = vrot.slane %v5866_v57, %v18395_v61  ;;  %v5890_v3 = vrot.slane %v5882_v54, %v18395_v61 }
 0x73b   : > { %v5850_v33 = vcombine.low %v5789_v34, %v5793_v2  ;;  %v5834_v9 = vcombine.low %v5787_v62, %v5791_v21  ;;  %v5851_v56 = vcombine.high %v5789_v34, %v5793_v2  ;;  %v5835_v10 = vcombine.high %v5787_v62, %v5791_v21 }
 0x73c   : > { %6174 = vrot.lane.b32.xlu0 %v6148_v60, %s12195_s30  ;;  %6767 = vrot.lane.b32.xlu1 %v6741_v16, %s12195_s30 }
 0x73d   : > { %v5858_v49 = vrot.slane %v5850_v33, %v18394_v59  ;;  %v5842_v26 = vrot.slane %v5834_v9, %v18394_v59  ;;  %v5865_v16 = vrot.slane %v5851_v56, %v18394_v59  ;;  %v5849_v31 = vrot.slane %v5835_v10, %v18394_v59 }
 0x73e   : > { %v5586_v20 = vpop.permute.xlu1 %5585  ;;  %v5584_v46 = vpop.permute.xlu0 %5583 }
 0x73f   : > { %v5898_v42 = vcombine.low %v5842_v26, %v5858_v49  ;;  %v5899_v29 = vcombine.high %v5842_v26, %v5858_v49  ;;  %v5914_v34 = vcombine.low %v5849_v31, %v5865_v16  ;;  %v5915_v0 = vcombine.high %v5849_v31, %v5865_v16 }
 0x741   : > { %v15846_v28 = vrot.slane %v5898_v42, %v18395_v61  ;;  %v5913_v22 = vrot.slane %v5899_v29, %v18395_v61  ;;  %v5922_v57 = vrot.slane %v5914_v34, %v18395_v61  ;;  %v5929_v31 = vrot.slane %v5915_v0, %v18395_v61 }
 0x742   : > { %v5590_v39 = vpop.permute.xlu1 %5589  ;;  %v5588_v27 = vpop.permute.xlu0 %5587 }
 0x743   : > { %v5624_v36 = vcombine.high %v5586_v20, %v5590_v39  ;;  %v5608_v1 = vcombine.high %v5584_v46, %v5588_v27  ;;  %v5931_v32 = vcombine.high %v15849_v24, %v15846_v28  ;;  %v5623_v50 = vcombine.low %v5586_v20, %v5590_v39 }
 0x744   : > { %v5607_v43 = vcombine.low %v5584_v46, %v5588_v27  ;;  %v5932_v62 = vcombine.low %v5881_v19, %v5913_v22  ;;  %v5933_v26 = vcombine.high %v5881_v19, %v5913_v22  ;;  %v5935_v16 = vcombine.high %v5890_v3, %v5922_v57 }
 0x745   : > { %v15859_v8 = vrot.slane %v5624_v36, %v18394_v59  ;;  %v15862_v52 = vrot.slane %v5608_v1, %v18394_v59  ;;  %5939 = vrot.lane.b32.xlu1 %v5931_v32, %s12189_s15  ;;  %v5631_v35 = vrot.slane %v5623_v50, %v18394_v59  ;;  %v5934_v1 = vcombine.low %v5890_v3, %v5922_v57 }
 0x746   : > { %v5594_v40 = vpop.permute.xlu1 %5593  ;;  %v5592_v58 = vpop.permute.xlu0 %5591  ;;  %v5615_v47 = vrot.slane %v5607_v43, %v18394_v59  ;;  %v5883_v32 = vcombine.high %v5817_v14, %v5833_v15 }
 0x747   : > { %v5688_v51 = vcombine.high %v15862_v52, %v15859_v8  ;;  %v5687_v54 = vcombine.low %v15862_v52, %v15859_v8 }
 0x748   : > { %v5671_v10 = vcombine.low %v5615_v47, %v5631_v35  ;;  %v5672_v22 = vcombine.high %v5615_v47, %v5631_v35  ;;  %v5897_v47 = vrot.slane %v5883_v32, %v18395_v61 }
 0x749   : > { %5943 = vrot.lane.b32.xlu1 %v5932_v62, %s18174_s3  ;;  %v15899_v62 = vrot.slane %v5688_v51, %v18395_v61 }
 0x74a   : > { %v5598_v2 = vpop.permute.xlu1 %5597  ;;  %v5596_v21 = vpop.permute.xlu0 %5595  ;;  %v5936_v52 = vcombine.low %v5897_v47, %v5929_v31 }
 0x74b   : > { %v5655_v60 = vcombine.low %v5594_v40, %v5598_v2  ;;  %v5656_v33 = vcombine.high %v5594_v40, %v5598_v2  ;;  %v5639_v9 = vcombine.low %v5592_v58, %v5596_v21  ;;  %v5640_v49 = vcombine.high %v5592_v58, %v5596_v21 }
 0x74c   : > { %v15889_v58 = vrot.slane %v5671_v10, %v18395_v61  ;;  %v5686_v2 = vrot.slane %v5672_v22, %v18395_v61 }
 0x74d   : > { %v5663_v20 = vrot.slane %v5655_v60, %v18394_v59  ;;  %v5670_v46 = vrot.slane %v5656_v33, %v18394_v59  ;;  %v5647_v42 = vrot.slane %v5639_v9, %v18394_v59  ;;  %v5654_v56 = vrot.slane %v5640_v49, %v18394_v59  ;;  %5947 = vrot.lane.b32.xlu1 %v5933_v26, %s18176_s16 }
 0x74e   : > { %v15879_v29 = vpop.permute.xlu1 %6974  ;;  %v15881_v44 = vpop.permute.xlu0 %6972 }
 0x74f   : > { %v5703_v39 = vcombine.low %v5647_v42, %v5663_v20  ;;  %v5720_v27 = vcombine.high %v5654_v56, %v5670_v46  ;;  %v5704_v36 = vcombine.high %v5647_v42, %v5663_v20  ;;  %v5719_v34 = vcombine.low %v5654_v56, %v5670_v46 }
 0x750   : > { %v5695_v56 = vrot.slane %v5687_v54, %v18395_v61 }
 0x751   : > { %v15885_v50 = vrot.slane %v5703_v39, %v18395_v61  ;;  %5951 = vrot.lane.b32.xlu1 %v5934_v1, %s18172_s20  ;;  %v15892_v19 = vrot.slane %v5720_v27, %v18395_v61  ;;  %v5718_v14 = vrot.slane %v5704_v36, %v18395_v61  ;;  %v5727_v49 = vrot.slane %v5719_v34, %v18395_v61 }
 0x752   : > { %v6979_v43 = vpop.permute.xlu1 %6978  ;;  %v6977_v40 = vpop.permute.xlu0 %6976 }
 0x753   : > { %v5736_v15 = vcombine.high %v15889_v58, %v15885_v50  ;;  %v7012_v35 = vcombine.low %v15879_v29, %v6979_v43  ;;  %v6996_v21 = vcombine.low %v15881_v44, %v6977_v40  ;;  %v5737_v9 = vcombine.low %v5686_v2, %v5718_v14 }
 0x754   : > { %v5740_v27 = vcombine.high %v5695_v56, %v5727_v49  ;;  %v5738_v36 = vcombine.high %v5686_v2, %v5718_v14  ;;  %v7013_v1 = vcombine.high %v15879_v29, %v6979_v43  ;;  %v6997_v32 = vcombine.high %v15881_v44, %v6977_v40 }
 0x755   : > { %5955 = vrot.lane.b32.xlu1 %v5935_v16, %s12194_s0  ;;  %5744 = vrot.lane.b32.xlu0 %v5736_v15, %s12189_s15  ;;  %v7020_v57 = vrot.slane %v7012_v35, %v18394_v59  ;;  %v7004_v20 = vrot.slane %v6996_v21, %v18394_v59  ;;  %v5739_v44 = vcombine.low %v5695_v56, %v5727_v49 }
 0x756   : > { %v6983_v60 = vpop.permute.xlu1 %6982  ;;  %v6981_v33 = vpop.permute.xlu0 %6980  ;;  %v7027_v40 = vrot.slane %v7013_v1, %v18394_v59  ;;  %v7011_v2 = vrot.slane %v6997_v32, %v18394_v59 }
 0x757   : > { %v7061_v34 = vcombine.high %v7004_v20, %v7020_v57 }
 0x758   : > { %v7076_v49 = vcombine.low %v7011_v2, %v7027_v40  ;;  %v7077_v26 = vcombine.high %v7011_v2, %v7027_v40 }
 0x759   : > { %5959 = vrot.lane.b32.xlu1 %v5936_v52, %s12192_s8  ;;  %5748 = vrot.lane.b32.xlu0 %v5737_v9, %s18174_s3  ;;  %v7075_v9 = vrot.slane %v7061_v34, %v18395_v61 }
 0x75a   : > { %v6987_v46 = vpop.permute.xlu1 %6986  ;;  %v6985_v42 = vpop.permute.xlu0 %6984  ;;  %v7084_v34 = vrot.slane %v7076_v49, %v18395_v61 }
 0x75b   : > { %v7044_v10 = vcombine.low %v6983_v60, %v6987_v46  ;;  %v7028_v3 = vcombine.low %v6981_v33, %v6985_v42  ;;  %v7045_v0 = vcombine.high %v6983_v60, %v6987_v46  ;;  %v7029_v39 = vcombine.high %v6981_v33, %v6985_v42 }
 0x75c   : > { %v7060_v60 = vcombine.low %v7004_v20, %v7020_v57  ;;  %v5937_v42 = vcombine.high %v5897_v47, %v5929_v31 }
 0x75d   : > { %v7052_v22 = vrot.slane %v7044_v10, %v18394_v59  ;;  %v7036_v16 = vrot.slane %v7028_v3, %v18394_v59  ;;  %5760 = vrot.lane.b32.xlu1 %v5740_v27, %s12194_s0  ;;  %5752 = vrot.lane.b32.xlu0 %v5738_v36, %s18176_s16  ;;  %v7059_v14 = vrot.slane %v7045_v0, %v18394_v59 }
 0x75e   : > { %v15927_v15 = vpop.permute.xlu1 %6779  ;;  %v15929_v54 = vpop.permute.xlu0 %6777  ;;  %v7043_v29 = vrot.slane %v7029_v39, %v18394_v59  ;;  %v15946_v39 = vrot.slane %v7060_v60, %v18395_v61 }
 0x75f   : > { %v7093_v35 = vcombine.high %v7036_v16, %v7052_v22  ;;  %v7092_v43 = vcombine.low %v7036_v16, %v7052_v22 }
 0x760   : > { %v7108_v46 = vcombine.low %v7043_v29, %v7059_v14 }
 0x761   : > { %v7107_v21 = vrot.slane %v7093_v35, %v18395_v61  ;;  %5756 = vrot.lane.b32.xlu0 %v5739_v44, %s18172_s20  ;;  %v15939_v3 = vrot.slane %v7092_v43, %v18395_v61 }
 0x762   : > { %v6784_v33 = vpop.permute.xlu1 %6783  ;;  %v6782_v52 = vpop.permute.xlu0 %6781  ;;  %v15951_v47 = vrot.slane %v7108_v46, %v18395_v61 }
 0x763   : > { %v7126_v10 = vcombine.low %v7075_v9, %v7107_v21  ;;  %v6817_v56 = vcombine.low %v15927_v15, %v6784_v33  ;;  %v6801_v0 = vcombine.low %v15929_v54, %v6782_v52  ;;  %v7127_v27 = vcombine.high %v7075_v9, %v7107_v21 }
 0x764   : > { %v7125_v31 = vcombine.high %v15946_v39, %v15939_v3  ;;  %v7128_v44 = vcombine.low %v7084_v34, %v15951_v47  ;;  %v6818_v11 = vcombine.high %v15927_v15, %v6784_v33 }
 0x765   : > { %5963 = vrot.lane.b32.xlu0 %v5937_v42, %s12195_s30  ;;  %7137 = vrot.lane.b32.xlu1 %v7126_v10, %s18174_s3  ;;  %v6825_v1 = vrot.slane %v6817_v56, %v18394_v59  ;;  %v6809_v32 = vrot.slane %v6801_v0, %v18394_v59  ;;  %v7109_v56 = vcombine.high %v7043_v29, %v7059_v14 }
 0x766   : > { %v6788_v57 = vpop.permute.xlu1 %6787  ;;  %v6786_v20 = vpop.permute.xlu0 %6785 }
 0x767   : > { %v6865_v9 = vcombine.low %v6809_v32, %v6825_v1  ;;  %v6866_v46 = vcombine.high %v6809_v32, %v6825_v1  ;;  %v6802_v1 = vcombine.high %v15929_v54, %v6782_v52  ;;  %v7123_v40 = vrot.slane %v7109_v56, %v18395_v61 }
 0x768   : > { %v15992_v52 = vrot.slane %v6818_v11, %v18394_v59 }
 0x769   : > { %7141 = vrot.lane.b32.xlu1 %v7127_v27, %s18176_s16  ;;  %7133 = vrot.lane.b32.xlu0 %v7125_v31, %s12189_s15  ;;  %v6880_v14 = vrot.slane %v6866_v46, %v18395_v61  ;;  %v15980_v29 = vrot.slane %v6865_v9, %v18395_v61 }
 0x76a   : > { %v6792_v22 = vpop.permute.xlu1 %6791  ;;  %v6790_v16 = vpop.permute.xlu0 %6789 }
 0x76b   : > { %v6849_v35 = vcombine.low %v6788_v57, %v6792_v22  ;;  %v6833_v43 = vcombine.low %v6786_v20, %v6790_v16  ;;  %v6850_v49 = vcombine.high %v6788_v57, %v6792_v22  ;;  %v6834_v31 = vcombine.high %v6786_v20, %v6790_v16 }
 0x76c   : > { %v7091_v57 = vrot.slane %v7077_v26, %v18395_v61  ;;  %v15996_v20 = vrot.slane %v6802_v1, %v18394_v59 }
 0x76d   : > { %v6857_v21 = vrot.slane %v6849_v35, %v18394_v59  ;;  %v6841_v60 = vrot.slane %v6833_v43, %v18394_v59  ;;  %7145 = vrot.lane.b32.xlu1 %v7128_v44, %s18172_s20  ;;  %v15984_v15 = vrot.slane %v6850_v49, %v18394_v59  ;;  %v15987_v2 = vrot.slane %v6834_v31, %v18394_v59 }
 0x76e   : > { %v15964_v42 = vpop.permute.xlu1 %6381  ;;  %v15966_v10 = vpop.permute.xlu0 %6379  ;;  %v7130_v26 = vcombine.low %v7091_v57, %v7123_v40  ;;  %v6881_v56 = vcombine.low %v15996_v20, %v15992_v52 }
 0x76f   : > { %v6897_v0 = vcombine.low %v6841_v60, %v6857_v21  ;;  %v6898_v27 = vcombine.high %v6841_v60, %v6857_v21  ;;  %v6913_v11 = vcombine.low %v15987_v2, %v15984_v15 }
 0x770   : > { %v6889_v46 = vrot.slane %v6881_v56, %v18395_v61 }
 0x771   : > { %v6912_v35 = vrot.slane %v6898_v27, %v18395_v61  ;;  %v15971_v43 = vrot.slane %v6897_v0, %v18395_v61 }
 0x772   : > { %v15974_v32 = vpop.permute.xlu1 %6385  ;;  %v15976_v44 = vpop.permute.xlu0 %6383 }
 0x773   : > { %v6932_v33 = vcombine.high %v6880_v14, %v6912_v35  ;;  %v6930_v54 = vcombine.high %v15980_v29, %v15971_v43  ;;  %v6419_v22 = vcombine.low %v15964_v42, %v15974_v32  ;;  %v6403_v16 = vcombine.low %v15966_v10, %v15976_v44 }
 0x774   : > { %v6931_v9 = vcombine.low %v6880_v14, %v6912_v35  ;;  %v7131_v14 = vcombine.high %v7091_v57, %v7123_v40 }
 0x775   : > { %6946 = vrot.lane.b32.xlu1 %v6932_v33, %s18176_s16  ;;  %6938 = vrot.lane.b32.xlu0 %v6930_v54, %s12189_s15  ;;  %v6427_v0 = vrot.slane %v6419_v22, %v18394_v59  ;;  %v6411_v27 = vrot.slane %v6403_v16, %v18394_v59  ;;  %v7129_v33 = vcombine.high %v7084_v34, %v15951_v47 }
 0x776   : > { %v16004_v21 = vpop.permute.xlu1 %6389  ;;  %v16006_v60 = vpop.permute.xlu0 %6387  ;;  %v6921_v54 = vrot.slane %v6913_v11, %v18395_v61 }
 0x777   : > { %v6467_v16 = vcombine.low %v6411_v27, %v6427_v0  ;;  %v6468_v36 = vcombine.high %v6411_v27, %v6427_v0  ;;  %v6882_v0 = vcombine.high %v15996_v20, %v15992_v52 }
 0x778   : > { %v6933_v57 = vcombine.low %v6889_v46, %v6921_v54  ;;  %v6934_v55 = vcombine.high %v6889_v46, %v6921_v54 }
 0x779   : > { %7153 = vrot.lane.b32.xlu1 %v7130_v26, %s12192_s8  ;;  %6942 = vrot.lane.b32.xlu0 %v6931_v9, %s18174_s3  ;;  %v6482_v63 = vrot.slane %v6468_v36, %v18395_v61  ;;  %v6404_v36 = vcombine.high %v15966_v10, %v15976_v44 }
 0x77a   : > { %v6394_v49 = vpop.permute.xlu1 %6393  ;;  %v6392_v31 = vpop.permute.xlu0 %6391 }
 0x77b   : > { %v6451_v1 = vcombine.low %v16004_v21, %v6394_v49  ;;  %v6435_v35 = vcombine.low %v16006_v60, %v6392_v31 }
 0x77d   : > { %v6459_v23 = vrot.slane %v6451_v1, %v18394_v59  ;;  %v6443_v22 = vrot.slane %v6435_v35, %v18394_v59  ;;  %7157 = vrot.lane.b32.xlu1 %v7131_v14, %s12195_s30  ;;  %7149 = vrot.lane.b32.xlu0 %v7129_v33, %s12194_s0  ;;  %v16036_v1 = vrot.slane %v6467_v16, %v18395_v61 }
 0x77e   : > { %v16026_v26 = vpop.permute.xlu1 %6186  ;;  %v16028_v9 = vpop.permute.xlu0 %6184  ;;  %v6914_v16 = vcombine.high %v15987_v2, %v15984_v15  ;;  %v6452_v15 = vcombine.high %v16004_v21, %v6394_v49  ;;  %v6436_v2 = vcombine.high %v16006_v60, %v6392_v31  ;;  %v6896_v21 = vrot.slane %v6882_v0, %v18395_v61 }
 0x77f   : > { %v6499_v40 = vcombine.low %v6443_v22, %v6459_v23  ;;  %v6500_v35 = vcombine.high %v6443_v22, %v6459_v23 }
 0x780   : > { %v6928_v54 = vrot.slane %v6914_v16, %v18395_v61 }
 0x781   : > { %v16032_v47 = vrot.slane %v6499_v40, %v18395_v61  ;;  %6950 = vrot.lane.b32.xlu0 %v6933_v57, %s18172_s20  ;;  %v6514_v23 = vrot.slane %v6500_v35, %v18395_v61 }
 0x782   : > { %v6191_v34 = vpop.permute.xlu1 %6190  ;;  %v6189_v11 = vpop.permute.xlu0 %6188 }
 0x783   : > { %v6532_v14 = vcombine.high %v16036_v1, %v16032_v47  ;;  %v6224_v33 = vcombine.low %v16026_v26, %v6191_v34  ;;  %v6208_v56 = vcombine.low %v16028_v9, %v6189_v11  ;;  %v6533_v46 = vcombine.low %v6482_v63, %v6514_v23 }
 0x784   : > { %v6225_v16 = vcombine.high %v16026_v26, %v6191_v34 }
 0x785   : > { %6540 = vrot.lane.b32.xlu0 %v6532_v14, %s12189_s15  ;;  %v6232_v22 = vrot.slane %v6224_v33, %v18394_v59  ;;  %v6216_v8 = vrot.slane %v6208_v56, %v18394_v59 }
 0x786   : > { %v6195_v40 = vpop.permute.xlu1 %6194  ;;  %v6193_v13 = vpop.permute.xlu0 %6192 }
 0x787   : > { %v6272_v35 = vcombine.low %v6216_v8, %v6232_v22  ;;  %v6273_v10 = vcombine.high %v6216_v8, %v6232_v22 }
 0x789   : > { %6954 = vrot.lane.b32.xlu0 %v6934_v55, %s12194_s0  ;;  %v6420_v55 = vcombine.high %v15964_v42, %v15974_v32  ;;  %v6935_v42 = vcombine.low %v6896_v21, %v6928_v54  ;;  %v6209_v32 = vcombine.high %v16028_v9, %v6189_v11  ;;  %v16072_v44 = vrot.slane %v6272_v35, %v18395_v61 }
 0x78a   : > { %v6199_v27 = vpop.permute.xlu1 %6198  ;;  %v6197_v14 = vpop.permute.xlu0 %6196 }
 0x78b   : > { %v6256_v57 = vcombine.low %v6195_v40, %v6199_v27  ;;  %v6240_v51 = vcombine.low %v6193_v13, %v6197_v14  ;;  %v6257_v60 = vcombine.high %v6195_v40, %v6199_v27  ;;  %v6241_v49 = vcombine.high %v6193_v13, %v6197_v14 }
 0x78c   : > { %v6434_v13 = vrot.slane %v6420_v55, %v18394_v59  ;;  %v6418_v40 = vrot.slane %v6404_v36, %v18394_v59  ;;  %v6534_v27 = vcombine.high %v6482_v63, %v6514_v23  ;;  %v6239_v14 = vrot.slane %v6225_v16, %v18394_v59 }
 0x78d   : > { %v6264_v33 = vrot.slane %v6256_v57, %v18394_v59  ;;  %v6248_v52 = vrot.slane %v6240_v51, %v18394_v59  ;;  %6544 = vrot.lane.b32.xlu0 %v6533_v46, %s18174_s3  ;;  %v6466_v57 = vrot.slane %v6452_v15, %v18394_v59  ;;  %v6450_v51 = vrot.slane %v6436_v2, %v18394_v59 }
 0x78e   : > { %v16064_v20 = vpop.permute.xlu1 %5541  ;;  %v6271_v26 = vrot.slane %v6257_v60, %v18394_v59  ;;  %v6255_v34 = vrot.slane %v6241_v49, %v18394_v59  ;;  %v16087_v22 = vpop.permute.xlu0 %5549  ;;  %v6223_v15 = vrot.slane %v6209_v32, %v18394_v59  ;;  %v6287_v2 = vrot.slane %v6273_v10, %v18395_v61 }
 0x78f   : > { %v6304_v31 = vcombine.low %v6248_v52, %v6264_v33  ;;  %v6305_v56 = vcombine.high %v6248_v52, %v6264_v33  ;;  %v6515_v11 = vcombine.low %v6450_v51, %v6466_v57  ;;  %18400 = vst [vmem:[#allocation33_spill] sm:$0xff] %v16087_v22  ;;  %v6483_v33 = vcombine.low %v6418_v40, %v6434_v13 }
 0x790   : > { %v6320_v55 = vcombine.low %v6255_v34, %v6271_v26  ;;  %v6936_v60 = vcombine.high %v6896_v21, %v6928_v54  ;;  %v6288_v23 = vcombine.low %v6223_v15, %v6239_v14  ;;  %v6516_v32 = vcombine.high %v6450_v51, %v6466_v57 }
 0x791   : > { %v16075_v46 = vrot.slane %v6304_v31, %v18395_v61  ;;  %6958 = vrot.lane.b32.xlu0 %v6935_v42, %s12192_s8  ;;  %v6319_v9 = vrot.slane %v6305_v56, %v18395_v61  ;;  %v6523_v63 = vrot.slane %v6515_v11, %v18395_v61  ;;  %v6491_v56 = vrot.slane %v6483_v33, %v18395_v61 }
 0x792   : > { %v16080_v0 = vpop.permute.xlu1 %5545  ;;  %v16100_v49 = vpop.permute.xlu0 %6743  ;;  %v6328_v42 = vrot.slane %v6320_v55, %v18395_v61  ;;  %v6296_v54 = vrot.slane %v6288_v23, %v18395_v61  ;;  %v6484_v21 = vcombine.high %v6418_v40, %v6434_v13  ;;  %v6321_v11 = vcombine.high %v6255_v34, %v6271_v26 }
 0x793   : > { %v6337_v8 = vcombine.high %v16072_v44, %v16075_v46  ;;  %v6338_v36 = vcombine.low %v6287_v2, %v6319_v9  ;;  %v6339_v16 = vcombine.high %v6287_v2, %v6319_v9  ;;  %v6535_v10 = vcombine.low %v6491_v56, %v6523_v63 }
 0x794   : > { %v6530_v9 = vrot.slane %v6516_v32, %v18395_v61  ;;  %v6289_v2 = vcombine.high %v6223_v15, %v6239_v14  ;;  %v6498_v51 = vrot.slane %v6484_v21, %v18395_v61  ;;  %v6341_v13 = vcombine.high %v6296_v54, %v6328_v42 }
 0x795   : > { %6345 = vrot.lane.b32.xlu1 %v6337_v8, %s12189_s15  ;;  %6548 = vrot.lane.b32.xlu0 %v6534_v27, %s18176_s16  ;;  %v6340_v27 = vcombine.low %v6296_v54, %v6328_v42  ;;  %v6335_v40 = vrot.slane %v6321_v11, %v18395_v61  ;;  %v18403_v42 = vcombine.high %v15649_v45, %v15652_v18 }
 0x796   : > { %v16096_v52 = vpop.permute.xlu1 %5553  ;;  %v6537_v26 = vcombine.low %v6498_v51, %v6530_v9  ;;  %v6303_v34 = vrot.slane %v6289_v2, %v18395_v61  ;;  %v6538_v55 = vcombine.high %v6498_v51, %v6530_v9  ;;  %v18406_v21 = vcombine.low %v15713_v17, %v15716_v38 }
 0x797   : > { %18401 = vst [vmem:[#allocation45_spill] sm:$0xff] %v16096_v52  ;;  %v18407_v45 = vcombine.high %v15713_v17, %v15716_v38 }
 0x798   : > { %v6342_v14 = vcombine.low %v6303_v34, %v6335_v40 }
 0x799   : > { %6349 = vrot.lane.b32.xlu1 %v6338_v36, %s18174_s3  ;;  %6962 = vrot.lane.b32.xlu0 %v6936_v60, %s12195_s30  ;;  %v16112_v36 = vpop.permute.xlu0 %6150  ;;  %v6536_v60 = vcombine.high %v6491_v56, %v6523_v63  ;;  %v6343_v63 = vcombine.high %v6303_v34, %v6335_v40  ;;  %s12209_s3 = smov 124  }
 0x79a   : > { %v16103_v31 = vpop.permute.xlu1 %6747 }
 0x79d   : > { %6353 = vrot.lane.b32.xlu1 %v6339_v16, %s18176_s16  ;;  %6552 = vrot.lane.b32.xlu0 %v6535_v10, %s18172_s20  ;;  %v16123_v33 = vpop.permute.xlu0 %6154  ;;  %v18402_v16 = vcombine.low %v15899_v62, %v15892_v19  ;;  %v18404_v10 = vcombine.high %v15899_v62, %v15892_v19  ;;  %s18460_s16 = smov 4  }
 0x79e   : > { %v16110_v8 = vpop.permute.xlu1 %6751 }
 0x7a1   : > { %6357 = vrot.lane.b32.xlu1 %v6340_v27, %s18172_s20  ;;  %6556 = vrot.lane.b32.xlu0 %v6536_v60, %s12194_s0  ;;  %v16130_v23 = vpop.permute.xlu0 %6158  ;;  %s11567_s20 = sshll.u32 %s12556_s23, 3  ;;  %s18480_s23 = smov 72  }
 0x7a2   : > { %v16117_v57 = vpop.permute.xlu1 %6755  ;;  %s818_s2 = scalar_lea.vmem %s18405_s1, %s11567_s20  ;;  %s12210_s20 = smov 116  }
 0x7a3   : > { %v7323_v18 = vld [vmem:[%s818_s2] sm:$0x3]  ;;  %v7324_v11 = vld [vmem:[%s818_s2 + $0x2] sm:$0x3]  ;;  %v7325_v27 = vld [vmem:[%s818_s2 + $0x4] sm:$0x3] }
 0x7a4   : > { %v7326_v60 = vld [vmem:[%s818_s2 + $0x6] sm:$0x3]  ;;  %s12208_s2 = smov 2   ;;  %s18479_s1 = smov 88  }
 0x7a5   : > { %6361 = vrot.lane.b32.xlu1 %v6341_v13, %s12194_s0  ;;  %6560 = vrot.lane.b32.xlu0 %v6537_v26, %s12192_s8  ;;  %v16144_v32 = vpop.permute.xlu0 %6162 }
 0x7a6   : > { %v16126_v15 = vpop.permute.xlu1 %6759 }
 0x7a9   : > { %6365 = vrot.lane.b32.xlu1 %v6342_v14, %s12192_s8  ;;  %6564 = vrot.lane.b32.xlu0 %v6538_v55, %s12195_s30  ;;  %v16163_v19 = vpop.permute.xlu0 %6166 }
 0x7aa   : > { %v16133_v56 = vpop.permute.xlu1 %6763 }
 0x7ad   : > { %6369 = vrot.lane.b32.xlu1 %v6343_v63, %s12195_s30  ;;  %5764 = vrot.lane.b32.xlu0 %v18402_v16, %s12192_s8  ;;  %v16172_v2 = vpop.permute.xlu0 %6170 }
 0x7ae   : > { %v16153_v54 = vpop.permute.xlu1 %6767 }
 0x7b1   : > { %5557 = vrot.lane.b32.xlu1 %v18403_v42, %s12194_s0  ;;  %5768 = vrot.lane.b32.xlu0 %v18404_v10, %s12195_s30  ;;  %v16177_v17 = vpop.permute.xlu0 %6174 }
 0x7b5   : > { %5561 = vrot.lane.b32.xlu1 %v18406_v21, %s12192_s8  ;;  %5565 = vrot.lane.b32.xlu0 %v18407_v45, %s12195_s30 }
 0x7b7   : > { %v16165_v62 = vpop.permute.xlu1 %5939 }
 0x7b9   : > { %7333 = vrot.lane.b32.xlu1 %v7323_v18, %s12183_s14  ;;  %7335 = vrot.lane.b32.xlu0 %v7324_v11, %s12183_s14  ;;  %v18408_v18 = vcombine.low %v15946_v39, %v15939_v3 }
 0x7bb   : > { %v16169_v9 = vpop.permute.xlu1 %5943 }
 0x7bd   : > { %7337 = vrot.lane.b32.xlu1 %v7325_v27, %s12183_s14  ;;  %7339 = vrot.lane.b32.xlu0 %v7326_v60, %s12183_s14 }
 0x7bf   : > { %v16175_v38 = vpop.permute.xlu1 %5947 }
 0x7c3   : > { %v16179_v51 = vpop.permute.xlu1 %5951 }
 0x7c7   : > { %v16181_v13 = vpop.permute.xlu1 %5955  ;;  %v16183_v40 = vpop.permute.xlu0 %5744 }
 0x7cb   : > { %v16185_v26 = vpop.permute.xlu0 %5748  ;;  %v16187_v34 = vpop.permute.xlu1 %5959 }
 0x7cf   : > { %v16189_v14 = vpop.permute.xlu0 %5752  ;;  %v16191_v55 = vpop.permute.xlu1 %5760 }
 0x7d3   : > { %v16193_v63 = vpop.permute.xlu0 %5756 }
 0x7d7   : > { %v7138_v16 = vpop.permute.xlu1 %7137  ;;  %v16195_v42 = vpop.permute.xlu0 %5963 }
 0x7db   : > { %v7142_v10 = vpop.permute.xlu1 %7141  ;;  %v7134_v21 = vpop.permute.xlu0 %7133 }
 0x7dc   : > { %v7160_v11 = vsel %vm3259_vm8, %v18408_v18, %v7134_v21 }
 0x7dd   : > { %v7161_v35 = vsel %vm1112_vm9, %v7160_v11, %v7138_v16 }
 0x7de   : > { %v7162_v6 = vsel %vm18409_vm3, %v7161_v35, %v7142_v10  ;;  %v18412_v35 = vcombine.low %v15980_v29, %v15971_v43 }
 0x7df   : > { %v7146_v45 = vpop.permute.xlu1 %7145 }
 0x7e0   : > { %v7163_v4 = vsel %vm1114_vm11, %v7162_v6, %v7146_v45 }
 0x7e7   : > { %v6947_v27 = vpop.permute.xlu1 %6946  ;;  %v6939_v60 = vpop.permute.xlu0 %6938 }
 0x7e8   : > { %v6965_v6 = vsel %vm3259_vm8, %v18412_v35, %v6939_v60 }
 0x7eb   : > { %v7154_v53 = vpop.permute.xlu1 %7153  ;;  %v6943_v25 = vpop.permute.xlu0 %6942 }
 0x7ef   : > { %v7150_v61 = vpop.permute.xlu0 %7149  ;;  %v7158_v52 = vpop.permute.xlu1 %7157 }
 0x7f0   : > { %v7164_v59 = vsel %vm18410_vm10, %v7163_v4, %v7150_v61  ;;  %v6966_v4 = vsel %vm1112_vm9, %v6965_v6, %v6943_v25  ;;  %vm18414_vm10 = vmmov %vm18409_vm3 }
 0x7f1   : > { %v7165_v22 = vsel %vm1116_vm13, %v7164_v59, %v7154_v53  ;;  %v18413_v53 = vcombine.low %v15677_v37, %v15663_v12 }
 0x7f2   : > { %v7166_v3 = vsel %vm18411_vm14, %v7165_v22, %v7158_v52  ;;  %v6967_v22 = vsel %vm18409_vm3, %v6966_v4, %v6947_v27  ;;  %vm18415_vm14 = vcmask 326656   ;;  %vm18417_vm3 = vcmask 457728  }
 0x7f3   : > { %11659 = vmatpush3.msra.mxu1 %v7166_v3  ;;  %v6951_v39 = vpop.permute.xlu0 %6950  ;;  %v6770_v59 = vsel %vm3259_vm8, %v18413_v53, %v16100_v49  ;;  %vm18416_vm6 = vmmov %vm18415_vm14  ;;  %v18421_v4 = vcombine.low %v16072_v44, %v16075_v46 }
 0x7f4   : > { %11660 = vmatprep.subr.mxu1 %v18387_v41  ;;  %v6771_v52 = vsel %vm1112_vm9, %v6770_v59, %v16103_v31  ;;  %v6968_v45 = vsel %vm1114_vm11, %v6967_v22, %v6951_v39 }
 0x7f5   : > { %v6772_v43 = vsel %vm18414_vm10, %v6771_v52, %v16110_v8  ;;  %vm18418_vm10 = vmmov %vm18417_vm3 }
 0x7f6   : > { %v6773_v60 = vsel %vm1114_vm11, %v6772_v43, %v16117_v57 }
 0x7f7   : > { %v6541_v21 = vpop.permute.xlu0 %6540  ;;  %v6774_v49 = vsel %vm18416_vm6, %v6773_v60, %v16126_v15  ;;  %v18419_v15 = vcombine.low %v16036_v1, %v16032_v47  ;;  %vm18420_vm6 = vcmask 195584   ;;  %v18422_v1 = vcombine.low %v15680_v5, %v15666_v7 }
 0x7f8   : > { %v6775_v31 = vsel %vm1116_vm13, %v6774_v49, %v16133_v56  ;;  %v18425_v7 = vcombine.low %v15849_v24, %v15846_v28  ;;  %v18437_v49 = vld [vmem:[#allocation45_spill] sm:$0xff] }
 0x7f9   : > { %v6776_v8 = vsel %vm18418_vm10, %v6775_v31, %v16153_v54 }
 0x7fa   : > { %v5966_v5 = vsel %vm3259_vm8, %v18425_v7, %v16165_v62 }
 0x7fb   : > { %v6955_v16 = vpop.permute.xlu0 %6954 }
 0x7fc   : > { %v6969_v25 = vsel %vm18415_vm14, %v6968_v45, %v6955_v16 }
 0x7ff   : > { %v6545_v18 = vpop.permute.xlu0 %6544 }
 0x803   : > { %v6959_v11 = vpop.permute.xlu0 %6958 }
 0x804   : > { %v6970_v37 = vsel %vm1116_vm13, %v6969_v25, %v6959_v11  ;;  %v6567_v11 = vsel %vm3259_vm8, %v18419_v15, %v6541_v21  ;;  %v6177_v21 = vsel %vm3259_vm8, %v18422_v1, %v16112_v36  ;;  %v18426_v36 = vcombine.low %v15889_v58, %v15885_v50 }
 0x805   : > { %v6568_v56 = vsel %vm1112_vm9, %v6567_v11, %v6545_v18  ;;  %v6178_v46 = vsel %vm1112_vm9, %v6177_v21, %v16123_v33 }
 0x806   : > { %v5771_v25 = vsel %vm3259_vm8, %v18426_v36, %v16183_v40 }
 0x807   : > { %v6346_v61 = vpop.permute.xlu1 %6345  ;;  %v6549_v10 = vpop.permute.xlu0 %6548  ;;  %v5772_v28 = vsel %vm1112_vm9, %v5771_v25, %v16185_v26  ;;  %v18430_v26 = vcombine.low %v15578_v48, %v15581_v30 }
 0x808   : > { %v6569_v54 = vsel %vm18420_vm6, %v6568_v56, %v6549_v10  ;;  %v6372_v53 = vsel %vm3259_vm8, %v18421_v4, %v6346_v61 }
 0x809   : > { %v5568_v60 = vsel %vm3259_vm8, %v18430_v26, %v16064_v20 }
 0x80b   : > { %v6350_v29 = vpop.permute.xlu1 %6349  ;;  %v6963_v12 = vpop.permute.xlu0 %6962 }
 0x80c   : > { %v6971_v27 = vsel %vm18417_vm3, %v6970_v37, %v6963_v12  ;;  %v6373_v22 = vsel %vm1112_vm9, %v6372_v53, %v6350_v29  ;;  %vm18423_vm3 = vmmov %vm18420_vm6 }
 0x80d   : > { %11661 = vmatpush3.msra.mxu1 %v6971_v27  ;;  %vm18424_vm6 = vmmov %vm18423_vm3 }
 0x80e   : > { %11662 = vmatprep.subr.mxu1 %v18387_v41  ;;  %v6179_v43 = vsel %vm18424_vm6, %v6178_v46, %v16130_v23  ;;  %v5967_v23 = vsel %vm1112_vm9, %v5966_v5, %v16169_v9 }
 0x80f   : > { %v6354_v3 = vpop.permute.xlu1 %6353  ;;  %11663 = vmatpush3.msra.mxu1 %v6776_v8  ;;  %v6553_v57 = vpop.permute.xlu0 %6552  ;;  %v6180_v29 = vsel %vm1114_vm11, %v6179_v43, %v16144_v32  ;;  %v5773_v32 = vsel %vm18424_vm6, %v5772_v28, %v16189_v14  ;;  %v5569_v14 = vsel %vm1112_vm9, %v5568_v60, %v16080_v0 }
 0x810   : > { %11664 = vmatprep.subr.mxu1 %v18387_v41  ;;  %v6570_v59 = vsel %vm1114_vm11, %v6569_v54, %v6553_v57  ;;  %v6374_v18 = vsel %vm18423_vm3, %v6373_v22, %v6354_v3  ;;  %vm18427_vm3 = vmmov %vm18415_vm14  ;;  %v5314_v3 = vld [vmem:[%s18086_s10] sm:$0xff] }
 0x811   : > { %v6181_v50 = vsel %vm18427_vm3, %v6180_v29, %v16163_v19 }
 0x812   : > { %v6182_v37 = vsel %vm1116_vm13, %v6181_v50, %v16172_v2 }
 0x813   : > { %v6358_v39 = vpop.permute.xlu1 %6357  ;;  %v6557_v16 = vpop.permute.xlu0 %6556 }
 0x814   : > { %v6571_v52 = vsel %vm18415_vm14, %v6570_v59, %v6557_v16  ;;  %v6375_v61 = vsel %vm1114_vm11, %v6374_v18, %v6358_v39 }
 0x817   : > { %v6362_v35 = vpop.permute.xlu1 %6361  ;;  %v6561_v6 = vpop.permute.xlu0 %6560 }
 0x818   : > { %v6572_v10 = vsel %vm1116_vm13, %v6571_v52, %v6561_v6  ;;  %v6376_v33 = vsel %vm18415_vm14, %v6375_v61, %v6362_v35  ;;  %vm18429_vm14 = vcmask 457728  }
 0x819   : > { %vm18431_vm3 = vmmov %vm18429_vm14 }
 0x81a   : > { %v6183_v12 = vsel %vm18431_vm3, %v6182_v37, %v16177_v17  ;;  %v18435_v17 = vld [vmem:[#allocation33_spill] sm:$0xff] }
 0x81b   : > { %v6366_v47 = vpop.permute.xlu1 %6365  ;;  %v6565_v44 = vpop.permute.xlu0 %6564 }
 0x81c   : > { %v6573_v45 = vsel %vm18418_vm10, %v6572_v10, %v6565_v44  ;;  %v6377_v24 = vsel %vm1116_vm13, %v6376_v33, %v6366_v47  ;;  %vm18428_vm10 = vmmov %vm18424_vm6 }
 0x81d   : > { %11665 = vmatpush3.msra.mxu1 %v6573_v45  ;;  %v5968_v58 = vsel %vm18428_vm10, %v5967_v23, %v16175_v38  ;;  %v5774_v38 = vsel %vm1114_vm11, %v5773_v32, %v16193_v63  ;;  %vm18432_vm10 = vcmask 326656   ;;  %vm18433_vm6 = vmmov %vm18431_vm3  ;;  %vm18436_vm3 = vcmask 195584  }
 0x81e   : > { %11666 = vmatprep.subr.mxu1 %v18387_v41  ;;  %v5969_v19 = vsel %vm1114_vm11, %v5968_v58, %v16179_v51  ;;  %v5570_v63 = vsel %vm18436_vm3, %v5569_v14, %v18435_v17 }
 0x81f   : > { %v6370_v62 = vpop.permute.xlu1 %6369  ;;  %v5765_v9 = vpop.permute.xlu0 %5764  ;;  %v5970_v48 = vsel %vm18432_vm10, %v5969_v19, %v16181_v13 }
 0x820   : > { %v6378_v40 = vsel %vm18429_vm14, %v6377_v24, %v6370_v62  ;;  %v5971_v30 = vsel %vm1116_vm13, %v5970_v48, %v16187_v34  ;;  %vm18434_vm14 = vmmov %vm18432_vm10  ;;  %v5571_v34 = vsel %vm1114_vm11, %v5570_v63, %v18437_v49 }
 0x821   : > { %11667 = vmatpush3.msra.mxu1 %v6378_v40  ;;  %v5972_v2 = vsel %vm18433_vm6, %v5971_v30, %v16195_v42  ;;  %v5775_v51 = vsel %vm18434_vm14, %v5774_v38, %v16191_v55  ;;  %vm18438_vm10 = vmmov %vm18433_vm6  ;;  %v18441_v40 = vld [vmem:[#allocation27_spill] sm:$0xff] }
 0x822   : > { %11668 = vmatprep.subr.mxu1 %v18387_v41  ;;  %v5776_v13 = vsel %vm1116_vm13, %v5775_v51, %v5765_v9  ;;  %vm18439_vm6 = vmmov %vm18434_vm14  ;;  %vm7172_vm14 = vcmask 588800  }
 0x823   : > { %v5558_v20 = vpop.permute.xlu1 %5557  ;;  %11669 = vmatpush3.msra.mxu1 %v6183_v12  ;;  %v5769_v0 = vpop.permute.xlu0 %5768  ;;  %vm18440_vm3 = vmmov %vm18438_vm10 }
 0x824   : > { %11670 = vmatprep.subr.mxu1 %v18387_v41  ;;  %v5777_v27 = vsel %vm18438_vm10, %v5776_v13, %v5769_v0  ;;  %v5572_v42 = vsel %vm18439_vm6, %v5571_v34, %v5558_v20  ;;  %vm7349_vm10 = vcmask 23552   ;;  %vm7370_vm6 = vcmask 1042432  }
 0x825   : > { %11671 = vmatpush3.msra.mxu1 %v5972_v2  ;;  %v5315_v2 = vld [vmem:[%s18087_s11] sm:$0xff] }
 0x826   : > { %11672 = vmatprep.subr.mxu1 %v18387_v41 }
 0x827   : > { %v5562_v31 = vpop.permute.xlu1 %5561  ;;  %11673 = vmatpush3.msra.mxu1 %v5777_v27  ;;  %v5566_v8 = vpop.permute.xlu0 %5565 }
 0x828   : > { %v5573_v55 = vsel %vm1116_vm13, %v5572_v42, %v5562_v31  ;;  %11674 = vmatprep.subr.mxu1 %v18387_v41 }
 0x829   : > { %v5574_v57 = vsel %vm18440_vm3, %v5573_v55, %v5566_v8  ;;  %v18442_v8 = vld [vmem:[#allocation28_spill] sm:$0xff]  ;;  %vm7404_vm3 = vcmask 15360  }
 0x82a   : > { %11675 = vmatpush3.msra.mxu1 %v5574_v57 }
 0x82b   : > { %v7334_v39 = vpop.permute.xlu1 %7333  ;;  %11677 = vmatmul.mubr.msk.f32.vlgmr.msra.gmra.mxu1 %vm7172_vm14, %v5314_v3  ;;  %11692 = vmatprep.subr.mxu1 %v18387_v41  ;;  %v7336_v15 = vpop.permute.xlu0 %7335 }
 0x82c   : > { %v7345_v16 = vsel %vm861_vm0, 0.0, %v7334_v39  ;;  %11694 = vmatprep.mubr.msk.f32.mxu1 %vm12197_vm7, %v18387_v41  ;;  %v7346_v35 = vsel %vm861_vm0, 0.0, %v7336_v15 }
 0x82d   : > { %v7350_v11 = vsel %vm7349_vm10, %v7345_v16, 0.0  ;;  %v7351_v6 = vsel %vm7349_vm10, %v7346_v35, 0.0 }
 0x82e   : > { %v7358_v56 = vrot.slane %v7350_v11, 7  ;;  %v7359_v54 = vrot.slane %v7351_v6, 7 }
 0x82f   : > { %v7338_v4 = vpop.permute.xlu1 %7337  ;;  %v7340_v22 = vpop.permute.xlu0 %7339 }
 0x830   : > { %v7366_v53 = vsel %vm887_vm2, 0.0, %v7358_v56  ;;  %v7347_v59 = vsel %vm861_vm0, 0.0, %v7338_v4  ;;  %v7367_v47 = vsel %vm887_vm2, 0.0, %v7359_v54  ;;  %v7348_v21 = vsel %vm861_vm0, 0.0, %v7340_v22 }
 0x831   : > { %v7371_v52 = vsel %vm7370_vm6, %v7366_v53, 0.0  ;;  %v7352_v1 = vsel %vm7349_vm10, %v7347_v59, 0.0  ;;  %v7372_v18 = vsel %vm7370_vm6, %v7367_v47, 0.0  ;;  %v7353_v44 = vsel %vm7349_vm10, %v7348_v21, 0.0 }
 0x832   : > { %v7360_v10 = vrot.slane %v7352_v1, 7  ;;  %v7616_v46 = vrot.slane %v7371_v52, 2  ;;  %v7361_v61 = vrot.slane %v7353_v44, 7  ;;  %v7617_v45 = vrot.slane %v7372_v18, 2 }
 0x833   : > { %v7494_v36 = vrot.slane %v7371_v52, 1  ;;  %v7495_v62 = vrot.slane %v7372_v18, 1 }
 0x834   : > { %v7368_v43 = vsel %vm887_vm2, 0.0, %v7360_v10  ;;  %7654 = vrot.lane.b32.xlu1 %v7616_v46, %s12185_s5  ;;  %v7369_v5 = vsel %vm887_vm2, 0.0, %v7361_v61  ;;  %7656 = vrot.lane.b32.xlu0 %v7617_v45, %s12185_s5 }
 0x835   : > { %v7373_v7 = vsel %vm7370_vm6, %v7368_v43, 0.0  ;;  %v7374_v33 = vsel %vm7370_vm6, %v7369_v5, 0.0 }
 0x836   : > { %v7375_v25 = vcombine.low %v7371_v52, %v7373_v7  ;;  %v7618_v29 = vrot.slane %v7373_v7, 2  ;;  %v7496_v23 = vrot.slane %v7373_v7, 1  ;;  %v7383_v28 = vcombine.low %v7372_v18, %v7374_v33 }
 0x837   : > { %v7619_v24 = vrot.slane %v7374_v33, 2  ;;  %v7497_v50 = vrot.slane %v7374_v33, 1 }
 0x838   : > { %7658 = vrot.lane.b32.xlu1 %v7618_v29, %s12185_s5  ;;  %v7624_v58 = vcombine.low %v7616_v46, %v7618_v29  ;;  %v7502_v32 = vcombine.low %v7494_v36, %v7496_v23  ;;  %v16352_v9 = vrot.slane %v7375_v25, %v18441_v40  ;;  %v16356_v37 = vrot.slane %v7383_v28, %v18441_v40 }
 0x839   : > { %7660 = vrot.lane.b32.xlu0 %v7619_v24, %s12185_s5  ;;  %v7632_v26 = vcombine.low %v7617_v45, %v7619_v24  ;;  %v7510_v60 = vcombine.low %v7495_v62, %v7497_v50 }
 0x83a   : > { %v7631_v19 = vrot.slane %v7624_v58, %v18441_v40  ;;  %v16360_v38 = vrot.slane %v7502_v32, %v18441_v40  ;;  %v7391_v48 = vcombine.low %v16352_v9, %v16356_v37  ;;  %v7328_v9 = vld [vmem:[%s18089_s13] sm:$0xff] }
 0x83b   : > { %v7639_v14 = vrot.slane %v7632_v26, %v18441_v40  ;;  %v16364_v12 = vrot.slane %v7510_v60, %v18441_v40 }
 0x83c   : > { %7696 = vrot.lane.b32.xlu1 %v7616_v46, %s12187_s17 }
 0x83d   : > { %7698 = vrot.lane.b32.xlu0 %v7617_v45, %s12187_s17  ;;  %v7640_v30 = vcombine.low %v7631_v19, %v7639_v14  ;;  %v7518_v20 = vcombine.low %v16360_v38, %v16364_v12 }
 0x83f   : > { %v16409_v21 = vrot.slane %v7640_v30, %v18442_v8 }
 0x840   : > { %7700 = vrot.lane.b32.xlu1 %v7618_v29, %s12187_s17  ;;  %v16426_v29 = vrot.slane %v7518_v20, %v18442_v8 }
 0x841   : > { %7702 = vrot.lane.b32.xlu0 %v7619_v24, %s12187_s17  ;;  %v7648_v45 = vcombine.high %v16409_v21, %v18387_v41 }
 0x842   : > { %v7526_v58 = vcombine.high %v16426_v29, %v18387_v41 }
 0x844   : > { %7574 = vrot.lane.b32.xlu1 %v7494_v36, %s12187_s17 }
 0x845   : > { %7576 = vrot.lane.b32.xlu0 %v7495_v62, %s12187_s17 }
 0x848   : > { %7578 = vrot.lane.b32.xlu1 %v7496_v23, %s12187_s17 }
 0x849   : > { %7580 = vrot.lane.b32.xlu0 %v7497_v50, %s12187_s17 }
 0x84c   : > { %7532 = vrot.lane.b32.xlu1 %v7494_v36, %s12185_s5 }
 0x84d   : > { %7534 = vrot.lane.b32.xlu0 %v7495_v62, %s12185_s5 }
 0x850   : > { %7536 = vrot.lane.b32.xlu1 %v7496_v23, %s12185_s5 }
 0x851   : > { %7538 = vrot.lane.b32.xlu0 %v7497_v50, %s12185_s5 }
 0x854   : > { %7410 = vrot.lane.b32.xlu1 %v7371_v52, %s12185_s5 }
 0x855   : > { %7412 = vrot.lane.b32.xlu0 %v7372_v18, %s12185_s5 }
 0x858   : > { %7414 = vrot.lane.b32.xlu1 %v7373_v7, %s12185_s5 }
 0x859   : > { %7416 = vrot.lane.b32.xlu0 %v7374_v33, %s12185_s5 }
 0x85c   : > { %7452 = vrot.lane.b32.xlu1 %v7371_v52, %s12187_s17 }
 0x85d   : > { %7454 = vrot.lane.b32.xlu0 %v7372_v18, %s12187_s17 }
 0x860   : > { %7456 = vrot.lane.b32.xlu1 %v7373_v7, %s12187_s17 }
 0x861   : > { %7458 = vrot.lane.b32.xlu0 %v7374_v33, %s12187_s17 }
 0x864   : > { %7169 = vperm.xlu1 %11883, %v5315_v2  }
 0x8a6   : > { %v7655_v51 = vpop.permute.xlu1 %7654  ;;  %v7657_v0 = vpop.permute.xlu0 %7656 }
 0x8aa   : > { %v7659_v17 = vpop.permute.xlu1 %7658 }
 0x8ab   : > { %v7666_v63 = vcombine.low %v7655_v51, %v7659_v17  ;;  %v7661_v13 = vpop.permute.xlu0 %7660 }
 0x8ac   : > { %v7674_v49 = vcombine.low %v7657_v0, %v7661_v13 }
 0x8ad   : > { %v7673_v34 = vrot.slane %v7666_v63, %v18441_v40 }
 0x8ae   : > { %v7681_v27 = vrot.slane %v7674_v49, %v18441_v40  ;;  %v7697_v42 = vpop.permute.xlu1 %7696 }
 0x8af   : > { %v7699_v31 = vpop.permute.xlu0 %7698 }
 0x8b0   : > { %v7682_v55 = vcombine.low %v7673_v34, %v7681_v27  ;;  %v7398_v27 = vrot.slane %v7391_v48, %v18442_v8 }
 0x8b2   : > { %v16396_v3 = vrot.slane %v7682_v55, %v18442_v8  ;;  %v7701_v57 = vpop.permute.xlu1 %7700 }
 0x8b3   : > { %v7708_v39 = vcombine.low %v7697_v42, %v7701_v57  ;;  %v7703_v16 = vpop.permute.xlu0 %7702  ;;  %v7399_v57 = vcombine.high %v7398_v27, %v18387_v41 }
 0x8b4   : > { %v7716_v15 = vcombine.low %v7699_v31, %v7703_v16  ;;  %v7690_v11 = vcombine.high %v16396_v3, %v18387_v41 }
 0x8b5   : > { %v7715_v35 = vrot.slane %v7708_v39, %v18441_v40 }
 0x8b6   : > { %v7723_v56 = vrot.slane %v7716_v15, %v18441_v40  ;;  %7692 = vrot.lane.b32.xlu0 %v7690_v11, %s12208_s2  ;;  %v7575_v6 = vpop.permute.xlu1 %7574 }
 0x8b7   : > { %v7577_v54 = vpop.permute.xlu0 %7576 }
 0x8b8   : > { %v7724_v4 = vcombine.low %v7715_v35, %v7723_v56 }
 0x8ba   : > { %v16404_v53 = vrot.slane %v7724_v4, %v18442_v8  ;;  %v7579_v59 = vpop.permute.xlu1 %7578 }
 0x8bb   : > { %v7586_v22 = vcombine.low %v7575_v6, %v7579_v59  ;;  %v7581_v52 = vpop.permute.xlu0 %7580 }
 0x8bc   : > { %v7594_v47 = vcombine.low %v7577_v54, %v7581_v52  ;;  %v7732_v1 = vcombine.high %v16404_v53, %v18387_v41 }
 0x8bd   : > { %v7593_v18 = vrot.slane %v7586_v22, %v18441_v40 }
 0x8be   : > { %v7601_v10 = vrot.slane %v7594_v47, %v18441_v40  ;;  %7734 = vrot.lane.b32.xlu1 %v7732_v1, %s12208_s2  ;;  %v7533_v44 = vpop.permute.xlu1 %7532 }
 0x8bf   : > { %v7535_v46 = vpop.permute.xlu0 %7534 }
 0x8c0   : > { %v7602_v61 = vcombine.low %v7593_v18, %v7601_v10 }
 0x8c2   : > { %v16417_v43 = vrot.slane %v7602_v61, %v18442_v8  ;;  %7650 = vrot.lane.b32.xlu1 %v7648_v45, %s12208_s2  ;;  %v7537_v7 = vpop.permute.xlu1 %7536 }
 0x8c3   : > { %v7544_v5 = vcombine.low %v7533_v44, %v7537_v7  ;;  %v7539_v36 = vpop.permute.xlu0 %7538 }
 0x8c4   : > { %v7552_v25 = vcombine.low %v7535_v46, %v7539_v36  ;;  %v7610_v33 = vcombine.high %v16417_v43, %v18387_v41 }
 0x8c5   : > { %v7551_v23 = vrot.slane %v7544_v5, %v18441_v40 }
 0x8c6   : > { %v7559_v28 = vrot.slane %v7552_v25, %v18441_v40  ;;  %7612 = vrot.lane.b32.xlu0 %v7610_v33, %s12208_s2  ;;  %v7411_v24 = vpop.permute.xlu1 %7410 }
 0x8c7   : > { %v7413_v62 = vpop.permute.xlu0 %7412 }
 0x8c8   : > { %v7560_v50 = vcombine.low %v7551_v23, %v7559_v28  ;;  %v7327_v28 = vld [vmem:[#allocation10] sm:$0xff] }
 0x8ca   : > { %v7567_v32 = vrot.slane %v7560_v50, %v18442_v8  ;;  %7528 = vrot.lane.b32.xlu0 %v7526_v58, %s12208_s2  ;;  %v7415_v26 = vpop.permute.xlu1 %7414  ;;  %v7836_v50 = vld [vmem:[%s18094_s18] sm:$0xf] }
 0x8cb   : > { %v7422_v60 = vcombine.low %v7411_v24, %v7415_v26  ;;  %v7417_v19 = vpop.permute.xlu0 %7416  ;;  %11693 = vmatpush3.msk.msra.mxu1 %vm3015_vm15, %v7836_v50 }
 0x8cc   : > { %v7430_v38 = vcombine.low %v7413_v62, %v7417_v19  ;;  %v7568_v14 = vcombine.high %v7567_v32, %v18387_v41  ;;  %v11885_v62 = vld [vmem:[%s18095_s19] sm:$0xff]  ;;  %11697 = vmatprep.subr.mxu1 %v18387_v41 }
 0x8cd   : > { %v7429_v12 = vrot.slane %v7422_v60, %v18441_v40 }
 0x8ce   : > { %v7437_v30 = vrot.slane %v7430_v38, %v18441_v40  ;;  %7570 = vrot.lane.b32.xlu1 %v7568_v14, %s12208_s2  ;;  %v7453_v20 = vpop.permute.xlu1 %7452 }
 0x8cf   : > { %v7455_v2 = vpop.permute.xlu0 %7454 }
 0x8d0   : > { %v7438_v51 = vcombine.low %v7429_v12, %v7437_v30 }
 0x8d2   : > { %v7445_v0 = vrot.slane %v7438_v51, %v18442_v8  ;;  %v7457_v17 = vpop.permute.xlu1 %7456 }
 0x8d3   : > { %v7464_v63 = vcombine.low %v7453_v20, %v7457_v17  ;;  %v7459_v13 = vpop.permute.xlu0 %7458 }
 0x8d4   : > { %v7472_v49 = vcombine.low %v7455_v2, %v7459_v13  ;;  %v7446_v34 = vcombine.high %v7445_v0, %v18387_v41 }
 0x8d5   : > { %v7471_v42 = vrot.slane %v7464_v63, %v18441_v40 }
 0x8d6   : > { %v7479_v31 = vrot.slane %v7472_v49, %v18441_v40  ;;  %7448 = vrot.lane.b32.xlu0 %v7446_v34, %s12208_s2 }
 0x8d8   : > { %v7480_v55 = vcombine.low %v7471_v42, %v7479_v31 }
 0x8da   : > { %v7487_v39 = vrot.slane %v7480_v55, %v18442_v8  ;;  %7401 = vrot.lane.b32.xlu0 %v7399_v57, %s12208_s2 }
 0x8dc   : > { %v7488_v16 = vcombine.high %v7487_v39, %v18387_v41 }
 0x8de   : > { %7490 = vrot.lane.b32.xlu1 %v7488_v16, %s12208_s2  ;;  %s18461_s2 = smov 12  }
 0x8df   : > { %v7170_v37 = vpop.permute.xlu1 %7169 }
 0x8e2   : > { %7756 = vperm.xlu1 %11883, %v7328_v9  }
 0x8eb   : > { %v7242_v48 = vpop.f32.mrf.mxu1 }
 0x8ec   : > { %v7243_v15 = vadd.f32 %v7242_v48, %v7170_v37 }
 0x8ed   : > { %v11678_v11 = vpop.f32.mrf.mxu1 }
 0x8ee   : > { %v7246_v35 = vmax.f32 %v7243_v15, 0.0 }
 0x8f0   : > { %11550 = vmatmul.mubr.msk.f32.vlgmr.msra.gmra.mxu0 %vm1118_vm12, %v7246_v35 }
 0x8f1   : > { %11689 = vmatprep.mubr.msk.f32.mxu0 %vm12197_vm7, %v18387_v41 }
 0x928   : > { %v7693_v56 = vpop.permute.xlu0 %7692 }
 0x929   : > { %v7695_v54 = vsel %vm7404_vm3, %v16396_v3, %v7693_v56 }
 0x92a   : > { %v7748_v59 = vrot.slane %v7695_v54, 4 }
 0x930   : > { %v7735_v6 = vpop.permute.xlu1 %7734 }
 0x931   : > { %v7737_v4 = vsel %vm7404_vm3, %v16404_v53, %v7735_v6 }
 0x932   : > { %11680 = vmatpush3.msk.msra.mxu0 %vm3015_vm15, %v7737_v4 }
 0x933   : > { %11681 = vmatprep.subr.mxu0 %v18387_v41 }
 0x934   : > { %v7651_v22 = vpop.permute.xlu1 %7650 }
 0x935   : > { %v7653_v52 = vsel %vm7404_vm3, %v16409_v21, %v7651_v22 }
 0x936   : > { %v7753_v47 = vsel %vm3015_vm15, %v7653_v52, %v7748_v59 }
 0x937   : > { %11682 = vmatpush3.msra.mxu0 %v7753_v47 }
 0x938   : > { %11683 = vmatprep.subr.mxu0 %v18387_v41  ;;  %v7613_v1 = vpop.permute.xlu0 %7612 }
 0x939   : > { %v7615_v3 = vsel %vm7404_vm3, %v16417_v43, %v7613_v1 }
 0x93a   : > { %v7745_v18 = vrot.slane %v7615_v3, 4 }
 0x93c   : > { %v7529_v46 = vpop.permute.xlu0 %7528 }
 0x93d   : > { %v7531_v61 = vsel %vm7404_vm3, %v16426_v29, %v7529_v46  ;;  %v11884_v29 = vld [vmem:[%s18095_s19 + $0x8] sm:$0xff] }
 0x93e   : > { %v7742_v5 = vrot.slane %v7531_v61, 4 }
 0x940   : > { %v7571_v53 = vpop.permute.xlu1 %7570 }
 0x941   : > { %v7573_v10 = vsel %vm7404_vm3, %v7567_v32, %v7571_v53 }
 0x942   : > { %v7752_v44 = vsel %vm3015_vm15, %v7573_v10, %v7745_v18 }
 0x943   : > { %11684 = vmatpush3.msra.mxu0 %v7752_v44 }
 0x944   : > { %11685 = vmatprep.subr.mxu0 %v18387_v41 }
 0x948   : > { %v7449_v21 = vpop.permute.xlu0 %7448 }
 0x949   : > { %v7451_v7 = vsel %vm7404_vm3, %v7445_v0, %v7449_v21 }
 0x94a   : > { %v7739_v33 = vrot.slane %v7451_v7, 4 }
 0x94c   : > { %v7402_v45 = vpop.permute.xlu0 %7401 }
 0x94d   : > { %v7405_v43 = vsel %vm7404_vm3, %v7398_v27, %v7402_v45 }
 0x94e   : > { %v7750_v24 = vsel %vm3015_vm15, %v7405_v43, %v7739_v33 }
 0x950   : > { %v7491_v36 = vpop.permute.xlu1 %7490 }
 0x951   : > { %v7493_v25 = vsel %vm7404_vm3, %v7487_v39, %v7491_v36  ;;  %vm18447_vm3 = vcmask 1044480  }
 0x952   : > { %v7751_v23 = vsel %vm3015_vm15, %v7493_v25, %v7742_v5  ;;  %vm18444_vm15 = vcmask 39936  }
 0x953   : > { %11686 = vmatpush3.msra.mxu0 %v7751_v23  ;;  %vm18445_vm10 = vmmov %vm18444_vm15 }
 0x954   : > { %11687 = vmatprep.subr.mxu0 %v18387_v41  ;;  %vm18446_vm6 = vmmov %vm18445_vm10 }
 0x955   : > { %11688 = vmatpush3.msra.mxu0 %v7750_v24 }
 0x956   : > { %11690 = vmatmul.mubr.msk.f32.vlgmr.msra.gmra.mxu0 %vm3029_vm4, %v7327_v28  ;;  %11718 = vmatprep.subr.mxu0 %v18387_v41  ;;  %vm18443_vm4 = vcmask 31744  }
 0x957   : > { %11719 = vmatpush3.msra.mxu0 %v11884_v29  ;;  %11722 = vmatprep.mubr.msk.f32.mxu0 %vm12197_vm7, %v18387_v41 }
 0x958   : > { %11720 = vmatprep.subr.mxu0 %v18387_v41 }
 0x959   : > { %11721 = vmatpush3.msra.mxu0 %v11885_v62 }
 0x95a   : > { %11725 = vmatprep.subr.mxu0 %v18387_v41 }
 0x95d   : > { %v7757_v26 = vpop.permute.xlu1 %7756 }
 0x9b0   : > { %v16499_v58 = vpop.f32.mrf.mxu0 }
 0x9b2   : > { %v16501_v32 = vpop.f32.mrf.mxu0 }
 0xa16   : > { %v7831_v60 = vpop.f32.mrf.mxu0 }
 0xa17   : > { %v7832_v19 = vadd.f32 %v7831_v60, %v7757_v26 }
 0xa18   : > { %v11691_v38 = vpop.f32.mrf.mxu0 }
 0xa19   : > { %v7835_v14 = vmax.f32 %v7832_v19, 0.0 }
 0xa1b   : > { %11695 = vmatmul.mubr.msk.f32.vlgmr.msra.gmra.mxu1 %vm18443_vm4, %v7835_v14  ;;  %vm18448_vm4 = vmmov %vm18446_vm6 }
 0xa1c   : > { %11715 = vmatprep.mubr.msk.f32.mxu1 %vm12197_vm7, %v18387_v41 }
 0xadb   : > { %v7909_v12 = vpop.f32.mrf.mxu1 }
 0xadc   : > { %7917 = vrot.lane.b32.xlu1 %v7909_v12, %s12204_s26  ;;  %7914 = vrot.lane.b32.xlu0 %v7909_v12, %s12209_s3  ;;  %s18462_s3 = sld [smem:[#allocation80_spill]] }
 0xadd   : > { %v11696_v30 = vpop.f32.mrf.mxu1 }
 0xae0   : > { %7920 = vrot.lane.b32.xlu0 %v7909_v12, %s12210_s20 }
 0xb4e   : > { %v7918_v20 = vpop.permute.xlu1 %7917  ;;  %v7915_v2 = vpop.permute.xlu0 %7914 }
 0xb4f   : > { %v7923_v51 = vcombine.low %v7909_v12, %v7918_v20  ;;  %v7924_v13 = vcombine.high %v7909_v12, %v7918_v20 }
 0xb51   : > { %v7931_v49 = vrot.slane %v7923_v51, %v18441_v40  ;;  %v7938_v55 = vrot.slane %v7924_v13, %v18441_v40 }
 0xb52   : > { %v7921_v0 = vpop.permute.xlu0 %7920 }
 0xb53   : > { %v7939_v17 = vcombine.low %v7915_v2, %v7921_v0  ;;  %v7940_v63 = vcombine.high %v7915_v2, %v7921_v0 }
 0xb55   : > { %v7947_v34 = vrot.slane %v7939_v17, %v18441_v40  ;;  %v7954_v27 = vrot.slane %v7940_v63, %v18441_v40 }
 0xb57   : > { %v7955_v42 = vcombine.low %v7931_v49, %v7947_v34  ;;  %v7956_v31 = vcombine.high %v7931_v49, %v7947_v34  ;;  %v7971_v39 = vcombine.low %v7938_v55, %v7954_v27  ;;  %v7972_v37 = vcombine.high %v7938_v55, %v7954_v27 }
 0xb59   : > { %v7963_v57 = vrot.slane %v7955_v42, %v18442_v8  ;;  %v7970_v9 = vrot.slane %v7956_v31, %v18442_v8  ;;  %v7979_v15 = vrot.slane %v7971_v39, %v18442_v8  ;;  %v7986_v35 = vrot.slane %v7972_v37, %v18442_v8 }
 0xb5b   : > { %8001 = vrot.lane.b32.xlu1 %v7963_v57, %s12183_s14  ;;  %v7987_v16 = vcombine.high %v7963_v57, %v18387_v41  ;;  %v7988_v48 = vcombine.high %v7970_v9, %v18387_v41  ;;  %v7989_v11 = vcombine.high %v7979_v15, %v18387_v41  ;;  %v7990_v56 = vcombine.high %v7986_v35, %v18387_v41 }
 0xb5d   : > { %8003 = vrot.lane.b32.xlu0 %v7987_v16, %s12183_s14 }
 0xb5f   : > { %8005 = vrot.lane.b32.xlu1 %v7970_v9, %s12183_s14 }
 0xb61   : > { %8007 = vrot.lane.b32.xlu0 %v7988_v48, %s12183_s14 }
 0xb63   : > { %8009 = vrot.lane.b32.xlu1 %v7979_v15, %s12183_s14 }
 0xb65   : > { %8011 = vrot.lane.b32.xlu0 %v7989_v11, %s12183_s14 }
 0xb67   : > { %8013 = vrot.lane.b32.xlu1 %v7986_v35, %s12183_s14 }
 0xb69   : > { %8015 = vrot.lane.b32.xlu0 %v7990_v56, %s12183_s14 }
 0xbcd   : > { %v8002_v6 = vpop.permute.xlu1 %8001 }
 0xbce   : > { %v8025_v54 = vsel %vm861_vm0, 0.0, %v8002_v6 }
 0xbcf   : > { %v8033_v4 = vsel %vm18444_vm15, %v8025_v54, 0.0  ;;  %v8004_v59 = vpop.permute.xlu0 %8003  ;;  %vm18449_vm15 = vmmov %vm18447_vm3 }
 0xbd0   : > { %v8049_v22 = vrot.slane %v8033_v4, 7  ;;  %v8026_v52 = vsel %vm861_vm0, 0.0, %v8004_v59 }
 0xbd1   : > { %v8034_v47 = vsel %vm18445_vm10, %v8026_v52, 0.0  ;;  %v8006_v1 = vpop.permute.xlu1 %8005  ;;  %vm18450_vm10 = vmmov %vm18448_vm4 }
 0xbd2   : > { %v8065_v3 = vsel %vm887_vm2, 0.0, %v8049_v22  ;;  %v8050_v18 = vrot.slane %v8034_v47, 7  ;;  %v8027_v53 = vsel %vm861_vm0, 0.0, %v8006_v1 }
 0xbd3   : > { %v8035_v10 = vsel %vm18446_vm6, %v8027_v53, 0.0  ;;  %v8008_v44 = vpop.permute.xlu0 %8007  ;;  %v16535_v46 = vsel %vm18447_vm3, %v8065_v3, 0.0  ;;  %vm18451_vm6 = vmmov %vm18447_vm3 }
 0xbd4   : > { %v8066_v21 = vsel %vm887_vm2, 0.0, %v8050_v18  ;;  %v8051_v61 = vrot.slane %v8035_v10, 7  ;;  %v8028_v45 = vsel %vm861_vm0, 0.0, %v8008_v44  ;;  %8279 = vrot.lane.b32.xlu1 %v16535_v46, %s12187_s17  ;;  %v16554_v29 = vrot.slane %v16535_v46, 2  ;;  %vm18452_vm3 = vmmov %vm18448_vm4 }
 0xbd5   : > { %v8036_v7 = vsel %vm18448_vm4, %v8028_v45, 0.0  ;;  %v8010_v5 = vpop.permute.xlu1 %8009  ;;  %v16543_v36 = vsel %vm18449_vm15, %v8066_v21, 0.0  ;;  %vm18453_vm4 = vmmov %vm18451_vm6  ;;  %v16593_v55 = vrot.slane %v16535_v46, 1 }
 0xbd6   : > { %v8067_v43 = vsel %vm887_vm2, 0.0, %v8051_v61  ;;  %v8052_v25 = vrot.slane %v8036_v7, 7  ;;  %v8029_v33 = vsel %vm861_vm0, 0.0, %v8010_v5  ;;  %8281 = vrot.lane.b32.xlu0 %v16543_v36, %s12187_s17  ;;  %v16567_v12 = vrot.slane %v16543_v36, 2  ;;  %vm18454_vm15 = vmmov %vm18452_vm3 }
 0xbd7   : > { %v8037_v23 = vsel %vm18450_vm10, %v8029_v33, 0.0  ;;  %v8012_v28 = vpop.permute.xlu0 %8011  ;;  %v16551_v24 = vsel %vm18451_vm6, %v8067_v43, 0.0  ;;  %vm18455_vm10 = vmmov %vm18453_vm4  ;;  %v16602_v9 = vrot.slane %v16543_v36, 1 }
 0xbd8   : > { %v8068_v62 = vsel %vm887_vm2, 0.0, %v8052_v25  ;;  %v8053_v50 = vrot.slane %v8037_v23, 7  ;;  %v8030_v26 = vsel %vm861_vm0, 0.0, %v8012_v28  ;;  %8283 = vrot.lane.b32.xlu1 %v16551_v24, %s12187_s17  ;;  %v8081_v60 = vcombine.low %v16535_v46, %v16551_v24  ;;  %vm18456_vm6 = vmmov %vm18452_vm3 }
 0xbd9   : > { %v8038_v19 = vsel %vm18452_vm3, %v8030_v26, 0.0  ;;  %v8014_v38 = vpop.permute.xlu1 %8013  ;;  %v16564_v14 = vsel %vm18453_vm4, %v8068_v62, 0.0  ;;  %v16570_v30 = vrot.slane %v16551_v24, 2  ;;  %v16586_v34 = vrot.slane %v16551_v24, 1  ;;  %vm18457_vm3 = vmmov %vm18453_vm4 }
 0xbda   : > { %v8069_v20 = vsel %vm887_vm2, 0.0, %v8053_v50  ;;  %v8054_v2 = vrot.slane %v8038_v19, 7  ;;  %v8031_v51 = vsel %vm861_vm0, 0.0, %v8014_v38  ;;  %8285 = vrot.lane.b32.xlu0 %v16564_v14, %s12187_s17  ;;  %v8089_v0 = vcombine.low %v16543_v36, %v16564_v14  ;;  %vm18458_vm4 = vmmov %vm18457_vm3 }
 0xbdb   : > { %v8039_v17 = vsel %vm18454_vm15, %v8031_v51, 0.0  ;;  %v8016_v63 = vpop.permute.xlu0 %8015  ;;  %v16580_v13 = vsel %vm18455_vm10, %v8069_v20, 0.0  ;;  %v16583_v49 = vrot.slane %v16564_v14, 2  ;;  %v8715_v15 = vcombine.low %v16554_v29, %v16570_v30  ;;  %vm18459_vm15 = vmmov %vm18457_vm3 }
 0xbdc   : > { %v8070_v27 = vsel %vm887_vm2, 0.0, %v8054_v2  ;;  %v8055_v42 = vrot.slane %v8039_v17, 7  ;;  %v8032_v31 = vsel %vm861_vm0, 0.0, %v8016_v63  ;;  %8287 = vrot.lane.b32.xlu1 %v16580_v13, %s12187_s17  ;;  %v16610_v11 = vrot.slane %v16564_v14, 1 }
 0xbdd   : > { %v8040_v57 = vsel %vm18456_vm6, %v8032_v31, 0.0  ;;  %v16597_v39 = vsel %vm18457_vm3, %v8070_v27, 0.0  ;;  %v8723_v16 = vcombine.low %v16567_v12, %v16583_v49  ;;  %v16616_v56 = vrot.slane %v16580_v13, 2 }
 0xbde   : > { %v8071_v37 = vsel %vm887_vm2, 0.0, %v8055_v42  ;;  %v8056_v48 = vrot.slane %v8040_v57, 7  ;;  %8289 = vrot.lane.b32.xlu0 %v16597_v39, %s12187_s17  ;;  %v16619_v6 = vrot.slane %v16597_v39, 2  ;;  %v8402_v54 = vcombine.low %v16593_v55, %v16586_v34 }
 0xbdf   : > { %v16613_v35 = vsel %vm18458_vm4, %v8071_v37, 0.0  ;;  %v8410_v22 = vcombine.low %v16602_v9, %v16610_v11  ;;  %v16630_v52 = vrot.slane %v16580_v13, 1  ;;  %v16636_v1 = vrot.slane %v16597_v39, 1 }
 0xbe0   : > { %v8072_v4 = vsel %vm887_vm2, 0.0, %v8056_v48  ;;  %8291 = vrot.lane.b32.xlu1 %v16613_v35, %s12187_s17  ;;  %v8705_v59 = vrot.slane %v16613_v35, 2  ;;  %v16639_v3 = vrot.slane %v16613_v35, 1  ;;  %v16642_v18 = vrot.slane %v8723_v16, %v18441_v40 }
 0xbe1   : > { %v16633_v47 = vsel %vm18459_vm15, %v8072_v4, 0.0  ;;  %v8097_v53 = vcombine.low %v16580_v13, %v16613_v35  ;;  %v16658_v7 = vrot.slane %v8410_v22, %v18441_v40  ;;  %v16661_v5 = vrot.slane %v8715_v15, %v18441_v40 }
 0xbe2   : > { %8293 = vrot.lane.b32.xlu0 %v16633_v47, %s12187_s17  ;;  %v8731_v10 = vcombine.low %v16616_v56, %v8705_v59  ;;  %v8706_v44 = vrot.slane %v16633_v47, 2  ;;  %v16651_v21 = vrot.slane %v16633_v47, 1  ;;  %v8105_v61 = vcombine.low %v16597_v39, %v16633_v47 }
 0xbe3   : > { %v8418_v45 = vcombine.low %v16630_v52, %v16639_v3  ;;  %v16669_v33 = vrot.slane %v8402_v54, %v18441_v40  ;;  %v8747_v28 = vcombine.low %v16661_v5, %v16642_v18  ;;  %v16688_v19 = vrot.slane %v8089_v0, %v18441_v40 }
 0xbe4   : > { %8172 = vrot.lane.b32.xlu1 %v16535_v46, %s12185_s5  ;;  %v8739_v43 = vcombine.low %v16619_v6, %v8706_v44  ;;  %v8426_v25 = vcombine.low %v16636_v1, %v16651_v21  ;;  %v16672_v23 = vrot.slane %v8731_v10, %v18441_v40  ;;  %v16699_v20 = vrot.slane %v8097_v53, %v18441_v40 }
 0xbe5   : > { %v16679_v62 = vrot.slane %v8418_v45, %v18441_v40  ;;  %v8434_v38 = vcombine.low %v16669_v33, %v16658_v7  ;;  %v16702_v2 = vrot.slane %v8105_v61, %v18441_v40  ;;  %v16728_v42 = vrot.slane %v8747_v28, %v18442_v8 }
 0xbe6   : > { %8174 = vrot.lane.b32.xlu0 %v16543_v36, %s12185_s5  ;;  %v16682_v50 = vrot.slane %v8426_v25, %v18441_v40  ;;  %v16685_v26 = vrot.slane %v8739_v43, %v18441_v40  ;;  %v16696_v36 = vrot.slane %v8081_v60, %v18441_v40  ;;  %vm18463_vm10 = vcmask 31744  }
 0xbe7   : > { %v8129_v60 = vcombine.low %v16699_v20, %v16702_v2  ;;  %v16725_v27 = vrot.slane %v8434_v38, %v18442_v8  ;;  %vm18464_vm6 = vcmask 97280   ;;  %vm18465_vm3 = vmmov %vm18463_vm10 }
 0xbe8   : > { %8176 = vrot.lane.b32.xlu1 %v16551_v24, %s12185_s5  ;;  %v8450_v51 = vcombine.low %v16679_v62, %v16682_v50  ;;  %v8763_v0 = vcombine.low %v16672_v23, %v16685_v26  ;;  %v8113_v46 = vcombine.low %v16696_v36, %v16688_v19  ;;  %v8114_v17 = vcombine.high %v16696_v36, %v16688_v19  ;;  %vm18466_vm4 = vmmov %vm18465_vm3 }
 0xbe9   : > { %v16731_v31 = vrot.slane %v8129_v60, %v18442_v8  ;;  %vm18467_vm15 = vmmov %vm18464_vm6 }
 0xbea   : > { %8178 = vrot.lane.b32.xlu0 %v16564_v14, %s12185_s5  ;;  %v16719_v24 = vrot.slane %v8450_v51, %v18442_v8  ;;  %v16722_v63 = vrot.slane %v8763_v0, %v18442_v8  ;;  %v16736_v14 = vrot.slane %v8113_v46, %v18442_v8 }
 0xbec   : > { %8905 = vrot.lane.b32.xlu1 %v16554_v29, %s12187_s17  ;;  %v8466_v57 = vcombine.low %v16725_v27, %v16719_v24  ;;  %v8779_v16 = vcombine.low %v16728_v42, %v16722_v63  ;;  %v8145_v37 = vcombine.low %v16736_v14, %v16731_v31 }
 0xbee   : > { %8907 = vrot.lane.b32.xlu0 %v16567_v12, %s12187_s17 }
 0xbf0   : > { %8909 = vrot.lane.b32.xlu1 %v16570_v30, %s12187_s17 }
 0xbf2   : > { %8911 = vrot.lane.b32.xlu0 %v16583_v49, %s12187_s17 }
 0xbf4   : > { %8913 = vrot.lane.b32.xlu1 %v16616_v56, %s12187_s17 }
 0xbf6   : > { %8915 = vrot.lane.b32.xlu0 %v16619_v6, %s12187_s17 }
 0xbf8   : > { %8917 = vrot.lane.b32.xlu1 %v8705_v59, %s12187_s17 }
 0xbfa   : > { %8919 = vrot.lane.b32.xlu0 %v8706_v44, %s12187_s17 }
 0xbfc   : > { %8798 = vrot.lane.b32.xlu1 %v16554_v29, %s12185_s5  ;;  %v8451_v29 = vcombine.high %v16679_v62, %v16682_v50 }
 0xbfe   : > { %8800 = vrot.lane.b32.xlu0 %v16567_v12, %s12185_s5  ;;  %v8435_v12 = vcombine.high %v16669_v33, %v16658_v7 }
 0xc00   : > { %8802 = vrot.lane.b32.xlu1 %v16570_v30, %s12185_s5  ;;  %v8764_v30 = vcombine.high %v16672_v23, %v16685_v26 }
 0xc02   : > { %8804 = vrot.lane.b32.xlu0 %v16583_v49, %s12185_s5  ;;  %v8465_v49 = vrot.slane %v8451_v29, %v18442_v8 }
 0xc04   : > { %8806 = vrot.lane.b32.xlu1 %v16616_v56, %s12185_s5 }
 0xc06   : > { %8808 = vrot.lane.b32.xlu0 %v16619_v6, %s12185_s5 }
 0xc08   : > { %8810 = vrot.lane.b32.xlu1 %v8705_v59, %s12185_s5 }
 0xc0a   : > { %8812 = vrot.lane.b32.xlu0 %v8706_v44, %s12185_s5 }
 0xc0c   : > { %8592 = vrot.lane.b32.xlu1 %v16593_v55, %s12187_s17 }
 0xc0e   : > { %8594 = vrot.lane.b32.xlu0 %v16602_v9, %s12187_s17 }
 0xc10   : > { %8596 = vrot.lane.b32.xlu1 %v16586_v34, %s12187_s17 }
 0xc12   : > { %8598 = vrot.lane.b32.xlu0 %v16610_v11, %s12187_s17 }
 0xc14   : > { %8600 = vrot.lane.b32.xlu1 %v16630_v52, %s12187_s17 }
 0xc16   : > { %8602 = vrot.lane.b32.xlu0 %v16636_v1, %s12187_s17 }
 0xc18   : > { %8604 = vrot.lane.b32.xlu1 %v16639_v3, %s12187_s17 }
 0xc1a   : > { %8606 = vrot.lane.b32.xlu0 %v16651_v21, %s12187_s17 }
 0xc1c   : > { %8485 = vrot.lane.b32.xlu1 %v16593_v55, %s12185_s5  ;;  %v8780_v55 = vcombine.high %v16728_v42, %v16722_v63 }
 0xc1e   : > { %8487 = vrot.lane.b32.xlu0 %v16602_v9, %s12185_s5  ;;  %v8778_v9 = vrot.slane %v8764_v30, %v18442_v8 }
 0xc20   : > { %8489 = vrot.lane.b32.xlu1 %v16586_v34, %s12185_s5  ;;  %v8748_v34 = vcombine.high %v16661_v5, %v16642_v18 }
 0xc22   : > { %8491 = vrot.lane.b32.xlu0 %v16610_v11, %s12185_s5  ;;  %v8762_v15 = vrot.slane %v8748_v34, %v18442_v8 }
 0xc24   : > { %8493 = vrot.lane.b32.xlu1 %v16630_v52, %s12185_s5  ;;  %v8781_v11 = vcombine.low %v8762_v15, %v8778_v9  ;;  %v8782_v56 = vcombine.high %v8762_v15, %v8778_v9 }
 0xc26   : > { %8495 = vrot.lane.b32.xlu0 %v16636_v1, %s12185_s5 }
 0xc28   : > { %8497 = vrot.lane.b32.xlu1 %v16639_v3, %s12185_s5 }
 0xc2a   : > { %8499 = vrot.lane.b32.xlu0 %v16651_v21, %s12185_s5 }
 0xc2c   : > { %8180 = vrot.lane.b32.xlu1 %v16580_v13, %s12185_s5  ;;  %v8467_v13 = vcombine.high %v16725_v27, %v16719_v24 }
 0xc2e   : > { %8182 = vrot.lane.b32.xlu0 %v16597_v39, %s12185_s5  ;;  %v8449_v39 = vrot.slane %v8435_v12, %v18442_v8 }
 0xc30   : > { %8184 = vrot.lane.b32.xlu1 %v16613_v35, %s12185_s5  ;;  %v8468_v48 = vcombine.low %v8449_v39, %v8465_v49  ;;  %v8469_v35 = vcombine.high %v8449_v39, %v8465_v49 }
 0xc32   : > { %8186 = vrot.lane.b32.xlu0 %v16633_v47, %s12185_s5 }
 0xc34   : > { %8471 = vrot.lane.b32.xlu1 %v8467_v13, %s18460_s16 }
 0xc36   : > { %8784 = vrot.lane.b32.xlu0 %v8780_v55, %s18460_s16 }
 0xc38   : > { %8475 = vrot.lane.b32.xlu1 %v8468_v48, %s12189_s15 }
 0xc3a   : > { %8788 = vrot.lane.b32.xlu0 %v8781_v11, %s12189_s15 }
 0xc3c   : > { %8479 = vrot.lane.b32.xlu1 %v8469_v35, %s18461_s2 }
 0xc3e   : > { %8792 = vrot.lane.b32.xlu0 %v8782_v56, %s18461_s2 }
 0xc46   : > { %v8280_v6 = vpop.permute.xlu1 %8279 }
 0xc48   : > { %v8282_v54 = vpop.permute.xlu0 %8281 }
 0xc4a   : > { %v8284_v4 = vpop.permute.xlu1 %8283 }
 0xc4b   : > { %v8303_v1 = vcombine.low %v8280_v6, %v8284_v4 }
 0xc4c   : > { %v8286_v59 = vpop.permute.xlu0 %8285 }
 0xc4d   : > { %v8311_v52 = vcombine.low %v8282_v54, %v8286_v59  ;;  %v8310_v44 = vrot.slane %v8303_v1, %v18441_v40 }
 0xc4e   : > { %v8288_v22 = vpop.permute.xlu1 %8287 }
 0xc4f   : > { %v8318_v18 = vrot.slane %v8311_v52, %v18441_v40 }
 0xc50   : > { %v8290_v47 = vpop.permute.xlu0 %8289 }
 0xc51   : > { %v8335_v45 = vcombine.low %v8310_v44, %v8318_v18  ;;  %v8336_v28 = vcombine.high %v8310_v44, %v8318_v18 }
 0xc52   : > { %v8292_v3 = vpop.permute.xlu1 %8291 }
 0xc53   : > { %v8319_v53 = vcombine.low %v8288_v22, %v8292_v3  ;;  %v16843_v62 = vrot.slane %v8335_v45, %v18442_v8  ;;  %v8350_v60 = vrot.slane %v8336_v28, %v18442_v8 }
 0xc54   : > { %v8294_v10 = vpop.permute.xlu0 %8293 }
 0xc55   : > { %v8327_v21 = vcombine.low %v8290_v47, %v8294_v10  ;;  %v8326_v7 = vrot.slane %v8319_v53, %v18441_v40 }
 0xc56   : > { %v16834_v61 = vpop.permute.xlu1 %8172 }
 0xc57   : > { %v8334_v5 = vrot.slane %v8327_v21, %v18441_v40 }
 0xc58   : > { %v16838_v43 = vpop.permute.xlu0 %8174 }
 0xc59   : > { %v8351_v25 = vcombine.low %v8326_v7, %v8334_v5  ;;  %v8352_v33 = vcombine.high %v8326_v7, %v8334_v5 }
 0xc5a   : > { %v16840_v23 = vpop.permute.xlu1 %8176 }
 0xc5b   : > { %v16846_v50 = vrot.slane %v8351_v25, %v18442_v8  ;;  %v8366_v38 = vrot.slane %v8352_v33, %v18442_v8 }
 0xc5c   : > { %v16848_v26 = vpop.permute.xlu0 %8178 }
 0xc5d   : > { %v8368_v51 = vcombine.high %v16843_v62, %v16846_v50  ;;  %v8367_v46 = vcombine.low %v16843_v62, %v16846_v50  ;;  %v8369_v12 = vcombine.low %v8350_v60, %v8366_v38  ;;  %v8370_v49 = vcombine.high %v8350_v60, %v8366_v38 }
 0xc5e   : > { %v8906_v0 = vpop.permute.xlu1 %8905 }
 0xc5f   : > { %8372 = vrot.lane.b32.xlu0 %v8368_v51, %s18460_s16 }
 0xc60   : > { %v8908_v29 = vpop.permute.xlu0 %8907 }
 0xc62   : > { %v8910_v30 = vpop.permute.xlu1 %8909 }
 0xc63   : > { %8376 = vrot.lane.b32.xlu0 %v8369_v12, %s12189_s15  ;;  %v8929_v9 = vcombine.low %v8906_v0, %v8910_v30 }
 0xc64   : > { %v8912_v13 = vpop.permute.xlu0 %8911 }
 0xc65   : > { %v8937_v55 = vcombine.low %v8908_v29, %v8912_v13  ;;  %v8936_v56 = vrot.slane %v8929_v9, %v18441_v40 }
 0xc66   : > { %v8914_v34 = vpop.permute.xlu1 %8913 }
 0xc67   : > { %8380 = vrot.lane.b32.xlu0 %v8370_v49, %s18461_s2  ;;  %v8944_v15 = vrot.slane %v8937_v55, %v18441_v40 }
 0xc68   : > { %v8916_v39 = vpop.permute.xlu0 %8915 }
 0xc69   : > { %v8962_v4 = vcombine.high %v8936_v56, %v8944_v15  ;;  %v8961_v52 = vcombine.low %v8936_v56, %v8944_v15 }
 0xc6a   : > { %v8918_v48 = vpop.permute.xlu1 %8917 }
 0xc6b   : > { %v8945_v11 = vcombine.low %v8914_v34, %v8918_v48  ;;  %v8976_v53 = vrot.slane %v8962_v4, %v18442_v8  ;;  %v16869_v21 = vrot.slane %v8961_v52, %v18442_v8 }
 0xc6c   : > { %v8920_v35 = vpop.permute.xlu0 %8919 }
 0xc6d   : > { %v8953_v6 = vcombine.low %v8916_v39, %v8920_v35  ;;  %v8952_v59 = vrot.slane %v8945_v11, %v18441_v40 }
 0xc6e   : > { %v8799_v54 = vpop.permute.xlu1 %8798 }
 0xc6f   : > { %v8960_v22 = vrot.slane %v8953_v6, %v18441_v40 }
 0xc70   : > { %v8801_v47 = vpop.permute.xlu0 %8800 }
 0xc71   : > { %v8977_v1 = vcombine.low %v8952_v59, %v8960_v22  ;;  %v8978_v3 = vcombine.high %v8952_v59, %v8960_v22 }
 0xc72   : > { %v8803_v18 = vpop.permute.xlu1 %8802 }
 0xc73   : > { %v16865_v10 = vrot.slane %v8977_v1, %v18442_v8  ;;  %v8992_v44 = vrot.slane %v8978_v3, %v18442_v8  ;;  %v8822_v51 = vcombine.low %v8799_v54, %v8803_v18 }
 0xc74   : > { %v8805_v45 = vpop.permute.xlu0 %8804 }
 0xc75   : > { %v8995_v7 = vcombine.low %v8976_v53, %v8992_v44  ;;  %v8993_v25 = vcombine.low %v16869_v21, %v16865_v10  ;;  %v8830_v33 = vcombine.low %v8801_v47, %v8805_v45  ;;  %v8996_v38 = vcombine.high %v8976_v53, %v8992_v44 }
 0xc76   : > { %v8807_v5 = vpop.permute.xlu1 %8806  ;;  %v16879_v13 = vrot.slane %v8822_v51, %v18441_v40 }
 0xc77   : > { %9002 = vrot.lane.b32.xlu0 %v8995_v7, %s12189_s15  ;;  %v16876_v29 = vrot.slane %v8830_v33, %v18441_v40 }
 0xc78   : > { %v8809_v28 = vpop.permute.xlu0 %8808 }
 0xc79   : > { %v8854_v39 = vcombine.low %v16879_v13, %v16876_v29 }
 0xc7a   : > { %v8811_v0 = vpop.permute.xlu1 %8810 }
 0xc7b   : > { %v8838_v60 = vcombine.low %v8807_v5, %v8811_v0  ;;  %9006 = vrot.lane.b32.xlu0 %v8996_v38, %s18461_s2  ;;  %v16895_v35 = vrot.slane %v8854_v39, %v18442_v8 }
 0xc7c   : > { %v8813_v12 = vpop.permute.xlu0 %8812 }
 0xc7d   : > { %v8846_v30 = vcombine.low %v8809_v28, %v8813_v12  ;;  %v16882_v34 = vrot.slane %v8838_v60, %v18441_v40 }
 0xc7e   : > { %v8593_v49 = vpop.permute.xlu1 %8592 }
 0xc7f   : > { %v16885_v55 = vrot.slane %v8846_v30, %v18441_v40 }
 0xc80   : > { %v8595_v9 = vpop.permute.xlu0 %8594 }
 0xc81   : > { %v8870_v48 = vcombine.low %v16882_v34, %v16885_v55 }
 0xc82   : > { %v8597_v15 = vpop.permute.xlu1 %8596 }
 0xc83   : > { %v16892_v11 = vrot.slane %v8870_v48, %v18442_v8  ;;  %v8616_v22 = vcombine.low %v8593_v49, %v8597_v15 }
 0xc84   : > { %v8599_v56 = vpop.permute.xlu0 %8598 }
 0xc85   : > { %v8886_v54 = vcombine.low %v16895_v35, %v16892_v11  ;;  %v8624_v4 = vcombine.low %v8595_v9, %v8599_v56  ;;  %v16903_v53 = vrot.slane %v8616_v22, %v18441_v40  ;;  %v8204_v22 = vcombine.low %v16838_v43, %v16848_v26 }
 0xc86   : > { %v8601_v6 = vpop.permute.xlu1 %8600 }
 0xc87   : > { %v16900_v1 = vrot.slane %v8624_v4, %v18441_v40 }
 0xc88   : > { %v8603_v59 = vpop.permute.xlu0 %8602 }
 0xc89   : > { %v8648_v5 = vcombine.low %v16903_v53, %v16900_v1 }
 0xc8a   : > { %v8605_v52 = vpop.permute.xlu1 %8604 }
 0xc8b   : > { %v8632_v47 = vcombine.low %v8601_v6, %v8605_v52  ;;  %v16919_v0 = vrot.slane %v8648_v5, %v18442_v8 }
 0xc8c   : > { %v8607_v3 = vpop.permute.xlu0 %8606 }
 0xc8d   : > { %v8640_v18 = vcombine.low %v8603_v59, %v8607_v3  ;;  %v16906_v45 = vrot.slane %v8632_v47, %v18441_v40 }
 0xc8e   : > { %v8486_v44 = vpop.permute.xlu1 %8485 }
 0xc8f   : > { %v16909_v7 = vrot.slane %v8640_v18, %v18441_v40 }
 0xc90   : > { %v8488_v33 = vpop.permute.xlu0 %8487 }
 0xc91   : > { %v8664_v28 = vcombine.low %v16906_v45, %v16909_v7  ;;  %v8665_v19 = vcombine.high %v16906_v45, %v16909_v7 }
 0xc92   : > { %v8490_v38 = vpop.permute.xlu1 %8489 }
 0xc93   : > { %v16916_v51 = vrot.slane %v8664_v28, %v18442_v8  ;;  %v8509_v9 = vcombine.low %v8486_v44, %v8490_v38  ;;  %v8196_v44 = vcombine.low %v16834_v61, %v16840_v23  ;;  %v8211_v38 = vrot.slane %v8204_v22, %v18441_v40 }
 0xc94   : > { %v8492_v60 = vpop.permute.xlu0 %8491 }
 0xc95   : > { %v8680_v30 = vcombine.low %v16919_v0, %v16916_v51  ;;  %v8517_v49 = vcombine.low %v8488_v33, %v8492_v60  ;;  %v8516_v4 = vrot.slane %v8509_v9, %v18441_v40  ;;  %v8203_v9 = vrot.slane %v8196_v44, %v18441_v40 }
 0xc96   : > { %v8494_v12 = vpop.permute.xlu1 %8493  ;;  %v8130_v44 = vcombine.high %v16699_v20, %v16702_v2  ;;  %v8855_v20 = vcombine.high %v16879_v13, %v16876_v29  ;;  %v8128_v2 = vrot.slane %v8114_v17, %v18442_v8  ;;  %v7992_v29 = vld [vmem:[%s18462_s3] sm:$0xff]  ;;  %v8649_v17 = vcombine.high %v16903_v53, %v16900_v1 }
 0xc97   : > { %v8524_v15 = vrot.slane %v8517_v49, %v18441_v40 }
 0xc98   : > { %v8496_v39 = vpop.permute.xlu0 %8495 }
 0xc99   : > { %v8541_v47 = vcombine.low %v8516_v4, %v8524_v15 }
 0xc9a   : > { %v8498_v48 = vpop.permute.xlu1 %8497 }
 0xc9b   : > { %v8525_v56 = vcombine.low %v8494_v12, %v8498_v48  ;;  %v8542_v12 = vcombine.high %v8516_v4, %v8524_v15  ;;  %v16933_v49 = vrot.slane %v8541_v47, %v18442_v8  ;;  %v8228_v15 = vcombine.low %v8203_v9, %v8211_v38 }
 0xc9c   : > { %v8500_v6 = vpop.permute.xlu0 %8499 }
 0xc9d   : > { %v8533_v59 = vcombine.low %v8496_v39, %v8500_v6  ;;  %v8532_v3 = vrot.slane %v8525_v56, %v18441_v40  ;;  %v8556_v6 = vrot.slane %v8542_v12, %v18442_v8  ;;  %v16949_v47 = vrot.slane %v8228_v15, %v18442_v8 }
 0xc9e   : > { %v8181_v52 = vpop.permute.xlu1 %8180  ;;  %v8994_v12 = vcombine.high %v16869_v21, %v16865_v10  ;;  %v8663_v15 = vrot.slane %v8649_v17, %v18442_v8 }
 0xc9f   : > { %v8540_v18 = vrot.slane %v8533_v59, %v18441_v40 }
 0xca0   : > { %v8183_v5 = vpop.permute.xlu0 %8182 }
 0xca1   : > { %v8557_v33 = vcombine.low %v8532_v3, %v8540_v18  ;;  %v8558_v28 = vcombine.high %v8532_v3, %v8540_v18 }
 0xca2   : > { %v8185_v60 = vpop.permute.xlu1 %8184 }
 0xca3   : > { %v16936_v43 = vrot.slane %v8557_v33, %v18442_v8  ;;  %v8212_v26 = vcombine.low %v8181_v52, %v8185_v60  ;;  %v8572_v48 = vrot.slane %v8558_v28, %v18442_v8  ;;  %v8871_v28 = vcombine.high %v16882_v34, %v16885_v55 }
 0xca4   : > { %v8187_v39 = vpop.permute.xlu0 %8186  ;;  %v8146_v60 = vcombine.high %v16736_v14, %v16731_v31  ;;  %v11888_v31 = vld [vmem:[#allocation13 + $0x68] sm:$0xff]  ;;  %v11889_v14 = vld [vmem:[#allocation13 + $0x60] sm:$0xff] }
 0xca5   : > { %v8220_v56 = vcombine.low %v8183_v5, %v8187_v39  ;;  %v8574_v61 = vcombine.high %v16933_v49, %v16936_v43  ;;  %v8573_v23 = vcombine.low %v16933_v49, %v16936_v43  ;;  %v8219_v4 = vrot.slane %v8212_v26, %v18441_v40 }
 0xca6   : > { %v8575_v52 = vcombine.low %v8556_v6, %v8572_v48  ;;  %v8576_v18 = vcombine.high %v8556_v6, %v8572_v48  ;;  %v8144_v26 = vrot.slane %v8130_v44, %v18442_v8  ;;  %v8885_v34 = vrot.slane %v8871_v28, %v18442_v8 }
 0xca7   : > { %v8227_v59 = vrot.slane %v8220_v56, %v18441_v40  ;;  %8578 = vrot.lane.b32.xlu0 %v8574_v61, %s18460_s16  ;;  %v8887_v39 = vcombine.high %v16895_v35, %v16892_v11  ;;  %v8869_v48 = vrot.slane %v8855_v20, %v18442_v8  ;;  %v8679_v56 = vrot.slane %v8665_v19, %v18442_v8 }
 0xca8   : > { %v8147_v55 = vcombine.low %v8128_v2, %v8144_v26  ;;  %v8681_v61 = vcombine.high %v16919_v0, %v16916_v51 }
 0xca9   : > { %v8244_v22 = vcombine.low %v8219_v4, %v8227_v59  ;;  %v8888_v13 = vcombine.low %v8869_v48, %v8885_v34  ;;  %v8889_v36 = vcombine.high %v8869_v48, %v8885_v34  ;;  %v8245_v6 = vcombine.high %v8219_v4, %v8227_v59  ;;  %v8785_v4 = vpop.permute.xlu0 %8784  ;;  %v8472_v59 = vpop.permute.xlu1 %8471 }
 0xcaa   : > { %v8683_v7 = vcombine.high %v8663_v15, %v8679_v56 }
 0xcab   : > { %v16952_v3 = vrot.slane %v8244_v22, %v18442_v8  ;;  %8582 = vrot.lane.b32.xlu0 %v8575_v52, %s12189_s15  ;;  %v8682_v22 = vcombine.low %v8663_v15, %v8679_v56  ;;  %v8229_v52 = vcombine.high %v8203_v9, %v8211_v38  ;;  %v8259_v45 = vrot.slane %v8245_v6, %v18442_v8 }
 0xcad   : > { %v8261_v5 = vcombine.high %v16949_v47, %v16952_v3  ;;  %v8260_v33 = vcombine.low %v16949_v47, %v16952_v3  ;;  %v8243_v1 = vrot.slane %v8229_v52, %v18442_v8  ;;  %v8789_v38 = vpop.permute.xlu0 %8788  ;;  %v8476_v28 = vpop.permute.xlu1 %8475 }
 0xcaf   : > { %8586 = vrot.lane.b32.xlu0 %v8576_v18, %s18461_s2  ;;  %8265 = vrot.lane.b32.xlu1 %v8261_v5, %s18460_s16  ;;  %v8262_v53 = vcombine.low %v8243_v1, %v8259_v45  ;;  %v8263_v18 = vcombine.high %v8243_v1, %v8259_v45  ;;  %v8148_v5 = vcombine.high %v8128_v2, %v8144_v26 }
 0xcb1   : > { %v8793_v9 = vpop.permute.xlu0 %8792 }
 0xcb3   : > { %8150 = vrot.lane.b32.xlu0 %v8146_v60, %s18460_s16  ;;  %8998 = vrot.lane.b32.xlu1 %v8994_v12, %s18460_s16  ;;  %v8480_v12 = vpop.permute.xlu1 %8479 }
 0xcb7   : > { %8154 = vrot.lane.b32.xlu0 %v8147_v55, %s12189_s15  ;;  %8891 = vrot.lane.b32.xlu1 %v8887_v39, %s18460_s16 }
 0xcbb   : > { %9014 = vperm.xlu0 %11882, %v7992_v29   ;;  %8895 = vrot.lane.b32.xlu1 %v8888_v13, %s12189_s15 }
 0xcbf   : > { %8899 = vrot.lane.b32.xlu1 %v8889_v36, %s18461_s2 }
 0xcc3   : > { %8685 = vrot.lane.b32.xlu1 %v8681_v61, %s18460_s16 }
 0xcc7   : > { %8689 = vrot.lane.b32.xlu1 %v8682_v22, %s12189_s15 }
 0xccb   : > { %8693 = vrot.lane.b32.xlu1 %v8683_v7, %s18461_s2 }
 0xccf   : > { %8269 = vrot.lane.b32.xlu1 %v8262_v53, %s12189_s15 }
 0xcd1   : > { %v8373_v44 = vpop.permute.xlu0 %8372 }
 0xcd3   : > { %8273 = vrot.lane.b32.xlu1 %v8263_v18, %s18461_s2 }
 0xcd5   : > { %v8377_v60 = vpop.permute.xlu0 %8376 }
 0xcd7   : > { %8158 = vrot.lane.b32.xlu1 %v8148_v5, %s18461_s2  ;;  %s18477_s2 = sld [smem:[#allocation79_spill]]  ;;  %v11886_v5 = vld [vmem:[#allocation13 + $0x78] sm:$0xff] }
 0xcd9   : > { %v8381_v20 = vpop.permute.xlu0 %8380 }
 0xce9   : > { %v9003_v34 = vpop.permute.xlu0 %9002 }
 0xced   : > { %v9007_v26 = vpop.permute.xlu0 %9006 }
 0xd19   : > { %v8579_v36 = vpop.permute.xlu0 %8578 }
 0xd1a   : > { %v8589_v22 = vsel %vm18465_vm3, %v8573_v23, %v8579_v36  ;;  %v8383_v23 = vsel %vm18465_vm3, %v8367_v46, %v8373_v44  ;;  %v11894_v44 = vld [vmem:[#allocation13 + $0x38] sm:$0xff] }
 0xd1b   : > { %v8384_v24 = vsel %vm3259_vm8, %v8383_v23, %v8377_v60  ;;  %v11896_v60 = vld [vmem:[#allocation13 + $0x28] sm:$0xff] }
 0xd1d   : > { %v8583_v6 = vpop.permute.xlu0 %8582 }
 0xd1e   : > { %v8590_v45 = vsel %vm3259_vm8, %v8589_v22, %v8583_v6 }
 0xd21   : > { %v8266_v55 = vpop.permute.xlu1 %8265 }
 0xd25   : > { %v8999_v39 = vpop.permute.xlu1 %8998 }
 0xd26   : > { %v9009_v48 = vsel %vm18463_vm10, %v8993_v25, %v8999_v39  ;;  %v8795_v25 = vsel %vm18466_vm4, %v8779_v16, %v8785_v4  ;;  %vm18468_vm10 = vmmov %vm18464_vm6  ;;  %v11887_v4 = vld [vmem:[#allocation13 + $0x70] sm:$0xff]  ;;  %v11901_v39 = vld [vmem:[#allocation13] sm:$0xff] }
 0xd27   : > { %v9010_v2 = vsel %vm3259_vm8, %v9009_v48, %v9003_v34  ;;  %v8796_v61 = vsel %vm3259_vm8, %v8795_v25, %v8789_v38  ;;  %vm18470_vm4 = vmmov %vm18468_vm10  ;;  %v11891_v38 = vld [vmem:[#allocation13 + $0x50] sm:$0xff] }
 0xd28   : > { %v9011_v29 = vsel %vm18464_vm6, %v9010_v2, %v9007_v26  ;;  %v8797_v15 = vsel %vm18468_vm10, %v8796_v61, %v8793_v9  ;;  %vm18469_vm6 = vmmov %vm18465_vm3  ;;  %v8385_v27 = vsel %vm18470_vm4, %v8384_v24, %v8381_v20  ;;  %v11892_v9 = vld [vmem:[#allocation13 + $0x48] sm:$0xff]  ;;  %v11898_v20 = vld [vmem:[#allocation13 + $0x18] sm:$0xff] }
 0xd29   : > { %v8892_v13 = vpop.permute.xlu1 %8891  ;;  %11698 = vmatpush3.msra.mxu1 %v9011_v29  ;;  %vm18472_vm10 = vmmov %vm18470_vm4  ;;  %v11899_v34 = vld [vmem:[#allocation13 + $0x10] sm:$0xff] }
 0xd2a   : > { %11699 = vmatprep.subr.mxu1 %v18387_v41  ;;  %v8902_v17 = vsel %vm18465_vm3, %v8886_v54, %v8892_v13  ;;  %v8587_v54 = vpop.permute.xlu0 %8586 }
 0xd2b   : > { %v8591_v0 = vsel %vm18472_vm10, %v8590_v45, %v8587_v54  ;;  %vm18475_vm10 = vmmov %vm18470_vm4 }
 0xd2d   : > { %v8896_v19 = vpop.permute.xlu1 %8895 }
 0xd2e   : > { %v8903_v10 = vsel %vm3259_vm8, %v8902_v17, %v8896_v19 }
 0xd31   : > { %v8900_v21 = vpop.permute.xlu1 %8899 }
 0xd32   : > { %v8904_v56 = vsel %vm18467_vm15, %v8903_v10, %v8900_v21  ;;  %vm18471_vm15 = vmmov %vm18465_vm3 }
 0xd33   : > { %11700 = vmatpush3.msra.mxu1 %v8904_v56  ;;  %v8482_v51 = vsel %vm18471_vm15, %v8466_v57, %v8472_v59  ;;  %vm18474_vm15 = vmmov %vm18465_vm3  ;;  %v11893_v59 = vld [vmem:[#allocation13 + $0x40] sm:$0xff] }
 0xd34   : > { %11701 = vmatprep.subr.mxu1 %v18387_v41  ;;  %v8483_v7 = vsel %vm3259_vm8, %v8482_v51, %v8476_v28  ;;  %v8276_v57 = vsel %vm18474_vm15, %v8260_v33, %v8266_v55  ;;  %v7991_v33 = vld [vmem:[%s18477_s2] sm:$0xff]  ;;  %v11895_v28 = vld [vmem:[#allocation13 + $0x30] sm:$0xff]  ;;  %v11900_v55 = vld [vmem:[#allocation13 + $0x8] sm:$0xff] }
 0xd35   : > { %v8686_v11 = vpop.permute.xlu1 %8685  ;;  %11702 = vmatpush3.msra.mxu1 %v8797_v15 }
 0xd36   : > { %11703 = vmatprep.subr.mxu1 %v18387_v41  ;;  %v8696_v63 = vsel %vm18469_vm6, %v8680_v30, %v8686_v11  ;;  %v8151_v30 = vpop.permute.xlu0 %8150  ;;  %vm18473_vm6 = vmmov %vm18470_vm4 }
 0xd37   : > { %v8484_v43 = vsel %vm18473_vm6, %v8483_v7, %v8480_v12  ;;  %vm18476_vm6 = vmmov %vm18465_vm3  ;;  %v11897_v12 = vld [vmem:[#allocation13 + $0x20] sm:$0xff] }
 0xd38   : > { %v8161_v46 = vsel %vm18476_vm6, %v8145_v37, %v8151_v30  ;;  %vm18478_vm3 = vmmov %vm18470_vm4  ;;  %v11890_v37 = vld [vmem:[#allocation13 + $0x58] sm:$0xff]  ;;  %vm18495_vm6 = vcmask 195584  }
 0xd39   : > { %v8690_v35 = vpop.permute.xlu1 %8689 }
 0xd3a   : > { %v8697_v42 = vsel %vm3259_vm8, %v8696_v63, %v8690_v35  ;;  %v8155_v62 = vpop.permute.xlu0 %8154 }
 0xd3b   : > { %v8162_v47 = vsel %vm3259_vm8, %v8161_v46, %v8155_v62 }
 0xd3d   : > { %v8694_v16 = vpop.permute.xlu1 %8693 }
 0xd3e   : > { %v8698_v52 = vsel %vm18470_vm4, %v8697_v42, %v8694_v16  ;;  %v9015_v48 = vpop.permute.xlu0 %9014 }
 0xd3f   : > { %11704 = vmatpush3.msra.mxu1 %v8698_v52 }
 0xd40   : > { %11705 = vmatprep.subr.mxu1 %v18387_v41 }
 0xd41   : > { %v8270_v49 = vpop.permute.xlu1 %8269  ;;  %11706 = vmatpush3.msra.mxu1 %v8591_v0 }
 0xd42   : > { %11707 = vmatprep.subr.mxu1 %v18387_v41  ;;  %v8277_v1 = vsel %vm3259_vm8, %v8276_v57, %v8270_v49 }
 0xd43   : > { %11708 = vmatpush3.msra.mxu1 %v8484_v43 }
 0xd44   : > { %11709 = vmatprep.subr.mxu1 %v18387_v41 }
 0xd45   : > { %v8274_v53 = vpop.permute.xlu1 %8273  ;;  %11710 = vmatpush3.msra.mxu1 %v8385_v27 }
 0xd46   : > { %v8278_v50 = vsel %vm18475_vm10, %v8277_v1, %v8274_v53  ;;  %11711 = vmatprep.subr.mxu1 %v18387_v41 }
 0xd47   : > { %11712 = vmatpush3.msra.mxu1 %v8278_v50 }
 0xd48   : > { %11713 = vmatprep.subr.mxu1 %v18387_v41 }
 0xd49   : > { %v8159_v3 = vpop.permute.xlu1 %8158 }
 0xd4a   : > { %v8163_v18 = vsel %vm18478_vm3, %v8162_v47, %v8159_v3  ;;  %vm18497_vm3 = vmmov %vm18495_vm6 }
 0xd4b   : > { %11714 = vmatpush3.msra.mxu1 %v8163_v18 }
 0xd4c   : > { %11716 = vmatmul.mubr.msk.f32.vlgmr.msra.gmra.mxu1 %vm7172_vm14, %v7991_v33  ;;  %11273 = vmatprep.subr.mxu1 %v11886_v5 }
 0xd4d   : > { %11274 = vmatpush1.msra.mxu1 %v11887_v4  ;;  %11321 = vmatprep.mubr.f32.mxu1 %v18387_v41 }
 0xd4e   : > { %11275 = vmatprep.subr.mxu1 %v11888_v31 }
 0xd4f   : > { %11276 = vmatpush1.msra.mxu1 %v11889_v14 }
 0xd50   : > { %11277 = vmatprep.subr.mxu1 %v11890_v37 }
 0xd51   : > { %11278 = vmatpush1.msra.mxu1 %v11891_v38 }
 0xd52   : > { %11279 = vmatprep.subr.mxu1 %v11892_v9 }
 0xd53   : > { %11280 = vmatpush1.msra.mxu1 %v11893_v59 }
 0xd54   : > { %11281 = vmatprep.subr.mxu1 %v11894_v44 }
 0xd55   : > { %11282 = vmatpush1.msra.mxu1 %v11895_v28 }
 0xd56   : > { %11283 = vmatprep.subr.mxu1 %v11896_v60 }
 0xd57   : > { %11284 = vmatpush1.msra.mxu1 %v11897_v12 }
 0xd58   : > { %11285 = vmatprep.subr.mxu1 %v11898_v20 }
 0xd59   : > { %11286 = vmatpush1.msra.mxu1 %v11899_v34 }
 0xd5a   : > { %11287 = vmatprep.subr.mxu1 %v11900_v55 }
 0xd5b   : > { %11288 = vmatpush1.msra.mxu1 %v11901_v39 }
 0xe0c   : > { %v9086_v26 = vpop.f32.mrf.mxu1 }
 0xe0d   : > { %v9087_v2 = vadd.f32 %v9086_v26, %v9015_v48 }
 0xe0e   : > { %v11717_v29 = vpop.f32.mrf.mxu1 }
 0xe0f   : > { %v9090_v13 = vmax.f32 %v9087_v2, 0.0 }
 0xe11   : > { %11723 = vmatmul.mubr.msk.f32.vlgmr.msra.gmra.mxu0 %vm1112_vm9, %v9090_v13 }
 0xe12   : > { %11743 = vmatprep.mubr.msk.f32.mxu0 %vm12197_vm7, %v18387_v41 }
 0xed1   : > { %v9160_v19 = vpop.f32.mrf.mxu0 }
 0xed2   : > { %9168 = vrot.lane.b32.xlu0 %v9160_v19, %s12202_s28  ;;  %9165 = vrot.lane.b32.xlu1 %v9160_v19, %s12204_s26  ;;  %s18509_s26 = sld [smem:[#allocation76_spill]] }
 0xed3   : > { %v11724_v36 = vpop.f32.mrf.mxu0 }
 0xed6   : > { %9174 = vrot.lane.b32.xlu0 %v9160_v19, %s12201_s12  ;;  %9171 = vrot.lane.b32.xlu1 %v9160_v19, %s12205_s22  ;;  %s18508_s12 = sld [smem:[#allocation82_spill]]  ;;  %s18538_s22 = sshll.u32 %s12524_s24, 4 }
 0xed7   : > { %s808_s3 = scalar_lea.vmem [#allocation14], %s18538_s22 }
 0xed8   : > { %s11349_s20 = sshll.u32 %s808_s3, 4  ;;  %s11350_s20 = int_to_ptr.vmem [resolvable:$true] %s11349_s20 }
 0xeda   : > { %9180 = vrot.lane.b32.xlu0 %v9160_v19, %s12200_s4  ;;  %9177 = vrot.lane.b32.xlu1 %v9160_v19, %s18479_s1  ;;  %s18539_s1 = sld [smem:[#allocation84_spill]] }
 0xede   : > { %9183 = vrot.lane.b32.xlu1 %v9160_v19, %s18480_s23 }
 0xf44   : > { %v9169_v17 = vpop.permute.xlu0 %9168  ;;  %v9166_v10 = vpop.permute.xlu1 %9165 }
 0xf45   : > { %v9186_v6 = vcombine.low %v9160_v19, %v9169_v17  ;;  %v9187_v30 = vcombine.high %v9160_v19, %v9169_v17 }
 0xf47   : > { %v9194_v63 = vrot.slane %v9186_v6, %v18441_v40  ;;  %v9201_v53 = vrot.slane %v9187_v30, %v18441_v40 }
 0xf48   : > { %v9175_v21 = vpop.permute.xlu0 %9174  ;;  %v9172_v25 = vpop.permute.xlu1 %9171 }
 0xf49   : > { %v9202_v56 = vcombine.low %v9166_v10, %v9172_v25  ;;  %v9203_v22 = vcombine.high %v9166_v10, %v9172_v25 }
 0xf4b   : > { %v9210_v11 = vrot.slane %v9202_v56, %v18441_v40  ;;  %v9217_v23 = vrot.slane %v9203_v22, %v18441_v40 }
 0xf4c   : > { %v9181_v61 = vpop.permute.xlu0 %9180  ;;  %v9178_v15 = vpop.permute.xlu1 %9177 }
 0xf4d   : > { %v9218_v35 = vcombine.low %v9175_v21, %v9181_v61  ;;  %v9250_v52 = vcombine.low %v9194_v63, %v9210_v11  ;;  %v9219_v45 = vcombine.high %v9175_v21, %v9181_v61  ;;  %v9251_v24 = vcombine.high %v9194_v63, %v9210_v11 }
 0xf4e   : > { %v9266_v3 = vcombine.low %v9201_v53, %v9217_v23  ;;  %v9267_v14 = vcombine.high %v9201_v53, %v9217_v23 }
 0xf4f   : > { %v9226_v51 = vrot.slane %v9218_v35, %v18441_v40  ;;  %v9233_v27 = vrot.slane %v9219_v45, %v18441_v40  ;;  %v9258_v57 = vrot.slane %v9250_v52, %v18442_v8  ;;  %v9265_v33 = vrot.slane %v9251_v24, %v18442_v8 }
 0xf50   : > { %v9184_v54 = vpop.permute.xlu1 %9183  ;;  %v9274_v37 = vrot.slane %v9266_v3, %v18442_v8  ;;  %v9281_v44 = vrot.slane %v9267_v14, %v18442_v8 }
 0xf51   : > { %v9234_v42 = vcombine.low %v9178_v15, %v9184_v54  ;;  %v9235_v16 = vcombine.high %v9178_v15, %v9184_v54 }
 0xf53   : > { %v9242_v0 = vrot.slane %v9234_v42, %v18441_v40  ;;  %v9249_v7 = vrot.slane %v9235_v16, %v18441_v40 }
 0xf55   : > { %v9282_v49 = vcombine.low %v9226_v51, %v9242_v0  ;;  %v9283_v43 = vcombine.high %v9226_v51, %v9242_v0  ;;  %v9298_v62 = vcombine.low %v9233_v27, %v9249_v7  ;;  %v9299_v18 = vcombine.high %v9233_v27, %v9249_v7 }
 0xf57   : > { %v9290_v1 = vrot.slane %v9282_v49, %v18442_v8  ;;  %v9297_v47 = vrot.slane %v9283_v43, %v18442_v8  ;;  %v9306_v31 = vrot.slane %v9298_v62, %v18442_v8  ;;  %v9313_v59 = vrot.slane %v9299_v18, %v18442_v8 }
 0xf59   : > { %v9315_v50 = vcombine.high %v9258_v57, %v9290_v1  ;;  %v9314_v46 = vcombine.low %v9258_v57, %v9290_v1  ;;  %v9317_v5 = vcombine.high %v9265_v33, %v9297_v47  ;;  %v9316_v4 = vcombine.low %v9265_v33, %v9297_v47 }
 0xf5a   : > { %v9319_v38 = vcombine.high %v9274_v37, %v9306_v31  ;;  %v9318_v9 = vcombine.low %v9274_v37, %v9306_v31  ;;  %v9321_v28 = vcombine.high %v9281_v44, %v9313_v59  ;;  %v9320_v60 = vcombine.low %v9281_v44, %v9313_v59 }
 0xf5b   : > { %9334 = vrot.lane.b32.xlu1 %v9315_v50, %s12183_s14  ;;  %9332 = vrot.lane.b32.xlu0 %v9314_v46, %s12183_s14 }
 0xf5f   : > { %9338 = vrot.lane.b32.xlu1 %v9317_v5, %s12183_s14  ;;  %9336 = vrot.lane.b32.xlu0 %v9316_v4, %s12183_s14 }
 0xf63   : > { %9342 = vrot.lane.b32.xlu1 %v9319_v38, %s12183_s14  ;;  %9340 = vrot.lane.b32.xlu0 %v9318_v9, %s12183_s14 }
 0xf67   : > { %9346 = vrot.lane.b32.xlu1 %v9321_v28, %s12183_s14  ;;  %9344 = vrot.lane.b32.xlu0 %v9320_v60, %s12183_s14  ;;  %s18489_s14 = smov 24  }
 0xfcd   : > { %v9335_v12 = vpop.permute.xlu1 %9334  ;;  %v9333_v20 = vpop.permute.xlu0 %9332 }
 0xfce   : > { %v9357_v34 = vsel %vm861_vm0, 0.0, %v9335_v12  ;;  %v9356_v55 = vsel %vm861_vm0, 0.0, %v9333_v20 }
 0xfcf   : > { %v9365_v39 = vsel %vm3138_vm1, %v9357_v34, 0.0  ;;  %v9364_v48 = vsel %vm3138_vm1, %v9356_v55, 0.0 }
 0xfd0   : > { %v9381_v26 = vrot.slane %v9365_v39, 7  ;;  %v9380_v2 = vrot.slane %v9364_v48, 7 }
 0xfd1   : > { %v9339_v29 = vpop.permute.xlu1 %9338  ;;  %v9337_v13 = vpop.permute.xlu0 %9336 }
 0xfd2   : > { %v17111_v19 = vsel %vm887_vm2, 0.0, %v9381_v26  ;;  %v17114_v36 = vsel %vm887_vm2, 0.0, %v9380_v2  ;;  %v17121_v17 = vsel %vm887_vm2, %v9381_v26, 0.0  ;;  %v17124_v10 = vsel %vm887_vm2, %v9380_v2, 0.0 }
 0xfd3   : > { %9788 = vrot.lane.b32.xlu1 %v17111_v19, %s12187_s17  ;;  %9786 = vrot.lane.b32.xlu0 %v17114_v36, %s12187_s17  ;;  %v9359_v21 = vsel %vm861_vm0, 0.0, %v9339_v29  ;;  %v9358_v25 = vsel %vm861_vm0, 0.0, %v9337_v13  ;;  %v10586_v42 = vrot.slane %v17121_v17, 2  ;;  %v10583_v16 = vrot.slane %v17124_v10, 2 }
 0xfd4   : > { %v9367_v56 = vsel %vm3138_vm1, %v9359_v21, 0.0  ;;  %v9366_v61 = vsel %vm3138_vm1, %v9358_v25, 0.0  ;;  %v10585_v24 = vrot.slane %v17111_v19, 2  ;;  %v10582_v27 = vrot.slane %v17114_v36, 2 }
 0xfd5   : > { %v9343_v15 = vpop.permute.xlu1 %9342  ;;  %v9341_v6 = vpop.permute.xlu0 %9340  ;;  %v9383_v11 = vrot.slane %v9367_v56, 7  ;;  %v9382_v35 = vrot.slane %v9366_v61, 7  ;;  %v9993_v20 = vrot.slane %v17121_v17, 1  ;;  %v9990_v39 = vrot.slane %v17124_v10, 1 }
 0xfd6   : > { %v9361_v54 = vsel %vm861_vm0, 0.0, %v9343_v15  ;;  %v9360_v63 = vsel %vm861_vm0, 0.0, %v9341_v6  ;;  %v17181_v37 = vsel %vm2296_vm5, %v10585_v24, %v10586_v42  ;;  %v17184_v38 = vsel %vm2296_vm5, %v10582_v27, %v10583_v16 }
 0xfd7   : > { %v9369_v22 = vsel %vm3138_vm1, %v9361_v54, 0.0  ;;  %v9368_v52 = vsel %vm3138_vm1, %v9360_v63, 0.0  ;;  %v17137_v45 = vsel %vm887_vm2, 0.0, %v9383_v11  ;;  %v17140_v51 = vsel %vm887_vm2, %v9383_v11, 0.0 }
 0xfd8   : > { %v17143_v0 = vsel %vm887_vm2, 0.0, %v9382_v35  ;;  %v17146_v30 = vsel %vm887_vm2, %v9382_v35, 0.0  ;;  %v9428_v7 = vcombine.low %v17111_v19, %v17137_v45  ;;  %v9429_v49 = vcombine.high %v17111_v19, %v17137_v45  ;;  %9792 = vrot.lane.b32.xlu1 %v17137_v45, %s12187_s17 }
 0xfd9   : > { %9790 = vrot.lane.b32.xlu0 %v17143_v0, %s12187_s17  ;;  %v9347_v43 = vpop.permute.xlu1 %9346  ;;  %v9345_v23 = vpop.permute.xlu0 %9344  ;;  %v10592_v57 = vrot.slane %v17140_v51, 2  ;;  %v9412_v1 = vcombine.low %v17114_v36, %v17143_v0  ;;  %v9413_v53 = vcombine.high %v17114_v36, %v17143_v0  ;;  %v10589_v62 = vrot.slane %v17146_v30, 2 }
 0xfda   : > { %v9385_v50 = vrot.slane %v9369_v22, 7  ;;  %v9384_v46 = vrot.slane %v9368_v52, 7  ;;  %v9363_v47 = vsel %vm861_vm0, 0.0, %v9347_v43  ;;  %v9362_v3 = vsel %vm861_vm0, 0.0, %v9345_v23 }
 0xfdb   : > { %v9371_v33 = vsel %vm3138_vm1, %v9363_v47, 0.0  ;;  %v9370_v18 = vsel %vm3138_vm1, %v9362_v3, 0.0  ;;  %v10591_v5 = vrot.slane %v17137_v45, 2  ;;  %v10588_v4 = vrot.slane %v17143_v0, 2 }
 0xfdc   : > { %v17171_v31 = vsel %vm887_vm2, 0.0, %v9385_v50  ;;  %v17174_v14 = vsel %vm887_vm2, 0.0, %v9384_v46  ;;  %v9387_v9 = vrot.slane %v9371_v33, 7  ;;  %v9386_v59 = vrot.slane %v9370_v18, 7 }
 0xfdd   : > { %9796 = vrot.lane.b32.xlu1 %v17171_v31, %s12187_s17  ;;  %9794 = vrot.lane.b32.xlu0 %v17174_v14, %s12187_s17  ;;  %v17187_v44 = vsel %vm2296_vm5, %v10591_v5, %v10592_v57  ;;  %v17190_v28 = vsel %vm2296_vm5, %v10588_v4, %v10589_v62  ;;  %v9992_v10 = vrot.slane %v17111_v19, 1  ;;  %v9999_v21 = vrot.slane %v17140_v51, 1 }
 0xfde   : > { %v10631_v60 = vcombine.high %v17181_v37, %v17187_v44  ;;  %v10615_v12 = vcombine.high %v17184_v38, %v17190_v28  ;;  %v17198_v34 = vsel %vm887_vm2, 0.0, %v9387_v9  ;;  %v17201_v55 = vsel %vm887_vm2, 0.0, %v9386_v59 }
 0xfdf   : > { %v9411_v48 = vsel %vm887_vm2, %v9387_v9, 0.0  ;;  %v9460_v26 = vcombine.low %v17171_v31, %v17198_v34  ;;  %v9461_v2 = vcombine.high %v17171_v31, %v17198_v34  ;;  %v9410_v29 = vsel %vm887_vm2, %v9386_v59, 0.0 }
 0xfe0   : > { %v9444_v13 = vcombine.low %v17174_v14, %v17201_v55  ;;  %v9445_v17 = vcombine.high %v17174_v14, %v17201_v55  ;;  %v9409_v25 = vsel %vm887_vm2, %v9385_v50, 0.0  ;;  %v9408_v56 = vsel %vm887_vm2, %v9384_v46, 0.0 }
 0xfe1   : > { %9800 = vrot.lane.b32.xlu1 %v17198_v34, %s12187_s17  ;;  %9798 = vrot.lane.b32.xlu0 %v17201_v55, %s12187_s17  ;;  %v9989_v61 = vrot.slane %v17114_v36, 1  ;;  %v9996_v15 = vrot.slane %v17146_v30, 1  ;;  %v10604_v6 = vrot.slane %v9411_v48, 2  ;;  %v10630_v11 = vcombine.low %v17181_v37, %v17187_v44 }
 0xfe2   : > { %v10603_v35 = vrot.slane %v17198_v34, 2  ;;  %v10601_v54 = vrot.slane %v9410_v29, 2  ;;  %v10600_v63 = vrot.slane %v17201_v55, 2  ;;  %v9998_v42 = vrot.slane %v17137_v45, 1 }
 0xfe3   : > { %v9995_v16 = vrot.slane %v17143_v0, 1  ;;  %v10598_v22 = vrot.slane %v9409_v25, 2  ;;  %v10595_v52 = vrot.slane %v9408_v56, 2  ;;  %v10597_v51 = vrot.slane %v17171_v31, 2 }
 0xfe4   : > { %v10594_v30 = vrot.slane %v17174_v14, 2  ;;  %v10005_v43 = vrot.slane %v9409_v25, 1  ;;  %v10002_v23 = vrot.slane %v9408_v56, 1  ;;  %v10614_v24 = vcombine.low %v17184_v38, %v17190_v28 }
 0xfe5   : > { %9593 = vrot.lane.b32.xlu1 %v17111_v19, %s12185_s5  ;;  %9591 = vrot.lane.b32.xlu0 %v17114_v36, %s12185_s5  ;;  %v10011_v27 = vrot.slane %v9411_v48, 1  ;;  %v17239_v57 = vsel %vm2296_vm5, %v10603_v35, %v10604_v6  ;;  %vm18481_vm0 = vcmask 1046528   ;;  %v10008_v46 = vrot.slane %v9410_v29, 1 }
 0xfe6   : > { %v17242_v62 = vsel %vm18481_vm0, %v9998_v42, %v9999_v21  ;;  %vm18482_vm1 = vmmov %vm18481_vm0  ;;  %v17252_v47 = vrot.slane %v10630_v11, %v18441_v40  ;;  %v17255_v3 = vsel %vm2296_vm5, %v10600_v63, %v10601_v54  ;;  %v10010_v33 = vrot.slane %v17198_v34, 1 }
 0xfe7   : > { %v17245_v50 = vsel %vm18482_vm1, %v9995_v16, %v9996_v15  ;;  %v17259_v18 = vsel %vm2296_vm5, %v10597_v51, %v10598_v22  ;;  %v17262_v5 = vsel %vm2296_vm5, %v10594_v30, %v10595_v52  ;;  %vm18483_vm2 = vmmov %vm18481_vm0  ;;  %v10004_v21 = vrot.slane %v17171_v31, 1 }
 0xfe8   : > { %v17265_v4 = vsel %vm18483_vm2, %v9992_v10, %v9993_v20  ;;  %vm18484_vm7 = vmmov %vm18481_vm0  ;;  %v10662_v59 = vcombine.low %v17259_v18, %v17239_v57  ;;  %v10663_v25 = vcombine.high %v17259_v18, %v17239_v57  ;;  %v10646_v20 = vcombine.low %v17262_v5, %v17255_v3 }
 0xfe9   : > { %9597 = vrot.lane.b32.xlu1 %v17137_v45, %s12185_s5  ;;  %9595 = vrot.lane.b32.xlu0 %v17143_v0, %s12185_s5  ;;  %v17268_v9 = vsel %vm18484_vm7, %v9989_v61, %v9990_v39  ;;  %v10037_v48 = vcombine.low %v17265_v4, %v17242_v62  ;;  %v10647_v39 = vcombine.high %v17262_v5, %v17255_v3  ;;  %v10001_v10 = vrot.slane %v17174_v14, 1  ;;  %vm18485_vm5 = vmmov %vm18481_vm0 }
 0xfea   : > { %v10021_v29 = vcombine.low %v17268_v9, %v17245_v50  ;;  %v10038_v56 = vcombine.high %v17265_v4, %v17242_v62  ;;  %v17291_v61 = vsel %vm18485_vm5, %v10010_v33, %v10011_v27  ;;  %v10007_v15 = vrot.slane %v17201_v55, 1  ;;  %vm18486_vm4 = vmmov %vm18481_vm0 }
 0xfeb   : > { %v9420_v6 = vrot.slane %v9412_v1, %v18441_v40  ;;  %v10022_v11 = vcombine.high %v17268_v9, %v17245_v50  ;;  %v9436_v35 = vrot.slane %v9428_v7, %v18441_v40  ;;  %v9452_v54 = vrot.slane %v9444_v13, %v18441_v40  ;;  %vm18487_vm15 = vmmov %vm18481_vm0 }
 0xfec   : > { %v9468_v63 = vrot.slane %v9460_v26, %v18441_v40  ;;  %v17307_v42 = vrot.slane %v10037_v48, %v18441_v40  ;;  %v17310_v16 = vrot.slane %v10021_v29, %v18441_v40  ;;  %v17313_v1 = vsel %vm18486_vm4, %v10004_v21, %v10005_v43  ;;  %vm18488_vm10 = vmmov %vm18481_vm0 }
 0xfed   : > { %9601 = vrot.lane.b32.xlu1 %v17171_v31, %s12185_s5  ;;  %9599 = vrot.lane.b32.xlu0 %v17174_v14, %s12185_s5  ;;  %v17316_v22 = vsel %vm18487_vm15, %v10007_v15, %v10008_v46  ;;  %v17319_v52 = vsel %vm18488_vm10, %v10001_v10, %v10002_v23  ;;  %v10069_v7 = vcombine.low %v17313_v1, %v17291_v61  ;;  %vm18498_vm0 = vmmov %vm18497_vm3  ;;  %vm18499_vm1 = vcmask 326656  }
 0xfee   : > { %v9477_v13 = vcombine.high %v9420_v6, %v9436_v35  ;;  %v9509_v26 = vcombine.high %v9452_v54, %v9468_v63  ;;  %v10053_v51 = vcombine.low %v17319_v52, %v17316_v22  ;;  %v9476_v30 = vcombine.low %v9420_v6, %v9436_v35  ;;  %vm18500_vm2 = vmmov %vm18499_vm1 }
 0xfef   : > { %v9508_v43 = vcombine.low %v9452_v54, %v9468_v63  ;;  %v17330_v27 = vrot.slane %v10662_v59, %v18441_v40  ;;  %v17333_v23 = vrot.slane %v10646_v20, %v18441_v40  ;;  %v17342_v48 = vrot.slane %v10038_v56, %v18441_v40  ;;  %vm18511_vm4 = vmmov %vm18498_vm0 }
 0xff0   : > { %v17336_v46 = vrot.slane %v9477_v13, %v18442_v8  ;;  %v17339_v33 = vrot.slane %v9509_v26, %v18442_v8  ;;  %v17345_v29 = vrot.slane %v9476_v30, %v18442_v8  ;;  %v10085_v59 = vcombine.low %v17310_v16, %v17307_v42  ;;  %vm18512_vm15 = vmmov %vm18499_vm1 }
 0xff1   : > { %9605 = vrot.lane.b32.xlu1 %v17198_v34, %s12185_s5  ;;  %9603 = vrot.lane.b32.xlu0 %v17201_v55, %s12185_s5  ;;  %v17348_v21 = vrot.slane %v9508_v43, %v18442_v8  ;;  %v17353_v20 = vrot.slane %v10022_v11, %v18441_v40  ;;  %v9427_v56 = vrot.slane %v9413_v53, %v18441_v40  ;;  %vm18502_vm7 = vcmask 457728   ;;  %vm18514_vm10 = vmmov %vm18498_vm0 }
 0xff2   : > { %v9543_v10 = vcombine.high %v17336_v46, %v17339_v33  ;;  %v9542_v15 = vcombine.low %v17336_v46, %v17339_v33  ;;  %v17368_v6 = vrot.slane %v10069_v7, %v18441_v40  ;;  %v17371_v11 = vrot.slane %v10053_v51, %v18441_v40  ;;  %vm18503_vm5 = vmmov %vm18502_vm7 }
 0xff3   : > { %v9541_v35 = vcombine.high %v17345_v29, %v17348_v21  ;;  %v10645_v36 = vrot.slane %v10631_v60, %v18441_v40  ;;  %v9443_v0 = vrot.slane %v9429_v49, %v18441_v40  ;;  %v9459_v53 = vrot.slane %v9445_v17, %v18441_v40 }
 0xff4   : > { %v9475_v54 = vrot.slane %v9461_v2, %v18441_v40  ;;  %v17395_v60 = vrot.slane %v10614_v24, %v18441_v40  ;;  %v10629_v19 = vrot.slane %v10615_v12, %v18441_v40  ;;  %v10677_v45 = vrot.slane %v10663_v25, %v18441_v40 }
 0xff5   : > { %10982 = vrot.lane.b32.xlu1 %v17181_v37, %s12187_s17  ;;  %10980 = vrot.lane.b32.xlu0 %v17184_v38, %s12187_s17  ;;  %v10086_v49 = vcombine.high %v17310_v16, %v17307_v42  ;;  %v10661_v14 = vrot.slane %v10647_v39, %v18441_v40  ;;  %v9492_v31 = vcombine.low %v9427_v56, %v9443_v0 }
 0xff6   : > { %v9524_v34 = vcombine.low %v9459_v53, %v9475_v54  ;;  %v10710_v12 = vcombine.low %v17333_v23, %v17330_v27  ;;  %v10117_v2 = vcombine.low %v17371_v11, %v17368_v6  ;;  %v10678_v25 = vcombine.low %v17395_v60, %v17252_v47 }
 0xff7   : > { %v17416_v17 = vrot.slane %v9492_v31, %v18442_v8  ;;  %v10694_v39 = vcombine.low %v10629_v19, %v10645_v36  ;;  %v10726_v7 = vcombine.low %v10661_v14, %v10677_v45  ;;  %v10695_v31 = vcombine.high %v10629_v19, %v10645_v36 }
 0xff8   : > { %v17419_v24 = vrot.slane %v9524_v34, %v18442_v8  ;;  %v17430_v13 = vrot.slane %v10710_v12, %v18442_v8  ;;  %v17433_v26 = vrot.slane %v10117_v2, %v18442_v8  ;;  %v10727_v34 = vcombine.high %v10661_v14, %v10677_v45 }
 0xff9   : > { %10986 = vrot.lane.b32.xlu1 %v17187_v44, %s12187_s17  ;;  %10984 = vrot.lane.b32.xlu0 %v17190_v28, %s12187_s17  ;;  %v17438_v30 = vrot.slane %v10694_v39, %v18442_v8  ;;  %v17441_v43 = vrot.slane %v10726_v7, %v18442_v8  ;;  %v17444_v55 = vrot.slane %v10678_v25, %v18442_v8 }
 0xffa   : > { %v9544_v63 = vcombine.low %v17416_v17, %v17419_v24  ;;  %v17447_v12 = vrot.slane %v10085_v59, %v18442_v8  ;;  %v17456_v7 = vrot.slane %v10695_v31, %v18442_v8  ;;  %v17463_v59 = vrot.slane %v10727_v34, %v18442_v8 }
 0xffb   : > { %v10746_v51 = vcombine.low %v17438_v30, %v17441_v43  ;;  %v10747_v39 = vcombine.high %v17438_v30, %v17441_v43  ;;  %v10742_v36 = vcombine.low %v17444_v55, %v17430_v13  ;;  %v9493_v14 = vcombine.high %v9427_v56, %v9443_v0 }
 0xffc   : > { %v10748_v25 = vcombine.low %v17456_v7, %v17463_v59  ;;  %v10749_v31 = vcombine.high %v17456_v7, %v17463_v59  ;;  %v9525_v2 = vcombine.high %v9459_v53, %v9475_v54  ;;  %v18492_v42 = vcombine.low %v17353_v20, %v17342_v48 }
 0xffd   : > { %10990 = vrot.lane.b32.xlu1 %v17259_v18, %s12187_s17  ;;  %10988 = vrot.lane.b32.xlu0 %v17262_v5, %s12187_s17  ;;  %v17480_v34 = vrot.slane %v9493_v14, %v18442_v8  ;;  %v18493_v54 = vcombine.high %v17353_v20, %v17342_v48 }
 0xffe   : > { %v17483_v19 = vrot.slane %v9525_v2, %v18442_v8  ;;  %v10109_v16 = vrot.slane %v18492_v42, %v18442_v8 }
0x1001   : > { %10994 = vrot.lane.b32.xlu1 %v17239_v57, %s12187_s17  ;;  %10992 = vrot.lane.b32.xlu0 %v17255_v3, %s12187_s17 }
0x1005   : > { %10787 = vrot.lane.b32.xlu1 %v17181_v37, %s12185_s5  ;;  %10785 = vrot.lane.b32.xlu0 %v17184_v38, %s12185_s5  ;;  %v10070_v37 = vcombine.high %v17313_v1, %v17291_v61  ;;  %v10054_v38 = vcombine.high %v17319_v52, %v17316_v22 }
0x1009   : > { %10791 = vrot.lane.b32.xlu1 %v17187_v44, %s12185_s5  ;;  %10789 = vrot.lane.b32.xlu0 %v17190_v28, %s12185_s5  ;;  %v10743_v44 = vcombine.high %v17444_v55, %v17430_v13  ;;  %v10118_v28 = vcombine.high %v17371_v11, %v17368_v6 }
0x100d   : > { %10795 = vrot.lane.b32.xlu1 %v17259_v18, %s12185_s5  ;;  %10793 = vrot.lane.b32.xlu0 %v17262_v5, %s12185_s5  ;;  %v10150_v18 = vcombine.high %v17447_v12, %v17433_v26  ;;  %v10132_v5 = vrot.slane %v10118_v28, %v18442_v8 }
0x1011   : > { %10799 = vrot.lane.b32.xlu1 %v17239_v57, %s12185_s5  ;;  %10797 = vrot.lane.b32.xlu0 %v17255_v3, %s12185_s5  ;;  %v10711_v57 = vcombine.high %v17333_v23, %v17330_v27  ;;  %v10068_v3 = vrot.slane %v10054_v38, %v18441_v40 }
0x1015   : > { %10389 = vrot.lane.b32.xlu1 %v17265_v4, %s12187_s17  ;;  %10387 = vrot.lane.b32.xlu0 %v17268_v9, %s12187_s17 }
0x1019   : > { %10393 = vrot.lane.b32.xlu1 %v17242_v62, %s12187_s17  ;;  %10391 = vrot.lane.b32.xlu0 %v17245_v50, %s12187_s17 }
0x101d   : > { %10397 = vrot.lane.b32.xlu1 %v17313_v1, %s12187_s17  ;;  %10395 = vrot.lane.b32.xlu0 %v17319_v52, %s12187_s17 }
0x1021   : > { %10401 = vrot.lane.b32.xlu1 %v17291_v61, %s12187_s17  ;;  %10399 = vrot.lane.b32.xlu0 %v17316_v22, %s12187_s17  ;;  %s18491_s17 = smov 32  }
0x1025   : > { %10194 = vrot.lane.b32.xlu1 %v17265_v4, %s12185_s5  ;;  %10192 = vrot.lane.b32.xlu0 %v17268_v9, %s12185_s5  ;;  %v10725_v4 = vrot.slane %v10711_v57, %v18442_v8 }
0x1029   : > { %10198 = vrot.lane.b32.xlu1 %v17242_v62, %s12185_s5  ;;  %10196 = vrot.lane.b32.xlu0 %v17245_v50, %s12185_s5  ;;  %v10679_v62 = vcombine.high %v17395_v60, %v17252_v47  ;;  %v10084_v50 = vrot.slane %v10070_v37, %v18441_v40  ;;  %v10100_v47 = vrot.slane %v10086_v49, %v18442_v8 }
0x102a   : > { %v10116_v60 = vrot.slane %v18493_v54, %v18442_v8 }
0x102b   : > { %v10693_v9 = vrot.slane %v10679_v62, %v18442_v8 }
0x102d   : > { %10202 = vrot.lane.b32.xlu1 %v17313_v1, %s12185_s5  ;;  %10200 = vrot.lane.b32.xlu0 %v17319_v52, %s12185_s5  ;;  %v10744_v1 = vcombine.low %v10693_v9, %v10725_v4  ;;  %v10152_v52 = vcombine.high %v10100_v47, %v10132_v5  ;;  %v10745_v27 = vcombine.high %v10693_v9, %v10725_v4 }
0x1031   : > { %10206 = vrot.lane.b32.xlu1 %v17291_v61, %s12185_s5  ;;  %10204 = vrot.lane.b32.xlu0 %v17316_v22, %s12185_s5  ;;  %s18490_s5 = smov 16   ;;  %v10151_v61 = vcombine.low %v10100_v47, %v10132_v5  ;;  %v10133_v22 = vcombine.low %v10068_v3, %v10084_v50 }
0x1033   : > { %v10141_v23 = vrot.slane %v10133_v22, %v18442_v8 }
0x1035   : > { %9557 = vrot.lane.b32.xlu0 %v9543_v10, %s18489_s14  ;;  %9549 = vrot.lane.b32.xlu1 %v9541_v35, %s12189_s15  ;;  %v10153_v10 = vcombine.low %v10109_v16, %v10141_v23  ;;  %v10154_v35 = vcombine.high %v10109_v16, %v10141_v23 }
0x1039   : > { %10751 = vrot.lane.b32.xlu0 %v10743_v44, %s12189_s15  ;;  %9553 = vrot.lane.b32.xlu1 %v9542_v15, %s18490_s5  ;;  %v10134_v15 = vcombine.high %v10068_v3, %v10084_v50 }
0x103b   : > { %v10148_v53 = vrot.slane %v10134_v15, %v18442_v8 }
0x103d   : > { %10158 = vrot.lane.b32.xlu0 %v10150_v18, %s12189_s15  ;;  %9561 = vrot.lane.b32.xlu1 %v9544_v63, %s18491_s17  ;;  %v10155_v14 = vcombine.low %v10116_v60, %v10148_v53  ;;  %v10156_v30 = vcombine.high %v10116_v60, %v10148_v53 }
0x1041   : > { %10162 = vrot.lane.b32.xlu0 %v10151_v61, %s18490_s5  ;;  %10755 = vrot.lane.b32.xlu1 %v10744_v1, %s18490_s5 }
0x1045   : > { %v9789_v46 = vpop.permute.xlu1 %9788  ;;  %v9787_v33 = vpop.permute.xlu0 %9786  ;;  %10166 = vrot.lane.b32.xlu0 %v10152_v52, %s18489_s14  ;;  %10759 = vrot.lane.b32.xlu1 %v10745_v27, %s18489_s14 }
0x1049   : > { %10170 = vrot.lane.b32.xlu0 %v10153_v10, %s18491_s17  ;;  %10763 = vrot.lane.b32.xlu1 %v10746_v51, %s18491_s17 }
0x104a   : > { %v9793_v6 = vpop.permute.xlu1 %9792 }
0x104b   : > { %v9791_v11 = vpop.permute.xlu0 %9790  ;;  %v9826_v49 = vcombine.low %v9789_v46, %v9793_v6  ;;  %v9827_v4 = vcombine.high %v9789_v46, %v9793_v6 }
0x104c   : > { %v9810_v63 = vcombine.low %v9787_v33, %v9791_v11  ;;  %v9811_v47 = vcombine.high %v9787_v33, %v9791_v11 }
0x104d   : > { %10174 = vrot.lane.b32.xlu0 %v10154_v35, %s12194_s0  ;;  %10767 = vrot.lane.b32.xlu1 %v10747_v39, %s12194_s0  ;;  %v9834_v48 = vrot.slane %v9826_v49, %v18441_v40  ;;  %v9841_v33 = vrot.slane %v9827_v4, %v18441_v40 }
0x104e   : > { %v9818_v20 = vrot.slane %v9810_v63, %v18441_v40  ;;  %v9825_v42 = vrot.slane %v9811_v47, %v18441_v40 }
0x104f   : > { %v9797_v51 = vpop.permute.xlu1 %9796  ;;  %v9795_v2 = vpop.permute.xlu0 %9794 }
0x1050   : > { %v9875_v61 = vcombine.high %v9818_v20, %v9834_v48 }
0x1051   : > { %10178 = vrot.lane.b32.xlu0 %v10155_v14, %s12192_s8  ;;  %10771 = vrot.lane.b32.xlu1 %v10748_v25, %s12192_s8  ;;  %v9874_v25 = vcombine.low %v9818_v20, %v9834_v48 }
0x1052   : > { %v9889_v53 = vrot.slane %v9875_v61, %v18442_v8 }
0x1053   : > { %v9801_v37 = vpop.permute.xlu1 %9800  ;;  %v9799_v38 = vpop.permute.xlu0 %9798  ;;  %v17616_v52 = vrot.slane %v9874_v25, %v18442_v8 }
0x1054   : > { %v9858_v43 = vcombine.low %v9797_v51, %v9801_v37  ;;  %v9842_v39 = vcombine.low %v9795_v2, %v9799_v38  ;;  %v9859_v3 = vcombine.high %v9797_v51, %v9801_v37  ;;  %v9843_v18 = vcombine.high %v9795_v2, %v9799_v38 }
0x1055   : > { %10182 = vrot.lane.b32.xlu0 %v10156_v30, %s12195_s30  ;;  %10775 = vrot.lane.b32.xlu1 %v10749_v31, %s12195_s30  ;;  %v9890_v51 = vcombine.low %v9825_v42, %v9841_v33 }
0x1056   : > { %v9866_v44 = vrot.slane %v9858_v43, %v18441_v40  ;;  %v9850_v28 = vrot.slane %v9842_v39, %v18441_v40  ;;  %v9873_v31 = vrot.slane %v9859_v3, %v18441_v40  ;;  %v9857_v27 = vrot.slane %v9843_v18, %v18441_v40 }
0x1057   : > { %v9594_v57 = vpop.permute.xlu1 %9593  ;;  %v9592_v62 = vpop.permute.xlu0 %9591 }
0x1058   : > { %v9906_v50 = vcombine.low %v9850_v28, %v9866_v44  ;;  %v9907_v5 = vcombine.high %v9850_v28, %v9866_v44  ;;  %v9922_v49 = vcombine.low %v9857_v27, %v9873_v31  ;;  %v9923_v4 = vcombine.high %v9857_v27, %v9873_v31 }
0x105a   : > { %v17613_v9 = vrot.slane %v9906_v50, %v18442_v8  ;;  %v9921_v46 = vrot.slane %v9907_v5, %v18442_v8  ;;  %v9930_v44 = vrot.slane %v9922_v49, %v18442_v8  ;;  %v9898_v5 = vrot.slane %v9890_v51, %v18442_v8 }
0x105b   : > { %v9598_v1 = vpop.permute.xlu1 %9597  ;;  %v9596_v22 = vpop.permute.xlu0 %9595  ;;  %v17662_v27 = vrot.slane %v9923_v4, %v18442_v8 }
0x105c   : > { %v9632_v7 = vcombine.high %v9594_v57, %v9598_v1  ;;  %v9616_v59 = vcombine.high %v9592_v62, %v9596_v22  ;;  %v9939_v23 = vcombine.high %v17616_v52, %v17613_v9  ;;  %v9631_v15 = vcombine.low %v9594_v57, %v9598_v1 }
0x105d   : > { %v9615_v6 = vcombine.low %v9592_v62, %v9596_v22  ;;  %v9940_v63 = vcombine.low %v9889_v53, %v9921_v46  ;;  %v9941_v39 = vcombine.high %v9889_v53, %v9921_v46  ;;  %v9942_v22 = vcombine.low %v9898_v5, %v9930_v44 }
0x105e   : > { %v17626_v16 = vrot.slane %v9632_v7, %v18441_v40  ;;  %v17629_v10 = vrot.slane %v9616_v59, %v18441_v40  ;;  %9947 = vrot.lane.b32.xlu1 %v9939_v23, %s12189_s15  ;;  %v9639_v2 = vrot.slane %v9631_v15, %v18441_v40  ;;  %v9891_v7 = vcombine.high %v9825_v42, %v9841_v33 }
0x105f   : > { %v9602_v11 = vpop.permute.xlu1 %9601  ;;  %v9600_v35 = vpop.permute.xlu0 %9599  ;;  %v9623_v14 = vrot.slane %v9615_v6, %v18441_v40  ;;  %v9943_v31 = vcombine.high %v9898_v5, %v9930_v44 }
0x1060   : > { %v9696_v60 = vcombine.high %v17629_v10, %v17626_v16  ;;  %v9695_v49 = vcombine.low %v17629_v10, %v17626_v16  ;;  %v9905_v51 = vrot.slane %v9891_v7, %v18442_v8 }
0x1061   : > { %v9679_v50 = vcombine.low %v9623_v14, %v9639_v2  ;;  %v9680_v59 = vcombine.high %v9623_v14, %v9639_v2 }
0x1062   : > { %9951 = vrot.lane.b32.xlu1 %v9940_v63, %s18490_s5  ;;  %v17668_v53 = vrot.slane %v9696_v60, %v18442_v8  ;;  %v9944_v10 = vcombine.low %v9905_v51, %v17662_v27 }
0x1063   : > { %v9606_v48 = vpop.permute.xlu1 %9605  ;;  %v9604_v20 = vpop.permute.xlu0 %9603  ;;  %v17656_v6 = vrot.slane %v9679_v50, %v18442_v8  ;;  %v9694_v2 = vrot.slane %v9680_v59, %v18442_v8 }
0x1064   : > { %v9663_v37 = vcombine.low %v9602_v11, %v9606_v48  ;;  %v9664_v38 = vcombine.high %v9602_v11, %v9606_v48  ;;  %v9647_v30 = vcombine.low %v9600_v35, %v9604_v20  ;;  %v9648_v43 = vcombine.high %v9600_v35, %v9604_v20 }
0x1066   : > { %v9671_v28 = vrot.slane %v9663_v37, %v18441_v40  ;;  %v9678_v25 = vrot.slane %v9664_v38, %v18441_v40  ;;  %v9655_v57 = vrot.slane %v9647_v30, %v18441_v40  ;;  %v9662_v62 = vrot.slane %v9648_v43, %v18441_v40  ;;  %9955 = vrot.lane.b32.xlu1 %v9941_v39, %s18489_s14 }
0x1067   : > { %v17646_v3 = vpop.permute.xlu1 %10982  ;;  %v17648_v18 = vpop.permute.xlu0 %10980 }
0x1068   : > { %v9711_v47 = vcombine.low %v9655_v57, %v9671_v28  ;;  %v9728_v61 = vcombine.high %v9662_v62, %v9678_v25  ;;  %v9712_v1 = vcombine.high %v9655_v57, %v9671_v28  ;;  %v9727_v35 = vcombine.low %v9662_v62, %v9678_v25 }
0x1069   : > { %v9703_v25 = vrot.slane %v9695_v49, %v18442_v8 }
0x106a   : > { %v17652_v23 = vrot.slane %v9711_v47, %v18442_v8  ;;  %9959 = vrot.lane.b32.xlu1 %v9942_v22, %s18491_s17  ;;  %v17659_v11 = vrot.slane %v9728_v61, %v18442_v8  ;;  %v9726_v42 = vrot.slane %v9712_v1, %v18442_v8  ;;  %v9735_v38 = vrot.slane %v9727_v35, %v18442_v8 }
0x106b   : > { %v10987_v46 = vpop.permute.xlu1 %10986  ;;  %v10985_v15 = vpop.permute.xlu0 %10984 }
0x106c   : > { %v9744_v33 = vcombine.high %v17656_v6, %v17652_v23  ;;  %v11020_v63 = vcombine.low %v17646_v3, %v10987_v46  ;;  %v11004_v14 = vcombine.low %v17648_v18, %v10985_v15  ;;  %v9745_v37 = vcombine.low %v9694_v2, %v9726_v42 }
0x106d   : > { %v9748_v4 = vcombine.high %v9703_v25, %v9735_v38  ;;  %v9746_v47 = vcombine.high %v9694_v2, %v9726_v42  ;;  %v11021_v61 = vcombine.high %v17646_v3, %v10987_v46  ;;  %v11005_v1 = vcombine.high %v17648_v18, %v10985_v15 }
0x106e   : > { %9963 = vrot.lane.b32.xlu1 %v9943_v31, %s12194_s0  ;;  %9752 = vrot.lane.b32.xlu0 %v9744_v33, %s12189_s15  ;;  %v11028_v43 = vrot.slane %v11020_v63, %v18441_v40  ;;  %v11012_v39 = vrot.slane %v11004_v14, %v18441_v40  ;;  %v9747_v18 = vcombine.low %v9703_v25, %v9735_v38 }
0x106f   : > { %v10991_v48 = vpop.permute.xlu1 %10990  ;;  %v10989_v20 = vpop.permute.xlu0 %10988  ;;  %v11035_v15 = vrot.slane %v11021_v61, %v18441_v40  ;;  %v11019_v49 = vrot.slane %v11005_v1, %v18441_v40 }
0x1070   : > { %v11069_v59 = vcombine.high %v11012_v39, %v11028_v43  ;;  %v11068_v2 = vcombine.low %v11012_v39, %v11028_v43 }
0x1072   : > { %9967 = vrot.lane.b32.xlu1 %v9944_v10, %s12192_s8  ;;  %9756 = vrot.lane.b32.xlu0 %v9745_v37, %s18490_s5  ;;  %v11083_v14 = vrot.slane %v11069_v59, %v18442_v8  ;;  %v17713_v25 = vrot.slane %v11068_v2, %v18442_v8 }
0x1073   : > { %v10995_v44 = vpop.permute.xlu1 %10994  ;;  %v10993_v28 = vpop.permute.xlu0 %10992 }
0x1074   : > { %v11052_v57 = vcombine.low %v10991_v48, %v10995_v44  ;;  %v11036_v62 = vcombine.low %v10989_v20, %v10993_v28  ;;  %v11053_v50 = vcombine.high %v10991_v48, %v10995_v44  ;;  %v11037_v5 = vcombine.high %v10989_v20, %v10993_v28 }
0x1075   : > { %v9945_v44 = vcombine.high %v9905_v51, %v17662_v27  ;;  %v11084_v28 = vcombine.low %v11019_v49, %v11035_v15 }
0x1076   : > { %v11060_v22 = vrot.slane %v11052_v57, %v18441_v40  ;;  %v11044_v7 = vrot.slane %v11036_v62, %v18441_v40  ;;  %9768 = vrot.lane.b32.xlu1 %v9748_v4, %s12194_s0  ;;  %9760 = vrot.lane.b32.xlu0 %v9746_v47, %s18489_s14  ;;  %v11067_v42 = vrot.slane %v11053_v50, %v18441_v40 }
0x1077   : > { %v17697_v31 = vpop.permute.xlu1 %10787  ;;  %v17699_v35 = vpop.permute.xlu0 %10785  ;;  %v11051_v3 = vrot.slane %v11037_v5, %v18441_v40  ;;  %v17727_v4 = vrot.slane %v11084_v28, %v18442_v8 }
0x1078   : > { %v11101_v33 = vcombine.high %v11044_v7, %v11060_v22  ;;  %v11100_v46 = vcombine.low %v11044_v7, %v11060_v22 }
0x1079   : > { %v11116_v37 = vcombine.low %v11051_v3, %v11067_v42 }
0x107a   : > { %v11115_v63 = vrot.slane %v11101_v33, %v18442_v8  ;;  %9764 = vrot.lane.b32.xlu0 %v9747_v18, %s18491_s17  ;;  %v17709_v10 = vrot.slane %v11100_v46, %v18442_v8 }
0x107b   : > { %v10792_v48 = vpop.permute.xlu1 %10791  ;;  %v10790_v20 = vpop.permute.xlu0 %10789  ;;  %v17720_v50 = vrot.slane %v11116_v37, %v18442_v8 }
0x107c   : > { %v11134_v38 = vcombine.low %v11083_v14, %v11115_v63  ;;  %v10825_v57 = vcombine.low %v17697_v31, %v10792_v48  ;;  %v10809_v43 = vcombine.low %v17699_v35, %v10790_v20  ;;  %v11135_v5 = vcombine.high %v11083_v14, %v11115_v63 }
0x107d   : > { %v11133_v27 = vcombine.high %v17713_v25, %v17709_v10  ;;  %v11136_v33 = vcombine.low %v17727_v4, %v17720_v50 }
0x107e   : > { %9971 = vrot.lane.b32.xlu0 %v9945_v44, %s12195_s30  ;;  %11145 = vrot.lane.b32.xlu1 %v11134_v38, %s18490_s5  ;;  %v10833_v47 = vrot.slane %v10825_v57, %v18441_v40  ;;  %v10817_v61 = vrot.slane %v10809_v43, %v18441_v40  ;;  %v11117_v44 = vcombine.high %v11051_v3, %v11067_v42 }
0x107f   : > { %v10796_v39 = vpop.permute.xlu1 %10795  ;;  %v10794_v62 = vpop.permute.xlu0 %10793 }
0x1080   : > { %v10873_v63 = vcombine.low %v10817_v61, %v10833_v47  ;;  %v10874_v2 = vcombine.high %v10817_v61, %v10833_v47  ;;  %v10810_v47 = vcombine.high %v17699_v35, %v10790_v20 }
0x1082   : > { %11149 = vrot.lane.b32.xlu1 %v11135_v5, %s18489_s14  ;;  %11141 = vrot.lane.b32.xlu0 %v11133_v27, %s12189_s15  ;;  %v11085_v5 = vcombine.high %v11019_v49, %v11035_v15  ;;  %v10826_v27 = vcombine.high %v17697_v31, %v10792_v48  ;;  %v17749_v61 = vrot.slane %v10873_v63, %v18442_v8 }
0x1083   : > { %v10800_v1 = vpop.permute.xlu1 %10799  ;;  %v10798_v22 = vpop.permute.xlu0 %10797  ;;  %v11131_v15 = vrot.slane %v11117_v44, %v18442_v8 }
0x1084   : > { %v10857_v7 = vcombine.low %v10796_v39, %v10800_v1  ;;  %v10841_v59 = vcombine.low %v10794_v62, %v10798_v22  ;;  %v10858_v57 = vcombine.high %v10796_v39, %v10800_v1  ;;  %v10842_v43 = vcombine.high %v10794_v62, %v10798_v22 }
0x1085   : > { %v11099_v20 = vrot.slane %v11085_v5, %v18442_v8  ;;  %v17767_v39 = vrot.slane %v10826_v27, %v18441_v40  ;;  %v17770_v62 = vrot.slane %v10810_v47, %v18441_v40 }
0x1086   : > { %v10865_v46 = vrot.slane %v10857_v7, %v18441_v40  ;;  %v10849_v18 = vrot.slane %v10841_v59, %v18441_v40  ;;  %11153 = vrot.lane.b32.xlu1 %v11136_v33, %s18491_s17  ;;  %v10888_v33 = vrot.slane %v10874_v2, %v18442_v8  ;;  %v17758_v31 = vrot.slane %v10858_v57, %v18441_v40 }
0x1087   : > { %v17738_v14 = vpop.permute.xlu1 %10389  ;;  %v17740_v37 = vpop.permute.xlu0 %10387  ;;  %v17761_v49 = vrot.slane %v10842_v43, %v18441_v40  ;;  %v11138_v2 = vcombine.low %v11099_v20, %v11131_v15  ;;  %v10890_v56 = vcombine.high %v17770_v62, %v17767_v39 }
0x1088   : > { %v10905_v38 = vcombine.low %v10849_v18, %v10865_v46  ;;  %v10906_v28 = vcombine.high %v10849_v18, %v10865_v46 }
0x1089   : > { %v10921_v63 = vcombine.low %v17761_v49, %v17758_v31 }
0x108a   : > { %v17744_v7 = vrot.slane %v10905_v38, %v18442_v8  ;;  %v10920_v59 = vrot.slane %v10906_v28, %v18442_v8  ;;  %v10889_v28 = vcombine.low %v17770_v62, %v17767_v39  ;;  %v10904_v39 = vrot.slane %v10890_v56, %v18442_v8 }
0x108b   : > { %v17752_v42 = vpop.permute.xlu1 %10393  ;;  %v17754_v3 = vpop.permute.xlu0 %10391 }
0x108c   : > { %v10940_v48 = vcombine.high %v10888_v33, %v10920_v59  ;;  %v10938_v35 = vcombine.high %v17749_v61, %v17744_v7  ;;  %v10427_v1 = vcombine.low %v17738_v14, %v17752_v42  ;;  %v10411_v22 = vcombine.low %v17740_v37, %v17754_v3 }
0x108d   : > { %v10939_v44 = vcombine.low %v10888_v33, %v10920_v59  ;;  %v10929_v33 = vrot.slane %v10921_v63, %v18442_v8 }
0x108e   : > { %10954 = vrot.lane.b32.xlu1 %v10940_v48, %s18489_s14  ;;  %10946 = vrot.lane.b32.xlu0 %v10938_v35, %s12189_s15  ;;  %v10435_v57 = vrot.slane %v10427_v1, %v18441_v40  ;;  %v10419_v43 = vrot.slane %v10411_v22, %v18441_v40  ;;  %v11139_v48 = vcombine.high %v11099_v20, %v11131_v15 }
0x108f   : > { %v17778_v46 = vpop.permute.xlu1 %10397  ;;  %v17780_v18 = vpop.permute.xlu0 %10395  ;;  %v11137_v35 = vcombine.high %v17727_v4, %v17720_v50 }
0x1090   : > { %v10475_v38 = vcombine.low %v10419_v43, %v10435_v57 }
0x1092   : > { %11161 = vrot.lane.b32.xlu1 %v11138_v2, %s12192_s8  ;;  %10950 = vrot.lane.b32.xlu0 %v10939_v44, %s18490_s5  ;;  %v10897_v2 = vrot.slane %v10889_v28, %v18442_v8  ;;  %v17810_v50 = vrot.slane %v10475_v38, %v18442_v8 }
0x1093   : > { %v10402_v5 = vpop.permute.xlu1 %10401  ;;  %v10400_v27 = vpop.permute.xlu0 %10399 }
0x1094   : > { %v10459_v47 = vcombine.low %v17778_v46, %v10402_v5  ;;  %v10443_v59 = vcombine.low %v17780_v18, %v10400_v27  ;;  %v10941_v15 = vcombine.low %v10897_v2, %v10929_v33  ;;  %v10942_v54 = vcombine.high %v10897_v2, %v10929_v33 }
0x1095   : > { %v10444_v33 = vcombine.high %v17780_v18, %v10400_v27 }
0x1096   : > { %v10467_v1 = vrot.slane %v10459_v47, %v18441_v40  ;;  %v10451_v22 = vrot.slane %v10443_v59, %v18441_v40  ;;  %11165 = vrot.lane.b32.xlu1 %v11139_v48, %s12195_s30  ;;  %11157 = vrot.lane.b32.xlu0 %v11137_v35, %s12194_s0 }
0x1097   : > { %v17802_v44 = vpop.permute.xlu1 %10194  ;;  %v17804_v51 = vpop.permute.xlu0 %10192 }
0x1098   : > { %v10507_v63 = vcombine.low %v10451_v22, %v10467_v1  ;;  %v10508_v47 = vcombine.high %v10451_v22, %v10467_v1  ;;  %v10922_v1 = vcombine.high %v17761_v49, %v17758_v31  ;;  %v10460_v49 = vcombine.high %v17778_v46, %v10402_v5 }
0x109a   : > { %v17807_v20 = vrot.slane %v10507_v63, %v18442_v8  ;;  %10958 = vrot.lane.b32.xlu0 %v10941_v15, %s18491_s17  ;;  %v10476_v63 = vcombine.high %v10419_v43, %v10435_v57  ;;  %v10522_v22 = vrot.slane %v10508_v47, %v18442_v8  ;;  %v10936_v15 = vrot.slane %v10922_v1, %v18442_v8 }
0x109b   : > { %v17813_v4 = vpop.permute.xlu1 %10198  ;;  %v17815_v28 = vpop.permute.xlu0 %10196  ;;  %v10474_v60 = vrot.slane %v10460_v49, %v18441_v40 }
0x109c   : > { %v10540_v59 = vcombine.high %v17810_v50, %v17807_v20  ;;  %v10232_v48 = vcombine.low %v17802_v44, %v17813_v4  ;;  %v10216_v35 = vcombine.low %v17804_v51, %v17815_v28  ;;  %v10490_v43 = vrot.slane %v10476_v63, %v18442_v8 }
0x109d   : > { %v10943_v56 = vcombine.low %v10904_v39, %v10936_v15 }
0x109e   : > { %10548 = vrot.lane.b32.xlu0 %v10540_v59, %s12189_s15  ;;  %v10240_v0 = vrot.slane %v10232_v48, %v18441_v40  ;;  %v10224_v57 = vrot.slane %v10216_v35, %v18441_v40  ;;  %v10541_v2 = vcombine.low %v10490_v43, %v10522_v22  ;;  %v10412_v35 = vcombine.high %v17740_v37, %v17754_v3 }
0x109f   : > { %v10203_v38 = vpop.permute.xlu1 %10202  ;;  %v10201_v30 = vpop.permute.xlu0 %10200 }
0x10a0   : > { %v10280_v62 = vcombine.low %v10224_v57, %v10240_v0 }
0x10a2   : > { %10962 = vrot.lane.b32.xlu0 %v10942_v54, %s12194_s0  ;;  %v10428_v54 = vcombine.high %v17738_v14, %v17752_v42  ;;  %v18494_v14 = vcombine.low %v17345_v29, %v17348_v21  ;;  %v17857_v42 = vrot.slane %v10280_v62, %v18442_v8 }
0x10a3   : > { %v10207_v59 = vpop.permute.xlu1 %10206  ;;  %v10205_v16 = vpop.permute.xlu0 %10204 }
0x10a4   : > { %v10264_v45 = vcombine.low %v10203_v38, %v10207_v59  ;;  %v10248_v31 = vcombine.low %v10201_v30, %v10205_v16  ;;  %v10265_v63 = vcombine.high %v10203_v38, %v10207_v59  ;;  %v10249_v1 = vcombine.high %v10201_v30, %v10205_v16 }
0x10a5   : > { %v10217_v16 = vcombine.high %v17804_v51, %v17815_v28  ;;  %v10281_v30 = vcombine.high %v10224_v57, %v10240_v0  ;;  %v10442_v38 = vrot.slane %v10428_v54, %v18441_v40  ;;  %v10426_v59 = vrot.slane %v10412_v35, %v18441_v40 }
0x10a6   : > { %v10272_v47 = vrot.slane %v10264_v45, %v18441_v40  ;;  %v10256_v48 = vrot.slane %v10248_v31, %v18441_v40  ;;  %10552 = vrot.lane.b32.xlu0 %v10541_v2, %s18490_s5  ;;  %v10458_v45 = vrot.slane %v10444_v33, %v18441_v40  ;;  %v10233_v31 = vcombine.high %v17802_v44, %v17813_v4 }
0x10a7   : > { %v9550_v46 = vpop.permute.xlu1 %9549  ;;  %v9558_v18 = vpop.permute.xlu0 %9557  ;;  %v10279_v44 = vrot.slane %v10265_v63, %v18441_v40  ;;  %v10263_v29 = vrot.slane %v10249_v1, %v18441_v40  ;;  %v10542_v33 = vcombine.high %v10490_v43, %v10522_v22  ;;  %v10491_v13 = vcombine.low %v10426_v59, %v10442_v38 }
0x10a8   : > { %v10312_v5 = vcombine.low %v10256_v48, %v10272_v47  ;;  %v10313_v27 = vcombine.high %v10256_v48, %v10272_v47  ;;  %v9576_v37 = vsel %vm3259_vm8, %v18494_v14, %v9550_v46  ;;  %v10523_v49 = vcombine.low %v10458_v45, %v10474_v60 }
0x10a9   : > { %v10247_v62 = vrot.slane %v10233_v31, %v18441_v40  ;;  %v10231_v47 = vrot.slane %v10217_v16, %v18441_v40  ;;  %v10295_v48 = vrot.slane %v10281_v30, %v18442_v8  ;;  %v10328_v35 = vcombine.low %v10263_v29, %v10279_v44 }
0x10aa   : > { %v17860_v3 = vrot.slane %v10312_v5, %v18442_v8  ;;  %10966 = vrot.lane.b32.xlu0 %v10943_v56, %s12192_s8  ;;  %v10327_v0 = vrot.slane %v10313_v27, %v18442_v8  ;;  %v18496_v43 = vcombine.low %v17447_v12, %v17433_v26  ;;  %v10531_v1 = vrot.slane %v10523_v49, %v18442_v8 }
0x10ab   : > { %v9554_v21 = vpop.permute.xlu1 %9553  ;;  %v10752_v4 = vpop.permute.xlu0 %10751  ;;  %v10944_v46 = vcombine.high %v10904_v39, %v10936_v15  ;;  %v10499_v5 = vrot.slane %v10491_v13, %v18442_v8  ;;  %v10336_v31 = vrot.slane %v10328_v35, %v18442_v8  ;;  %v10492_v39 = vcombine.high %v10426_v59, %v10442_v38 }
0x10ac   : > { %v9577_v51 = vsel %vm1112_vm9, %v9576_v37, %v9554_v21  ;;  %v10778_v28 = vsel %vm3259_vm8, %v10742_v36, %v10752_v4  ;;  %v10345_v57 = vcombine.high %v17857_v42, %v17860_v3  ;;  %v10344_v55 = vcombine.low %v17857_v42, %v17860_v3 }
0x10ad   : > { %v9578_v2 = vsel %vm18495_vm6, %v9577_v51, %v9558_v18  ;;  %v10346_v63 = vcombine.low %v10295_v48, %v10327_v0  ;;  %v10296_v18 = vcombine.low %v10231_v47, %v10247_v62  ;;  %v10347_v12 = vcombine.high %v10295_v48, %v10327_v0  ;;  %vm18515_vm6 = vmmov %vm18499_vm1 }
0x10ae   : > { %10353 = vrot.lane.b32.xlu1 %v10345_v57, %s12189_s15  ;;  %10556 = vrot.lane.b32.xlu0 %v10542_v33, %s18489_s14  ;;  %v10524_v37 = vcombine.high %v10458_v45, %v10474_v60  ;;  %v10543_v16 = vcombine.low %v10499_v5, %v10531_v1  ;;  %v10329_v4 = vcombine.high %v10263_v29, %v10279_v44 }
0x10af   : > { %v9562_v36 = vpop.permute.xlu1 %9561  ;;  %v10159_v54 = vpop.permute.xlu0 %10158  ;;  %v10304_v15 = vrot.slane %v10296_v18, %v18442_v8  ;;  %v10544_v0 = vcombine.high %v10499_v5, %v10531_v1  ;;  %v10297_v60 = vcombine.high %v10231_v47, %v10247_v62  ;;  %v10506_v45 = vrot.slane %v10492_v39, %v18442_v8 }
0x10b0   : > { %v17884_v22 = vsel %vm1114_vm11, %v9578_v2, %v9562_v36  ;;  %v10185_v40 = vsel %vm3259_vm8, %v18496_v43, %v10159_v54  ;;  %v10538_v49 = vrot.slane %v10524_v37, %v18442_v8  ;;  %v10343_v33 = vrot.slane %v10329_v4, %v18442_v8 }
0x10b1   : > { %v10349_v2 = vcombine.high %v10304_v15, %v10336_v31  ;;  %v10311_v13 = vrot.slane %v10297_v60, %v18442_v8  ;;  %v18501_v18 = vcombine.low %v17668_v53, %v17659_v11  ;;  %v18507_v37 = vcombine.high %v17480_v34, %v17483_v19 }
0x10b2   : > { %10357 = vrot.lane.b32.xlu1 %v10346_v63, %s18490_s5  ;;  %10970 = vrot.lane.b32.xlu0 %v10944_v46, %s12195_s30  ;;  %v10545_v48 = vcombine.low %v10506_v45, %v10538_v49  ;;  %v10546_v43 = vcombine.high %v10506_v45, %v10538_v49  ;;  %s12088_s5 = scalar_lea.vmem %s11350_s20, 256 }
0x10b3   : > { %v10756_v27 = vpop.permute.xlu1 %10755  ;;  %v10163_v56 = vpop.permute.xlu0 %10162  ;;  %v10350_v54 = vcombine.low %v10311_v13, %v10343_v33  ;;  %v10351_v1 = vcombine.high %v10311_v13, %v10343_v33  ;;  %p12089_p2 = scmp.ne.s32.totalorder %s11350_s20, %s12088_s5 }
0x10b4   : > { %v10779_v14 = vsel %vm1112_vm9, %v10778_v28, %v10756_v27  ;;  %v10186_v26 = vsel %vm1112_vm9, %v10185_v40, %v10163_v56  ;;  %v10348_v28 = vcombine.low %v10304_v15, %v10336_v31 }
0x10b6   : > { %10361 = vrot.lane.b32.xlu1 %v10347_v12, %s18489_s14  ;;  %10560 = vrot.lane.b32.xlu0 %v10543_v16, %s18491_s17  ;;  %v18506_v12 = vcombine.low %v17480_v34, %v17483_v19  ;;  %s11335_s14 = scalar_lea.sflag [#allocation4], %s12524_s24 }
0x10b7   : > { %v10760_v30 = vpop.permute.xlu1 %10759  ;;  %v10167_v21 = vpop.permute.xlu0 %10166 }
0x10b8   : > { %v10780_v51 = vsel %vm18497_vm3, %v10779_v14, %v10760_v30  ;;  %v10187_v57 = vsel %vm18498_vm0, %v10186_v26, %v10167_v21  ;;  %v18504_v14 = vcombine.high %v17416_v17, %v17419_v24  ;;  %v18505_v26 = vcombine.high %v17668_v53, %v17659_v11  ;;  %v9323_v17 = vld [vmem:[%s18508_s12] sm:$0xff]  ;;  %vm18516_vm3 = vmmov %vm18503_vm5 }
0x10b9   : > { %v828_v24 = vld [vmem:[%s18509_s26] sm:$0xff]  ;;  %v18510_v53 = vcombine.low %v17616_v52, %v17613_v9  ;;  %v18513_v9 = vcombine.low %v17656_v6, %v17652_v23 }
0x10ba   : > { %10365 = vrot.lane.b32.xlu1 %v10348_v28, %s18491_s17  ;;  %10564 = vrot.lane.b32.xlu0 %v10544_v0, %s12194_s0 }
0x10bb   : > { %v10764_v38 = vpop.permute.xlu1 %10763  ;;  %v10171_v59 = vpop.permute.xlu0 %10170 }
0x10bc   : > { %v10781_v44 = vsel %vm1114_vm11, %v10780_v51, %v10764_v38  ;;  %v10188_v29 = vsel %vm1114_vm11, %v10187_v57, %v10171_v59 }
0x10be   : > { %10369 = vrot.lane.b32.xlu1 %v10349_v2, %s12194_s0  ;;  %10568 = vrot.lane.b32.xlu0 %v10545_v48, %s12192_s8 }
0x10bf   : > { %v10175_v62 = vpop.permute.xlu0 %10174  ;;  %v10768_v47 = vpop.permute.xlu1 %10767 }
0x10c0   : > { %v10189_v36 = vsel %vm18499_vm1, %v10188_v29, %v10175_v62  ;;  %v10782_v35 = vsel %vm18500_vm2, %v10781_v44, %v10768_v47  ;;  %v18517_v47 = vcombine.low %v17713_v25, %v17709_v10  ;;  %vm18518_vm2 = vmmov %vm18516_vm3 }
0x10c2   : > { %10373 = vrot.lane.b32.xlu1 %v10350_v54, %s12192_s8  ;;  %10572 = vrot.lane.b32.xlu0 %v10546_v43, %s12195_s30 }
0x10c3   : > { %v10179_v40 = vpop.permute.xlu0 %10178  ;;  %v10772_v63 = vpop.permute.xlu1 %10771 }
0x10c4   : > { %v10190_v8 = vsel %vm1116_vm13, %v10189_v36, %v10179_v40  ;;  %v10783_v46 = vsel %vm1116_vm13, %v10782_v35, %v10772_v63 }
0x10c6   : > { %10377 = vrot.lane.b32.xlu1 %v10351_v1, %s12195_s30  ;;  %9772 = vrot.lane.b32.xlu0 %v18501_v18, %s12192_s8 }
0x10c7   : > { %v10183_v5 = vpop.permute.xlu0 %10182  ;;  %v10776_v27 = vpop.permute.xlu1 %10775 }
0x10c8   : > { %v17924_v56 = vsel %vm18502_vm7, %v10190_v8, %v10183_v5  ;;  %v17927_v31 = vsel %vm18503_vm5, %v10783_v46, %v10776_v27  ;;  %vm18520_vm7 = vmmov %vm18498_vm0 }
0x10c9   : > { %vm18521_vm5 = vmmov %vm18499_vm1 }
0x10ca   : > { %9565 = vrot.lane.b32.xlu1 %v18504_v14, %s12194_s0  ;;  %9776 = vrot.lane.b32.xlu0 %v18505_v26, %s12195_s30 }
0x10ce   : > { %9569 = vrot.lane.b32.xlu1 %v18506_v12, %s12192_s8  ;;  %9573 = vrot.lane.b32.xlu0 %v18507_v37, %s12195_s30  ;;  %s18537_s8 = sld [smem:[#allocation25_spill]]  ;;  %s11568_s30 = sshll.u32 %s12343_s29, 8 }
0x10cf   : > { %s11347_s23 = scalar_lea.hbm %s18539_s1, %s11568_s30  ;;  %s12211_s29 = smov [#allocation14]  }
0x10d0   : > { %v9948_v11 = vpop.permute.xlu1 %9947  ;;  %s12092_s17 = sshll.u32 %s12211_s29, 4  ;;  %s12093_s17 = int_to_ptr.vmem [resolvable:$false] %s12092_s17 }
0x10d1   : > { %v9974_v16 = vsel %vm3259_vm8, %v18510_v53, %v9948_v11  ;;  %s12094_s15 = scalar_lea.vmem %s12093_s17, 512  ;;  %p12095_p3 = scmp.lt.s32.totalorder %s11350_s20, %s12093_s17 }
0x10d2   : > { %11177 = vperm.xlu1 %11883, %v9323_v17   ;;  %3026 = vperm.xlu0 %11882, %v828_v24   ;;  %v18519_v17 = vcombine.low %v17749_v61, %v17744_v7  ;;  %p12096_p10 = scmp.lt.s32.totalorder %s12094_s15, %s12088_s5 }
0x10d4   : > { %v9952_v15 = vpop.permute.xlu1 %9951  ;;  %p18540_p5 = scmp.ne.s32.totalorder %s18537_s8, 0  ;;  %p12097_p7 = por %p12096_p10, %p12095_p3 }
0x10d5   : > { %v9975_v19 = vsel %vm1112_vm9, %v9974_v16, %v9952_v15 }
0x10d6   : > { %p12090_p9 = pnand %p12089_p2, %p18540_p5 }
0x10d8   : > { %v9956_v34 = vpop.permute.xlu1 %9955  ;;  %p12091_p6 = pneg %p12090_p9 }
0x10d9   : > { %v9976_v39 = vsel %vm18511_vm4, %v9975_v19, %v9956_v34  ;;  %vm18522_vm4 = vmmov %vm18518_vm2 }
0x10da   : > { %p12098_p0 = pnand %p12097_p7, %p12091_p6 }
0x10dc   : > { %v9960_v30 = vpop.permute.xlu1 %9959 }
0x10dd   : > { %v9977_v21 = vsel %vm1114_vm11, %v9976_v39, %v9960_v30 }
0x10e0   : > { %v9964_v4 = vpop.permute.xlu1 %9963  ;;  %v9753_v51 = vpop.permute.xlu0 %9752 }
0x10e1   : > { %v9978_v57 = vsel %vm18512_vm15, %v9977_v21, %v9964_v4  ;;  %v9779_v52 = vsel %vm3259_vm8, %v18513_v9, %v9753_v51  ;;  %v18523_v9 = vcombine.low %v17810_v50, %v17807_v20  ;;  %vm18524_vm15 = vmmov %vm18498_vm0 }
0x10e4   : > { %v9968_v28 = vpop.permute.xlu1 %9967  ;;  %v9757_v49 = vpop.permute.xlu0 %9756 }
0x10e5   : > { %v9979_v0 = vsel %vm1116_vm13, %v9978_v57, %v9968_v28  ;;  %v9780_v60 = vsel %vm1112_vm9, %v9779_v52, %v9757_v49 }
0x10e8   : > { %v9761_v45 = vpop.permute.xlu0 %9760  ;;  %v9769_v59 = vpop.permute.xlu1 %9768 }
0x10e9   : > { %v9781_v38 = vsel %vm18514_vm10, %v9780_v60, %v9761_v45  ;;  %vm18525_vm10 = vmmov %vm18499_vm1 }
0x10ec   : > { %v9765_v33 = vpop.permute.xlu0 %9764 }
0x10ed   : > { %v9782_v44 = vsel %vm1114_vm11, %v9781_v38, %v9765_v33 }
0x10ee   : > { %v17968_v29 = vsel %vm18515_vm6, %v9782_v44, %v9769_v59  ;;  %vm18526_vm6 = vmmov %vm18498_vm0 }
0x10f0   : > { %v11146_v2 = vpop.permute.xlu1 %11145  ;;  %v9972_v23 = vpop.permute.xlu0 %9971 }
0x10f1   : > { %v17971_v6 = vsel %vm18516_vm3, %v9979_v0, %v9972_v23  ;;  %vm18527_vm3 = vmmov %vm18518_vm2 }
0x10f4   : > { %v11150_v48 = vpop.permute.xlu1 %11149  ;;  %v11142_v13 = vpop.permute.xlu0 %11141 }
0x10f5   : > { %v11168_v36 = vsel %vm3259_vm8, %v18517_v47, %v11142_v13 }
0x10f6   : > { %v11169_v43 = vsel %vm1112_vm9, %v11168_v36, %v11146_v2 }
0x10f7   : > { %v11170_v8 = vsel %vm18498_vm0, %v11169_v43, %v11150_v48  ;;  %vm18528_vm0 = vmmov %vm18499_vm1 }
0x10f8   : > { %v11154_v62 = vpop.permute.xlu1 %11153 }
0x10f9   : > { %v11171_v1 = vsel %vm1114_vm11, %v11170_v8, %v11154_v62 }
0x1100   : > { %v10955_v54 = vpop.permute.xlu1 %10954  ;;  %v10947_v35 = vpop.permute.xlu0 %10946 }
0x1101   : > { %v10973_v24 = vsel %vm3259_vm8, %v18519_v17, %v10947_v35 }
0x1104   : > { %v11162_v40 = vpop.permute.xlu1 %11161  ;;  %v10951_v63 = vpop.permute.xlu0 %10950 }
0x1105   : > { %v10974_v11 = vsel %vm1112_vm9, %v10973_v24, %v10951_v63  ;;  %v9322_v63 = vld [vmem:[#allocation11] sm:$0xff] }
0x1106   : > { %v10975_v15 = vsel %vm18520_vm7, %v10974_v11, %v10955_v54 }
0x1108   : > { %v11158_v46 = vpop.permute.xlu0 %11157  ;;  %v11166_v5 = vpop.permute.xlu1 %11165 }
0x1109   : > { %v11172_v18 = vsel %vm18499_vm1, %v11171_v1, %v11158_v46  ;;  %vm18532_vm1 = vmmov %vm18518_vm2 }
0x110a   : > { %v11173_v27 = vsel %vm1116_vm13, %v11172_v18, %v11162_v40 }
0x110b   : > { %v11174_v10 = vsel %vm18518_vm2, %v11173_v27, %v11166_v5  ;;  %v18533_v5 = vld [vmem:[#allocation31_spill] sm:$0xff] }
0x110c   : > { %11726 = vmatpush3.msra.mxu0 %v11174_v10  ;;  %v10959_v25 = vpop.permute.xlu0 %10958  ;;  %v18534_v10 = vld [vmem:[#allocation53_spill] sm:$0xff] }
0x110d   : > { %11727 = vmatprep.subr.mxu0 %v18387_v41  ;;  %v10976_v19 = vsel %vm1114_vm11, %v10975_v15, %v10959_v25 }
0x1110   : > { %v10549_v14 = vpop.permute.xlu0 %10548 }
0x1111   : > { %v10575_v52 = vsel %vm3259_vm8, %v18523_v9, %v10549_v14 }
0x1114   : > { %v10963_v26 = vpop.permute.xlu0 %10962 }
0x1115   : > { %v10977_v34 = vsel %vm18521_vm5, %v10976_v19, %v10963_v26  ;;  %v18535_v26 = vld [vmem:[#allocation54_spill] sm:$0xff] }
0x1118   : > { %v10553_v12 = vpop.permute.xlu0 %10552 }
0x1119   : > { %v10576_v49 = vsel %vm1112_vm9, %v10575_v52, %v10553_v12 }
0x111c   : > { %v10967_v37 = vpop.permute.xlu0 %10966 }
0x111d   : > { %v10978_v30 = vsel %vm1116_vm13, %v10977_v34, %v10967_v37  ;;  %v18536_v37 = vld [vmem:[#allocation29_spill] sm:$0xff] }
0x1120   : > { %v10354_v53 = vpop.permute.xlu1 %10353  ;;  %v10557_v16 = vpop.permute.xlu0 %10556 }
0x1121   : > { %v10577_v60 = vsel %vm18524_vm15, %v10576_v49, %v10557_v16 }
0x1124   : > { %v10358_v39 = vpop.permute.xlu1 %10357  ;;  %v10971_v21 = vpop.permute.xlu0 %10970 }
0x1125   : > { %v10979_v4 = vsel %vm18522_vm4, %v10978_v30, %v10971_v21 }
0x1126   : > { %11728 = vmatpush3.msra.mxu0 %v10979_v4 }
0x1127   : > { %11729 = vmatprep.subr.mxu0 %v18387_v41 }
0x1128   : > { %v10362_v7 = vpop.permute.xlu1 %10361  ;;  %11730 = vmatpush3.msra.mxu0 %v17927_v31  ;;  %v10561_v61 = vpop.permute.xlu0 %10560  ;;  %v10380_v31 = vsel %vm3259_vm8, %v10344_v55, %v10354_v53  ;;  %vm18529_vm8 = vmmov %vm18518_vm2 }
0x1129   : > { %11731 = vmatprep.subr.mxu0 %v18387_v41  ;;  %v10578_v45 = vsel %vm1114_vm11, %v10577_v60, %v10561_v61  ;;  %v10381_v38 = vsel %vm1112_vm9, %v10380_v31, %v10358_v39  ;;  %vm18530_vm9 = vmmov %vm18518_vm2 }
0x112a   : > { %v10382_v50 = vsel %vm18526_vm6, %v10381_v38, %v10362_v7 }
0x112c   : > { %v10366_v51 = vpop.permute.xlu1 %10365  ;;  %v10565_v57 = vpop.permute.xlu0 %10564 }
0x112d   : > { %v10579_v59 = vsel %vm18525_vm10, %v10578_v45, %v10565_v57  ;;  %v10383_v2 = vsel %vm1114_vm11, %v10382_v50, %v10366_v51  ;;  %vm18531_vm11 = vmmov %vm18528_vm0 }
0x1130   : > { %v10370_v28 = vpop.permute.xlu1 %10369  ;;  %v10569_v0 = vpop.permute.xlu0 %10568 }
0x1131   : > { %v10580_v33 = vsel %vm1116_vm13, %v10579_v59, %v10569_v0  ;;  %v10384_v42 = vsel %vm18528_vm0, %v10383_v2, %v10370_v28 }
0x1134   : > { %v10374_v20 = vpop.permute.xlu1 %10373  ;;  %v10573_v44 = vpop.permute.xlu0 %10572 }
0x1135   : > { %v10581_v23 = vsel %vm18527_vm3, %v10580_v33, %v10573_v44  ;;  %v10385_v3 = vsel %vm1116_vm13, %v10384_v42, %v10374_v20 }
0x1136   : > { %11732 = vmatpush3.msra.mxu0 %v10581_v23 }
0x1137   : > { %11733 = vmatprep.subr.mxu0 %v18387_v41 }
0x1138   : > { %v10378_v55 = vpop.permute.xlu1 %10377  ;;  %v9773_v13 = vpop.permute.xlu0 %9772 }
0x1139   : > { %v10386_v48 = vsel %vm18529_vm8, %v10385_v3, %v10378_v55  ;;  %v9784_v36 = vsel %vm1116_vm13, %v17968_v29, %v9773_v13 }
0x113a   : > { %11734 = vmatpush3.msra.mxu0 %v10386_v48 }
0x113b   : > { %11735 = vmatprep.subr.mxu0 %v18387_v41 }
0x113c   : > { %v9566_v62 = vpop.permute.xlu1 %9565  ;;  %11736 = vmatpush3.msra.mxu0 %v17924_v56  ;;  %v9777_v47 = vpop.permute.xlu0 %9776 }
0x113d   : > { %11737 = vmatprep.subr.mxu0 %v18387_v41  ;;  %v9785_v54 = vsel %vm18530_vm9, %v9784_v36, %v9777_v47  ;;  %v9580_v35 = vsel %vm18531_vm11, %v17884_v22, %v9566_v62 }
0x113e   : > { %11738 = vmatpush3.msra.mxu0 %v17971_v6 }
0x113f   : > { %11739 = vmatprep.subr.mxu0 %v18387_v41 }
0x1140   : > { %v9570_v43 = vpop.permute.xlu1 %9569  ;;  %11740 = vmatpush3.msra.mxu0 %v9785_v54  ;;  %v9574_v56 = vpop.permute.xlu0 %9573 }
0x1141   : > { %v9581_v40 = vsel %vm1116_vm13, %v9580_v35, %v9570_v43  ;;  %11741 = vmatprep.subr.mxu0 %v18387_v41 }
0x1142   : > { %v9582_v8 = vsel %vm18532_vm1, %v9581_v40, %v9574_v56 }
0x1143   : > { %11742 = vmatpush3.msra.mxu0 %v9582_v8 }
0x1144   : > { %11744 = vmatmul.mubr.msk.f32.vlgmr.msra.gmra.mxu0 %vm7172_vm14, %v9322_v63 }
0x114d   : > { %v11178_v29 = vpop.permute.xlu1 %11177  ;;  %v3027_v18 = vpop.permute.xlu0 %3026 }
0x114e   : > { %v3106_v27 = vadd.f32 %v18533_v5, %v3027_v18  ;;  %v3108_v41 = vadd.f32 %v18534_v10, %v3027_v18 }
0x1150   : > { %v3110_v25 = vmax.f32 %v3106_v27, 0.0  ;;  %v3111_v14 = vmax.f32 %v3108_v41, 0.0 }
0x1152   : > { %v4394_v12 = vadd.f32 %v18535_v26, %v3110_v25  ;;  %v4395_v17 = vadd.f32 %v18536_v37, %v3111_v14 }
0x1154   : > { %v7321_v24 = vadd.f32 %v16499_v58, %v4394_v12  ;;  %v7322_v16 = vadd.f32 %v16501_v32, %v4395_v17 }
0x1204   : > { %v11249_v6 = vpop.f32.mrf.mxu0 }
0x1205   : > { %v11250_v1 = vadd.f32 %v11249_v6, %v11178_v29 }
0x1206   : > { %v11745_v46 = vpop.f32.mrf.mxu0 }
0x1207   : > { %v11253_v22 = vmax.f32 %v11250_v1, 0.0 }
0x1209   : > { %11558 = vmatmul.mubr.msk.f32.vlgmr.msra.gmra.mxu1 %vm1118_vm12, %v11253_v22 }
0x12c9   : > { %v11323_v11 = vpop.f32.mrf.mxu1 }
0x12ca   : > { %v11328_v53 = vadd.f32 %v11323_v11, %v7321_v24 }
0x12cb   : > { %v11325_v15 = vpop.f32.mrf.mxu1 }
0x12cc   : > { %v11330_v19 = vmul.f32 0.25, %v11328_v53  ;;  %v11329_v34 = vadd.f32 %v11325_v15, %v7322_v16 }
0x12ce   : > { %11332 = vst [vmem:[%s808_s3] sm:$0xff] %v11330_v19  ;;  %v11331_v39 = vmul.f32 0.25, %v11329_v34 }
0x12d0   : > { %11333 = vst [vmem:[%s808_s3 + $0x8] sm:$0xff] %v11331_v39 }
0x12d1   : > { %12101 = shalt.err (!%p12098_p0)
}
0x12d2   : > { %s12102_s4 = scalar_lea.hbm %s11347_s23, 256  ;;  %s12106_s0 = scalar_lea.hbm %s18539_s1, 512 }
0x12d3   : > { %p12103_p8 = scmp.ne.s32.totalorder %s11347_s23, %s12102_s4  ;;  %p12107_p1 = scmp.lt.s32.totalorder %s11347_s23, %s18539_s1 }
0x12d4   : > { %p12108_p4 = scmp.lt.s32.totalorder %s12106_s0, %s12102_s4 }
0x12d5   : > { %p12104_p11 = pnand %p12103_p8, %p18540_p5 }
0x12d6   : > { %p12109_p13 = por %p12108_p4, %p12107_p1 }
0x12d7   : > { %p12105_p12 = pneg %p12104_p11 }
0x12d9   : > { %p12110_p2 = pnand %p12109_p13, %p12105_p12 }
0x12db   : > { %12113 = shalt.err (!%p12110_p2)
}
0x12dc   : > { %11770 = dma.vmem_to_hbm [thread:$0]  (%p18540_p5), %s11350_s20, 256, %s11347_s23, %s11335_s14  }
0x12dd PF: > { %s18541_s30 = sld [smem:[#allocation21_spill]]  ;;  %p18544_p6 = scmp.ge.s32.totalorder %s12168_s27, 2 }
0x12de   : > { %s18542_s22 = sld [smem:[#allocation26_spill]] }
0x12e3   : > { %s11361_s3 = sand.u32 1, %s18541_s30  }
0x12e4   : > { %p18543_p9 = scmp.ne.s32.totalorder %s18542_s22, 0  ;;  %s11362_s16 = scalar_lea.sflag [#allocation4], %s11361_s3 }
0x12e6   : > { %p11796_p3 = pnand %p18544_p6, %p18543_p9 }
0x12e8   : > { %p11797_p10 = pneg %p11796_p3 }
0x12ea   : > { %12151 = dma.done.wait (%p11797_p10), %s11362_s16, 256  }
0x12eb   : > { %12153 = vsyncadd (%p11797_p10), %s11362_s16, 4294967040  ;;  %s18545_s27 = sld [smem:[#allocation23_spill]]  ;;  %s18548_s2 = smov %s12160_s25 }
0x12ec   : > { %s18546_s5 = sld [smem:[#allocation22_spill]] }
0x12ed   : > { %s18547_s26 = sld [smem:[#allocation24_spill]] }
0x12f1   : > { %p39_p7 = scmp.ge.s32.totalorder %s18545_s27, 4  }
0x12f2   : > { %s18549_s25 = smov %s18546_s5 }
0x12f3   :  { %41 = sbr.rel (!%p39_p7) target bundleno = 24 (0x18), region = 188 }
0x12f8   :  { %11367 = vsyncpa [#allocation3], 1 }
0x12f9   :  { %11369 = vsyncpa [#allocation3 + $0x1], 1 }
0x12fa   :  { %11370 = vsyncpa [#allocation6], 1 }
0x12fb   :  { %11372 = vsyncpa [#allocation6 + $0x1], 1 }
0x12fc   :  { %11373 = vsyncpa [#allocation9], 1 }
0x12fd   :  { %11374 = vsyncpa [#allocation12], 1 }
0x12fe   :  { %11375 = vsyncpa [#allocation4], 1 }
0x12ff   :  { %11377 = vsyncpa [#allocation4 + $0x1], 1 }

</bundles_post_ra>
